<compile_context>
chip_gen: v5e
topology: v5e:2x2
jax: 0.10.0
libtpu: 0.0.40
codegen_flags: <defaults>
</compile_context>

<pallas_src>
import functools
import math

import jax
import jax.numpy as jnp
from jax.experimental import pallas as pl
from jax.experimental.pallas import tpu as pltpu


def _fused_stack_kernel(x_ref,
                        ln1_g_ref, ln1_b_ref,
                        wqkv_ref, bqkv_ref,
                        wo_ref, bo_ref,
                        ln2_g_ref, ln2_b_ref,
                        w1_ref, b1_ref,
                        w2_ref, b2_ref,
                        o_ref,
                        *, num_heads, num_layers):
    """One layer-step. Grid = (batch_blocks, num_recurrences * num_layers).

    x_ref / o_ref : (Bt, S, D). o_ref is the VMEM-resident residual stream.
    Weight refs   : full L-stacked arrays, resident in VMEM for the whole call;
                    the layer is selected with a dynamic first-axis index.
    """
    t = pl.program_id(1)
    layer = t % num_layers            # dynamic layer index into resident weights

    # Initialise the resident residual stream from the input on the first step.
    @pl.when(t == 0)
    def _init():
        o_ref[...] = x_ref[...]

    Bt, S, D = o_ref.shape
    M = Bt * S
    H = num_heads
    Dh = D // H
    cdt = jnp.bfloat16                # MXU compute dtype
    eps = 1e-5
    scale = 1.0 / math.sqrt(Dh)

    # Residual stream in f32, batch folded into rows.
    x = o_ref[...].reshape(M, D).astype(jnp.float32)

    def layer_norm(y, g, b):
        mu = jnp.mean(y, axis=-1, keepdims=True)
        var = jnp.mean(jnp.square(y - mu), axis=-1, keepdims=True)
        return (y - mu) * jax.lax.rsqrt(var + eps) * g + b

    # ---------------- Attention sub-block ----------------
    xn = layer_norm(x, ln1_g_ref[layer], ln1_b_ref[layer])              # (M, D) f32
    qkv = jnp.dot(xn.astype(cdt), wqkv_ref[layer],
                  preferred_element_type=jnp.float32) + bqkv_ref[layer]  # (M, 3D) f32

    def split_heads(y2d):
        # (M, D) -> (H*Bt, S, Dh), z = h*Bt + b
        parts = [y2d[:, h * Dh:(h + 1) * Dh].reshape(Bt, S, Dh) for h in range(H)]
        return jnp.concatenate(parts, axis=0).astype(cdt)

    q = split_heads(qkv[:, 0 * D:1 * D])                                 # (H*Bt, S, Dh)
    k = split_heads(qkv[:, 1 * D:2 * D])
    v = split_heads(qkv[:, 2 * D:3 * D])

    # Head-batched attention: one batched matmul per contraction.
    s = jnp.einsum('zqd,zkd->zqk', q, k,
                   preferred_element_type=jnp.float32) * scale          # (H*Bt, S, S)
    s = s - jnp.max(s, axis=-1, keepdims=True)
    p = jnp.exp(s)
    p = p / jnp.sum(p, axis=-1, keepdims=True)                          # exact softmax
    ctx = jnp.einsum('zqk,zkd->zqd', p.astype(cdt), v,
                     preferred_element_type=jnp.float32)                # (H*Bt, S, Dh)

    # Merge heads back along features: (H*Bt, S, Dh) -> (M, D)
    attn = jnp.concatenate(
        [ctx[h * Bt:(h + 1) * Bt].reshape(M, Dh) for h in range(H)], axis=-1)

    attn_out = jnp.dot(attn.astype(cdt), wo_ref[layer],
                       preferred_element_type=jnp.float32) + bo_ref[layer]
    x = x + attn_out

    # ---------------- Feed-forward sub-block ----------------
    xn2 = layer_norm(x, ln2_g_ref[layer], ln2_b_ref[layer])
    h1 = jnp.dot(xn2.astype(cdt), w1_ref[layer],
                 preferred_element_type=jnp.float32) + b1_ref[layer]     # (M, Dff)
    # tanh-approx GELU (EUP path); ~1e-3 from nn.GELU()'s exact erf form.
    c0 = math.sqrt(2.0 / math.pi)
    h1 = 0.5 * h1 * (1.0 + jnp.tanh(c0 * (h1 + 0.044715 * h1 * h1 * h1)))
    ff = jnp.dot(h1.astype(cdt), w2_ref[layer],
                 preferred_element_type=jnp.float32) + b2_ref[layer]     # (M, D)
    x = x + ff

    # Write back the resident residual stream (flushed to HBM once per block).
    o_ref[...] = x.reshape(Bt, S, D).astype(o_ref.dtype)


def recurrent_stack_block(x, params, num_heads, num_recurrences,
                          batch_block=None, vmem_limit_bytes=None):
    """x: (B, S, D) float32. params: layer-stacked, pre-transposed weights."""
    B, S, D = x.shape
    L = params["wqkv"].shape[0]
    Dff = params["w1"].shape[2]
    # v5e/v6e: one big batch block amortises weight fetch; on v7x pass
    # batch_block = B // 2 so grid[0] >= 2 feeds both TensorCores.
    Bt = B if batch_block is None else batch_block
    assert B % Bt == 0, "batch must be divisible by batch_block"
    assert D % num_heads == 0, "hidden_dim must be divisible by num_heads"

    n_steps = num_recurrences * L
    grid = (B // Bt, n_steps)

    # Resident parameter: full stacked array as one block, constant index_map
    # -> fetched from HBM exactly once per pallas_call.
    def resident(shape):
        zeros = (0,) * len(shape)
        return pl.BlockSpec(tuple(shape), lambda b, t: zeros)

    if vmem_limit_bytes is None:
        bf16, f32 = 2, 4
        w_bytes = L * (3 * D * D + D * D + 2 * D * Dff) * bf16       # stacked weights
        p_bytes = L * (4 * D + 3 * D + Dff + 2 * D) * f32            # LN params + biases
        a_bytes = 4 * Bt * S * D * f32                               # x + out buffers
        t_bytes = (Bt * S * 3 * D                                    # qkv
                   + 3 * Bt * S * D                                  # q, k, v
                   + 2 * num_heads * Bt * S * S                      # scores + probs
                   + Bt * S * Dff                                    # h1
                   + 4 * Bt * S * D) * f32                           # misc f32 temps
        est = 2 * w_bytes + 2 * p_bytes + a_bytes + 2 * t_bytes      # 2x buffering margin
        vmem_limit_bytes = int(min(100 * 1024 * 1024,
                                   max(16 * 1024 * 1024, est)))

    kernel = functools.partial(_fused_stack_kernel,
                               num_heads=num_heads, num_layers=L)

    act_spec = pl.BlockSpec((Bt, S, D), lambda b, t: (b, 0, 0))

    return pl.pallas_call(
        kernel,
        out_shape=jax.ShapeDtypeStruct((B, S, D), x.dtype),
        grid_spec=pltpu.PrefetchScalarGridSpec(
            num_scalar_prefetch=0,
            grid=grid,
            in_specs=[
                act_spec,                              # x (read once per batch block)
                resident(params["ln1_g"].shape),       # (L, 1, D)
                resident(params["ln1_b"].shape),       # (L, 1, D)
                resident(params["wqkv"].shape),        # (L, D, 3D) bf16
                resident(params["bqkv"].shape),        # (L, 1, 3D)
                resident(params["wo"].shape),          # (L, D, D) bf16
                resident(params["bo"].shape),          # (L, 1, D)
                resident(params["ln2_g"].shape),       # (L, 1, D)
                resident(params["ln2_b"].shape),       # (L, 1, D)
                resident(params["w1"].shape),          # (L, D, Dff) bf16
                resident(params["b1"].shape),          # (L, 1, Dff)
                resident(params["w2"].shape),          # (L, Dff, D) bf16
                resident(params["b2"].shape),          # (L, 1, D)
            ],
            out_specs=pl.BlockSpec((Bt, S, D), lambda b, t: (b, 0, 0)),
        ),
        input_output_aliases={0: 0},                   # update activation in place
        compiler_params=pltpu.CompilerParams(
            dimension_semantics=("parallel", "arbitrary"),
            vmem_limit_bytes=int(vmem_limit_bytes)),
    )(x,
      params["ln1_g"], params["ln1_b"],
      params["wqkv"], params["bqkv"],
      params["wo"], params["bo"],
      params["ln2_g"], params["ln2_b"],
      params["w1"], params["b1"],
      params["w2"], params["b2"])


def init_stacked_params(key, num_layers, hidden_dim, ff_mult):
    """Layer-stacked params. Linear weights pre-transposed to (in, out), bf16."""
    D, L = hidden_dim, num_layers
    Dff = ff_mult * D
    ks = jax.random.split(key, 4)
    std = 0.02
    wdt = jnp.bfloat16
    return {
        "ln1_g": jnp.ones((L, 1, D), jnp.float32),
        "ln1_b": jnp.zeros((L, 1, D), jnp.float32),
        # PyTorch in_proj_weight is (3D, D); stored transposed (D, 3D).
        "wqkv": (std * jax.random.normal(ks[0], (L, D, 3 * D))).astype(wdt),
        "bqkv": jnp.zeros((L, 1, 3 * D), jnp.float32),
        # out_proj.weight is (D, D); stored transposed.
        "wo": (std * jax.random.normal(ks[1], (L, D, D))).astype(wdt),
        "bo": jnp.zeros((L, 1, D), jnp.float32),
        "ln2_g": jnp.ones((L, 1, D), jnp.float32),
        "ln2_b": jnp.zeros((L, 1, D), jnp.float32),
        # ff: Linear(D, Dff) weight (Dff, D) -> transposed (D, Dff)
        "w1": (std * jax.random.normal(ks[2], (L, D, Dff))).astype(wdt),
        "b1": jnp.zeros((L, 1, Dff), jnp.float32),
        "w2": (std * jax.random.normal(ks[3], (L, Dff, D))).astype(wdt),
        "b2": jnp.zeros((L, 1, D), jnp.float32),
    }


if __name__ == "__main__":
    # Small TPU-friendly shapes; seq chosen so M = B*S = 128 (MXU-aligned rows).
    batch = 2
    seq = 64
    hidden_dim = 128
    num_heads = 4          # hidden_dim divisible by num_heads
    ff_mult = 4
    num_layers = 2
    num_recurrences = 2

    root = jax.random.PRNGKey(0)
    k_x, k_p = jax.random.split(root)
    x = jax.random.normal(k_x, (batch, seq, hidden_dim), jnp.float32)
    params = init_stacked_params(k_p, num_layers, hidden_dim, ff_mult)

    fwd = jax.jit(functools.partial(recurrent_stack_block,
                                    num_heads=num_heads,
                                    num_recurrences=num_recurrences))
    out = jax.block_until_ready(fwd(x, params))

    assert out.shape == (batch, seq, hidden_dim)
    assert bool(jnp.all(jnp.isfinite(out)))
    print("KERNEL_OK")
</pallas_src>

<mosaic_0001>
module attributes {stable_mosaic.version = 11 : i64} {
  func.func @_fused_stack_kernel(%arg0: i32, %arg1: i32, %arg2: memref<2x64x128xf32, #tpu.memory_space<vmem>>, %arg3: memref<2x1x128xf32, #tpu.memory_space<vmem>>, %arg4: memref<2x1x128xf32, #tpu.memory_space<vmem>>, %arg5: memref<2x128x384xbf16, #tpu.memory_space<vmem>>, %arg6: memref<2x1x384xf32, #tpu.memory_space<vmem>>, %arg7: memref<2x128x128xbf16, #tpu.memory_space<vmem>>, %arg8: memref<2x1x128xf32, #tpu.memory_space<vmem>>, %arg9: memref<2x1x128xf32, #tpu.memory_space<vmem>>, %arg10: memref<2x1x128xf32, #tpu.memory_space<vmem>>, %arg11: memref<2x128x512xbf16, #tpu.memory_space<vmem>>, %arg12: memref<2x1x512xf32, #tpu.memory_space<vmem>>, %arg13: memref<2x512x128xbf16, #tpu.memory_space<vmem>>, %arg14: memref<2x1x128xf32, #tpu.memory_space<vmem>>, %arg15: memref<2x64x128xf32, #tpu.memory_space<vmem>>) attributes {dimension_semantics = [#tpu.dimension_semantics<parallel>, #tpu.dimension_semantics<arbitrary>], iteration_bounds = array<i64: 1, 4>, scalar_prefetch = 0 : i64, scratch_operands = 0 : i64, tpu.core_type = #tpu.core_type<tc>, window_params = [{transform_indices = @transform_0, window_bounds = array<i64: 2, 64, 128>}, {pipeline_mode = #tpu.pipeline_mode<synchronous>, transform_indices = @transform_1, window_bounds = array<i64: 2, 1, 128>}, {pipeline_mode = #tpu.pipeline_mode<synchronous>, transform_indices = @transform_2, window_bounds = array<i64: 2, 1, 128>}, {pipeline_mode = #tpu.pipeline_mode<synchronous>, transform_indices = @transform_3, window_bounds = array<i64: 2, 128, 384>}, {pipeline_mode = #tpu.pipeline_mode<synchronous>, transform_indices = @transform_4, window_bounds = array<i64: 2, 1, 384>}, {pipeline_mode = #tpu.pipeline_mode<synchronous>, transform_indices = @transform_5, window_bounds = array<i64: 2, 128, 128>}, {pipeline_mode = #tpu.pipeline_mode<synchronous>, transform_indices = @transform_6, window_bounds = array<i64: 2, 1, 128>}, {pipeline_mode = #tpu.pipeline_mode<synchronous>, transform_indices = @transform_7, window_bounds = array<i64: 2, 1, 128>}, {pipeline_mode = #tpu.pipeline_mode<synchronous>, transform_indices = @transform_8, window_bounds = array<i64: 2, 1, 128>}, {pipeline_mode = #tpu.pipeline_mode<synchronous>, transform_indices = @transform_9, window_bounds = array<i64: 2, 128, 512>}, {pipeline_mode = #tpu.pipeline_mode<synchronous>, transform_indices = @transform_10, window_bounds = array<i64: 2, 1, 512>}, {pipeline_mode = #tpu.pipeline_mode<synchronous>, transform_indices = @transform_11, window_bounds = array<i64: 2, 512, 128>}, {pipeline_mode = #tpu.pipeline_mode<synchronous>, transform_indices = @transform_12, window_bounds = array<i64: 2, 1, 128>}, {transform_indices = @transform_13, window_bounds = array<i64: 2, 64, 128>}]} {
    %c2_i32 = arith.constant 2 : i32
    %c0_i32 = arith.constant 0 : i32
    %0 = arith.cmpi eq, %c2_i32, %c0_i32 : i32
    %c1_i32 = arith.constant 1 : i32
    %1 = arith.select %0, %c1_i32, %c2_i32 : i32
    %2 = arith.remsi %arg1, %1 : i32
    %c0_i32_0 = arith.constant 0 : i32
    %3 = arith.cmpi ne, %2, %c0_i32_0 : i32
    %c0_i32_1 = arith.constant 0 : i32
    %4 = arith.cmpi slt, %2, %c0_i32_1 : i32
    %c0_i32_2 = arith.constant 0 : i32
    %5 = arith.cmpi slt, %1, %c0_i32_2 : i32
    %6 = arith.xori %4, %5 : i1
    %7 = arith.andi %6, %3 : i1
    %8 = arith.addi %2, %1 : i32
    %9 = arith.select %7, %8, %2 : i32
    %c0_i32_3 = arith.constant 0 : i32
    %10 = arith.cmpi eq, %arg1, %c0_i32_3 : i32
    %11 = arith.extui %10 : i1 to i32
    %c0_i32_4 = arith.constant 0 : i32
    %12 = arith.cmpi ne, %11, %c0_i32_4 : i32
    scf.if %12 {
      %c0_56 = arith.constant 0 : index
      %c0_57 = arith.constant 0 : index
      %c0_58 = arith.constant 0 : index
      %184 = vector.load %arg2[%c0_56, %c0_57, %c0_58] : memref<2x64x128xf32, #tpu.memory_space<vmem>>, vector<2x64x128xf32>
      %c0_59 = arith.constant 0 : index
      %c0_60 = arith.constant 0 : index
      %c0_61 = arith.constant 0 : index
      %185 = vector.load %arg15[%c0_59, %c0_60, %c0_61] : memref<2x64x128xf32, #tpu.memory_space<vmem>>, vector<2x64x128xf32>
      tpu.vector_store %arg15[%c0_59, %c0_60, %c0_61], %184 {strides = array<i32>} : memref<2x64x128xf32, #tpu.memory_space<vmem>>, vector<2x64x128xf32>,
    } else {
    }
    %c0 = arith.constant 0 : index
    %c0_5 = arith.constant 0 : index
    %c0_6 = arith.constant 0 : index
    %13 = vector.load %arg15[%c0, %c0_5, %c0_6] : memref<2x64x128xf32, #tpu.memory_space<vmem>>, vector<2x64x128xf32>
    %14 = vector.shape_cast %13 : vector<2x64x128xf32> to vector<128x128xf32>
    %15 = arith.index_cast %9 : i32 to index
    %c0_7 = arith.constant 0 : index
    %c0_8 = arith.constant 0 : index
    %16 = vector.load %arg3[%15, %c0_7, %c0_8] : memref<2x1x128xf32, #tpu.memory_space<vmem>>, vector<1x1x128xf32>
    %17 = vector.shape_cast %16 : vector<1x1x128xf32> to vector<1x128xf32>
    %18 = arith.index_cast %9 : i32 to index
    %c0_9 = arith.constant 0 : index
    %c0_10 = arith.constant 0 : index
    %19 = vector.load %arg4[%18, %c0_9, %c0_10] : memref<2x1x128xf32, #tpu.memory_space<vmem>>, vector<1x1x128xf32>
    %20 = vector.shape_cast %19 : vector<1x1x128xf32> to vector<1x128xf32>
    %cst = arith.constant dense<0.000000e+00> : vector<128xf32>
    %21 = vector.multi_reduction <add>, %14, %cst [1] : vector<128x128xf32> to vector<128xf32>
    %22 = vector.shape_cast %21 : vector<128xf32> to vector<128x1xf32>
    %cst_11 = arith.constant 1.280000e+02 : f32
    %23 = vector.broadcast %cst_11 : f32 to vector<128x1xf32>
    %24 = arith.divf %22, %23 : vector<128x1xf32>
    %25 = vector.broadcast %24 : vector<128x1xf32> to vector<128x128xf32>
    %26 = arith.subf %14, %25 : vector<128x128xf32>
    %27 = arith.mulf %26, %26 : vector<128x128xf32>
    %cst_12 = arith.constant dense<0.000000e+00> : vector<128xf32>
    %28 = vector.multi_reduction <add>, %27, %cst_12 [1] : vector<128x128xf32> to vector<128xf32>
    %29 = vector.shape_cast %28 : vector<128xf32> to vector<128x1xf32>
    %cst_13 = arith.constant 1.280000e+02 : f32
    %30 = vector.broadcast %cst_13 : f32 to vector<128x1xf32>
    %31 = arith.divf %29, %30 : vector<128x1xf32>
    %32 = vector.broadcast %24 : vector<128x1xf32> to vector<128x128xf32>
    %33 = arith.subf %14, %32 : vector<128x128xf32>
    %cst_14 = arith.constant 9.99999974E-6 : f32
    %34 = vector.broadcast %cst_14 : f32 to vector<128x1xf32>
    %35 = arith.addf %31, %34 : vector<128x1xf32>
    %36 = math.rsqrt %35 : vector<128x1xf32>
    %37 = vector.broadcast %36 : vector<128x1xf32> to vector<128x128xf32>
    %38 = arith.mulf %33, %37 : vector<128x128xf32>
    %39 = vector.broadcast %17 : vector<1x128xf32> to vector<128x128xf32>
    %40 = arith.mulf %38, %39 : vector<128x128xf32>
    %41 = vector.broadcast %20 : vector<1x128xf32> to vector<128x128xf32>
    %42 = arith.addf %40, %41 : vector<128x128xf32>
    %43 = arith.truncf %42 : vector<128x128xf32> to vector<128x128xbf16>
    %44 = arith.index_cast %9 : i32 to index
    %c0_15 = arith.constant 0 : index
    %c0_16 = arith.constant 0 : index
    %45 = vector.load %arg5[%44, %c0_15, %c0_16] : memref<2x128x384xbf16, #tpu.memory_space<vmem>>, vector<1x128x384xbf16>
    %46 = vector.shape_cast %45 : vector<1x128x384xbf16> to vector<128x384xbf16>
    %cst_17 = arith.constant dense<0.000000e+00> : vector<128x384xf32>
    %47 = tpu.matmul %43, %46, %cst_17 {dimension_numbers = #tpu.dot_dimension_numbers<[1], [0], [0], [1], [0, 0, 1, 1], [], []>} : vector<128x128xbf16>, vector<128x384xbf16>, vector<128x384xf32> -> vector<128x384xf32>
    %48 = arith.index_cast %9 : i32 to index
    %c0_18 = arith.constant 0 : index
    %c0_19 = arith.constant 0 : index
    %49 = vector.load %arg6[%48, %c0_18, %c0_19] : memref<2x1x384xf32, #tpu.memory_space<vmem>>, vector<1x1x384xf32>
    %50 = vector.shape_cast %49 : vector<1x1x384xf32> to vector<1x384xf32>
    %51 = vector.broadcast %50 : vector<1x384xf32> to vector<128x384xf32>
    %52 = arith.addf %47, %51 : vector<128x384xf32>
    %53 = vector.extract_strided_slice %52 {offsets = [0, 0], sizes = [128, 128], strides = [1, 1]} : vector<128x384xf32> to vector<128x128xf32>
    %54 = vector.extract_strided_slice %53 {offsets = [0, 0], sizes = [128, 32], strides = [1, 1]} : vector<128x128xf32> to vector<128x32xf32>
    %55 = vector.shape_cast %54 : vector<128x32xf32> to vector<2x64x32xf32>
    %56 = vector.extract_strided_slice %53 {offsets = [0, 32], sizes = [128, 32], strides = [1, 1]} : vector<128x128xf32> to vector<128x32xf32>
    %57 = vector.shape_cast %56 : vector<128x32xf32> to vector<2x64x32xf32>
    %58 = vector.extract_strided_slice %53 {offsets = [0, 64], sizes = [128, 32], strides = [1, 1]} : vector<128x128xf32> to vector<128x32xf32>
    %59 = vector.shape_cast %58 : vector<128x32xf32> to vector<2x64x32xf32>
    %60 = vector.extract_strided_slice %53 {offsets = [0, 96], sizes = [128, 32], strides = [1, 1]} : vector<128x128xf32> to vector<128x32xf32>
    %61 = vector.shape_cast %60 : vector<128x32xf32> to vector<2x64x32xf32>
    %62 = tpu.concatenate %55, %57, %59, %61 in 0 : vector<2x64x32xf32>, vector<2x64x32xf32>, vector<2x64x32xf32>, vector<2x64x32xf32> -> vector<8x64x32xf32>
    %63 = arith.truncf %62 : vector<8x64x32xf32> to vector<8x64x32xbf16>
    %64 = vector.extract_strided_slice %52 {offsets = [0, 128], sizes = [128, 128], strides = [1, 1]} : vector<128x384xf32> to vector<128x128xf32>
    %65 = vector.extract_strided_slice %64 {offsets = [0, 0], sizes = [128, 32], strides = [1, 1]} : vector<128x128xf32> to vector<128x32xf32>
    %66 = vector.shape_cast %65 : vector<128x32xf32> to vector<2x64x32xf32>
    %67 = vector.extract_strided_slice %64 {offsets = [0, 32], sizes = [128, 32], strides = [1, 1]} : vector<128x128xf32> to vector<128x32xf32>
    %68 = vector.shape_cast %67 : vector<128x32xf32> to vector<2x64x32xf32>
    %69 = vector.extract_strided_slice %64 {offsets = [0, 64], sizes = [128, 32], strides = [1, 1]} : vector<128x128xf32> to vector<128x32xf32>
    %70 = vector.shape_cast %69 : vector<128x32xf32> to vector<2x64x32xf32>
    %71 = vector.extract_strided_slice %64 {offsets = [0, 96], sizes = [128, 32], strides = [1, 1]} : vector<128x128xf32> to vector<128x32xf32>
    %72 = vector.shape_cast %71 : vector<128x32xf32> to vector<2x64x32xf32>
    %73 = tpu.concatenate %66, %68, %70, %72 in 0 : vector<2x64x32xf32>, vector<2x64x32xf32>, vector<2x64x32xf32>, vector<2x64x32xf32> -> vector<8x64x32xf32>
    %74 = arith.truncf %73 : vector<8x64x32xf32> to vector<8x64x32xbf16>
    %75 = vector.extract_strided_slice %52 {offsets = [0, 256], sizes = [128, 128], strides = [1, 1]} : vector<128x384xf32> to vector<128x128xf32>
    %76 = vector.extract_strided_slice %75 {offsets = [0, 0], sizes = [128, 32], strides = [1, 1]} : vector<128x128xf32> to vector<128x32xf32>
    %77 = vector.shape_cast %76 : vector<128x32xf32> to vector<2x64x32xf32>
    %78 = vector.extract_strided_slice %75 {offsets = [0, 32], sizes = [128, 32], strides = [1, 1]} : vector<128x128xf32> to vector<128x32xf32>
    %79 = vector.shape_cast %78 : vector<128x32xf32> to vector<2x64x32xf32>
    %80 = vector.extract_strided_slice %75 {offsets = [0, 64], sizes = [128, 32], strides = [1, 1]} : vector<128x128xf32> to vector<128x32xf32>
    %81 = vector.shape_cast %80 : vector<128x32xf32> to vector<2x64x32xf32>
    %82 = vector.extract_strided_slice %75 {offsets = [0, 96], sizes = [128, 32], strides = [1, 1]} : vector<128x128xf32> to vector<128x32xf32>
    %83 = vector.shape_cast %82 : vector<128x32xf32> to vector<2x64x32xf32>
    %84 = tpu.concatenate %77, %79, %81, %83 in 0 : vector<2x64x32xf32>, vector<2x64x32xf32>, vector<2x64x32xf32>, vector<2x64x32xf32> -> vector<8x64x32xf32>
    %85 = arith.truncf %84 : vector<8x64x32xf32> to vector<8x64x32xbf16>
    "tpu.trace_start"() <{level = 10 : i32, message = "zqd,zkd->zqk"}> : () -> ()
    %cst_20 = arith.constant dense<0.000000e+00> : vector<8x64x64xf32>
    %86 = tpu.matmul %63, %74, %cst_20 {dimension_numbers = #tpu.dot_dimension_numbers<[2], [2], [1], [1], [0, 0, 0, 1, 1, 1], [0], [0]>} : vector<8x64x32xbf16>, vector<8x64x32xbf16>, vector<8x64x64xf32> -> vector<8x64x64xf32>
    "tpu.trace_stop"() : () -> ()
    %cst_21 = arith.constant 0.176776692 : f32
    %87 = vector.broadcast %cst_21 : f32 to vector<8x64x64xf32>
    %88 = arith.mulf %86, %87 : vector<8x64x64xf32>
    %cst_22 = arith.constant dense<0xFF800000> : vector<8x64xf32>
    %89 = vector.multi_reduction <maximumf>, %88, %cst_22 [2] : vector<8x64x64xf32> to vector<8x64xf32>
    %90 = vector.shape_cast %89 : vector<8x64xf32> to vector<8x64x1xf32>
    %91 = vector.broadcast %90 : vector<8x64x1xf32> to vector<8x64x64xf32>
    %92 = arith.subf %88, %91 : vector<8x64x64xf32>
    %93 = math.exp %92 : vector<8x64x64xf32>
    %cst_23 = arith.constant dense<0.000000e+00> : vector<8x64xf32>
    %94 = vector.multi_reduction <add>, %93, %cst_23 [2] : vector<8x64x64xf32> to vector<8x64xf32>
    %95 = vector.shape_cast %94 : vector<8x64xf32> to vector<8x64x1xf32>
    %96 = vector.broadcast %95 : vector<8x64x1xf32> to vector<8x64x64xf32>
    %97 = arith.divf %93, %96 : vector<8x64x64xf32>
    %98 = arith.truncf %97 : vector<8x64x64xf32> to vector<8x64x64xbf16>
    "tpu.trace_start"() <{level = 10 : i32, message = "zqk,zkd->zqd"}> : () -> ()
    %cst_24 = arith.constant dense<0.000000e+00> : vector<8x64x32xf32>
    %99 = tpu.matmul %98, %85, %cst_24 {dimension_numbers = #tpu.dot_dimension_numbers<[2], [1], [1], [2], [0, 0, 0, 1, 1, 2], [0], [0]>} : vector<8x64x64xbf16>, vector<8x64x32xbf16>, vector<8x64x32xf32> -> vector<8x64x32xf32>
    "tpu.trace_stop"() : () -> ()
    %100 = vector.extract_strided_slice %99 {offsets = [0, 0, 0], sizes = [2, 64, 32], strides = [1, 1, 1]} : vector<8x64x32xf32> to vector<2x64x32xf32>
    %101 = vector.shape_cast %100 : vector<2x64x32xf32> to vector<128x32xf32>
    %102 = vector.extract_strided_slice %99 {offsets = [2, 0, 0], sizes = [2, 64, 32], strides = [1, 1, 1]} : vector<8x64x32xf32> to vector<2x64x32xf32>
    %103 = vector.shape_cast %102 : vector<2x64x32xf32> to vector<128x32xf32>
    %104 = vector.extract_strided_slice %99 {offsets = [4, 0, 0], sizes = [2, 64, 32], strides = [1, 1, 1]} : vector<8x64x32xf32> to vector<2x64x32xf32>
    %105 = vector.shape_cast %104 : vector<2x64x32xf32> to vector<128x32xf32>
    %106 = vector.extract_strided_slice %99 {offsets = [6, 0, 0], sizes = [2, 64, 32], strides = [1, 1, 1]} : vector<8x64x32xf32> to vector<2x64x32xf32>
    %107 = vector.shape_cast %106 : vector<2x64x32xf32> to vector<128x32xf32>
    %108 = tpu.concatenate %101, %103, %105, %107 in 1 : vector<128x32xf32>, vector<128x32xf32>, vector<128x32xf32>, vector<128x32xf32> -> vector<128x128xf32>
    %109 = arith.truncf %108 : vector<128x128xf32> to vector<128x128xbf16>
    %110 = arith.index_cast %9 : i32 to index
    %c0_25 = arith.constant 0 : index
    %c0_26 = arith.constant 0 : index
    %111 = vector.load %arg7[%110, %c0_25, %c0_26] : memref<2x128x128xbf16, #tpu.memory_space<vmem>>, vector<1x128x128xbf16>
    %112 = vector.shape_cast %111 : vector<1x128x128xbf16> to vector<128x128xbf16>
    %cst_27 = arith.constant dense<0.000000e+00> : vector<128x128xf32>
    %113 = tpu.matmul %109, %112, %cst_27 {dimension_numbers = #tpu.dot_dimension_numbers<[1], [0], [0], [1], [0, 0, 1, 1], [], []>} : vector<128x128xbf16>, vector<128x128xbf16>, vector<128x128xf32> -> vector<128x128xf32>
    %114 = arith.index_cast %9 : i32 to index
    %c0_28 = arith.constant 0 : index
    %c0_29 = arith.constant 0 : index
    %115 = vector.load %arg8[%114, %c0_28, %c0_29] : memref<2x1x128xf32, #tpu.memory_space<vmem>>, vector<1x1x128xf32>
    %116 = vector.shape_cast %115 : vector<1x1x128xf32> to vector<1x128xf32>
    %117 = vector.broadcast %116 : vector<1x128xf32> to vector<128x128xf32>
    %118 = arith.addf %113, %117 : vector<128x128xf32>
    %119 = arith.addf %14, %118 : vector<128x128xf32>
    %120 = arith.index_cast %9 : i32 to index
    %c0_30 = arith.constant 0 : index
    %c0_31 = arith.constant 0 : index
    %121 = vector.load %arg9[%120, %c0_30, %c0_31] : memref<2x1x128xf32, #tpu.memory_space<vmem>>, vector<1x1x128xf32>
    %122 = vector.shape_cast %121 : vector<1x1x128xf32> to vector<1x128xf32>
    %123 = arith.index_cast %9 : i32 to index
    %c0_32 = arith.constant 0 : index
    %c0_33 = arith.constant 0 : index
    %124 = vector.load %arg10[%123, %c0_32, %c0_33] : memref<2x1x128xf32, #tpu.memory_space<vmem>>, vector<1x1x128xf32>
    %125 = vector.shape_cast %124 : vector<1x1x128xf32> to vector<1x128xf32>
    %cst_34 = arith.constant dense<0.000000e+00> : vector<128xf32>
    %126 = vector.multi_reduction <add>, %119, %cst_34 [1] : vector<128x128xf32> to vector<128xf32>
    %127 = vector.shape_cast %126 : vector<128xf32> to vector<128x1xf32>
    %cst_35 = arith.constant 1.280000e+02 : f32
    %128 = vector.broadcast %cst_35 : f32 to vector<128x1xf32>
    %129 = arith.divf %127, %128 : vector<128x1xf32>
    %130 = vector.broadcast %129 : vector<128x1xf32> to vector<128x128xf32>
    %131 = arith.subf %119, %130 : vector<128x128xf32>
    %132 = arith.mulf %131, %131 : vector<128x128xf32>
    %cst_36 = arith.constant dense<0.000000e+00> : vector<128xf32>
    %133 = vector.multi_reduction <add>, %132, %cst_36 [1] : vector<128x128xf32> to vector<128xf32>
    %134 = vector.shape_cast %133 : vector<128xf32> to vector<128x1xf32>
    %cst_37 = arith.constant 1.280000e+02 : f32
    %135 = vector.broadcast %cst_37 : f32 to vector<128x1xf32>
    %136 = arith.divf %134, %135 : vector<128x1xf32>
    %137 = vector.broadcast %129 : vector<128x1xf32> to vector<128x128xf32>
    %138 = arith.subf %119, %137 : vector<128x128xf32>
    %cst_38 = arith.constant 9.99999974E-6 : f32
    %139 = vector.broadcast %cst_38 : f32 to vector<128x1xf32>
    %140 = arith.addf %136, %139 : vector<128x1xf32>
    %141 = math.rsqrt %140 : vector<128x1xf32>
    %142 = vector.broadcast %141 : vector<128x1xf32> to vector<128x128xf32>
    %143 = arith.mulf %138, %142 : vector<128x128xf32>
    %144 = vector.broadcast %122 : vector<1x128xf32> to vector<128x128xf32>
    %145 = arith.mulf %143, %144 : vector<128x128xf32>
    %146 = vector.broadcast %125 : vector<1x128xf32> to vector<128x128xf32>
    %147 = arith.addf %145, %146 : vector<128x128xf32>
    %148 = arith.truncf %147 : vector<128x128xf32> to vector<128x128xbf16>
    %149 = arith.index_cast %9 : i32 to index
    %c0_39 = arith.constant 0 : index
    %c0_40 = arith.constant 0 : index
    %150 = vector.load %arg11[%149, %c0_39, %c0_40] : memref<2x128x512xbf16, #tpu.memory_space<vmem>>, vector<1x128x512xbf16>
    %151 = vector.shape_cast %150 : vector<1x128x512xbf16> to vector<128x512xbf16>
    %cst_41 = arith.constant dense<0.000000e+00> : vector<128x512xf32>
    %152 = tpu.matmul %148, %151, %cst_41 {dimension_numbers = #tpu.dot_dimension_numbers<[1], [0], [0], [1], [0, 0, 1, 1], [], []>} : vector<128x128xbf16>, vector<128x512xbf16>, vector<128x512xf32> -> vector<128x512xf32>
    %153 = arith.index_cast %9 : i32 to index
    %c0_42 = arith.constant 0 : index
    %c0_43 = arith.constant 0 : index
    %154 = vector.load %arg12[%153, %c0_42, %c0_43] : memref<2x1x512xf32, #tpu.memory_space<vmem>>, vector<1x1x512xf32>
    %155 = vector.shape_cast %154 : vector<1x1x512xf32> to vector<1x512xf32>
    %156 = vector.broadcast %155 : vector<1x512xf32> to vector<128x512xf32>
    %157 = arith.addf %152, %156 : vector<128x512xf32>
    %cst_44 = arith.constant 5.000000e-01 : f32
    %158 = vector.broadcast %cst_44 : f32 to vector<128x512xf32>
    %159 = arith.mulf %158, %157 : vector<128x512xf32>
    %cst_45 = arith.constant 4.471500e-02 : f32
    %160 = vector.broadcast %cst_45 : f32 to vector<128x512xf32>
    %161 = arith.mulf %160, %157 : vector<128x512xf32>
    %162 = arith.mulf %161, %157 : vector<128x512xf32>
    %163 = arith.mulf %162, %157 : vector<128x512xf32>
    %164 = arith.addf %157, %163 : vector<128x512xf32>
    %cst_46 = arith.constant 0.797884583 : f32
    %165 = vector.broadcast %cst_46 : f32 to vector<128x512xf32>
    %166 = arith.mulf %165, %164 : vector<128x512xf32>
    %167 = math.tanh %166 : vector<128x512xf32>
    %cst_47 = arith.constant 1.000000e+00 : f32
    %168 = vector.broadcast %cst_47 : f32 to vector<128x512xf32>
    %169 = arith.addf %168, %167 : vector<128x512xf32>
    %170 = arith.mulf %159, %169 : vector<128x512xf32>
    %171 = arith.truncf %170 : vector<128x512xf32> to vector<128x512xbf16>
    %172 = arith.index_cast %9 : i32 to index
    %c0_48 = arith.constant 0 : index
    %c0_49 = arith.constant 0 : index
    %173 = vector.load %arg13[%172, %c0_48, %c0_49] : memref<2x512x128xbf16, #tpu.memory_space<vmem>>, vector<1x512x128xbf16>
    %174 = vector.shape_cast %173 : vector<1x512x128xbf16> to vector<512x128xbf16>
    %cst_50 = arith.constant dense<0.000000e+00> : vector<128x128xf32>
    %175 = tpu.matmul %171, %174, %cst_50 {dimension_numbers = #tpu.dot_dimension_numbers<[1], [0], [0], [1], [0, 0, 1, 1], [], []>} : vector<128x512xbf16>, vector<512x128xbf16>, vector<128x128xf32> -> vector<128x128xf32>
    %176 = arith.index_cast %9 : i32 to index
    %c0_51 = arith.constant 0 : index
    %c0_52 = arith.constant 0 : index
    %177 = vector.load %arg14[%176, %c0_51, %c0_52] : memref<2x1x128xf32, #tpu.memory_space<vmem>>, vector<1x1x128xf32>
    %178 = vector.shape_cast %177 : vector<1x1x128xf32> to vector<1x128xf32>
    %179 = vector.broadcast %178 : vector<1x128xf32> to vector<128x128xf32>
    %180 = arith.addf %175, %179 : vector<128x128xf32>
    %181 = arith.addf %119, %180 : vector<128x128xf32>
    %182 = vector.shape_cast %181 : vector<128x128xf32> to vector<2x64x128xf32>
    %c0_53 = arith.constant 0 : index
    %c0_54 = arith.constant 0 : index
    %c0_55 = arith.constant 0 : index
    %183 = vector.load %arg15[%c0_53, %c0_54, %c0_55] : memref<2x64x128xf32, #tpu.memory_space<vmem>>, vector<2x64x128xf32>
    tpu.vector_store %arg15[%c0_53, %c0_54, %c0_55], %182 {strides = array<i32>} : memref<2x64x128xf32, #tpu.memory_space<vmem>>, vector<2x64x128xf32>,
    return
  }
  func.func @transform_0(%arg0: i32, %arg1: i32) -> (i32, i32, i32) {
    %c0_i32 = arith.constant 0 : i32
    %c0_i32_0 = arith.constant 0 : i32
    %c0_i32_1 = arith.constant 0 : i32
    return %arg0, %c0_i32, %c0_i32_0 : i32, i32, i32
  }
  func.func @transform_1(%arg0: i32, %arg1: i32) -> (i32, i32, i32) {
    %c0_i32 = arith.constant 0 : i32
    %c0_i32_0 = arith.constant 0 : i32
    %c0_i32_1 = arith.constant 0 : i32
    %c0_i32_2 = arith.constant 0 : i32
    return %c0_i32, %c0_i32_0, %c0_i32_1 : i32, i32, i32
  }
  func.func @transform_2(%arg0: i32, %arg1: i32) -> (i32, i32, i32) {
    %c0_i32 = arith.constant 0 : i32
    %c0_i32_0 = arith.constant 0 : i32
    %c0_i32_1 = arith.constant 0 : i32
    %c0_i32_2 = arith.constant 0 : i32
    return %c0_i32, %c0_i32_0, %c0_i32_1 : i32, i32, i32
  }
  func.func @transform_3(%arg0: i32, %arg1: i32) -> (i32, i32, i32) {
    %c0_i32 = arith.constant 0 : i32
    %c0_i32_0 = arith.constant 0 : i32
    %c0_i32_1 = arith.constant 0 : i32
    %c0_i32_2 = arith.constant 0 : i32
    return %c0_i32, %c0_i32_0, %c0_i32_1 : i32, i32, i32
  }
  func.func @transform_4(%arg0: i32, %arg1: i32) -> (i32, i32, i32) {
    %c0_i32 = arith.constant 0 : i32
    %c0_i32_0 = arith.constant 0 : i32
    %c0_i32_1 = arith.constant 0 : i32
    %c0_i32_2 = arith.constant 0 : i32
    return %c0_i32, %c0_i32_0, %c0_i32_1 : i32, i32, i32
  }
  func.func @transform_5(%arg0: i32, %arg1: i32) -> (i32, i32, i32) {
    %c0_i32 = arith.constant 0 : i32
    %c0_i32_0 = arith.constant 0 : i32
    %c0_i32_1 = arith.constant 0 : i32
    %c0_i32_2 = arith.constant 0 : i32
    return %c0_i32, %c0_i32_0, %c0_i32_1 : i32, i32, i32
  }
  func.func @transform_6(%arg0: i32, %arg1: i32) -> (i32, i32, i32) {
    %c0_i32 = arith.constant 0 : i32
    %c0_i32_0 = arith.constant 0 : i32
    %c0_i32_1 = arith.constant 0 : i32
    %c0_i32_2 = arith.constant 0 : i32
    return %c0_i32, %c0_i32_0, %c0_i32_1 : i32, i32, i32
  }
  func.func @transform_7(%arg0: i32, %arg1: i32) -> (i32, i32, i32) {
    %c0_i32 = arith.constant 0 : i32
    %c0_i32_0 = arith.constant 0 : i32
    %c0_i32_1 = arith.constant 0 : i32
    %c0_i32_2 = arith.constant 0 : i32
    return %c0_i32, %c0_i32_0, %c0_i32_1 : i32, i32, i32
  }
  func.func @transform_8(%arg0: i32, %arg1: i32) -> (i32, i32, i32) {
    %c0_i32 = arith.constant 0 : i32
    %c0_i32_0 = arith.constant 0 : i32
    %c0_i32_1 = arith.constant 0 : i32
    %c0_i32_2 = arith.constant 0 : i32
    return %c0_i32, %c0_i32_0, %c0_i32_1 : i32, i32, i32
  }
  func.func @transform_9(%arg0: i32, %arg1: i32) -> (i32, i32, i32) {
    %c0_i32 = arith.constant 0 : i32
    %c0_i32_0 = arith.constant 0 : i32
    %c0_i32_1 = arith.constant 0 : i32
    %c0_i32_2 = arith.constant 0 : i32
    return %c0_i32, %c0_i32_0, %c0_i32_1 : i32, i32, i32
  }
  func.func @transform_10(%arg0: i32, %arg1: i32) -> (i32, i32, i32) {
    %c0_i32 = arith.constant 0 : i32
    %c0_i32_0 = arith.constant 0 : i32
    %c0_i32_1 = arith.constant 0 : i32
    %c0_i32_2 = arith.constant 0 : i32
    return %c0_i32, %c0_i32_0, %c0_i32_1 : i32, i32, i32
  }
  func.func @transform_11(%arg0: i32, %arg1: i32) -> (i32, i32, i32) {
    %c0_i32 = arith.constant 0 : i32
    %c0_i32_0 = arith.constant 0 : i32
    %c0_i32_1 = arith.constant 0 : i32
    %c0_i32_2 = arith.constant 0 : i32
    return %c0_i32, %c0_i32_0, %c0_i32_1 : i32, i32, i32
  }
  func.func @transform_12(%arg0: i32, %arg1: i32) -> (i32, i32, i32) {
    %c0_i32 = arith.constant 0 : i32
    %c0_i32_0 = arith.constant 0 : i32
    %c0_i32_1 = arith.constant 0 : i32
    %c0_i32_2 = arith.constant 0 : i32
    return %c0_i32, %c0_i32_0, %c0_i32_1 : i32, i32, i32
  }
  func.func @transform_13(%arg0: i32, %arg1: i32) -> (i32, i32, i32) {
    %c0_i32 = arith.constant 0 : i32
    %c0_i32_0 = arith.constant 0 : i32
    %c0_i32_1 = arith.constant 0 : i32
    return %arg0, %c0_i32, %c0_i32_0 : i32, i32, i32
  }
}

</mosaic_0001>

<bundles_post_ra>
// kernel: recurrent_stack_block.1
= control target key start
LH: loop header
LB: loop body
LE: loop exit
PB: predicated region body
PF: predicated region fallthrough
CT: control target
= control target key end

     0   :  { %s14119_s0 = inlined_call_operand.hbm [shape: f32[2,64,128], index: 0, kind: input, shape index: {}, may-alias: {0,13}]   ;;  %s14120_s1 = inlined_call_operand.vmem [shape: f32[2,1,128], index: 1, kind: input, shape index: {}]   ;;  %s14121_s2 = inlined_call_operand.vmem [shape: f32[2,1,128], index: 2, kind: input, shape index: {}]   ;;  %s14122_s3 = inlined_call_operand.hbm [shape: bf16[2,128,384], index: 3, kind: input, shape index: {}]   ;;  %s14123_s4 = inlined_call_operand.vmem [shape: f32[2,1,384], index: 4, kind: input, shape index: {}]   ;;  %s14124_s5 = inlined_call_operand.vmem [shape: bf16[2,128,128], index: 5, kind: input, shape index: {}]   ;;  %s14125_s6 = inlined_call_operand.vmem [shape: f32[2,1,128], index: 6, kind: input, shape index: {}]   ;;  %s14126_s7 = inlined_call_operand.vmem [shape: f32[2,1,128], index: 7, kind: input, shape index: {}]   ;;  %s14127_s8 = inlined_call_operand.vmem [shape: f32[2,1,128], index: 8, kind: input, shape index: {}]   ;;  %s14128_s9 = inlined_call_operand.hbm [shape: bf16[2,128,512], index: 9, kind: input, shape index: {}]   ;;  %s14129_s10 = inlined_call_operand.vmem [shape: f32[2,1,512], index: 10, kind: input, shape index: {}]   ;;  %s14130_s11 = inlined_call_operand.hbm [shape: bf16[2,512,128], index: 11, kind: input, shape index: {}]   ;;  %s14131_s12 = inlined_call_operand.vmem [shape: f32[2,1,128], index: 12, kind: input, shape index: {}]   ;;  %s14132_s13 = inlined_call_operand.hbm [shape: f32[2,64,128], index: 13, kind: output, shape index: {}, may-alias: {0,13}]  }
   0x1   :  { %14231 = sst [smem:[#allocation53_spill]] %s14119_s0 }
   0x2   :  { %14232 = sst [smem:[#allocation54_spill]] %s14122_s3 }
   0x3   :  { %14233 = sst [smem:[#allocation55_spill]] %s14128_s9 }
   0x4   :  { %14234 = sst [smem:[#allocation56_spill]] %s14132_s13 }
   0x5   :  { %18 = vsyncpa [#allocation3], 0 }
   0x6   :  { %19 = vsyncpa [#allocation6], 0 }
   0x7   :  { %20 = vsyncpa [#allocation9], 0 }
   0x8   :  { %21 = vsyncpa [#allocation4], 0  ;;  %s9297_s25 = smov 0   ;;  %s9299_s26 = smov 0  }
   0x9   :  { %s9301_s27 = smov 0  }
   0xa LB: > { %14235 = sst [smem:[#allocation15_spill]] %s9202_s26  ;;  %s14133_s14 = sadd.s32 4294967295, %s9206_s27   ;;  %s9206_s27 = sphi %s9301_s27, %s27_s27   ;;  %s9202_s26 = sphi %s9299_s26, %s14608_s26   ;;  %s9198_s25 = sphi %s9297_s25, %s14607_s25  }
   0xb   : > { %14236 = sst [smem:[#allocation16_spill]] %s9206_s27  ;;  %p7399_p0 = scmp.ge.s32.totalorder %s9206_s27, 1 }
   0xc   : > { %s14237_s3 = sld [smem:[#allocation54_spill]]  ;;  %p348_p1 = scmp.lt.s32.totalorder %s9206_s27, 5 }
   0xd   : > { %p9320_p2 = scmp.eq.s32.totalorder %s14133_s14, 0  ;;  %s9208_s17 = smov [#allocation5]  }
   0xe   : > { %p9324_p3 = pnand %p7399_p0, %p348_p1  ;;  %s385_s18 = sshll.u32 %s9208_s17, 4  ;;  %s386_s18 = int_to_ptr.vmem [resolvable:$true] %s385_s18 }
   0xf   : > { %s36_s20 = sadd.s32 1, %s9202_s26  ;;  %s9209_s21 = smov 192  }
  0x10   : > { %p8000_p4 = pneg %p9324_p3  ;;  %p37_p6 = scmp.ge.s32.totalorder %s36_s20, 4 }
  0x11   : > { %s9210_s22 = smov 12   ;;  %s14241_s0 = sld [smem:[#allocation53_spill]] }
  0x12   : > { %s383_s30 = sshll.u32 %s14237_s3, 4  ;;  %p9332_p5 = pnand %p9320_p2, %p8000_p4  ;;  %s384_s30 = int_to_ptr.hbm [resolvable:$true] %s383_s30 }
  0x13   : > { %s14610_s20 = smov (%p37_p6, %s36_s20), 0  ;;  %s9211_s29 = smov [#allocation2]  }
  0x14   : > { %8006 = dma.hbm_to_vmem [thread:$0]  (!%p9332_p5), %s384_s30, 6144, %s386_s18, [#allocation6], %s9209_s21, %s9209_s21, %s9210_s22  }
  0x15   : > { %s365_s17 = sshll.u32 %s9211_s29, 4  ;;  %s14242_s9 = sld [smem:[#allocation55_spill]]  ;;  %s366_s17 = int_to_ptr.vmem [resolvable:$true] %s365_s17 }
  0x16   : > { %s9212_s13 = smov 128   ;;  %s9213_s27 = smov 8  }
  0x17   : > { %s363_s28 = sshll.u32 %s14241_s0, 4  ;;  %s9214_s30 = smov [#allocation7]   ;;  %s364_s28 = int_to_ptr.hbm [resolvable:$true] %s363_s28 }
  0x18   : > { %8003 = dma.hbm_to_vmem [thread:$0]  (!%p9332_p5), %s364_s28, 2048, %s366_s17, [#allocation3], %s9212_s13, %s9212_s13, %s9213_s27  }
  0x19   : > { %s414_s18 = sshll.u32 %s9214_s30, 4  ;;  %s9215_s21 = smov 256   ;;  %s415_s18 = int_to_ptr.vmem [resolvable:$true] %s414_s18 }
  0x1a   : > { %s9216_s22 = smov 16   ;;  %s429_s29 = sshll.u32 %s14130_s11, 4  ;;  %s430_s29 = int_to_ptr.hbm [resolvable:$true] %s429_s29 }
  0x1b   : > { %s412_s26 = sshll.u32 %s14242_s9, 4  ;;  %s9217_s3 = smov [#allocation8]   ;;  %s413_s26 = int_to_ptr.hbm [resolvable:$true] %s412_s26 }
  0x1c   : > { %8009 = dma.hbm_to_vmem [thread:$0]  (!%p9332_p5), %s413_s26, 8192, %s415_s18, [#allocation6], %s9215_s21, %s9215_s21, %s9216_s22  }
  0x1d   : > { %s431_s14 = sshll.u32 %s9217_s3, 4  ;;  %s9218_s0 = smov 64   ;;  %s432_s14 = int_to_ptr.vmem [resolvable:$true] %s431_s14 }
  0x1e   : > { %s9219_s9 = smov 4   ;;  %450 = sbr.rel (%p9324_p3) target bundleno = 2655 (0xa5f), region = 72 }
  0x1f   : > { %8012 = dma.hbm_to_vmem [thread:$0]  (!%p9332_p5), %s430_s29, 8192, %s432_s14, [#allocation9], %s9218_s0, %s9218_s0, %s9219_s9  }
  0x23   : > { %9181 = dma.done.wait (%p9320_p2), [#allocation3], 2048  }
  0x24   : > { %9183 = vsyncadd (%p9320_p2), [#allocation3], 4294965248 }
  0x25   : > { %9185 = dma.done.wait (%p9320_p2), [#allocation6], 14336  }
  0x26   : > { %9187 = vsyncadd (%p9320_p2), [#allocation6], 4294952960 }
  0x27   : > { %9189 = dma.done.wait (%p9320_p2), [#allocation9], 8192  }
  0x28   : > { %9191 = vsyncadd (%p9320_p2), [#allocation9], 4294959104  ;;  %p503_p7 = scmp.lt.s32.totalorder %s9198_s25, 0  ;;  %s504_s0 = ssub.s32 0, %s9198_s25 }
  0x29   : > { %s7409_s9 = smin.u32 %s9198_s25, %s504_s0  ;;  %p7412_p9 = scmp.ne.s32.totalorder %s9198_s25, 0 }
  0x2a   : > { %s506_s13 = sand.u32 1, %s7409_s9  }
  0x2b   : > { %s507_s26 = ssub.s32 0, %s506_s13  ;;  %518 = sbr.rel (%p7412_p9) target bundleno = 65 (0x41), region = 92 }
  0x2c   : > { %s14612_s26 = smov (!%p503_p7, %s507_s26), %s506_s13 }
  0x2d   : > { %p7411_p8 = scmp.lt.s32.totalorder %s14612_s26, 0  ;;  %s513_s27 = sadd.s32 2, %s14612_s26 }
  0x2f   : > { %s14614_s27 = smov (!%p7411_p8, %s513_s27), %s14612_s26 }
  0x30   : > { %v519_v0 = vld [vmem:[#allocation2] sm:$0xff]  ;;  %v520_v1 = vld [vmem:[#allocation2 + $0x8] sm:$0xff]  ;;  %v521_v2 = vld [vmem:[#allocation2 + $0x10] sm:$0xff] }
  0x31   : > { %535 = vst [vmem:[#allocation10] sm:$0xff] %v519_v0  ;;  %v522_v3 = vld [vmem:[#allocation2 + $0x18] sm:$0xff]  ;;  %v523_v4 = vld [vmem:[#allocation2 + $0x20] sm:$0xff]  ;;  %v524_v5 = vld [vmem:[#allocation2 + $0x28] sm:$0xff] }
  0x32   : > { %536 = vst [vmem:[#allocation10 + $0x8] sm:$0xff] %v520_v1  ;;  %v525_v6 = vld [vmem:[#allocation2 + $0x30] sm:$0xff]  ;;  %v526_v7 = vld [vmem:[#allocation2 + $0x38] sm:$0xff]  ;;  %v527_v8 = vld [vmem:[#allocation2 + $0x40] sm:$0xff] }
  0x33   : > { %537 = vst [vmem:[#allocation10 + $0x10] sm:$0xff] %v521_v2  ;;  %v528_v9 = vld [vmem:[#allocation2 + $0x48] sm:$0xff]  ;;  %v529_v10 = vld [vmem:[#allocation2 + $0x50] sm:$0xff]  ;;  %v530_v11 = vld [vmem:[#allocation2 + $0x58] sm:$0xff] }
  0x34   : > { %538 = vst [vmem:[#allocation10 + $0x18] sm:$0xff] %v522_v3  ;;  %v531_v12 = vld [vmem:[#allocation2 + $0x60] sm:$0xff]  ;;  %v532_v13 = vld [vmem:[#allocation2 + $0x68] sm:$0xff]  ;;  %v533_v14 = vld [vmem:[#allocation2 + $0x70] sm:$0xff] }
  0x35   : > { %539 = vst [vmem:[#allocation10 + $0x20] sm:$0xff] %v523_v4  ;;  %v534_v15 = vld [vmem:[#allocation2 + $0x78] sm:$0xff] }
  0x36   : > { %540 = vst [vmem:[#allocation10 + $0x28] sm:$0xff] %v524_v5 }
  0x37   : > { %541 = vst [vmem:[#allocation10 + $0x30] sm:$0xff] %v525_v6 }
  0x38   : > { %542 = vst [vmem:[#allocation10 + $0x38] sm:$0xff] %v526_v7 }
  0x39   : > { %543 = vst [vmem:[#allocation10 + $0x40] sm:$0xff] %v527_v8 }
  0x3a   : > { %544 = vst [vmem:[#allocation10 + $0x48] sm:$0xff] %v528_v9 }
  0x3b   : > { %545 = vst [vmem:[#allocation10 + $0x50] sm:$0xff] %v529_v10 }
  0x3c   : > { %546 = vst [vmem:[#allocation10 + $0x58] sm:$0xff] %v530_v11 }
  0x3d   : > { %547 = vst [vmem:[#allocation10 + $0x60] sm:$0xff] %v531_v12 }
  0x3e   : > { %548 = vst [vmem:[#allocation10 + $0x68] sm:$0xff] %v532_v13 }
  0x3f   : > { %549 = vst [vmem:[#allocation10 + $0x70] sm:$0xff] %v533_v14 }
  0x40   : > { %550 = vst [vmem:[#allocation10 + $0x78] sm:$0xff] %v534_v15 }
  0x41 PF: > { %v553_v16 = vld [vmem:[#allocation10 + $0x10] sm:$0xff]  ;;  %v551_v17 = vld [vmem:[#allocation10] sm:$0xff]  ;;  %v554_v19 = vld [vmem:[#allocation10 + $0x18] sm:$0xff]  ;;  %v9220_v25 = vmov 128.0   ;;  %s567_s16 = scalar_lea.vmem %s14120_s1, %s14614_s27  ;;  %s569_s17 = scalar_lea.vmem %s14121_s2, %s14614_s27 }
  0x42   : > { %575 = vadd.xlane.f32.xlu1 %v553_v16  ;;  %571 = vadd.xlane.f32.xlu0 %v551_v17  ;;  %v555_v18 = vld [vmem:[#allocation10 + $0x20] sm:$0xff]  ;;  %v552_v20 = vld [vmem:[#allocation10 + $0x8] sm:$0xff]  ;;  %v557_v22 = vld [vmem:[#allocation10 + $0x30] sm:$0xff]  ;;  %8552 = vrcp.f32 %v9220_v25  ;;  %s7872_s30 = smul.u32 192, %s14614_s27  ;;  %s9221_s9 = smov 64  }
  0x43   : > { %579 = vadd.xlane.f32.xlu2 %v555_v18  ;;  %v556_v21 = vld [vmem:[#allocation10 + $0x28] sm:$0xff]  ;;  %v9376_v23 = vld [vmem:[#allocation10 + $0x58] sm:$0xff]  ;;  %v9414_v52 = vld [vmem:[#allocation10 + $0x40] sm:$0xff]  ;;  %s979_s29 = smul.u32 3, %s14614_s27  ;;  %s9222_s13 = smov 96  }
  0x44   : > { %v9379_v24 = vld [vmem:[#allocation10 + $0x60] sm:$0xff]  ;;  %v9397_v46 = vld [vmem:[#allocation10 + $0x38] sm:$0xff]  ;;  %v9425_v56 = vld [vmem:[#allocation10 + $0x48] sm:$0xff]  ;;  %s9455_s18 = scalar_lea.vmem [#allocation5], %s7872_s30  ;;  %s9223_s26 = smov 32  }
  0x45   : > { %v9423_v54 = vld [vmem:[#allocation10 + $0x68] sm:$0xff]  ;;  %v9432_v59 = vld [vmem:[#allocation10 + $0x50] sm:$0xff]  ;;  %v7502_v11 = vld [vmem:[%s9455_s18 + $0xb4] sm:$0xf0]  ;;  %s980_s0 = scalar_lea.vmem %s14123_s4, %s979_s29  ;;  %s7897_s25 = sshll.u32 %s14614_s27, 6 }
  0x46   : > { %v9430_v58 = vld [vmem:[#allocation10 + $0x70] sm:$0xff]  ;;  %v7500_v7 = vld [vmem:[%s9455_s18 + $0xa8] sm:$0xf]  ;;  %v7894_v9 = vld [vmem:[%s9455_s18 + $0xac] sm:$0xf]  ;;  %s12695_s19 = scalar_lea.vmem %s14124_s5, %s7897_s25  ;;  %s5294_s30 = scalar_lea.vmem %s14125_s6, %s14614_s27 }
  0x47   : > { %v9441_v0 = vld [vmem:[#allocation10 + $0x78] sm:$0xff]  ;;  %v7895_v8 = vld [vmem:[%s9455_s18 + $0xb0] sm:$0xf0]  ;;  %v7508_v12 = vld [vmem:[%s9455_s18 + $0xb0] sm:$0xf]  ;;  %v7505_v14 = vor.u32 %v7894_v9, %v7502_v11  ;;  %s12826_s24 = scalar_lea.vmem %s14126_s7, %s14614_s27  ;;  %s12832_s14 = scalar_lea.vmem %s14127_s8, %s14614_s27 }
  0x48   : > { %v8553_v26 = vpop.eup %8552  ;;  %v7501_v10 = vor.u32 %v7895_v8, %v7500_v7  ;;  %v7896_v13 = vld [vmem:[%s9455_s18 + $0xb8] sm:$0xf0]  ;;  %v7879_v7 = vld [vmem:[%s9455_s18 + $0x34] sm:$0xf]  ;;  %v7442_v9 = vld [vmem:[%s9455_s18 + $0x3c] sm:$0xf0] }
  0x49   : > { %v604_v27 = vmul.f32 128.0, %v8553_v26  ;;  %vm608_vm0 = vweird.f32 %v8553_v26  ;;  %v7509_v15 = vor.u32 %v7896_v13, %v7508_v12  ;;  %1166 = vmatpush.bf16.msra.mxu1 %v7505_v14  ;;  %v7881_v11 = vld [vmem:[%s9455_s18 + $0x40] sm:$0xf0]  ;;  %v7445_v12 = vor.u32 %v7879_v7, %v7442_v9  ;;  %s9224_s21 = smov [#allocation10]   ;;  %s14603_s29 = sld [smem:[#allocation56_spill]] }
  0x4a   : > { %577 = vadd.xlane.f32.xlu1 %v554_v19  ;;  %573 = vadd.xlane.f32.xlu0 %v552_v20  ;;  %s7293_s22 = sshll.u32 %s9224_s21, 4  ;;  %s7294_s22 = int_to_ptr.vmem [resolvable:$true] %s7293_s22 }
  0x4b   : > { %581 = vadd.xlane.f32.xlu2 %v556_v21  ;;  %v605_v28 = vsub.f32 1.0, %v604_v27  ;;  %1117 = vmatpush.bf16.msra.mxu0 %v7501_v10  ;;  %v7889_v27 = vld [vmem:[%s9455_s18 + $0x80] sm:$0xf0]  ;;  %v7448_v10 = vld [vmem:[%s9455_s18 + $0x38] sm:$0xf] }
  0x4c   : > { %1215 = vmatpush.bf16.msra.mxu2 %v7509_v15  ;;  %7972 = vmatpush.bf16.msra.mxu3 %v7509_v15  ;;  %v7449_v13 = vor.u32 %v7881_v11, %v7448_v10  ;;  %v7428_v15 = vld [vmem:[%s9455_s18 + $0x18] sm:$0xf] }
  0x4d   : > { %v606_v29 = vmul.f32 %v8553_v26, %v605_v28  ;;  %v7888_v28 = vld [vmem:[%s9455_s18 + $0x7c] sm:$0xf] }
  0x4f   : > { %v607_v30 = vadd.f32 %v8553_v26, %v606_v29  ;;  %s7295_s3 = sshll.u32 %s14603_s29, 4  ;;  %s7296_s3 = int_to_ptr.hbm [resolvable:$true] %s7295_s3 }
  0x51   : > { %v9382_v31 = vsel %vm608_vm0, %v8553_v26, %v607_v30  ;;  %v7476_v26 = vld [vmem:[%s9455_s18 + $0x78] sm:$0xf]  ;;  %v7478_v30 = vld [vmem:[%s9455_s18 + $0x84] sm:$0xf0] }
  0x52   : > { %14243 = vst [vmem:[#allocation17_spill] sm:$0xff] %v9382_v31  ;;  %v7477_v29 = vor.u32 %v7889_v27, %v7476_v26 }
  0x53   : > { %583 = vadd.xlane.f32.xlu2 %v557_v22 }
  0x5b   : > { %593 = vadd.xlane.f32.xlu2 %v9376_v23 }
  0x63   : > { %595 = vadd.xlane.f32.xlu2 %v9379_v24 }
  0xb5   : > { %v576_v32 = vpop.xlane.xlu1 %575  ;;  %v572_v33 = vpop.xlane.xlu0 %571 }
  0xb6   : > { %v610_v34 = vmul.f32 %v9382_v31, %v572_v33  ;;  %v580_v37 = vpop.xlane.xlu2 %579  ;;  %v612_v45 = vmul.f32 %v9382_v31, %v576_v32  ;;  %v7484_v32 = vld [vmem:[%s9455_s18 + $0x80] sm:$0xf]  ;;  %v7890_v33 = vld [vmem:[%s9455_s18 + $0x88] sm:$0xf0] }
  0xb7   : > { %v614_v44 = vmul.f32 %v9382_v31, %v580_v37  ;;  %v7464_v37 = vld [vmem:[%s9455_s18 + $0x60] sm:$0xf] }
  0xb8   : > { %v9385_v35 = vsub.f32 %v551_v17, %v610_v34  ;;  %v9406_v50 = vsub.f32 %v553_v16, %v612_v45  ;;  %v7488_v16 = vld [vmem:[%s9455_s18 + $0x90] sm:$0xf]  ;;  %v7892_v17 = vld [vmem:[%s9455_s18 + $0x98] sm:$0xf0]  ;;  %v7481_v34 = vor.u32 %v7888_v28, %v7478_v30  ;;  %v7887_v45 = vld [vmem:[%s9455_s18 + $0x70] sm:$0xf0] }
  0xb9   : > { %v9404_v49 = vsub.f32 %v555_v18, %v614_v44  ;;  %v7891_v18 = vld [vmem:[%s9455_s18 + $0x94] sm:$0xf]  ;;  %v7472_v44 = vld [vmem:[%s9455_s18 + $0x68] sm:$0xf]  ;;  %v7416_v28 = vld [vmem:[%s9455_s18] sm:$0xf] }
  0xba   : > { %v642_v36 = vmul.f32 %v9385_v35, %v9385_v35  ;;  %v644_v53 = vmul.f32 %v9406_v50, %v9406_v50 }
  0xbb   : > { %v646_v51 = vmul.f32 %v9404_v49, %v9404_v49 }
  0xbc   : > { %658 = vadd.xlane.f32.xlu0 %v642_v36  ;;  %v7485_v36 = vor.u32 %v7890_v33, %v7484_v32  ;;  %v7873_v32 = vld [vmem:[%s9455_s18 + $0x4] sm:$0xf]  ;;  %v7418_v33 = vld [vmem:[%s9455_s18 + $0xc] sm:$0xf0] }
  0xbd   : > { %v578_v38 = vpop.xlane.xlu1 %577  ;;  %v574_v39 = vpop.xlane.xlu0 %573 }
  0xbe   : > { %v613_v40 = vmul.f32 %v9382_v31, %v578_v38  ;;  %v611_v41 = vmul.f32 %v9382_v31, %v574_v39  ;;  %v582_v55 = vpop.xlane.xlu2 %581  ;;  %v7886_v38 = vld [vmem:[%s9455_s18 + $0x68] sm:$0xf0]  ;;  %v7885_v39 = vld [vmem:[%s9455_s18 + $0x64] sm:$0xf] }
  0xbf   : > { %v615_v57 = vmul.f32 %v9382_v31, %v582_v55  ;;  %v7882_v55 = vld [vmem:[%s9455_s18 + $0x4c] sm:$0xf] }
  0xc0   : > { %v9391_v42 = vsub.f32 %v554_v19, %v613_v40  ;;  %v9393_v43 = vsub.f32 %v552_v20, %v611_v41  ;;  %v7489_v19 = vor.u32 %v7892_v17, %v7488_v16  ;;  %v7490_v20 = vld [vmem:[%s9455_s18 + $0x9c] sm:$0xf0]  ;;  %v7465_v40 = vor.u32 %v7886_v38, %v7464_v37  ;;  %v7466_v41 = vld [vmem:[%s9455_s18 + $0x6c] sm:$0xf0]  ;;  %v7877_v16 = vld [vmem:[%s9455_s18 + $0x20] sm:$0xf0] }
  0xc1   : > { %v9435_v61 = vsub.f32 %v556_v21, %v615_v57  ;;  %v7496_v21 = vld [vmem:[%s9455_s18 + $0x98] sm:$0xf]  ;;  %v7876_v17 = vld [vmem:[%s9455_s18 + $0x1c] sm:$0xf]  ;;  %v7875_v37 = vld [vmem:[%s9455_s18 + $0x10] sm:$0xf0] }
  0xc2   : > { %v645_v47 = vmul.f32 %v9391_v42, %v9391_v42  ;;  %v643_v48 = vmul.f32 %v9393_v43, %v9393_v43  ;;  %1118 = vmatpush.bf16.msra.mxu0 %v7489_v19  ;;  %v7429_v19 = vor.u32 %v7877_v16, %v7428_v15 }
  0xc3   : > { %v647_v62 = vmul.f32 %v9435_v61, %v9435_v61 }
  0xc4   : > { %664 = vadd.xlane.f32.xlu2 %v645_v47  ;;  %585 = vadd.xlane.f32.xlu0 %v9397_v46  ;;  %v7469_v47 = vor.u32 %v7885_v39, %v7466_v41 }
  0xc5   : > { %660 = vadd.xlane.f32.xlu1 %v643_v48  ;;  %v7473_v48 = vor.u32 %v7887_v45, %v7472_v44 }
  0xc6   : > { %v584_v60 = vpop.xlane.xlu2 %583  ;;  %1119 = vmatpush.bf16.msra.mxu0 %v7477_v29  ;;  %v7874_v29 = vld [vmem:[%s9455_s18 + $0x8] sm:$0xf0] }
  0xc7   : > { %v616_v63 = vmul.f32 %v9382_v31, %v584_v60  ;;  %v7454_v60 = vld [vmem:[%s9455_s18 + $0x54] sm:$0xf0]  ;;  %v7417_v30 = vor.u32 %v7874_v29, %v7416_v28 }
  0xc9   : > { %v9443_v1 = vsub.f32 %v557_v22, %v616_v63  ;;  %v7893_v22 = vld [vmem:[%s9455_s18 + $0xa0] sm:$0xf0]  ;;  %v7884_v63 = vld [vmem:[%s9455_s18 + $0x58] sm:$0xf0] }
  0xca   : > { %v7497_v25 = vor.u32 %v7893_v22, %v7496_v21  ;;  %1120 = vmatpush.bf16.msra.mxu0 %v7465_v40  ;;  %v7436_v21 = vld [vmem:[%s9455_s18 + $0x20] sm:$0xf]  ;;  %v7878_v22 = vld [vmem:[%s9455_s18 + $0x28] sm:$0xf0] }
  0xcb   : > { %v648_v3 = vmul.f32 %v9443_v1, %v9443_v1  ;;  %v7437_v26 = vor.u32 %v7878_v22, %v7436_v21 }
  0xcc   : > { %666 = vadd.xlane.f32.xlu2 %v646_v51  ;;  %587 = vadd.xlane.f32.xlu0 %v9414_v52  ;;  %v7452_v51 = vld [vmem:[%s9455_s18 + $0x48] sm:$0xf] }
  0xcd   : > { %662 = vadd.xlane.f32.xlu1 %v644_v53  ;;  %1216 = vmatpush.bf16.msra.mxu2 %v7497_v25  ;;  %v7883_v53 = vld [vmem:[%s9455_s18 + $0x50] sm:$0xf0] }
  0xce   : > { %v594_v2 = vpop.xlane.xlu2 %593  ;;  %7973 = vmatpush.bf16.msra.mxu3 %v7497_v25  ;;  %v7453_v57 = vor.u32 %v7883_v53, %v7452_v51 }
  0xcf   : > { %v621_v4 = vmul.f32 %v9382_v31, %v594_v2  ;;  %v7457_v2 = vor.u32 %v7882_v55, %v7454_v60 }
  0xd0   : > { %1121 = vmatpush.bf16.msra.mxu0 %v7453_v57 }
  0xd1   : > { %v9450_v5 = vsub.f32 %v9376_v23, %v621_v4  ;;  %v7493_v23 = vor.u32 %v7891_v18, %v7490_v20  ;;  %1217 = vmatpush.bf16.msra.mxu2 %v7485_v36  ;;  %v7440_v4 = vld [vmem:[%s9455_s18 + $0x30] sm:$0xf]  ;;  %v7430_v20 = vld [vmem:[%s9455_s18 + $0x24] sm:$0xf0] }
  0xd2   : > { %7974 = vmatpush.bf16.msra.mxu3 %v7485_v36  ;;  %v7433_v25 = vor.u32 %v7876_v17, %v7430_v20  ;;  %v7421_v36 = vor.u32 %v7873_v32, %v7418_v33  ;;  %v9552_v32 = vld [vmem:[%s567_s16] ss:$0 sm:$0xff] }
  0xd3   : > { %v653_v6 = vmul.f32 %v9450_v5, %v9450_v5  ;;  %1167 = vmatpush.bf16.msra.mxu1 %v7493_v23 }
  0xd4   : > { %597 = vadd.xlane.f32.xlu0 %v9423_v54 }
  0xd5   : > { %589 = vadd.xlane.f32.xlu1 %v9425_v56  ;;  %1218 = vmatpush.bf16.msra.mxu2 %v7473_v48 }
  0xd6   : > { %7975 = vmatpush.bf16.msra.mxu3 %v7473_v48  ;;  %v596_v14 = vpop.xlane.xlu2 %595 }
  0xd7   : > { %1168 = vmatpush.bf16.msra.mxu1 %v7481_v34  ;;  %v7424_v34 = vld [vmem:[%s9455_s18 + $0x8] sm:$0xf] }
  0xd8   : > { %v7425_v38 = vor.u32 %v7875_v37, %v7424_v34 }
  0xdb   : > { %1169 = vmatpush.bf16.msra.mxu1 %v7469_v47 }
  0xdc   : > { %599 = vadd.xlane.f32.xlu0 %v9430_v58 }
  0xdd   : > { %591 = vadd.xlane.f32.xlu1 %v9432_v59 }
  0xdf   : > { %1170 = vmatpush.bf16.msra.mxu1 %v7457_v2 }
  0xe3   : > { %1171 = vmatpush.bf16.msra.mxu1 %v7445_v12  ;;  %v622_v12 = vmul.f32 %v9382_v31, %v596_v14 }
  0xe4   : > { %668 = vadd.xlane.f32.xlu0 %v647_v62  ;;  %v7460_v62 = vld [vmem:[%s9455_s18 + $0x50] sm:$0xf] }
  0xe5   : > { %601 = vadd.xlane.f32.xlu1 %v9441_v0  ;;  %v9536_v20 = vsub.f32 %v9379_v24, %v622_v12 }
  0xe7   : > { %1172 = vmatpush.bf16.msra.mxu1 %v7433_v25  ;;  %v654_v24 = vmul.f32 %v9536_v20, %v9536_v20 }
  0xeb   : > { %1173 = vmatpush.bf16.msra.mxu1 %v7421_v36 }
  0xec   : > { %670 = vadd.xlane.f32.xlu0 %v648_v3  ;;  %v7461_v3 = vor.u32 %v7884_v63, %v7460_v62 }
  0xee   : > { %1219 = vmatpush.bf16.msra.mxu2 %v7461_v3  ;;  %7976 = vmatpush.bf16.msra.mxu3 %v7461_v3 }
  0xf2   : > { %1220 = vmatpush.bf16.msra.mxu2 %v7449_v13  ;;  %7977 = vmatpush.bf16.msra.mxu3 %v7449_v13 }
  0xf4   : > { %680 = vadd.xlane.f32.xlu0 %v653_v6  ;;  %v7880_v6 = vld [vmem:[%s9455_s18 + $0x38] sm:$0xf0] }
  0xf5   : > { %v7441_v8 = vor.u32 %v7880_v6, %v7440_v4 }
  0xf6   : > { %1221 = vmatpush.bf16.msra.mxu2 %v7437_v26  ;;  %7978 = vmatpush.bf16.msra.mxu3 %v7437_v26 }
  0xf7   : > { %1122 = vmatpush.bf16.msra.mxu0 %v7441_v8 }
  0xfa   : > { %1222 = vmatpush.bf16.msra.mxu2 %v7425_v38  ;;  %7979 = vmatpush.bf16.msra.mxu3 %v7425_v38 }
  0xfb   : > { %1123 = vmatpush.bf16.msra.mxu0 %v7429_v19 }
  0xff   : > { %1124 = vmatpush.bf16.msra.mxu0 %v7417_v30 }
 0x12f   : > { %v659_v18 = vpop.xlane.xlu0 %658 }
 0x130   : > { %v690_v23 = vmul.f32 %v659_v18, %v9382_v31 }
 0x132   : > { %v706_v27 = vadd.f32 1e-05, %v690_v23 }
 0x134   : > { %8554 = vrsqrt.f32 %v706_v27  ;;  %vm728_vm2 = vweird.f32 %v706_v27 }
 0x137   : > { %v665_v39 = vpop.xlane.xlu2 %664  ;;  %v586_v40 = vpop.xlane.xlu0 %585 }
 0x138   : > { %v693_v41 = vmul.f32 %v665_v39, %v9382_v31  ;;  %v661_v44 = vpop.xlane.xlu1 %660  ;;  %v617_v45 = vmul.f32 %v9382_v31, %v586_v40 }
 0x139   : > { %v691_v47 = vmul.f32 %v661_v44, %v9382_v31 }
 0x13a   : > { %v8555_v48 = vpop.eup %8554  ;;  %v9509_v51 = vadd.f32 1e-05, %v693_v41  ;;  %v9512_v53 = vsub.f32 %v9397_v46, %v617_v45  ;;  %v9564_v41 = vld [vmem:[%s569_s17] ss:$0 sm:$0xff]  ;;  %s6859_s17 = scalar_lea.vmem %s14131_s12, %s14614_s27 }
 0x13b   : > { %v723_v55 = vmul.f32 %v8555_v48, %v706_v27  ;;  %v707_v57 = vadd.f32 1e-05, %v691_v47  ;;  %vm729_vm1 = vweird.f32 %v8555_v48 }
 0x13c   : > { %8556 = vrsqrt.f32 %v9509_v51  ;;  %v649_v60 = vmul.f32 %v9512_v53, %v9512_v53  ;;  %vm730_vm3 = vmor %vm728_vm2, %vm729_vm1  ;;  %vm758_vm7 = vweird.f32 %v9509_v51 }
 0x13d   : > { %v724_v62 = vmul.f32 %v8555_v48, %v723_v55  ;;  %8558 = vrsqrt.f32 %v707_v57  ;;  %vm738_vm5 = vweird.f32 %v707_v57 }
 0x13e   : > { %672 = vadd.xlane.f32.xlu1 %v649_v60 }
 0x13f   : > { %v725_v63 = vmul.f32 0.5, %v724_v62  ;;  %v667_v2 = vpop.xlane.xlu2 %666  ;;  %v588_v3 = vpop.xlane.xlu0 %587 }
 0x140   : > { %v663_v4 = vpop.xlane.xlu1 %662  ;;  %v618_v6 = vmul.f32 %v9382_v31, %v588_v3  ;;  %v694_v9 = vmul.f32 %v667_v2, %v9382_v31 }
 0x141   : > { %v726_v7 = vsub.f32 1.5, %v725_v63  ;;  %v692_v46 = vmul.f32 %v663_v4, %v9382_v31 }
 0x142   : > { %v9519_v8 = vpop.eup %8556  ;;  %v9523_v10 = vsub.f32 %v9414_v52, %v618_v6  ;;  %v9531_v19 = vadd.f32 1e-05, %v694_v9 }
 0x143   : > { %v8559_v11 = vpop.eup %8558  ;;  %v9526_v13 = vadd.f32 1e-05, %v692_v46  ;;  %v727_v15 = vmul.f32 %v8555_v48, %v726_v7  ;;  %v753_v16 = vmul.f32 %v9519_v8, %v9509_v51  ;;  %vm759_vm8 = vweird.f32 %v9519_v8 }
 0x144   : > { %v733_v17 = vmul.f32 %v8559_v11, %v707_v57  ;;  %v650_v52 = vmul.f32 %v9523_v10, %v9523_v10  ;;  %vm739_vm4 = vweird.f32 %v8559_v11  ;;  %vm9585_vm10 = vmor %vm758_vm7, %vm759_vm8  ;;  %vm768_vm13 = vweird.f32 %v9531_v19 }
 0x145   : > { %8560 = vrsqrt.f32 %v9526_v13  ;;  %v731_v21 = vsel %vm730_vm3, %v8555_v48, %v727_v15  ;;  %v754_v22 = vmul.f32 %v9519_v8, %v753_v16  ;;  %vm740_vm6 = vmor %vm738_vm5, %vm739_vm4  ;;  %vm748_vm11 = vweird.f32 %v9526_v13 }
 0x146   : > { %v734_v18 = vmul.f32 %v8559_v11, %v733_v17  ;;  %674 = vadd.xlane.f32.xlu1 %v650_v52  ;;  %8562 = vrsqrt.f32 %v9531_v19  ;;  %v882_v30 = vmul.f32 %v731_v21, %v9385_v35 }
 0x147   : > { %v598_v14 = vpop.xlane.xlu0 %597  ;;  %v755_v33 = vmul.f32 0.5, %v754_v22 }
 0x148   : > { %v735_v23 = vmul.f32 0.5, %v734_v18  ;;  %v590_v25 = vpop.xlane.xlu1 %589  ;;  %v901_v40 = vmul.f32 %v9552_v32, %v882_v30  ;;  %v623_v62 = vmul.f32 %v9382_v31, %v598_v14 }
 0x149   : > { %v619_v26 = vmul.f32 %v9382_v31, %v590_v25  ;;  %v756_v45 = vsub.f32 1.5, %v755_v33 }
 0x14a   : > { %v736_v27 = vsub.f32 1.5, %v735_v23  ;;  %v920_v51 = vadd.f32 %v9564_v41, %v901_v40  ;;  %v9602_v16 = vsub.f32 %v9423_v54, %v623_v62 }
 0x14b   : > { %v8561_v28 = vpop.eup %8560  ;;  %v9542_v29 = vsub.f32 %v9425_v56, %v619_v26  ;;  %v757_v6 = vmul.f32 %v9519_v8, %v756_v45 }
 0x14c   : > { %v737_v34 = vmul.f32 %v8559_v11, %v736_v27  ;;  %v743_v36 = vmul.f32 %v8561_v28, %v9526_v13  ;;  %v9566_v44 = vpop.eup %8562  ;;  %vm749_vm9 = vweird.f32 %v8561_v28  ;;  %v655_v54 = vmul.f32 %v9602_v16, %v9602_v16 }
 0x14d   : > { %v651_v56 = vmul.f32 %v9542_v29, %v9542_v29  ;;  %v763_v2 = vmul.f32 %v9566_v44, %v9531_v19  ;;  %vm9592_vm12 = vmor %vm748_vm11, %vm749_vm9  ;;  %v761_v17 = vsel %vm9585_vm10, %v9519_v8, %v757_v6  ;;  %vm769_vm14 = vweird.f32 %v9566_v44 }
 0x14e   : > { %v741_v37 = vsel %vm740_vm6, %v8559_v11, %v737_v34  ;;  %v744_v38 = vmul.f32 %v8561_v28, %v743_v36  ;;  %682 = vadd.xlane.f32.xlu1 %v654_v24  ;;  %v885_v26 = vmul.f32 %v761_v17, %v9391_v42  ;;  %vm770_vm15 = vmor %vm768_vm13, %vm769_vm14 }
 0x14f   : > { %676 = vadd.xlane.f32.xlu2 %v651_v56  ;;  %v600_v39 = vpop.xlane.xlu0 %599  ;;  %v883_v35 = vmul.f32 %v741_v37, %v9393_v43  ;;  %v764_v15 = vmul.f32 %v9566_v44, %v763_v2 }
 0x150   : > { %v745_v47 = vmul.f32 0.5, %v744_v38  ;;  %v592_v48 = vpop.xlane.xlu1 %591  ;;  %v624_v55 = vmul.f32 %v9382_v31, %v600_v39 }
 0x151   : > { %v620_v43 = vmul.f32 %v9382_v31, %v592_v48  ;;  %v902_v57 = vmul.f32 %v9552_v32, %v883_v35  ;;  %v765_v23 = vmul.f32 0.5, %v764_v15 }
 0x152   : > { %v746_v60 = vsub.f32 1.5, %v745_v47  ;;  %v9575_v63 = vsub.f32 %v9430_v58, %v624_v55 }
 0x153   : > { %v9580_v3 = vsub.f32 %v9432_v59, %v620_v43  ;;  %v921_v4 = vadd.f32 %v9564_v41, %v902_v57 }
 0x154   : > { %v747_v46 = vmul.f32 %v8561_v28, %v746_v60  ;;  %v656_v58 = vmul.f32 %v9575_v63, %v9575_v63 }
 0x155   : > { %v652_v59 = vmul.f32 %v9580_v3, %v9580_v3  ;;  %v936_v11 = vpack.c.bf16 %v921_v4, %v920_v51 }
 0x156   : > { %v751_v12 = vsel %vm9592_vm12, %v8561_v28, %v747_v46  ;;  %686 = vadd.xlane.f32.xlu0 %v656_v58  ;;  %v766_v28 = vsub.f32 1.5, %v765_v23 }
 0x157   : > { %678 = vadd.xlane.f32.xlu2 %v652_v59  ;;  %1125 = vmatmul.bf16.vlgmr.msra.gmra.mxu0 %v936_v11  ;;  %v669_v13 = vpop.xlane.xlu0 %668  ;;  %v884_v21 = vmul.f32 %v751_v12, %v9406_v50  ;;  %v904_v50 = vmul.f32 %v9552_v32, %v885_v26 }
 0x158   : > { %1174 = vmatmul.bf16.vlgmr.msra.gmra.mxu1 %v936_v11  ;;  %1223 = vmatmul.bf16.vlgmr.msra.gmra.mxu2 %v936_v11  ;;  %v602_v18 = vpop.xlane.xlu1 %601  ;;  %v695_v52 = vmul.f32 %v669_v13, %v9382_v31  ;;  %v767_v42 = vmul.f32 %v9566_v44, %v766_v28 }
 0x159   : > { %v625_v14 = vmul.f32 %v9382_v31, %v602_v18  ;;  %v903_v27 = vmul.f32 %v9552_v32, %v884_v21  ;;  %v923_v33 = vadd.f32 %v9564_v41, %v904_v50 }
 0x15a   : > { %v711_v22 = vadd.f32 1e-05, %v695_v52  ;;  %v771_v56 = vsel %vm770_vm15, %v9566_v44, %v767_v42 }
 0x15b   : > { %v9611_v25 = vsub.f32 %v9441_v0, %v625_v14  ;;  %v922_v0 = vadd.f32 %v9564_v41, %v903_v27  ;;  %v886_v38 = vmul.f32 %v771_v56, %v9404_v49 }
 0x15c   : > { %8564 = vrsqrt.f32 %v711_v22  ;;  %vm778_vm0 = vweird.f32 %v711_v22 }
 0x15d   : > { %v657_v8 = vmul.f32 %v9611_v25, %v9611_v25  ;;  %v937_v36 = vpack.c.bf16 %v923_v33, %v922_v0  ;;  %v905_v45 = vmul.f32 %v9552_v32, %v886_v38 }
 0x15f   : > { %688 = vadd.xlane.f32.xlu1 %v657_v8  ;;  %684 = vadd.xlane.f32.xlu2 %v655_v54  ;;  %v924_v44 = vadd.f32 %v9564_v41, %v905_v45  ;;  %v671_v43 = vpop.xlane.xlu0 %670 }
 0x160   : > { %v696_v57 = vmul.f32 %v671_v43, %v9382_v31 }
 0x162   : > { %v8565_v24 = vpop.eup %8564  ;;  %v712_v49 = vadd.f32 1e-05, %v696_v57 }
 0x163   : > { %v773_v30 = vmul.f32 %v8565_v24, %v711_v22  ;;  %vm779_vm1 = vweird.f32 %v8565_v24 }
 0x164   : > { %vm780_vm2 = vmor %vm778_vm0, %vm779_vm1  ;;  %8566 = vrsqrt.f32 %v712_v49  ;;  %vm788_vm3 = vweird.f32 %v712_v49 }
 0x165   : > { %v774_v34 = vmul.f32 %v8565_v24, %v773_v30 }
 0x167   : > { %v775_v37 = vmul.f32 0.5, %v774_v34  ;;  %1130 = vmatmul.bf16.gmra.mxu0 %v937_v36  ;;  %v681_v4 = vpop.xlane.xlu0 %680 }
 0x168   : > { %1179 = vmatmul.bf16.gmra.mxu1 %v937_v36  ;;  %1228 = vmatmul.bf16.gmra.mxu2 %v937_v36  ;;  %v701_v46 = vmul.f32 %v681_v4, %v9382_v31 }
 0x169   : > { %v776_v19 = vsub.f32 1.5, %v775_v37 }
 0x16a   : > { %v8567_v60 = vpop.eup %8566  ;;  %v9635_v9 = vadd.f32 1e-05, %v701_v46 }
 0x16b   : > { %v777_v39 = vmul.f32 %v8565_v24, %v776_v19  ;;  %v783_v62 = vmul.f32 %v8567_v60, %v712_v49  ;;  %vm789_vm4 = vweird.f32 %v8567_v60 }
 0x16c   : > { %vm9638_vm5 = vmor %vm788_vm3, %vm789_vm4  ;;  %vm838_vm14 = vweird.f32 %v9635_v9 }
 0x16d   : > { %v781_v35 = vsel %vm780_vm2, %v8565_v24, %v777_v39  ;;  %v784_v2 = vmul.f32 %v8567_v60, %v783_v62 }
 0x16e   : > { %v887_v40 = vmul.f32 %v781_v35, %v9435_v61 }
 0x16f   : > { %v785_v7 = vmul.f32 0.5, %v784_v2 }
 0x170   : > { %v906_v47 = vmul.f32 %v9552_v32, %v887_v40 }
 0x171   : > { %v786_v58 = vsub.f32 1.5, %v785_v7 }
 0x172   : > { %v925_v48 = vadd.f32 %v9564_v41, %v906_v47 }
 0x173   : > { %v787_v13 = vmul.f32 %v8567_v60, %v786_v58 }
 0x174   : > { %v938_v55 = vpack.c.bf16 %v925_v48, %v924_v44 }
 0x175   : > { %v791_v21 = vsel %vm9638_vm5, %v8567_v60, %v787_v13 }
 0x176   : > { %v888_v50 = vmul.f32 %v791_v21, %v9443_v1 }
 0x177   : > { %1135 = vmatmul.bf16.gmra.mxu0 %v938_v55 }
 0x178   : > { %1184 = vmatmul.bf16.gmra.mxu1 %v938_v55  ;;  %1233 = vmatmul.bf16.gmra.mxu2 %v938_v55  ;;  %v907_v36 = vmul.f32 %v9552_v32, %v888_v50 }
 0x17a   : > { %v926_v44 = vadd.f32 %v9564_v41, %v907_v36 }
 0x1b1   : > { %v673_v61 = vpop.xlane.xlu1 %672 }
 0x1b2   : > { %v697_v51 = vmul.f32 %v673_v61, %v9382_v31 }
 0x1b4   : > { %v713_v6 = vadd.f32 1e-05, %v697_v51 }
 0x1b6   : > { %8568 = vrsqrt.f32 %v713_v6  ;;  %vm798_vm6 = vweird.f32 %v713_v6 }
 0x1b7   : > { %8570 = vrsqrt.f32 %v9635_v9 }
 0x1b9   : > { %v675_v59 = vpop.xlane.xlu1 %674 }
 0x1ba   : > { %v698_v12 = vmul.f32 %v675_v59, %v9382_v31 }
 0x1bc   : > { %v8569_v11 = vpop.eup %8568  ;;  %v714_v17 = vadd.f32 1e-05, %v698_v12 }
 0x1bd   : > { %v793_v15 = vmul.f32 %v8569_v11, %v713_v6  ;;  %vm799_vm7 = vweird.f32 %v8569_v11  ;;  %v9646_v26 = vpop.eup %8570 }
 0x1be   : > { %8572 = vrsqrt.f32 %v714_v17  ;;  %vm800_vm8 = vmor %vm798_vm6, %vm799_vm7  ;;  %v833_v30 = vmul.f32 %v9646_v26, %v9635_v9  ;;  %vm808_vm9 = vweird.f32 %v714_v17  ;;  %vm839_vm15 = vweird.f32 %v9646_v26 }
 0x1bf   : > { %v794_v52 = vmul.f32 %v8569_v11, %v793_v15  ;;  %v981_v15 = vld [vmem:[%s980_s0] sm:$0x7]  ;;  %vm9691_vm1 = vmor %vm838_vm14, %vm839_vm15  ;;  %s7906_s0 = sshll.u32 %s14614_s27, 8 }
 0x1c0   : > { %v834_v35 = vmul.f32 %v9646_v26, %v833_v30  ;;  %s13230_s16 = scalar_lea.vmem [#allocation8], %s7906_s0 }
 0x1c1   : > { %v795_v14 = vmul.f32 0.5, %v794_v52  ;;  %v683_v19 = vpop.xlane.xlu1 %682 }
 0x1c2   : > { %v677_v22 = vpop.xlane.xlu2 %676  ;;  %v702_v47 = vmul.f32 %v683_v19, %v9382_v31  ;;  %v835_v43 = vmul.f32 0.5, %v834_v35 }
 0x1c3   : > { %v796_v23 = vsub.f32 1.5, %v795_v14  ;;  %v699_v54 = vmul.f32 %v677_v22, %v9382_v31  ;;  %v9688_v22 = vperm.slane %v981_v15, 0 }
 0x1c4   : > { %v8573_v28 = vpop.eup %8572  ;;  %v9663_v60 = vadd.f32 1e-05, %v702_v47  ;;  %v836_v7 = vsub.f32 1.5, %v835_v43 }
 0x1c5   : > { %v797_v8 = vmul.f32 %v8569_v11, %v796_v23  ;;  %v715_v27 = vadd.f32 1e-05, %v699_v54  ;;  %v803_v24 = vmul.f32 %v8573_v28, %v714_v17  ;;  %vm809_vm10 = vweird.f32 %v8573_v28 }
 0x1c6   : > { %vm9666_vm11 = vmor %vm808_vm9, %vm809_vm10  ;;  %v837_v52 = vmul.f32 %v9646_v26, %v836_v7  ;;  %vm848_vm5 = vweird.f32 %v9663_v60 }
 0x1c7   : > { %v801_v0 = vsel %vm800_vm8, %v8569_v11, %v797_v8  ;;  %8574 = vrsqrt.f32 %v715_v27  ;;  %v804_v33 = vmul.f32 %v8573_v28, %v803_v24  ;;  %vm818_vm13 = vweird.f32 %v715_v27 }
 0x1c8   : > { %v889_v42 = vmul.f32 %v801_v0, %v9512_v53  ;;  %v9695_v8 = vperm.slane %v981_v15, 1 }
 0x1c9   : > { %v805_v37 = vmul.f32 0.5, %v804_v33  ;;  %v687_v21 = vpop.xlane.xlu0 %686 }
 0x1ca   : > { %v679_v34 = vpop.xlane.xlu2 %678  ;;  %v908_v56 = vmul.f32 %v9552_v32, %v889_v42 }
 0x1cb   : > { %v700_v38 = vmul.f32 %v679_v34, %v9382_v31  ;;  %v806_v53 = vsub.f32 1.5, %v805_v37  ;;  %v841_v34 = vsel %vm9691_vm1, %v9646_v26, %v837_v52  ;;  %vm1976_vm1 = vcmask 261120  }
 0x1cc   : > { %v927_v1 = vadd.f32 %v9564_v41, %v908_v56  ;;  %v893_v2 = vmul.f32 %v841_v34, %v9450_v5 }
 0x1cd   : > { %v8575_v39 = vpop.eup %8574  ;;  %v9657_v40 = vadd.f32 1e-05, %v700_v38  ;;  %v807_v57 = vmul.f32 %v8573_v28, %v806_v53 }
 0x1ce   : > { %v813_v45 = vmul.f32 %v8575_v39, %v715_v27  ;;  %v939_v55 = vpack.c.bf16 %v927_v1, %v926_v44  ;;  %vm819_vm12 = vweird.f32 %v8575_v39 }
 0x1cf   : > { %8576 = vrsqrt.f32 %v9657_v40  ;;  %v811_v46 = vsel %vm9666_vm11, %v8573_v28, %v807_v57  ;;  %vm820_vm0 = vmor %vm818_vm13, %vm819_vm12  ;;  %vm828_vm2 = vweird.f32 %v9657_v40 }
 0x1d0   : > { %v814_v48 = vmul.f32 %v8575_v39, %v813_v45  ;;  %1140 = vmatmul.bf16.gmra.mxu0 %v939_v55  ;;  %1189 = vmatmul.bf16.gmra.mxu1 %v939_v55  ;;  %8578 = vrsqrt.f32 %v9663_v60  ;;  %v890_v18 = vmul.f32 %v811_v46, %v9523_v10 }
 0x1d1   : > { %1238 = vmatmul.bf16.gmra.mxu2 %v939_v55 }
 0x1d2   : > { %v815_v49 = vmul.f32 0.5, %v814_v48  ;;  %v685_v62 = vpop.xlane.xlu2 %684  ;;  %v689_v54 = vpop.xlane.xlu1 %688  ;;  %v909_v0 = vmul.f32 %v9552_v32, %v890_v18 }
 0x1d3   : > { %v703_v61 = vmul.f32 %v685_v62, %v9382_v31  ;;  %v705_v36 = vmul.f32 %v689_v54, %v9382_v31  ;;  %v9736_v62 = vperm.slane %v981_v15, 2 }
 0x1d4   : > { %v816_v51 = vsub.f32 1.5, %v815_v49  ;;  %v1126_v4 = vpop.f32.mrf.mxu0 }
 0x1d5   : > { %v9673_v6 = vpop.eup %8576  ;;  %v1175_v58 = vpop.f32.mrf.mxu1  ;;  %v9680_v12 = vadd.f32 1e-05, %v703_v61  ;;  %v1127_v56 = vadd.f32 %v1126_v4, %v9688_v22  ;;  %v9729_v48 = vadd.f32 1e-05, %v705_v36 }
 0x1d6   : > { %v817_v59 = vmul.f32 %v8575_v39, %v816_v51  ;;  %v823_v11 = vmul.f32 %v9673_v6, %v9657_v40  ;;  %v9697_v28 = vpop.eup %8578  ;;  %vm829_vm3 = vweird.f32 %v9673_v6  ;;  %v928_v40 = vadd.f32 %v9564_v41, %v909_v0 }
 0x1d7   : > { %8580 = vrsqrt.f32 %v9680_v12  ;;  %v843_v19 = vmul.f32 %v9697_v28, %v9663_v60  ;;  %vm9719_vm4 = vmor %vm828_vm2, %vm829_vm3  ;;  %v1424_v55 = vpack.c.bf16 %v1127_v56, %v1127_v56  ;;  %vm849_vm6 = vweird.f32 %v9697_v28 }
 0x1d8   : > { %v821_v13 = vsel %vm820_vm0, %v8575_v39, %v817_v59  ;;  %v824_v17 = vmul.f32 %v9673_v6, %v823_v11  ;;  %v1176_v39 = vadd.f32 %v1175_v58, %v9695_v8  ;;  %vm858_vm7 = vweird.f32 %v9680_v12  ;;  %vm9804_vm10 = vmor %vm848_vm5, %vm849_vm6 }
 0x1d9   : > { %v891_v23 = vmul.f32 %v821_v13, %v9542_v29  ;;  %v704_v29 = vmul.f32 %v687_v21, %v9382_v31  ;;  %v844_v51 = vmul.f32 %v9697_v28, %v843_v19  ;;  %v9747_v59 = vunpack.c.l.b16 %v1424_v55 }
 0x1da   : > { %v825_v14 = vmul.f32 0.5, %v824_v17  ;;  %v1648_v7 = vpack.c.bf16 %v1176_v39, %v1176_v39  ;;  %v912_v17 = vmul.f32 %v9552_v32, %v893_v2  ;;  %vm878_vm11 = vweird.f32 %v9729_v48 }
 0x1db   : > { %v1224_v27 = vpop.f32.mrf.mxu2  ;;  %v910_v24 = vmul.f32 %v9552_v32, %v891_v23  ;;  %v9725_v47 = vadd.f32 1e-05, %v704_v29  ;;  %v845_v18 = vmul.f32 0.5, %v844_v51  ;;  %vm2745_vm2 = vcmask 523264  }
 0x1dc   : > { %v826_v50 = vsub.f32 1.5, %v825_v14  ;;  %v1128_v10 = vpop.f32.mrf.mxu0  ;;  %v1225_v15 = vadd.f32 %v1224_v27, %v9736_v62  ;;  %v9753_v52 = vunpack.c.l.b16 %v1648_v7  ;;  %v931_v34 = vadd.f32 %v9564_v41, %v912_v17 }
 0x1dd   : > { %v1129_v42 = vadd.f32 %v1128_v10, %v9688_v22  ;;  %v1177_v30 = vpop.f32.mrf.mxu1  ;;  %v9705_v33 = vpop.eup %8580  ;;  %v929_v45 = vadd.f32 %v9564_v41, %v910_v24  ;;  %8582 = vrsqrt.f32 %v9725_v47  ;;  %vm868_vm13 = vweird.f32 %v9725_v47 }
 0x1de   : > { %v1178_v37 = vadd.f32 %v1177_v30, %v9695_v8  ;;  %v827_v38 = vmul.f32 %v9673_v6, %v826_v50  ;;  %v853_v1 = vmul.f32 %v9705_v33, %v9680_v12  ;;  %8584 = vrsqrt.f32 %v9729_v48 }
 0x1df   : > { %v1425_v26 = vpack.c.bf16 %v1129_v42, %v1129_v42  ;;  %v8081_v53 = vpack.i.bf16 %v1129_v42, %v1127_v56  ;;  %v940_v43 = vpack.c.bf16 %v929_v45, %v928_v40  ;;  %v1872_v0 = vpack.c.bf16 %v1225_v15, %v1225_v15 }
 0x1e0   : > { %v9727_v44 = vpack.i.bf16 %v1178_v37, %v1176_v39  ;;  %v831_v57 = vsel %vm9719_vm4, %v9673_v6, %v827_v38  ;;  %v854_v49 = vmul.f32 %v9705_v33, %v853_v1  ;;  %v1649_v6 = vpack.c.bf16 %v1178_v37, %v1178_v37 }
 0x1e1   : > { %8082 = vrot.lane.b32.xlu1 %v8081_v53, %s9221_s9  ;;  %8072 = vrot.lane.b32.xlu0 %v8081_v53, %s9222_s13  ;;  %v9743_v46 = vunpack.c.l.b16 %v1425_v26  ;;  %v892_v11 = vmul.f32 %v831_v57, %v9580_v3  ;;  %v846_v42 = vsub.f32 1.5, %v845_v18  ;;  %vm859_vm8 = vweird.f32 %v9705_v33 }
 0x1e2   : > { %8067 = vrot.lane.b32.xlu2 %v9727_v44, %s9222_s13  ;;  %1243 = vmatmul.bf16.vlgmr.msra.gmra.mxu3 %v940_v43  ;;  %v855_v5 = vmul.f32 0.5, %v854_v49  ;;  %v9755_v14 = vunpack.c.l.b16 %v1649_v6  ;;  %vm9789_vm9 = vmor %vm858_vm7, %vm859_vm8 }
 0x1e3   : > { %v1226_v61 = vpop.f32.mrf.mxu2  ;;  %1145 = vmatmul.bf16.gmra.mxu0 %v940_v43  ;;  %1194 = vmatmul.bf16.gmra.mxu1 %v940_v43  ;;  %v1952_v21 = vpack.c.b16 %v9743_v46, %v9747_v59  ;;  %v911_v9 = vmul.f32 %v9552_v32, %v892_v11  ;;  %v9763_v54 = vpop.eup %8582  ;;  %v847_v40 = vmul.f32 %v9697_v28, %v846_v42 }
 0x1e4   : > { %v1131_v4 = vpop.f32.mrf.mxu0  ;;  %v1227_v13 = vadd.f32 %v1226_v61, %v9736_v62  ;;  %v1972_v3 = vpack.c.b16 %v9755_v14, %v9753_v52  ;;  %v856_v27 = vsub.f32 1.5, %v855_v5  ;;  %v9769_v29 = vpop.eup %8584  ;;  %v863_v19 = vmul.f32 %v9763_v54, %v9725_v47 }
 0x1e5   : > { %v1180_v58 = vpop.f32.mrf.mxu1  ;;  %v1132_v50 = vadd.f32 %v1131_v4, %v9688_v22  ;;  %v930_v1 = vadd.f32 %v9564_v41, %v911_v9  ;;  %v873_v35 = vmul.f32 %v9769_v29, %v9729_v48  ;;  %vm879_vm12 = vweird.f32 %v9769_v29 }
 0x1e6   : > { %v1181_v23 = vadd.f32 %v1180_v58, %v9695_v8  ;;  %v1873_v24 = vpack.c.bf16 %v1227_v13, %v1227_v13  ;;  %v857_v12 = vmul.f32 %v9705_v33, %v856_v27  ;;  %v9793_v55 = vpack.i.bf16 %v1227_v13, %v1225_v15  ;;  %vm9859_vm15 = vmor %vm878_vm11, %vm879_vm12 }
 0x1e7   : > { %v1426_v26 = vpack.c.bf16 %v1132_v50, %v1132_v50  ;;  %v941_v4 = vpack.c.bf16 %v931_v34, %v930_v1  ;;  %v874_v58 = vmul.f32 %v9769_v29, %v873_v35  ;;  %v864_v13 = vmul.f32 %v9763_v54, %v863_v19 }
 0x1e8   : > { %v9777_v37 = vunpack.c.l.b16 %v1873_v24  ;;  %v1650_v39 = vpack.c.bf16 %v1181_v23, %v1181_v23  ;;  %v861_v11 = vsel %vm9789_vm9, %v9705_v33, %v857_v12  ;;  %vm869_vm14 = vweird.f32 %v9763_v54 }
 0x1e9   : > { %8092 = vrot.lane.b32.xlu0 %v8081_v53, %s9223_s26  ;;  %v9786_v53 = vunpack.c.l.b16 %v1872_v0  ;;  %v9820_v5 = vunpack.c.l.b16 %v1426_v26  ;;  %v895_v27 = vmul.f32 %v861_v11, %v9602_v16  ;;  %v865_v42 = vmul.f32 0.5, %v864_v13  ;;  %vm870_vm0 = vmor %vm868_vm13, %vm869_vm14 }
 0x1ea   : > { %8077 = vrot.lane.b32.xlu2 %v9727_v44, %s9221_s9  ;;  %v9808_v7 = vunpack.c.l.b16 %v1650_v39 }
 0x1eb   : > { %v1229_v10 = vpop.f32.mrf.mxu2 }
 0x1ec   : > { %v1133_v30 = vpop.f32.mrf.mxu0  ;;  %v1230_v57 = vadd.f32 %v1229_v10, %v9736_v62  ;;  %v875_v10 = vmul.f32 0.5, %v874_v58 }
 0x1ed   : > { %v1134_v36 = vadd.f32 %v1133_v30, %v9688_v22  ;;  %v1182_v56 = vpop.f32.mrf.mxu1 }
 0x1ee   : > { %v1183_v38 = vadd.f32 %v1182_v56, %v9695_v8  ;;  %v1874_v9 = vpack.c.bf16 %v1230_v57, %v1230_v57  ;;  %v876_v1 = vsub.f32 1.5, %v875_v10 }
 0x1ef   : > { %v1427_v61 = vpack.c.bf16 %v1134_v36, %v1134_v36  ;;  %v8141_v56 = vpack.i.bf16 %v1134_v36, %v1132_v50 }
 0x1f0   : > { %v1651_v43 = vpack.c.bf16 %v1183_v38, %v1183_v38  ;;  %v9796_v49 = vpack.i.bf16 %v1183_v38, %v1181_v23  ;;  %v9838_v19 = vunpack.c.l.b16 %v1874_v9  ;;  %v914_v38 = vmul.f32 %v9552_v32, %v895_v27 }
 0x1f1   : > { %8102 = vrot.lane.b32.xlu0 %v9793_v55, %s9221_s9  ;;  %v9822_v15 = vunpack.c.l.b16 %v1427_v61 }
 0x1f2   : > { %v9810_v6 = vunpack.c.l.b16 %v1651_v43  ;;  %8087 = vrot.lane.b32.xlu2 %v9727_v44, %s9223_s26  ;;  %1248 = vmatmul.bf16.gmra.mxu3 %v941_v4  ;;  %v851_v44 = vsel %vm9804_vm10, %v9697_v28, %v847_v40  ;;  %v933_v26 = vadd.f32 %v9564_v41, %v914_v38  ;;  %v877_v40 = vmul.f32 %v9769_v29, %v876_v1 }
 0x1f3   : > { %v1231_v60 = vpop.f32.mrf.mxu2  ;;  %1150 = vmatmul.bf16.gmra.mxu0 %v941_v4  ;;  %1199 = vmatmul.bf16.gmra.mxu1 %v941_v4  ;;  %v1953_v23 = vpack.c.b16 %v9822_v15, %v9820_v5  ;;  %v894_v30 = vmul.f32 %v851_v44, %v9536_v20  ;;  %v866_v20 = vsub.f32 1.5, %v865_v42 }
 0x1f4   : > { %v1232_v17 = vadd.f32 %v1231_v60, %v9736_v62  ;;  %v1136_v18 = vpop.f32.mrf.mxu0  ;;  %v1973_v33 = vpack.c.b16 %v9810_v6, %v9808_v7  ;;  %v881_v11 = vsel %vm9859_vm15, %v9769_v29, %v877_v40 }
 0x1f5   : > { %v1137_v34 = vadd.f32 %v1136_v18, %v9688_v22  ;;  %v913_v50 = vmul.f32 %v9552_v32, %v894_v30 }
 0x1f6   : > { %v9834_v0 = vpack.i.bf16 %v1232_v17, %v1230_v57  ;;  %v1875_v24 = vpack.c.bf16 %v1232_v17, %v1232_v17  ;;  %v867_v57 = vmul.f32 %v9763_v54, %v866_v20 }
 0x1f7   : > { %v1428_v12 = vpack.c.bf16 %v1137_v34, %v1137_v34  ;;  %v932_v61 = vadd.f32 %v9564_v41, %v913_v50 }
 0x1f8   : > { %v9840_v28 = vunpack.c.l.b16 %v1875_v24  ;;  %v871_v18 = vsel %vm870_vm0, %v9763_v54, %v867_v57 }
 0x1f9   : > { %8142 = vrot.lane.b32.xlu0 %v8141_v56, %s9223_s26  ;;  %v9867_v47 = vunpack.c.l.b16 %v1428_v12  ;;  %v942_v58 = vpack.c.bf16 %v933_v26, %v932_v61  ;;  %v896_v9 = vmul.f32 %v871_v18, %v9575_v63 }
 0x1fa   : > { %8097 = vrot.lane.b32.xlu2 %v9793_v55, %s9222_s13 }
 0x1fb   : > { %v1234_v16 = vpop.f32.mrf.mxu2  ;;  %v915_v42 = vmul.f32 %v9552_v32, %v896_v9 }
 0x1fc   : > { %v1138_v35 = vpop.f32.mrf.mxu0  ;;  %v9865_v51 = vadd.f32 %v1234_v16, %v9736_v62 }
 0x1fd   : > { %v1139_v36 = vadd.f32 %v1138_v35, %v9688_v22  ;;  %v934_v30 = vadd.f32 %v9564_v41, %v915_v42 }
 0x1fe   : > { %v1876_v29 = vpack.c.bf16 %v9865_v51, %v9865_v51 }
 0x1ff   : > { %v9856_v45 = vpack.i.bf16 %v1139_v36, %v1137_v34  ;;  %v1429_v43 = vpack.c.bf16 %v1139_v36, %v1139_v36 }
 0x200   : > { %v9890_v27 = vunpack.c.l.b16 %v1876_v29 }
 0x201   : > { %v9869_v4 = vunpack.c.l.b16 %v1429_v43  ;;  %8147 = vrot.lane.b32.xlu0 %v9834_v0, %s9222_s13 }
 0x202   : > { %8112 = vrot.lane.b32.xlu2 %v9793_v55, %s9223_s26  ;;  %1253 = vmatmul.bf16.gmra.mxu3 %v942_v58  ;;  %v897_v55 = vmul.f32 %v881_v11, %v9611_v25 }
 0x203   : > { %v1236_v60 = vpop.f32.mrf.mxu2  ;;  %v1954_v13 = vpack.c.b16 %v9869_v4, %v9867_v47  ;;  %1155 = vmatmul.bf16.gmra.mxu0 %v942_v58  ;;  %1204 = vmatmul.bf16.gmra.mxu1 %v942_v58 }
 0x204   : > { %v9881_v17 = vadd.f32 %v1236_v60, %v9736_v62  ;;  %v916_v24 = vmul.f32 %v9552_v32, %v897_v55  ;;  %v1185_v32 = vpop.f32.mrf.mxu1 }
 0x205   : > { %v9918_v50 = vadd.f32 %v1185_v32, %v9695_v8 }
 0x206   : > { %v1877_v44 = vpack.c.bf16 %v9881_v17, %v9881_v17  ;;  %v935_v25 = vadd.f32 %v9564_v41, %v916_v24 }
 0x207   : > { %v1652_v18 = vpack.c.bf16 %v9918_v50, %v9918_v50 }
 0x208   : > { %v9892_v10 = vunpack.c.l.b16 %v1877_v44  ;;  %v943_v34 = vpack.c.bf16 %v935_v25, %v934_v30 }
 0x209   : > { %v1968_v42 = vunpack.c.l.b16 %v1652_v18 }
 0x20a   : > { %8122 = vrot.lane.b32.xlu2 %v8141_v56, %s9222_s13 }
 0x20c   : > { %v1187_v41 = vpop.f32.mrf.mxu1 }
 0x20d   : > { %v9914_v20 = vadd.f32 %v1187_v41, %v9695_v8 }
 0x20f   : > { %v1653_v61 = vpack.c.bf16 %v9914_v20, %v9914_v20 }
 0x211   : > { %v1969_v44 = vunpack.c.l.b16 %v1653_v61 }
 0x212   : > { %8127 = vrot.lane.b32.xlu2 %v9796_v49, %s9221_s9  ;;  %1258 = vmatmul.bf16.gmra.mxu3 %v943_v34 }
 0x213   : > { %1160 = vmatmul.bf16.gmra.mxu0 %v943_v34  ;;  %1209 = vmatmul.bf16.gmra.mxu1 %v943_v34  ;;  %v1974_v30 = vpack.c.b16 %v1969_v44, %v1968_v42 }
 0x215   : > { %v1996_v41 = vsel %vm1976_vm1, %v1974_v30, 0 }
 0x21a   : > { %8132 = vrot.lane.b32.xlu2 %v9796_v49, %s9223_s26 }
 0x222   : > { %8137 = vrot.lane.b32.xlu2 %v8141_v56, %s9221_s9 }
 0x22a   : > { %8152 = vrot.lane.b32.xlu2 %v9834_v0, %s9221_s9 }
 0x232   : > { %8182 = vrot.lane.b32.xlu2 %v9856_v45, %s9222_s13 }
 0x23a   : > { %8192 = vrot.lane.b32.xlu2 %v9856_v45, %s9221_s9 }
 0x24d   : > { %v1190_v63 = vpop.f32.mrf.mxu1  ;;  %v9994_v14 = vpop.f32.mrf.mxu0 }
 0x24e   : > { %v1191_v1 = vadd.f32 %v1190_v63, %v9695_v8 }
 0x250   : > { %v1654_v35 = vpack.c.bf16 %v1191_v1, %v1191_v1 }
 0x252   : > { %v1970_v57 = vunpack.c.l.b16 %v1654_v35 }
 0x254   : > { %v1239_v38 = vpop.f32.mrf.mxu2 }
 0x255   : > { %v1192_v16 = vpop.f32.mrf.mxu1  ;;  %v9921_v36 = vadd.f32 %v1239_v38, %v9736_v62 }
 0x256   : > { %v1193_v56 = vadd.f32 %v1192_v16, %v9695_v8 }
 0x257   : > { %v1878_v58 = vpack.c.bf16 %v9921_v36, %v9921_v36 }
 0x258   : > { %v1655_v12 = vpack.c.bf16 %v1193_v56, %v1193_v56  ;;  %v9923_v26 = vpack.i.bf16 %v1193_v56, %v1191_v1  ;;  %v1993_v56 = vsel %vm1976_vm1, %v1973_v33, 0  ;;  %v1990_v33 = vsel %vm1976_vm1, %v1972_v3, 0 }
 0x259   : > { %v9941_v24 = vunpack.c.l.b16 %v1878_v58  ;;  %v9964_v58 = vpop.permute.xlu2 %8067 }
 0x25a   : > { %v1971_v48 = vunpack.c.l.b16 %v1655_v12 }
 0x25c   : > { %v1241_v40 = vpop.f32.mrf.mxu2  ;;  %v1975_v60 = vpack.c.b16 %v1971_v48, %v1970_v57 }
 0x25d   : > { %v9926_v43 = vadd.f32 %v1241_v40, %v9736_v62 }
 0x25e   : > { %v1999_v55 = vsel %vm1976_vm1, %v1975_v60, 0 }
 0x25f   : > { %v1879_v11 = vpack.c.bf16 %v9926_v43, %v9926_v43  ;;  %2005 = vmatpush.bf16.xpose.msrb.mxu3 %v1999_v55 }
 0x260   : > { %v9936_v29 = vpop.f32.mrf.mxu1 }
 0x261   : > { %v9939_v9 = vunpack.c.l.b16 %v1879_v11  ;;  %v9980_v55 = vpop.permute.xlu2 %8077 }
 0x265   : > { %v1244_v25 = vpop.f32.mrf.mxu3 }
 0x266   : > { %v1245_v63 = vadd.f32 %v1244_v25, %v9736_v62 }
 0x267   : > { %2006 = vmatpush.bf16.xpose.msrb.mxu3 %v1996_v41 }
 0x268   : > { %v9945_v32 = vpop.f32.mrf.mxu1  ;;  %v1880_v12 = vpack.c.bf16 %v1245_v63, %v1245_v63 }
 0x269   : > { %v9998_v30 = vpop.permute.xlu2 %8087 }
 0x26a   : > { %v9960_v48 = vunpack.c.l.b16 %v1880_v12 }
 0x26c   : > { %14263 = vst [vmem:[#allocation19_spill] sm:$0xff] %v9960_v48 }
 0x26d   : > { %v1246_v38 = vpop.f32.mrf.mxu3 }
 0x26e   : > { %v1247_v1 = vadd.f32 %v1246_v38, %v9736_v62 }
 0x26f   : > { %2007 = vmatpush.bf16.xpose.msrb.mxu3 %v1993_v56  ;;  %v8171_v56 = vpack.i.bf16 %v9914_v20, %v9918_v50 }
 0x270   : > { %v9950_v16 = vpop.f32.mrf.mxu1  ;;  %v9956_v35 = vpack.i.bf16 %v1247_v1, %v1245_v63  ;;  %v1881_v40 = vpack.c.bf16 %v1247_v1, %v1247_v1  ;;  %v1143_v63 = vpop.f32.mrf.mxu0 }
 0x271   : > { %v10026_v20 = vpop.permute.xlu2 %8097 }
 0x272   : > { %14262 = vst [vmem:[#allocation18_spill] sm:$0xff] %v9956_v35  ;;  %8107 = vrot.lane.b32.xlu1 %v9956_v35, %s9222_s13  ;;  %v9962_v61 = vunpack.c.l.b16 %v1881_v40 }
 0x274   : > { %14264 = vst [vmem:[#allocation20_spill] sm:$0xff] %v9962_v61 }
 0x275   : > { %v1249_v57 = vpop.f32.mrf.mxu3 }
 0x276   : > { %v9975_v60 = vadd.f32 %v1249_v57, %v9736_v62 }
 0x277   : > { %2008 = vmatpush.bf16.xpose.msrb.mxu3 %v1990_v33 }
 0x278   : > { %v1202_v6 = vpop.f32.mrf.mxu1  ;;  %v10032_v33 = vpop.f32.mrf.mxu0 }
 0x27a   : > { %8117 = vrot.lane.b32.xlu1 %v9796_v49, %s9222_s13 }
 0x27d   : > { %v1251_v11 = vpop.f32.mrf.mxu3 }
 0x27e   : > { %v9978_v18 = vadd.f32 %v1251_v11, %v9736_v62  ;;  %7510 = vmatmul.msk.bf16.vlgmr.msrb.gmra.mxu3 %vm1976_vm1, %v1952_v21 }
 0x280   : > { %v1205_v44 = vpop.f32.mrf.mxu1  ;;  %v9984_v42 = vpack.i.bf16 %v9978_v18, %v9975_v60  ;;  %v1148_v4 = vpop.f32.mrf.mxu0 }
 0x281   : > { %v1206_v49 = vadd.f32 %v1205_v44, %v9695_v8 }
 0x282   : > { %14265 = vst [vmem:[#allocation21_spill] sm:$0xff] %v9984_v42  ;;  %8157 = vrot.lane.b32.xlu0 %v9984_v42, %s9222_s13  ;;  %8162 = vrot.lane.b32.xlu1 %v9834_v0, %s9223_s26 }
 0x285   : > { %v1254_v52 = vpop.f32.mrf.mxu3 }
 0x286   : > { %v1255_v46 = vadd.f32 %v1254_v52, %v9736_v62 }
 0x288   : > { %v1207_v3 = vpop.f32.mrf.mxu1  ;;  %v1884_v41 = vpack.c.bf16 %v1255_v46, %v1255_v46 }
 0x289   : > { %v1208_v25 = vadd.f32 %v1207_v3, %v9695_v8 }
 0x28a   : > { %8167 = vrot.lane.b32.xlu0 %v9984_v42, %s9221_s9  ;;  %8197 = vrot.lane.b32.xlu1 %v9856_v45, %s9223_s26  ;;  %v8201_v45 = vpack.i.bf16 %v9881_v17, %v9865_v51  ;;  %v10022_v40 = vunpack.c.l.b16 %v1884_v41  ;;  %v10042_v41 = vpop.permute.xlu2 %8112 }
 0x28b   : > { %v10005_v59 = vpack.i.bf16 %v1208_v25, %v1206_v49 }
 0x28c   : > { %14267 = vst [vmem:[#allocation23_spill] sm:$0xff] %v10022_v40 }
 0x28d   : > { %v1256_v21 = vpop.f32.mrf.mxu3 }
 0x28e   : > { %v1257_v0 = vadd.f32 %v1256_v21, %v9736_v62  ;;  %7511 = vmatmul.msk.bf16.gmra.mxu3 %vm1976_vm1, %v1953_v23 }
 0x290   : > { %v1210_v38 = vpop.f32.mrf.mxu1  ;;  %v10008_v1 = vpack.i.bf16 %v1257_v0, %v1255_v46  ;;  %v1885_v12 = vpack.c.bf16 %v1257_v0, %v1257_v0  ;;  %v1661_v0 = vpack.c.bf16 %v1208_v25, %v1208_v25 }
 0x291   : > { %v1211_v5 = vadd.f32 %v1210_v38, %v9695_v8 }
 0x292   : > { %14266 = vst [vmem:[#allocation22_spill] sm:$0xff] %v10008_v1  ;;  %8212 = vrot.lane.b32.xlu2 %v10008_v1, %s9222_s13  ;;  %8172 = vrot.lane.b32.xlu0 %v8171_v56, %s9222_s13  ;;  %v10024_v57 = vunpack.c.l.b16 %v1885_v12 }
 0x293   : > { %8202 = vrot.lane.b32.xlu1 %v8201_v45, %s9222_s13  ;;  %v1662_v50 = vpack.c.bf16 %v1211_v5, %v1211_v5 }
 0x294   : > { %14268 = vst [vmem:[#allocation24_spill] sm:$0xff] %v10024_v57 }
 0x295   : > { %v1259_v15 = vpop.f32.mrf.mxu3  ;;  %v2064_v46 = vunpack.c.l.b16 %v1662_v50 }
 0x296   : > { %v10035_v11 = vadd.f32 %v1259_v15, %v9736_v62 }
 0x298   : > { %v1212_v51 = vpop.f32.mrf.mxu1  ;;  %v1886_v38 = vpack.c.bf16 %v10035_v11, %v10035_v11 }
 0x299   : > { %v1213_v17 = vadd.f32 %v1212_v51, %v9695_v8  ;;  %v1660_v51 = vpack.c.bf16 %v1206_v49, %v1206_v49  ;;  %v1144_v49 = vadd.f32 %v1143_v63, %v9688_v22 }
 0x29a   : > { %8217 = vrot.lane.b32.xlu2 %v8201_v45, %s9223_s26  ;;  %8177 = vrot.lane.b32.xlu0 %v8171_v56, %s9221_s9  ;;  %v10059_v50 = vunpack.c.l.b16 %v1886_v38 }
 0x29b   : > { %8207 = vrot.lane.b32.xlu1 %v8201_v45, %s9221_s9  ;;  %v1663_v44 = vpack.c.bf16 %v1213_v17, %v1213_v17  ;;  %v10040_v52 = vpack.i.bf16 %v1213_v17, %v1211_v5  ;;  %v10052_v5 = vadd.f32 %v1202_v6, %v9695_v8  ;;  %v2063_v17 = vunpack.c.l.b16 %v1661_v0 }
 0x29c   : > { %14269 = vst [vmem:[#allocation25_spill] sm:$0xff] %v10059_v50  ;;  %v10068_v6 = vadd.f32 %v9950_v16, %v9695_v8  ;;  %v2062_v47 = vunpack.c.l.b16 %v1660_v51 }
 0x29d   : > { %v1261_v3 = vpop.f32.mrf.mxu3  ;;  %v2065_v21 = vunpack.c.l.b16 %v1663_v44  ;;  %v1142_v44 = vadd.f32 %v9994_v14, %v9688_v22  ;;  %v1659_v63 = vpack.c.bf16 %v10052_v5, %v10052_v5  ;;  %v1196_v14 = vadd.f32 %v9936_v29, %v9695_v8 }
 0x29e   : > { %v10047_v12 = vadd.f32 %v1261_v3, %v9736_v62  ;;  %7512 = vmatmul.msk.bf16.gmra.mxu3 %vm1976_vm1, %v1954_v13  ;;  %v2068_v3 = vpack.c.b16 %v2063_v17, %v2062_v47  ;;  %v1658_v16 = vpack.c.bf16 %v10068_v6, %v10068_v6  ;;  %v1151_v47 = vpop.f32.mrf.mxu0 }
 0x29f   : > { %v2069_v15 = vpack.c.b16 %v2065_v21, %v2064_v46  ;;  %v1431_v46 = vpack.c.bf16 %v1144_v49, %v1144_v49  ;;  %v10081_v21 = vpop.permute.xlu2 %8122  ;;  %v8246_v0 = vpack.i.bf16 %v1144_v49, %v1142_v44  ;;  %v2061_v51 = vunpack.c.l.b16 %v1659_v63 }
 0x2a0   : > { %v1887_v45 = vpack.c.bf16 %v10047_v12, %v10047_v12  ;;  %v2089_v38 = vsel %vm1976_vm1, %v2068_v3, 0  ;;  %v1656_v3 = vpack.c.bf16 %v1196_v14, %v1196_v14  ;;  %v8256_v63 = vpack.i.bf16 %v9926_v43, %v9921_v36 }
 0x2a1   : > { %v2092_v25 = vsel %vm1976_vm1, %v2069_v15, 0  ;;  %v1430_v15 = vpack.c.bf16 %v1142_v44, %v1142_v44  ;;  %v1147_v36 = vadd.f32 %v10032_v33, %v9688_v22  ;;  %v8281_v33 = vpack.i.bf16 %v10047_v12, %v10035_v11 }
 0x2a2   : > { %2098 = vmatpush.bf16.xpose.msra.mxu3 %v2092_v25  ;;  %8227 = vrot.lane.b32.xlu2 %v9923_v26, %s9222_s13  ;;  %v10063_v62 = vunpack.c.l.b16 %v1887_v45  ;;  %v1951_v45 = vunpack.c.l.b16 %v1431_v46  ;;  %v2060_v25 = vunpack.c.l.b16 %v1658_v16  ;;  %v2058_v46 = vunpack.c.l.b16 %v1656_v3  ;;  %v10118_v3 = vpop.permute.xlu0 %8072 }
 0x2a3   : > { %8222 = vrot.lane.b32.xlu1 %v10008_v1, %s9221_s9  ;;  %8187 = vrot.lane.b32.xlu0 %v8171_v56, %s9223_s26  ;;  %v1198_v56 = vadd.f32 %v9945_v32, %v9695_v8  ;;  %v1950_v17 = vunpack.c.l.b16 %v1430_v15 }
 0x2a4   : > { %v2067_v32 = vpack.c.b16 %v2061_v51, %v2060_v25  ;;  %v1432_v51 = vpack.c.bf16 %v1147_v36, %v1147_v36 }
 0x2a5   : > { %v1657_v49 = vpack.c.bf16 %v1198_v56, %v1198_v56  ;;  %v1955_v44 = vpack.c.b16 %v1951_v45, %v1950_v17 }
 0x2a6   : > { %v2086_v8 = vsel %vm1976_vm1, %v2067_v32, 0  ;;  %v1153_v15 = vpop.f32.mrf.mxu0 }
 0x2a7   : > { %v2059_v29 = vunpack.c.l.b16 %v1657_v49 }
 0x2a9   : > { %v2066_v43 = vpack.c.b16 %v2059_v29, %v2058_v46 }
 0x2aa   : > { %2099 = vmatpush.bf16.xpose.msra.mxu3 %v2089_v38  ;;  %8247 = vrot.lane.b32.xlu2 %v8246_v0, %s9221_s9  ;;  %v10097_v38 = vpop.permute.xlu2 %8127 }
 0x2ab   : > { %8232 = vrot.lane.b32.xlu1 %v9923_v26, %s9221_s9  ;;  %8237 = vrot.lane.b32.xlu0 %v9923_v26, %s9223_s26  ;;  %v1149_v26 = vadd.f32 %v1148_v4, %v9688_v22  ;;  %v2083_v45 = vsel %vm1976_vm1, %v2066_v43, 0 }
 0x2ad   : > { %v1433_v16 = vpack.c.bf16 %v1149_v26, %v1149_v26  ;;  %v8291_v25 = vpack.i.bf16 %v1149_v26, %v1147_v36  ;;  %v8296_v26 = vpack.i.bf16 %v1198_v56, %v1196_v14  ;;  %v8326_v56 = vpack.i.bf16 %v10052_v5, %v10068_v6  ;;  %v10145_v6 = vpop.permute.xlu1 %8082 }
 0x2ae   : > { %7513 = vmatmul.msk.bf16.gmra.mxu3 %vm1976_vm1, %v1955_v44  ;;  %v1156_v49 = vpop.f32.mrf.mxu0  ;;  %v1154_v44 = vadd.f32 %v1153_v15, %v9688_v22 }
 0x2af   : > { %v2039_v17 = vunpack.c.l.b16 %v1433_v16  ;;  %v10126_v16 = vpop.permute.xlu0 %8092 }
 0x2b0   : > { %v1435_v29 = vpack.c.bf16 %v1154_v44, %v1154_v44 }
 0x2b2   : > { %2100 = vmatpush.bf16.xpose.msra.mxu3 %v2086_v8  ;;  %8257 = vrot.lane.b32.xlu2 %v8256_v63, %s9222_s13  ;;  %v10109_v4 = vpop.permute.xlu2 %8132  ;;  %v2041_v46 = vunpack.c.l.b16 %v1435_v29 }
 0x2b3   : > { %8242 = vrot.lane.b32.xlu1 %v8246_v0, %s9222_s13  ;;  %8252 = vrot.lane.b32.xlu0 %v8246_v0, %s9223_s26  ;;  %v2038_v0 = vunpack.c.l.b16 %v1432_v51 }
 0x2b5   : > { %v2046_v32 = vpack.c.b16 %v2039_v17, %v2038_v0 }
 0x2b6   : > { %v1158_v36 = vpop.f32.mrf.mxu0 }
 0x2b7   : > { %v1159_v14 = vadd.f32 %v1158_v36, %v9688_v22  ;;  %v10138_v0 = vpop.permute.xlu0 %8102 }
 0x2b9   : > { %v1437_v17 = vpack.c.bf16 %v1159_v14, %v1159_v14 }
 0x2ba   : > { %2101 = vmatpush.bf16.xpose.msra.mxu3 %v2083_v45  ;;  %8272 = vrot.lane.b32.xlu2 %v8256_v63, %s9223_s26  ;;  %v10121_v8 = vpop.permute.xlu2 %8137 }
 0x2bb   : > { %8292 = vrot.lane.b32.xlu1 %v8291_v25, %s9222_s13  ;;  %8262 = vrot.lane.b32.xlu0 %v8256_v63, %s9221_s9  ;;  %v1152_v63 = vadd.f32 %v1151_v47, %v9688_v22  ;;  %v1157_v47 = vadd.f32 %v1156_v49, %v9688_v22  ;;  %v2043_v5 = vunpack.c.l.b16 %v1437_v17 }
 0x2bd   : > { %v8321_v11 = vpack.i.bf16 %v1154_v44, %v1152_v63  ;;  %v1434_v12 = vpack.c.bf16 %v1152_v63, %v1152_v63  ;;  %v8356_v49 = vpack.i.bf16 %v1159_v14, %v1157_v47 }
 0x2be   : > { %v1161_v45 = vpop.f32.mrf.mxu0 }
 0x2bf   : > { %v2040_v43 = vunpack.c.l.b16 %v1434_v12  ;;  %v10148_v29 = vpop.permute.xlu0 %8142 }
 0x2c1   : > { %7514 = vmatmul.msk.bf16.vlgmr.msra.gmra.mxu3 %vm1976_vm1, %v2046_v32  ;;  %v2047_v15 = vpack.c.b16 %v2041_v46, %v2040_v43  ;;  %v1436_v32 = vpack.c.bf16 %v1157_v47, %v1157_v47  ;;  %v1162_v46 = vadd.f32 %v1161_v45, %v9688_v22 }
 0x2c2   : > { %8282 = vrot.lane.b32.xlu2 %v8281_v33, %s9223_s26  ;;  %v10128_v51 = vpop.permute.xlu2 %8152 }
 0x2c3   : > { %8302 = vrot.lane.b32.xlu1 %v8291_v25, %s9221_s9  ;;  %8267 = vrot.lane.b32.xlu0 %v8281_v33, %s9222_s13 }
 0x2c6   : > { %v1163_v63 = vpop.f32.mrf.mxu0 }
 0x2c7   : > { %v1164_v12 = vadd.f32 %v1163_v63, %v9688_v22  ;;  %v10163_v47 = vpop.permute.xlu0 %8147 }
 0x2c9   : > { %v1439_v43 = vpack.c.bf16 %v1164_v12, %v1164_v12 }
 0x2ca   : > { %8297 = vrot.lane.b32.xlu2 %v8296_v26, %s9221_s9 }
 0x2cb   : > { %8322 = vrot.lane.b32.xlu1 %v8321_v11, %s9222_s13  ;;  %8277 = vrot.lane.b32.xlu0 %v8281_v33, %s9221_s9  ;;  %v10140_v33 = vpop.permute.xlu2 %8182  ;;  %v2045_v14 = vunpack.c.l.b16 %v1439_v43 }
 0x2d1   : > { %7515 = vmatmul.msk.bf16.gmra.mxu3 %vm1976_vm1, %v2047_v15  ;;  %v1438_v15 = vpack.c.bf16 %v1162_v46, %v1162_v46 }
 0x2d2   : > { %8312 = vrot.lane.b32.xlu2 %v8291_v25, %s9223_s26  ;;  %v2042_v25 = vunpack.c.l.b16 %v1436_v32 }
 0x2d3   : > { %8327 = vrot.lane.b32.xlu1 %v8326_v56, %s9221_s9  ;;  %8287 = vrot.lane.b32.xlu0 %v8296_v26, %s9222_s13  ;;  %v2044_v32 = vunpack.c.l.b16 %v1438_v15 }
 0x2d4   : > { %v2048_v44 = vpack.c.b16 %v2043_v5, %v2042_v25 }
 0x2d5   : > { %v2049_v5 = vpack.c.b16 %v2045_v14, %v2044_v32  ;;  %v8391_v32 = vpack.i.bf16 %v1164_v12, %v1162_v46 }
 0x2da   : > { %8332 = vrot.lane.b32.xlu2 %v8326_v56, %s9223_s26 }
 0x2db   : > { %8337 = vrot.lane.b32.xlu1 %v8321_v11, %s9221_s9  ;;  %8307 = vrot.lane.b32.xlu0 %v8296_v26, %s9223_s26  ;;  %v10155_v26 = vpop.permute.xlu2 %8192 }
 0x2e1   : > { %7516 = vmatmul.msk.bf16.gmra.mxu3 %vm1976_vm1, %v2048_v44 }
 0x2e2   : > { %8357 = vrot.lane.b32.xlu2 %v8356_v49, %s9222_s13 }
 0x2e3   : > { %8347 = vrot.lane.b32.xlu1 %v10005_v59, %s9222_s13  ;;  %8317 = vrot.lane.b32.xlu0 %v8326_v56, %s9222_s13 }
 0x2e4   : > { %v10158_v36 = vpop.permute.xlu1 %8107 }
 0x2e5   : > { %14270 = vst [vmem:[#allocation26_spill] sm:$0xff] %v10158_v36 }
 0x2ea   : > { %8367 = vrot.lane.b32.xlu2 %v8356_v49, %s9221_s9 }
 0x2eb   : > { %8372 = vrot.lane.b32.xlu1 %v8356_v49, %s9223_s26  ;;  %8342 = vrot.lane.b32.xlu0 %v8321_v11, %s9223_s26 }
 0x2ec   : > { %v10165_v17 = vpop.permute.xlu2 %8212  ;;  %v8118_v56 = vpop.permute.xlu1 %8117 }
 0x2ed   : > { %14271 = vst [vmem:[#allocation27_spill] sm:$0xff] %v10165_v17 }
 0x2f1   : > { %7517 = vmatmul.msk.bf16.gmra.mxu3 %vm1976_vm1, %v2049_v5 }
 0x2f3   : > { %8352 = vrot.lane.b32.xlu0 %v10005_v59, %s9221_s9  ;;  %8377 = vrot.lane.b32.xlu1 %v10040_v52, %s9222_s13 }
 0x2f4   : > { %v10172_v22 = vpop.permute.xlu2 %8217  ;;  %v10174_v45 = vpop.permute.xlu0 %8157 }
 0x2f5   : > { %14272 = vst [vmem:[#allocation28_spill] sm:$0xff] %v10174_v45  ;;  %v10176_v11 = vpop.permute.xlu1 %8162 }
 0x2fb   : > { %8362 = vrot.lane.b32.xlu0 %v10005_v59, %s9223_s26  ;;  %8382 = vrot.lane.b32.xlu1 %v10040_v52, %s9221_s9 }
 0x2fc   : > { %v8228_v25 = vpop.permute.xlu2 %8227  ;;  %v10182_v44 = vpop.permute.xlu0 %8167 }
 0x2fd   : > { %14273 = vst [vmem:[#allocation29_spill] sm:$0xff] %v10182_v44  ;;  %v10184_v63 = vpop.permute.xlu1 %8197  ;;  %v8230_v49 = vunpack.i.h.bf16 %v8228_v25  ;;  %v8229_v43 = vunpack.i.l.bf16 %v8228_v25  ;;  %v8120_v25 = vunpack.i.h.bf16 %v8118_v56 }
 0x2ff   : > { %v1671_v15 = vpack.c.bf16 %v8230_v49, %v8230_v49  ;;  %v1670_v14 = vpack.c.bf16 %v8229_v43, %v8229_v43  ;;  %v8119_v49 = vunpack.i.l.bf16 %v8118_v56 }
 0x301   : > { %v2157_v5 = vunpack.c.l.b16 %v1670_v14  ;;  %v2158_v7 = vunpack.c.l.b16 %v1671_v15  ;;  %v2010_v23 = vpop.f32.mrf.mxu3  ;;  %v1667_v14 = vpack.c.bf16 %v8120_v25, %v8120_v25 }
 0x303   : > { %8387 = vrot.lane.b32.xlu0 %v10040_v52, %s9223_s26  ;;  %8392 = vrot.lane.b32.xlu1 %v8391_v32, %s9222_s13  ;;  %v2162_v59 = vpack.c.b16 %v2158_v7, %v2157_v5  ;;  %v1666_v52 = vpack.c.bf16 %v8119_v49, %v8119_v49  ;;  %v8070_v7 = vunpack.i.h.bf16 %v9964_v58  ;;  %v8069_v5 = vunpack.i.l.bf16 %v9964_v58 }
 0x304   : > { %v8173_v2 = vpop.permute.xlu0 %8172  ;;  %v2154_v56 = vunpack.c.l.b16 %v1667_v14 }
 0x305   : > { %v10189_v13 = vpop.permute.xlu1 %8202  ;;  %v2185_v39 = vsel %vm1976_vm1, %v2162_v59, 0  ;;  %v8175_v54 = vunpack.i.h.bf16 %v8173_v2  ;;  %v8174_v34 = vunpack.i.l.bf16 %v8173_v2  ;;  %v1665_v25 = vpack.c.bf16 %v8070_v7, %v8070_v7 }
 0x306   : > { %2191 = vmatpush.bf16.xpose.msrb.mxu0 %v2185_v39  ;;  %v10199_v39 = vmul.f32 0.17677669, %v2010_v23  ;;  %v1664_v49 = vpack.c.bf16 %v8069_v5, %v8069_v5  ;;  %v8075_v7 = vunpack.i.h.bf16 %v10118_v3  ;;  %v8074_v5 = vunpack.i.l.bf16 %v10118_v3 }
 0x307   : > { %v1669_v12 = vpack.c.bf16 %v8175_v54, %v8175_v54  ;;  %v1668_v46 = vpack.c.bf16 %v8174_v34, %v8174_v34  ;;  %v2153_v34 = vunpack.c.l.b16 %v1666_v52  ;;  %v2152_v23 = vunpack.c.l.b16 %v1665_v25 }
 0x308   : > { %14274 = vst [vmem:[#allocation30_spill] sm:$0xff] %v10199_v39 }
 0x309   : > { %v2155_v43 = vunpack.c.l.b16 %v1668_v46  ;;  %v2156_v15 = vunpack.c.l.b16 %v1669_v12  ;;  %v10195_v31 = vpop.f32.mrf.mxu3  ;;  %v2746_v12 = vsel %vm2745_vm2, %v10199_v39, -inf  ;;  %v2160_v58 = vpack.c.b16 %v2154_v56, %v2153_v34 }
 0x30a   : > { %v1440_v34 = vpack.c.bf16 %v8074_v5, %v8074_v5 }
 0x30b   : > { %8397 = vrot.lane.b32.xlu0 %v8391_v32, %s9221_s9  ;;  %v2161_v59 = vpack.c.b16 %v2156_v15, %v2155_v43  ;;  %v2151_v43 = vunpack.c.l.b16 %v1664_v49  ;;  %v2179_v52 = vsel %vm1976_vm1, %v2160_v58, 0 }
 0x30c   : > { %v8178_v2 = vpop.permute.xlu0 %8177 }
 0x30d   : > { %v10197_v42 = vpop.permute.xlu1 %8207  ;;  %v2182_v54 = vsel %vm1976_vm1, %v2161_v59, 0  ;;  %v2159_v14 = vpack.c.b16 %v2152_v23, %v2151_v43  ;;  %v8180_v56 = vunpack.i.h.bf16 %v8178_v2 }
 0x30e   : > { %2192 = vmatpush.bf16.xpose.msrb.mxu0 %v2182_v54 }
 0x30f   : > { %v1685_v57 = vpack.c.bf16 %v8180_v56, %v8180_v56 }
 0x311   : > { %v10205_v46 = vpop.f32.mrf.mxu3  ;;  %v2342_v56 = vunpack.c.l.b16 %v1685_v57 }
 0x313   : > { %8402 = vrot.lane.b32.xlu0 %v8391_v32, %s9223_s26  ;;  %2747 = vmax.xlane.f32.xlu2 %v2746_v12  ;;  %v2176_v32 = vsel %vm1976_vm1, %v2159_v14, 0  ;;  %v1441_v12 = vpack.c.bf16 %v8075_v7, %v8075_v7 }
 0x315   : > { %v10207_v15 = vpop.permute.xlu1 %8222  ;;  %v8188_v59 = vpop.permute.xlu0 %8187  ;;  %v2132_v5 = vunpack.c.l.b16 %v1441_v12  ;;  %v8129_v12 = vunpack.i.l.bf16 %v10097_v38 }
 0x316   : > { %14275 = vst [vmem:[#allocation31_spill] sm:$0xff] %v10207_v15  ;;  %2193 = vmatpush.bf16.xpose.msrb.mxu0 %v2179_v52  ;;  %v8179_v52 = vunpack.i.l.bf16 %v8178_v2  ;;  %v8190_v43 = vunpack.i.h.bf16 %v8188_v59  ;;  %v8189_v23 = vunpack.i.l.bf16 %v8188_v59 }
 0x318   : > { %v1701_v2 = vpack.c.bf16 %v8190_v43, %v8190_v43  ;;  %v1700_v17 = vpack.c.bf16 %v8189_v23, %v8189_v23  ;;  %v1682_v23 = vpack.c.bf16 %v8129_v12, %v8129_v12 }
 0x319   : > { %v2017_v54 = vpop.f32.mrf.mxu3 }
 0x31a   : > { %v10213_v1 = vmul.f32 0.17677669, %v2017_v54  ;;  %v2131_v54 = vunpack.c.l.b16 %v1440_v34  ;;  %v10227_v34 = vpop.permute.xlu2 %8247  ;;  %v2527_v43 = vunpack.c.l.b16 %v1700_v17 }
 0x31c   : > { %14276 = vst [vmem:[#allocation32_spill] sm:$0xff] %v10213_v1  ;;  %v2755_v3 = vsel %vm2745_vm2, %v10213_v1, -inf  ;;  %v2139_v1 = vpack.c.b16 %v2132_v5, %v2131_v54  ;;  %v8079_v5 = vunpack.i.l.bf16 %v9980_v55 }
 0x31d   : > { %v8233_v25 = vpop.permute.xlu1 %8232  ;;  %v8238_v49 = vpop.permute.xlu0 %8237  ;;  %2756 = vmax.xlane.f32.xlu2 %v2755_v3 }
 0x31e   : > { %v8235_v35 = vunpack.i.h.bf16 %v8233_v25  ;;  %v8234_v39 = vunpack.i.l.bf16 %v8233_v25  ;;  %v8240_v36 = vunpack.i.h.bf16 %v8238_v49  ;;  %v8239_v58 = vunpack.i.l.bf16 %v8238_v49  ;;  %2194 = vmatpush.bf16.xpose.msrb.mxu0 %v2176_v32 }
 0x31f   : > { %v1684_v49 = vpack.c.bf16 %v8179_v52, %v8179_v52  ;;  %v8130_v32 = vunpack.i.h.bf16 %v10097_v38  ;;  %v2528_v52 = vunpack.c.l.b16 %v1701_v2  ;;  %v8125_v38 = vunpack.i.h.bf16 %v10081_v21 }
 0x320   : > { %v1687_v48 = vpack.c.bf16 %v8235_v35, %v8235_v35  ;;  %v1686_v61 = vpack.c.bf16 %v8234_v39, %v8234_v39  ;;  %v1703_v14 = vpack.c.bf16 %v8240_v36, %v8240_v36  ;;  %v1702_v7 = vpack.c.bf16 %v8239_v58, %v8239_v58 }
 0x321   : > { %v2020_v59 = vpop.f32.mrf.mxu3  ;;  %v10233_v58 = vmul.f32 0.17677669, %v10195_v31  ;;  %v2533_v17 = vpack.c.b16 %v2528_v52, %v2527_v43  ;;  %v8090_v2 = vunpack.i.h.bf16 %v9998_v30 }
 0x322   : > { %v2530_v45 = vunpack.c.l.b16 %v1703_v14  ;;  %v2529_v44 = vunpack.c.l.b16 %v1702_v7  ;;  %v2343_v40 = vunpack.c.l.b16 %v1686_v61  ;;  %v2344_v25 = vunpack.c.l.b16 %v1687_v48 }
 0x323   : > { %v10217_v35 = vmul.f32 0.17677669, %v2020_v59  ;;  %v8135_v48 = vunpack.i.h.bf16 %v10109_v4  ;;  %v8134_v61 = vunpack.i.l.bf16 %v10109_v4  ;;  %v8124_v4 = vunpack.i.l.bf16 %v10081_v21 }
 0x324   : > { %v2348_v15 = vpack.c.b16 %v2344_v25, %v2343_v40  ;;  %v2534_v50 = vpack.c.b16 %v2530_v45, %v2529_v44  ;;  %v2341_v44 = vunpack.c.l.b16 %v1684_v49  ;;  %v2749_v31 = vsel %vm2745_vm2, %v10233_v58, -inf }
 0x325   : > { %v10219_v36 = vpop.permute.xlu1 %8242  ;;  %v10221_v39 = vpop.permute.xlu0 %8252  ;;  %7518 = vmatmul.msk.bf16.vlgmr.msrb.gmra.mxu0 %vm1976_vm1, %v2139_v1  ;;  %v2758_v1 = vsel %vm2745_vm2, %v10217_v35, -inf  ;;  %v1698_v3 = vpack.c.bf16 %v8134_v61, %v8134_v61  ;;  %v8080_v7 = vunpack.i.h.bf16 %v9980_v55  ;;  %v1443_v21 = vpack.c.bf16 %v8125_v38, %v8125_v38 }
 0x326   : > { %v2371_v40 = vsel %vm1976_vm1, %v2348_v15, 0  ;;  %v2557_v45 = vsel %vm1976_vm1, %v2534_v50, 0  ;;  %2759 = vmax.xlane.f32.xlu2 %v2758_v1  ;;  %v1683_v15 = vpack.c.bf16 %v8130_v32, %v8130_v32  ;;  %v1699_v50 = vpack.c.bf16 %v8135_v48, %v8135_v48  ;;  %v8258_v38 = vpop.permute.xlu2 %8257 }
 0x327   : > { %2377 = vmatpush.bf16.xpose.msrb.mxu2 %v2371_v40  ;;  %2563 = vmatpush.bf16.xpose.msra.mxu0 %v2557_v45  ;;  %v2347_v57 = vpack.c.b16 %v2342_v56, %v2341_v44  ;;  %v1442_v54 = vpack.c.bf16 %v8124_v4, %v8124_v4  ;;  %v8089_v59 = vunpack.i.l.bf16 %v9998_v30  ;;  %v2339_v32 = vunpack.c.l.b16 %v1682_v23 }
 0x328   : > { %v2526_v12 = vunpack.c.l.b16 %v1699_v50  ;;  %v2525_v48 = vunpack.c.l.b16 %v1698_v3  ;;  %v2340_v40 = vunpack.c.l.b16 %v1683_v15  ;;  %v10251_v45 = vmul.f32 0.17677669, %v10205_v46 }
 0x329   : > { %v2022_v14 = vpop.f32.mrf.mxu3  ;;  %v2368_v61 = vsel %vm1976_vm1, %v2347_v57, 0  ;;  %v2554_v55 = vsel %vm1976_vm1, %v2533_v17, 0  ;;  %v1681_v44 = vpack.c.bf16 %v8080_v7, %v8080_v7  ;;  %v1680_v56 = vpack.c.bf16 %v8079_v5, %v8079_v5 }
 0x32a   : > { %v2134_v52 = vunpack.c.l.b16 %v1443_v21  ;;  %v2133_v43 = vunpack.c.l.b16 %v1442_v54  ;;  %v1697_v4 = vpack.c.bf16 %v8090_v2, %v8090_v2  ;;  %v1696_v30 = vpack.c.bf16 %v8089_v59, %v8089_v59 }
 0x32b   : > { %v2346_v1 = vpack.c.b16 %v2340_v40, %v2339_v32  ;;  %v2532_v23 = vpack.c.b16 %v2526_v12, %v2525_v48  ;;  %v8260_v50 = vunpack.i.h.bf16 %v8258_v38  ;;  %v8259_v3 = vunpack.i.l.bf16 %v8258_v38 }
 0x32c   : > { %v2752_v46 = vsel %vm2745_vm2, %v10251_v45, -inf  ;;  %v2140_v17 = vpack.c.b16 %v2134_v52, %v2133_v43  ;;  %v2337_v7 = vunpack.c.l.b16 %v1680_v56  ;;  %v2338_v5 = vunpack.c.l.b16 %v1681_v44 }
 0x32d   : > { %v10243_v25 = vpop.permute.xlu1 %8292  ;;  %2750 = vmax.xlane.f32.xlu1 %v2749_v31  ;;  %v10245_v49 = vpop.permute.xlu0 %8262  ;;  %v2524_v21 = vunpack.c.l.b16 %v1697_v4  ;;  %v2523_v54 = vunpack.c.l.b16 %v1696_v30  ;;  %v8085_v2 = vunpack.i.h.bf16 %v10145_v6  ;;  %v8084_v59 = vunpack.i.l.bf16 %v10145_v6 }
 0x32e   : > { %v8205_v32 = vunpack.i.h.bf16 %v10189_v13  ;;  %v2365_v12 = vsel %vm1976_vm1, %v2346_v1, 0  ;;  %v2551_v48 = vsel %vm1976_vm1, %v2532_v23, 0  ;;  %v1895_v40 = vpack.c.bf16 %v8260_v50, %v8260_v50 }
 0x32f   : > { %2378 = vmatpush.bf16.xpose.msrb.mxu2 %v2368_v61  ;;  %2564 = vmatpush.bf16.xpose.msra.mxu0 %v2554_v55  ;;  %v8204_v61 = vunpack.i.l.bf16 %v10189_v13  ;;  %v1894_v55 = vpack.c.bf16 %v8259_v3, %v8259_v3  ;;  %v10267_v56 = vmul.f32 0.17677669, %v2022_v14  ;;  %v8185_v44 = vunpack.i.h.bf16 %v10140_v33 }
 0x330   : > { %v8184_v52 = vunpack.i.l.bf16 %v10140_v33  ;;  %v2345_v6 = vpack.c.b16 %v2338_v5, %v2337_v7  ;;  %v1457_v43 = vpack.c.bf16 %v8085_v2, %v8085_v2  ;;  %v2531_v38 = vpack.c.b16 %v2524_v21, %v2523_v54 }
 0x331   : > { %v2025_v57 = vpop.f32.mrf.mxu3  ;;  %v1456_v4 = vpack.c.bf16 %v8084_v59, %v8084_v59  ;;  %v8150_v30 = vunpack.i.h.bf16 %v10163_v47  ;;  %v8149_v1 = vunpack.i.l.bf16 %v10163_v47  ;;  %v1893_v23 = vpack.c.bf16 %v8205_v32, %v8205_v32 }
 0x332   : > { %v1892_v13 = vpack.c.bf16 %v8204_v61, %v8204_v61  ;;  %v4551_v50 = vunpack.c.l.b16 %v1895_v40  ;;  %v4550_v3 = vunpack.c.l.b16 %v1894_v55  ;;  %v2362_v21 = vsel %vm1976_vm1, %v2345_v6, 0 }
 0x333   : > { %v2318_v47 = vunpack.c.l.b16 %v1457_v43  ;;  %v8100_v54 = vunpack.i.h.bf16 %v10026_v20  ;;  %v8099_v2 = vunpack.i.l.bf16 %v10026_v20  ;;  %v2548_v59 = vsel %vm1976_vm1, %v2531_v38, 0 }
 0x334   : > { %v2317_v32 = vunpack.c.l.b16 %v1456_v4  ;;  %v1890_v61 = vpack.c.bf16 %v8149_v1, %v8149_v1  ;;  %v4549_v55 = vunpack.c.l.b16 %v1893_v23  ;;  %v8264_v20 = vunpack.i.l.bf16 %v10245_v49 }
 0x335   : > { %v10256_v15 = vpop.permute.xlu1 %8302  ;;  %2753 = vmax.xlane.f32.xlu1 %v2752_v46  ;;  %v10258_v31 = vpop.permute.xlu0 %8267  ;;  %7519 = vmatmul.msk.bf16.gmra.mxu0 %vm1976_vm1, %v2140_v17  ;;  %v2761_v46 = vsel %vm2745_vm2, %v10267_v56, -inf  ;;  %v1445_v17 = vpack.c.bf16 %v8185_v44, %v8185_v44  ;;  %v4548_v44 = vunpack.c.l.b16 %v1892_v13  ;;  %v14277_v38 = vpack.c.b16 %v9939_v9, %v9941_v24 }
 0x336   : > { %v1889_v4 = vpack.c.bf16 %v8100_v54, %v8100_v54  ;;  %v4546_v23 = vunpack.c.l.b16 %v1890_v61  ;;  %v8209_v13 = vunpack.i.l.bf16 %v10197_v42  ;;  %v14278_v54 = vpack.c.b16 %v9892_v10, %v9890_v27 }
 0x337   : > { %2379 = vmatpush.bf16.xpose.msrb.mxu2 %v2365_v12  ;;  %2565 = vmatpush.bf16.xpose.msra.mxu0 %v2551_v48  ;;  %v1444_v12 = vpack.c.bf16 %v8184_v52, %v8184_v52  ;;  %v1891_v48 = vpack.c.bf16 %v8150_v30, %v8150_v30  ;;  %v4555_v52 = vpack.c.b16 %v4551_v50, %v4550_v3  ;;  %v2136_v6 = vunpack.c.l.b16 %v1445_v17 }
 0x338   : > { %v1888_v30 = vpack.c.bf16 %v8099_v2, %v8099_v2  ;;  %v4554_v3 = vpack.c.b16 %v4549_v55, %v4548_v44  ;;  %v2325_v17 = vpack.c.b16 %v2318_v47, %v2317_v32  ;;  %v8154_v32 = vunpack.i.l.bf16 %v10128_v51 }
 0x339   : > { %v2027_v14 = vpop.f32.mrf.mxu3  ;;  %v2135_v43 = vunpack.c.l.b16 %v1444_v12  ;;  %v4547_v1 = vunpack.c.l.b16 %v1891_v48  ;;  %v8155_v48 = vunpack.i.h.bf16 %v10128_v51  ;;  %v8245_v44 = vunpack.i.h.bf16 %v10219_v36 }
 0x33a   : > { %v10275_v33 = vmul.f32 0.17677669, %v2027_v14  ;;  %v10287_v14 = vmul.f32 0.17677669, %v2025_v57  ;;  %v8210_v57 = vunpack.i.h.bf16 %v10197_v42  ;;  %v4545_v42 = vunpack.c.l.b16 %v1889_v4 }
 0x33b   : > { %v2141_v24 = vpack.c.b16 %v2136_v6, %v2135_v43  ;;  %v4544_v2 = vunpack.c.l.b16 %v1888_v30  ;;  %v4553_v47 = vpack.c.b16 %v4547_v1, %v4546_v23  ;;  %v8244_v27 = vunpack.i.l.bf16 %v10219_v36 }
 0x33c   : > { %v2767_v40 = vsel %vm2745_vm2, %v10275_v33, -inf  ;;  %v1909_v61 = vpack.c.bf16 %v8210_v57, %v8210_v57  ;;  %v8140_v6 = vunpack.i.h.bf16 %v10121_v8  ;;  %v8139_v43 = vunpack.i.l.bf16 %v10121_v8 }
 0x33d   : > { %v10277_v7 = vpop.permute.xlu1 %8322  ;;  %2762 = vmax.xlane.f32.xlu1 %v2761_v46  ;;  %v10279_v5 = vpop.permute.xlu0 %8277  ;;  %v8265_v46 = vunpack.i.h.bf16 %v10245_v49  ;;  %2768 = vmax.xlane.f32.xlu0 %v2767_v40  ;;  %v2764_v49 = vsel %vm2745_vm2, %v10287_v14, -inf  ;;  %v1908_v40 = vpack.c.bf16 %v8209_v13, %v8209_v13  ;;  %v8105_v51 = vunpack.i.h.bf16 %v10138_v0 }
 0x33e   : > { %v4552_v4 = vpack.c.b16 %v4545_v42, %v4544_v2  ;;  %v1906_v30 = vpack.c.bf16 %v8154_v32, %v8154_v32  ;;  %v4719_v1 = vunpack.c.l.b16 %v1909_v61  ;;  %v1447_v13 = vpack.c.bf16 %v8245_v44, %v8245_v44 }
 0x33f   : > { %2380 = vmatpush.bf16.xpose.msrb.mxu2 %v2362_v21  ;;  %2566 = vmatpush.bf16.xpose.msra.mxu0 %v2548_v59  ;;  %v1911_v12 = vpack.c.bf16 %v8265_v46, %v8265_v46  ;;  %v1910_v21 = vpack.c.bf16 %v8264_v20, %v8264_v20  ;;  %v14279_v46 = vpack.c.b16 %v9840_v28, %v9838_v19  ;;  %v8104_v20 = vunpack.i.l.bf16 %v10138_v0 }
 0x340   : > { %v4718_v36 = vunpack.c.l.b16 %v1908_v40  ;;  %v1446_v8 = vpack.c.bf16 %v8244_v27, %v8244_v27  ;;  %v1459_v0 = vpack.c.bf16 %v8140_v6, %v8140_v6  ;;  %v4716_v42 = vunpack.c.l.b16 %v1906_v30 }
 0x341   : > { %v4721_v10 = vunpack.c.l.b16 %v1911_v12  ;;  %v2138_v2 = vunpack.c.l.b16 %v1447_v13  ;;  %v8194_v30 = vunpack.i.l.bf16 %v10155_v26 }
 0x342   : > { %v2320_v32 = vunpack.c.l.b16 %v1459_v0 }
 0x343   : > { %v1460_v0 = vpack.c.bf16 %v8194_v30, %v8194_v30 }
 0x344   : > { %v2103_v50 = vpop.f32.mrf.mxu3 }
 0x345   : > { %v10298_v59 = vpop.permute.xlu1 %8327  ;;  %2765 = vmax.xlane.f32.xlu1 %v2764_v49  ;;  %v10300_v9 = vpop.permute.xlu0 %8287  ;;  %7520 = vmatmul.msk.bf16.gmra.mxu0 %vm1976_vm1, %v2141_v24  ;;  %v10309_v55 = vmul.f32 0.17677669, %v2103_v50  ;;  %v1458_v49 = vpack.c.bf16 %v8139_v43, %v8139_v43  ;;  %v1904_v24 = vpack.c.bf16 %v8104_v20, %v8104_v20  ;;  %v8094_v20 = vunpack.i.l.bf16 %v10126_v16 }
 0x346   : > { %7526 = vmatmul.msk.bf16.vlgmr.msrb.gmra.mxu2 %vm1976_vm1, %v2325_v17  ;;  %v14280_v17 = vpack.c.b16 %v9777_v37, %v9786_v53 }
 0x347   : > { %4406 = vmatpush.bf16.msra.mxu2 %v14277_v38  ;;  %4576 = vmatpush.bf16.msrb.mxu0 %v4555_v52  ;;  %v4720_v52 = vunpack.c.l.b16 %v1910_v21  ;;  %v1907_v38 = vpack.c.bf16 %v8155_v48, %v8155_v48  ;;  %v2770_v57 = vsel %vm2745_vm2, %v10309_v55, -inf  ;;  %v1905_v21 = vpack.c.bf16 %v8105_v51, %v8105_v51 }
 0x348   : > { %v2137_v48 = vunpack.c.l.b16 %v1446_v8  ;;  %v2319_v61 = vunpack.c.l.b16 %v1458_v49  ;;  %v4714_v37 = vunpack.c.l.b16 %v1904_v24  ;;  %v8095_v51 = vunpack.i.h.bf16 %v10126_v16 }
 0x349   : > { %v4725_v50 = vpack.c.b16 %v4721_v10, %v4720_v52  ;;  %v4715_v40 = vunpack.c.l.b16 %v1905_v21  ;;  %v1472_v13 = vpack.c.bf16 %v8094_v20, %v8094_v20 }
 0x34a   : > { %v2142_v6 = vpack.c.b16 %v2138_v2, %v2137_v48  ;;  %v2326_v43 = vpack.c.b16 %v2320_v32, %v2319_v61  ;;  %v8114_v2 = vunpack.i.l.bf16 %v10042_v41  ;;  %v2321_v61 = vunpack.c.l.b16 %v1460_v0 }
 0x34b   : > { %4407 = vmatpush.bf16.msra.mxu2 %v14278_v54  ;;  %4577 = vmatpush.bf16.msrb.mxu0 %v4554_v3  ;;  %v4717_v54 = vunpack.c.l.b16 %v1907_v38  ;;  %v8273_v38 = vpop.permute.xlu2 %8272 }
 0x34c   : > { %v2105_v23 = vpop.f32.mrf.mxu3 }
 0x34d   : > { %v10322_v3 = vmul.f32 0.17677669, %v2105_v23  ;;  %v10324_v19 = vpop.permute.xlu1 %8337  ;;  %2771 = vmax.xlane.f32.xlu1 %v2770_v57  ;;  %v10326_v28 = vpop.permute.xlu0 %8307  ;;  %v4723_v52 = vpack.c.b16 %v4717_v54, %v4716_v42  ;;  %v8274_v23 = vunpack.i.l.bf16 %v8273_v38  ;;  %v1473_v57 = vpack.c.bf16 %v8095_v51, %v8095_v51 }
 0x34e   : > { %v8115_v42 = vunpack.i.h.bf16 %v10042_v41 }
 0x34f   : > { %4408 = vmatpush.bf16.msra.mxu2 %v14279_v46  ;;  %4578 = vmatpush.bf16.msrb.mxu0 %v4553_v47  ;;  %v2773_v12 = vsel %vm2745_vm2, %v10322_v3, -inf  ;;  %v4724_v47 = vpack.c.b16 %v4719_v1, %v4718_v36  ;;  %v4722_v1 = vpack.c.b16 %v4715_v40, %v4714_v37  ;;  %v8275_v36 = vunpack.i.h.bf16 %v8273_v38 }
 0x350   : > { %2774 = vmax.xlane.f32.xlu0 %v2773_v12  ;;  %v8220_v12 = vunpack.i.h.bf16 %v10172_v22  ;;  %v1926_v24 = vpack.c.bf16 %v8274_v23, %v8274_v23  ;;  %v2504_v48 = vunpack.c.l.b16 %v1473_v57  ;;  %v8165_v40 = vunpack.i.h.bf16 %v10176_v11 }
 0x351   : > { %v1927_v21 = vpack.c.bf16 %v8275_v36, %v8275_v36 }
 0x352   : > { %v1925_v37 = vpack.c.bf16 %v8220_v12, %v8220_v12  ;;  %v1923_v41 = vpack.c.bf16 %v8165_v40, %v8165_v40 }
 0x353   : > { %4409 = vmatpush.bf16.msra.mxu2 %v14280_v17  ;;  %4579 = vmatpush.bf16.msrb.mxu0 %v4552_v4  ;;  %v8195_v4 = vunpack.i.h.bf16 %v10155_v26  ;;  %v8219_v26 = vunpack.i.l.bf16 %v10172_v22 }
 0x354   : > { %v2108_v44 = vpop.f32.mrf.mxu3 }
 0x355   : > { %v10333_v53 = vmul.f32 0.17677669, %v2108_v44  ;;  %v10335_v27 = vpop.permute.xlu1 %8347  ;;  %v10337_v10 = vpop.permute.xlu0 %8317  ;;  %7521 = vmatmul.msk.bf16.gmra.mxu0 %vm1976_vm1, %v2142_v6  ;;  %v8164_v44 = vunpack.i.l.bf16 %v10176_v11  ;;  %v1924_v22 = vpack.c.bf16 %v8219_v26, %v8219_v26  ;;  %v4890_v6 = vunpack.c.l.b16 %v1926_v24 }
 0x356   : > { %7527 = vmatmul.msk.bf16.gmra.mxu2 %vm1976_vm1, %v2326_v43  ;;  %v10361_v43 = vpack.c.bf16 %v8115_v42, %v8115_v42  ;;  %v4889_v11 = vunpack.c.l.b16 %v1925_v37  ;;  %v8350_v0 = vunpack.i.h.bf16 %v10335_v27  ;;  %v8349_v12 = vunpack.i.l.bf16 %v10335_v27 }
 0x357   : > { %4746 = vmatpush.bf16.msrb.mxu2 %v4725_v50  ;;  %v2776_v46 = vsel %vm2745_vm2, %v10333_v53, -inf  ;;  %v1461_v50 = vpack.c.bf16 %v8195_v4, %v8195_v4  ;;  %v1922_v38 = vpack.c.bf16 %v8164_v44, %v8164_v44  ;;  %v4888_v23 = vunpack.c.l.b16 %v1924_v22 }
 0x358   : > { %2777 = vmax.xlane.f32.xlu1 %v2776_v46  ;;  %v10363_v46 = vpack.c.bf16 %v8114_v2, %v8114_v2  ;;  %v8144_v24 = vunpack.i.l.bf16 %v10148_v29  ;;  %v4887_v2 = vunpack.c.l.b16 %v1923_v41  ;;  %v4885_v40 = vunpack.c.l.b16 %v10361_v43 }
 0x359   : > { %v2322_v32 = vunpack.c.l.b16 %v1461_v50  ;;  %v10369_v50 = vpop.permute.xlu2 %8282  ;;  %v1677_v44 = vpack.c.bf16 %v8350_v0, %v8350_v0  ;;  %v1676_v37 = vpack.c.bf16 %v8349_v12, %v8349_v12  ;;  %v4894_v22 = vpack.c.b16 %v4889_v11, %v4888_v23 }
 0x35a   : > { %v8320_v43 = vunpack.i.h.bf16 %v10337_v10 }
 0x35b   : > { %4747 = vmatpush.bf16.msrb.mxu2 %v4724_v47  ;;  %v2503_v47 = vunpack.c.l.b16 %v1472_v13  ;;  %v2327_v36 = vpack.c.b16 %v2322_v32, %v2321_v61  ;;  %v8249_v32 = vunpack.i.l.bf16 %v10227_v34  ;;  %v2248_v0 = vunpack.c.l.b16 %v1676_v37 }
 0x35c   : > { %v2110_v8 = vpop.f32.mrf.mxu3  ;;  %v2249_v12 = vunpack.c.l.b16 %v1677_v44 }
 0x35d   : > { %v10347_v49 = vmul.f32 0.17677669, %v2110_v8  ;;  %v10349_v16 = vpop.permute.xlu1 %8372  ;;  %v10351_v17 = vpop.permute.xlu0 %8342  ;;  %v2511_v51 = vpack.c.b16 %v2504_v48, %v2503_v47  ;;  %v4886_v48 = vunpack.c.l.b16 %v1922_v38  ;;  %v8250_v47 = vunpack.i.h.bf16 %v10227_v34 }
 0x35e   : > { %v1462_v38 = vpack.c.bf16 %v8249_v32, %v8249_v32 }
 0x35f   : > { %4748 = vmatpush.bf16.msrb.mxu2 %v4723_v52  ;;  %v2779_v54 = vsel %vm2745_vm2, %v10347_v49, -inf  ;;  %v4891_v52 = vunpack.c.l.b16 %v1927_v21  ;;  %v8145_v21 = vunpack.i.h.bf16 %v10148_v29  ;;  %v4884_v29 = vunpack.c.l.b16 %v10363_v46 }
 0x360   : > { %2780 = vmax.xlane.f32.xlu1 %v2779_v54  ;;  %v1463_v41 = vpack.c.bf16 %v8250_v47, %v8250_v47  ;;  %v2323_v47 = vunpack.c.l.b16 %v1462_v38 }
 0x361   : > { %v4895_v8 = vpack.c.b16 %v4891_v52, %v4890_v6  ;;  %v1475_v52 = vpack.c.bf16 %v8145_v21, %v8145_v21  ;;  %v1474_v6 = vpack.c.bf16 %v8144_v24, %v8144_v24  ;;  %v4892_v44 = vpack.c.b16 %v4885_v40, %v4884_v29 }
 0x362   : > { %v8289_v40 = vunpack.i.l.bf16 %v10300_v9 }
 0x363   : > { %4749 = vmatpush.bf16.msrb.mxu2 %v4722_v1 }
 0x364   : > { %v2113_v20 = vpop.f32.mrf.mxu3 }
 0x365   : > { %v10365_v4 = vmul.f32 0.17677669, %v2113_v20  ;;  %v8378_v30 = vpop.permute.xlu1 %8377  ;;  %v10367_v1 = vpop.permute.xlu0 %8352  ;;  %7534 = vmatmul.msk.bf16.vlgmr.msra.gmra.mxu0 %vm1976_vm1, %v2511_v51 }
 0x366   : > { %v8380_v57 = vunpack.i.h.bf16 %v8378_v30  ;;  %v8379_v13 = vunpack.i.l.bf16 %v8378_v30  ;;  %7528 = vmatmul.msk.bf16.gmra.mxu2 %vm1976_vm1, %v2327_v36  ;;  %4916 = vmatpush.bf16.msra.mxu0 %v4895_v8  ;;  %v8354_v21 = vunpack.i.l.bf16 %v10367_v1 }
 0x367   : > { %v2782_v26 = vsel %vm2745_vm2, %v10365_v4, -inf }
 0x368   : > { %v1679_v54 = vpack.c.bf16 %v8380_v57, %v8380_v57  ;;  %v1678_v42 = vpack.c.bf16 %v8379_v13, %v8379_v13  ;;  %2783 = vmax.xlane.f32.xlu0 %v2782_v26  ;;  %v4893_v57 = vpack.c.b16 %v4887_v2, %v4886_v48  ;;  %v8319_v13 = vunpack.i.l.bf16 %v10337_v10  ;;  %v10394_v48 = vpop.permute.xlu2 %8297 }
 0x369   : > { %v8355_v26 = vunpack.i.h.bf16 %v10367_v1  ;;  %v2505_v2 = vunpack.c.l.b16 %v1474_v6  ;;  %v2324_v10 = vunpack.c.l.b16 %v1463_v41  ;;  %v8330_v6 = vunpack.i.h.bf16 %v10298_v59 }
 0x36a   : > { %v2250_v27 = vunpack.c.l.b16 %v1678_v42  ;;  %v2251_v61 = vunpack.c.l.b16 %v1679_v54  ;;  %4917 = vmatpush.bf16.msra.mxu0 %v4894_v22  ;;  %v2506_v42 = vunpack.c.l.b16 %v1475_v52  ;;  %v1674_v37 = vpack.c.bf16 %v8319_v13, %v8319_v13 }
 0x36b   : > { %v1693_v22 = vpack.c.bf16 %v8355_v26, %v8355_v26  ;;  %v8199_v52 = vunpack.i.l.bf16 %v10184_v63  ;;  %v8329_v41 = vunpack.i.l.bf16 %v10298_v59 }
 0x36c   : > { %v2115_v51 = vpop.f32.mrf.mxu3  ;;  %v2255_v20 = vpack.c.b16 %v2251_v61, %v2250_v27  ;;  %v1675_v61 = vpack.c.bf16 %v8320_v43, %v8320_v43  ;;  %v8290_v43 = vunpack.i.h.bf16 %v10300_v9  ;;  %v2246_v13 = vunpack.c.l.b16 %v1674_v37 }
 0x36d   : > { %v10383_v30 = vmul.f32 0.17677669, %v2115_v51  ;;  %v8383_v34 = vpop.permute.xlu1 %8382  ;;  %v10385_v36 = vpop.permute.xlu0 %8362  ;;  %v1692_v51 = vpack.c.bf16 %v8354_v21, %v8354_v21  ;;  %v1476_v26 = vpack.c.bf16 %v8199_v52, %v8199_v52  ;;  %v1691_v9 = vpack.c.bf16 %v8330_v6, %v8330_v6 }
 0x36e   : > { %v8385_v11 = vunpack.i.h.bf16 %v8383_v34  ;;  %v8384_v23 = vunpack.i.l.bf16 %v8383_v34  ;;  %v2278_v46 = vsel %vm1976_vm1, %v2255_v20, 0  ;;  %4918 = vmatpush.bf16.msra.mxu0 %v4893_v57  ;;  %v2254_v20 = vpack.c.b16 %v2249_v12, %v2248_v0 }
 0x36f   : > { %v2785_v8 = vsel %vm2745_vm2, %v10383_v30, -inf  ;;  %2284 = vmatpush.bf16.xpose.msrb.mxu1 %v2278_v46  ;;  %v2512_v34 = vpack.c.b16 %v2506_v42, %v2505_v2  ;;  %v2328_v57 = vpack.c.b16 %v2324_v10, %v2323_v47  ;;  %v2434_v46 = vunpack.c.l.b16 %v1692_v51 }
 0x370   : > { %v1695_v24 = vpack.c.bf16 %v8385_v11, %v8385_v11  ;;  %v1694_v54 = vpack.c.bf16 %v8384_v23, %v8384_v23  ;;  %2786 = vmax.xlane.f32.xlu1 %v2785_v8  ;;  %v8200_v11 = vunpack.i.h.bf16 %v10184_v63  ;;  %v2435_v23 = vunpack.c.l.b16 %v1693_v22  ;;  %v10406_v21 = vpop.permute.xlu2 %8312 }
 0x371   : > { %v2275_v63 = vsel %vm1976_vm1, %v2254_v20, 0  ;;  %v2247_v8 = vunpack.c.l.b16 %v1675_v61  ;;  %v1672_v42 = vpack.c.bf16 %v8289_v40, %v8289_v40  ;;  %v2507_v37 = vunpack.c.l.b16 %v1476_v26 }
 0x372   : > { %v2437_v32 = vunpack.c.l.b16 %v1695_v24  ;;  %v2436_v27 = vunpack.c.l.b16 %v1694_v54  ;;  %4919 = vmatpush.bf16.msra.mxu0 %v4892_v44  ;;  %v1477_v12 = vpack.c.bf16 %v8200_v11, %v8200_v11  ;;  %v1690_v24 = vpack.c.bf16 %v8329_v41, %v8329_v41 }
 0x373   : > { %v1673_v54 = vpack.c.bf16 %v8290_v43, %v8290_v43  ;;  %v2253_v2 = vpack.c.b16 %v2247_v8, %v2246_v13  ;;  %v2440_v10 = vpack.c.b16 %v2435_v23, %v2434_v46  ;;  %v8300_v61 = vunpack.i.h.bf16 %v10394_v48 }
 0x374   : > { %v2441_v1 = vpack.c.b16 %v2437_v32, %v2436_v27  ;;  %v2508_v27 = vunpack.c.l.b16 %v1477_v12  ;;  %v8299_v44 = vunpack.i.l.bf16 %v10394_v48  ;;  %v2433_v22 = vunpack.c.l.b16 %v1691_v9 }
 0x375   : > { %v8388_v38 = vpop.permute.xlu0 %8387  ;;  %7535 = vmatmul.msk.bf16.gmra.mxu0 %vm1976_vm1, %v2512_v34  ;;  %v2432_v51 = vunpack.c.l.b16 %v1690_v24  ;;  %v2272_v20 = vsel %vm1976_vm1, %v2253_v2, 0  ;;  %v2244_v34 = vunpack.c.l.b16 %v1672_v42  ;;  %v2245_v11 = vunpack.c.l.b16 %v1673_v54 }
 0x376   : > { %v2464_v29 = vsel %vm1976_vm1, %v2441_v1, 0  ;;  %7529 = vmatmul.msk.bf16.gmra.mxu2 %vm1976_vm1, %v2328_v57  ;;  %v8390_v0 = vunpack.i.h.bf16 %v8388_v38  ;;  %v8389_v59 = vunpack.i.l.bf16 %v8388_v38  ;;  %v2461_v1 = vsel %vm1976_vm1, %v2440_v10, 0 }
 0x377   : > { %2285 = vmatpush.bf16.xpose.msrb.mxu1 %v2275_v63  ;;  %2470 = vmatpush.bf16.xpose.msrb.mxu3 %v2464_v29  ;;  %v8365_v52 = vunpack.i.h.bf16 %v10385_v36  ;;  %v8364_v6 = vunpack.i.l.bf16 %v10385_v36  ;;  %v8295_v57 = vunpack.i.h.bf16 %v10243_v25  ;;  %v8294_v48 = vunpack.i.l.bf16 %v10243_v25 }
 0x378   : > { %v1711_v47 = vpack.c.bf16 %v8390_v0, %v8390_v0  ;;  %v1710_v32 = vpack.c.bf16 %v8389_v59, %v8389_v59  ;;  %v1689_v43 = vpack.c.bf16 %v8300_v61, %v8300_v61  ;;  %v1688_v40 = vpack.c.bf16 %v8299_v44, %v8299_v44  ;;  %v8333_v46 = vpop.permute.xlu2 %8332 }
 0x379   : > { %v2252_v29 = vpack.c.b16 %v2245_v11, %v2244_v34  ;;  %v2439_v13 = vpack.c.b16 %v2433_v22, %v2432_v51  ;;  %v2513_v23 = vpack.c.b16 %v2508_v27, %v2507_v37  ;;  %v1709_v63 = vpack.c.bf16 %v8365_v52, %v8365_v52 }
 0x37a   : > { %v2623_v41 = vunpack.c.l.b16 %v1711_v47  ;;  %v2622_v38 = vunpack.c.l.b16 %v1710_v32  ;;  %v1708_v8 = vpack.c.bf16 %v8364_v6, %v8364_v6  ;;  %v1449_v59 = vpack.c.bf16 %v8295_v57, %v8295_v57 }
 0x37b   : > { %v1448_v12 = vpack.c.bf16 %v8294_v48, %v8294_v48  ;;  %v2431_v36 = vunpack.c.l.b16 %v1689_v43  ;;  %v2430_v26 = vunpack.c.l.b16 %v1688_v40  ;;  %v8255_v9 = vunpack.i.h.bf16 %v10221_v39 }
 0x37c   : > { %v2627_v0 = vpack.c.b16 %v2623_v41, %v2622_v38  ;;  %v8254_v24 = vunpack.i.l.bf16 %v10221_v39  ;;  %v8335_v25 = vunpack.i.h.bf16 %v8333_v46  ;;  %v8334_v54 = vunpack.i.l.bf16 %v8333_v46 }
 0x37d   : > { %v2269_v42 = vsel %vm1976_vm1, %v2252_v29, 0  ;;  %v2458_v2 = vsel %vm1976_vm1, %v2439_v13, 0  ;;  %v2621_v10 = vunpack.c.l.b16 %v1709_v63  ;;  %v2620_v47 = vunpack.c.l.b16 %v1708_v8 }
 0x37e   : > { %v2650_v32 = vsel %vm1976_vm1, %v2627_v0, 0  ;;  %v2225_v27 = vunpack.c.l.b16 %v1449_v59  ;;  %v2224_v37 = vunpack.c.l.b16 %v1448_v12  ;;  %v8305_v61 = vunpack.i.h.bf16 %v10256_v15 }
 0x37f   : > { %2286 = vmatpush.bf16.xpose.msrb.mxu1 %v2272_v20  ;;  %2471 = vmatpush.bf16.xpose.msrb.mxu3 %v2461_v1  ;;  %v8304_v39 = vunpack.i.l.bf16 %v10256_v15  ;;  %v1479_v44 = vpack.c.bf16 %v8255_v9, %v8255_v9  ;;  %v1478_v22 = vpack.c.bf16 %v8254_v24, %v8254_v24  ;;  %v1882_v51 = vpack.c.bf16 %v9975_v60, %v9975_v60 }
 0x380   : > { %v1883_v20 = vpack.c.bf16 %v9978_v18, %v9978_v18  ;;  %v1707_v1 = vpack.c.bf16 %v8335_v25, %v8335_v25  ;;  %v1706_v34 = vpack.c.bf16 %v8334_v54, %v8334_v54  ;;  %v2438_v11 = vpack.c.b16 %v2431_v36, %v2430_v26  ;;  %v10437_v36 = vpop.permute.xlu2 %8357  ;;  %v14281_v26 = vld [vmem:[#allocation25_spill] sm:$0xff] }
 0x381   : > { %v2626_v52 = vpack.c.b16 %v2621_v10, %v2620_v47  ;;  %v2232_v6 = vpack.c.b16 %v2225_v27, %v2224_v37  ;;  %v1465_v41 = vpack.c.bf16 %v8305_v61, %v8305_v61  ;;  %v1464_v38 = vpack.c.bf16 %v8304_v39, %v8304_v39  ;;  %v14284_v37 = vld [vmem:[#allocation27_spill] sm:$0xff] }
 0x382   : > { %v2510_v57 = vunpack.c.l.b16 %v1479_v44  ;;  %v2509_v48 = vunpack.c.l.b16 %v1478_v22  ;;  %v4461_v43 = vunpack.c.l.b16 %v1882_v51  ;;  %v4462_v15 = vunpack.c.l.b16 %v1883_v20  ;;  %v14285_v22 = vld [vmem:[#allocation24_spill] sm:$0xff]  ;;  %v14286_v51 = vld [vmem:[#allocation23_spill] sm:$0xff] }
 0x383   : > { %v2619_v40 = vunpack.c.l.b16 %v1707_v1  ;;  %v2618_v29 = vunpack.c.l.b16 %v1706_v34  ;;  %v8280_v13 = vunpack.i.h.bf16 %v10279_v5  ;;  %v2455_v60 = vsel %vm1976_vm1, %v2438_v11, 0  ;;  %v14288_v34 = vld [vmem:[#allocation29_spill] sm:$0xff] }
 0x384   : > { %v8279_v18 = vunpack.i.l.bf16 %v10279_v5  ;;  %v8309_v46 = vunpack.i.l.bf16 %v10326_v28  ;;  %v2647_v63 = vsel %vm1976_vm1, %v2626_v52, 0  ;;  %v2411_v8 = vunpack.c.l.b16 %v1465_v41  ;;  %v14283_v5 = vld [vmem:[#allocation31_spill] sm:$0xff] }
 0x385   : > { %7536 = vmatmul.msk.bf16.gmra.mxu0 %vm1976_vm1, %v2513_v23  ;;  %v8310_v23 = vunpack.i.h.bf16 %v10326_v28  ;;  %v2410_v0 = vunpack.c.l.b16 %v1464_v38  ;;  %v8325_v59 = vunpack.i.h.bf16 %v10277_v7  ;;  %v8324_v12 = vunpack.i.l.bf16 %v10277_v7 }
 0x386   : > { %v14282_v9 = vpack.c.b16 %v10063_v62, %v14281_v26  ;;  %v8225_v24 = vunpack.i.h.bf16 %v14283_v5  ;;  %v8224_v28 = vunpack.i.l.bf16 %v14283_v5  ;;  %v4468_v25 = vpack.c.b16 %v4462_v15, %v4461_v43 }
 0x387   : > { %2287 = vmatpush.bf16.xpose.msrb.mxu1 %v2269_v42  ;;  %2472 = vmatpush.bf16.xpose.msrb.mxu3 %v2458_v2  ;;  %v2514_v54 = vpack.c.b16 %v2510_v57, %v2509_v48  ;;  %v8270_v42 = vunpack.i.h.bf16 %v10258_v31  ;;  %v8269_v2 = vunpack.i.l.bf16 %v10258_v31  ;;  %v2625_v10 = vpack.c.b16 %v2619_v40, %v2618_v29 }
 0x388   : > { %v1919_v47 = vpack.c.bf16 %v8280_v13, %v8280_v13  ;;  %v1918_v7 = vpack.c.bf16 %v8279_v18, %v8279_v18  ;;  %v1704_v27 = vpack.c.bf16 %v8309_v46, %v8309_v46  ;;  %v8215_v61 = vunpack.i.h.bf16 %v14284_v37  ;;  %v10460_v5 = vpop.permute.xlu2 %8367 }
 0x389   : > { %v2418_v39 = vpack.c.b16 %v2411_v8, %v2410_v0  ;;  %v1451_v62 = vpack.c.bf16 %v8325_v59, %v8325_v59  ;;  %v1450_v44 = vpack.c.bf16 %v8324_v12, %v8324_v12  ;;  %v14287_v20 = vpack.c.b16 %v14285_v22, %v14286_v51 }
 0x38a   : > { %v8214_v1 = vunpack.i.l.bf16 %v14284_v37  ;;  %v8170_v11 = vunpack.i.h.bf16 %v14288_v34  ;;  %v8169_v31 = vunpack.i.l.bf16 %v14288_v34  ;;  %v1917_v52 = vpack.c.bf16 %v8225_v24, %v8225_v24 }
 0x38b   : > { %v1903_v41 = vpack.c.bf16 %v8270_v42, %v8270_v42  ;;  %v1902_v38 = vpack.c.bf16 %v8269_v2, %v8269_v2  ;;  %v2644_v57 = vsel %vm1976_vm1, %v2625_v10, 0  ;;  %v4806_v48 = vunpack.c.l.b16 %v1919_v47  ;;  %v14290_v10 = vld [vmem:[#allocation20_spill] sm:$0xff] }
 0x38c   : > { %v4805_v43 = vunpack.c.l.b16 %v1918_v7  ;;  %v2616_v40 = vunpack.c.l.b16 %v1704_v27  ;;  %v2227_v29 = vunpack.c.l.b16 %v1451_v62  ;;  %v2226_v13 = vunpack.c.l.b16 %v1450_v44 }
 0x38d   : > { %v8339_v18 = vunpack.i.l.bf16 %v10324_v19  ;;  %v1900_v46 = vpack.c.bf16 %v8214_v1, %v8214_v1  ;;  %v1915_v59 = vpack.c.bf16 %v8170_v11, %v8170_v11  ;;  %v1914_v12 = vpack.c.bf16 %v8169_v31, %v8169_v31 }
 0x38e   : > { %7522 = vmatmul.msk.bf16.vlgmr.msrb.gmra.mxu1 %vm1976_vm1, %v2232_v6  ;;  %v1916_v6 = vpack.c.bf16 %v8224_v28, %v8224_v28  ;;  %v4804_v26 = vunpack.c.l.b16 %v1917_v52  ;;  %v4636_v24 = vunpack.c.l.b16 %v1903_v41  ;;  %v4635_v28 = vunpack.c.l.b16 %v1902_v38 }
 0x38f   : > { %2656 = vmatpush.bf16.xpose.msra.mxu1 %v2650_v32  ;;  %2473 = vmatpush.bf16.xpose.msrb.mxu3 %v2455_v60  ;;  %v1705_v32 = vpack.c.bf16 %v8310_v23, %v8310_v23  ;;  %v8340_v60 = vunpack.i.h.bf16 %v10324_v19  ;;  %v1901_v23 = vpack.c.bf16 %v8215_v61, %v8215_v61  ;;  %v1466_v19 = vpack.c.bf16 %v8339_v18, %v8339_v18 }
 0x390   : > { %v2233_v7 = vpack.c.b16 %v2227_v29, %v2226_v13  ;;  %v4802_v22 = vunpack.c.l.b16 %v1915_v59  ;;  %v4801_v51 = vunpack.c.l.b16 %v1914_v12  ;;  %v8360_v11 = vunpack.i.h.bf16 %v10437_v36 }
 0x391   : > { %v2617_v15 = vunpack.c.l.b16 %v1705_v32  ;;  %v1467_v2 = vpack.c.bf16 %v8340_v60, %v8340_v60  ;;  %v14293_v32 = vld [vmem:[#allocation26_spill] sm:$0xff]  ;;  %v4634_v61 = vunpack.c.l.b16 %v1901_v23  ;;  %v8359_v31 = vunpack.i.l.bf16 %v10437_v36 }
 0x392   : > { %v8110_v27 = vunpack.i.h.bf16 %v14293_v32  ;;  %v8109_v37 = vunpack.i.l.bf16 %v14293_v32  ;;  %v4808_v13 = vpack.c.b16 %v4802_v22, %v4801_v51  ;;  %v1453_v60 = vpack.c.bf16 %v8360_v11, %v8360_v11  ;;  %v8393_v32 = vpop.permute.xlu1 %8392 }
 0x393   : > { %v2624_v42 = vpack.c.b16 %v2617_v15, %v2616_v40  ;;  %v2413_v52 = vunpack.c.l.b16 %v1467_v2  ;;  %v1452_v18 = vpack.c.bf16 %v8359_v31, %v8359_v31 }
 0x394   : > { %v1897_v41 = vpack.c.bf16 %v8110_v27, %v8110_v27  ;;  %v1896_v38 = vpack.c.bf16 %v8109_v37, %v8109_v37 }
 0x395   : > { %7537 = vmatmul.msk.bf16.gmra.mxu0 %vm1976_vm1, %v2514_v54  ;;  %v4810_v54 = vpack.c.b16 %v4806_v48, %v4805_v43  ;;  %v2641_v1 = vsel %vm1976_vm1, %v2624_v42, 0 }
 0x396   : > { %7530 = vmatmul.msk.bf16.vlgmr.msrb.gmra.mxu3 %vm1976_vm1, %v2418_v39  ;;  %v4633_v39 = vunpack.c.l.b16 %v1900_v46  ;;  %v14294_v46 = vld [vmem:[#allocation30_spill] sm:$0xff]  ;;  %v4629_v59 = vunpack.c.l.b16 %v1896_v38 }
 0x397   : > { %2657 = vmatpush.bf16.xpose.msra.mxu1 %v2647_v63  ;;  %4491 = vmatpush.bf16.msra.mxu3 %v14282_v9  ;;  %v14289_v63 = vld [vmem:[#allocation28_spill] sm:$0xff]  ;;  %v4803_v9 = vunpack.c.l.b16 %v1916_v6  ;;  %v2412_v6 = vunpack.c.l.b16 %v1466_v19 }
 0x398   : > { %v8160_v8 = vunpack.i.h.bf16 %v14289_v63  ;;  %v8159_v0 = vunpack.i.l.bf16 %v14289_v63  ;;  %v4639_v43 = vpack.c.b16 %v4634_v61, %v4633_v39  ;;  %v8395_v39 = vunpack.i.h.bf16 %v8393_v32 }
 0x399   : > { %v4809_v34 = vpack.c.b16 %v4804_v26, %v4803_v9  ;;  %v2419_v23 = vpack.c.b16 %v2413_v52, %v2412_v6  ;;  %v2229_v26 = vunpack.c.l.b16 %v1453_v60  ;;  %v2228_v9 = vunpack.c.l.b16 %v1452_v18 }
 0x39a   : > { %v1899_v62 = vpack.c.bf16 %v8160_v8, %v8160_v8  ;;  %v1898_v44 = vpack.c.bf16 %v8159_v0, %v8159_v0  ;;  %v2118_v8 = vpop.f32.mrf.mxu3  ;;  %v4630_v0 = vunpack.c.l.b16 %v1897_v41  ;;  %v1455_v51 = vpack.c.bf16 %v8395_v39, %v8395_v39 }
 0x39b   : > { %4492 = vmatpush.bf16.msra.mxu3 %v14287_v20  ;;  %v4640_v20 = vpack.c.b16 %v4636_v24, %v4635_v28  ;;  %v8370_v24 = vunpack.i.h.bf16 %v10460_v5  ;;  %v8369_v28 = vunpack.i.l.bf16 %v10460_v5  ;;  %v8285_v60 = vunpack.i.h.bf16 %v10369_v50 }
 0x39c   : > { %v4632_v15 = vunpack.c.l.b16 %v1899_v62  ;;  %v4631_v40 = vunpack.c.l.b16 %v1898_v44  ;;  %v8394_v62 = vunpack.i.l.bf16 %v8393_v32  ;;  %v2231_v11 = vunpack.c.l.b16 %v1455_v51 }
 0x39d   : > { %v8284_v18 = vunpack.i.l.bf16 %v10369_v50  ;;  %v8344_v32 = vunpack.i.l.bf16 %v10351_v17 }
 0x39e   : > { %7523 = vmatmul.msk.bf16.gmra.mxu1 %vm1976_vm1, %v2233_v7  ;;  %v4638_v12 = vpack.c.b16 %v4632_v15, %v4631_v40  ;;  %v2234_v7 = vpack.c.b16 %v2229_v26, %v2228_v9  ;;  %v8314_v15 = vunpack.i.l.bf16 %v10406_v21 }
 0x39f   : > { %2658 = vmatpush.bf16.xpose.msra.mxu1 %v2644_v57  ;;  %4493 = vmatpush.bf16.msra.mxu3 %v4468_v25  ;;  %v14291_v25 = vld [vmem:[#allocation19_spill] sm:$0xff]  ;;  %v2748_v57 = vpop.xlane.xlu2 %2747 }
 0x3a0   : > { %v14292_v47 = vpack.c.b16 %v14290_v10, %v14291_v25  ;;  %v2938_v36 = vsub.f32 %v14294_v46, %v2748_v57  ;;  %v4637_v10 = vpack.c.b16 %v4630_v0, %v4629_v59  ;;  %v1469_v25 = vpack.c.bf16 %v8370_v24, %v8370_v24 }
 0x3a1   : > { %v1934_v0 = vpack.c.bf16 %v8284_v18, %v8284_v18  ;;  %v8374_v18 = vunpack.i.l.bf16 %v10349_v16 }
 0x3a2   : > { %v2196_v48 = vpop.f32.mrf.mxu0  ;;  %v3002_v42 = vmul.f32 1.442695, %v2938_v36  ;;  %v2415_v37 = vunpack.c.l.b16 %v1469_v25  ;;  %v1480_v36 = vpack.c.bf16 %v8314_v15, %v8314_v15  ;;  %v2120_v50 = vpop.f32.mrf.mxu3 }
 0x3a3   : > { %4494 = vmatpush.bf16.msra.mxu3 %v14292_v47  ;;  %v10471_v29 = vmul.f32 0.17677669, %v2196_v48  ;;  %v1468_v47 = vpack.c.bf16 %v8369_v28, %v8369_v28  ;;  %v4975_v24 = vunpack.c.l.b16 %v1934_v0  ;;  %v2751_v25 = vpop.xlane.xlu1 %2750 }
 0x3a4   : > { %8586 = vpow2.f32 %v3002_v42 }
 0x3a5   : > { %v2794_v63 = vsel %vm2745_vm2, %v10471_v29, -inf  ;;  %v2414_v61 = vunpack.c.l.b16 %v1468_v47  ;;  %v10504_v47 = vmul.f32 0.17677669, %v2120_v50 }
 0x3a6   : > { %7531 = vmatmul.msk.bf16.gmra.mxu3 %vm1976_vm1, %v2419_v23  ;;  %2795 = vmax.xlane.f32.xlu0 %v2794_v63 }
 0x3a7   : > { %4831 = vmatpush.bf16.msrb.mxu3 %v4810_v54  ;;  %2659 = vmatpush.bf16.xpose.msra.mxu1 %v2641_v1  ;;  %v10479_v54 = vmul.f32 0.17677669, %v2118_v8  ;;  %v2420_v22 = vpack.c.b16 %v2415_v37, %v2414_v61  ;;  %v8398_v1 = vpop.permute.xlu0 %8397  ;;  %v1935_v8 = vpack.c.bf16 %v8285_v60, %v8285_v60  ;;  %v2939_v37 = vsub.f32 %v10233_v58, %v2751_v25  ;;  %v2757_v51 = vpop.xlane.xlu2 %2756 }
 0x3a8   : > { %v8400_v52 = vunpack.i.h.bf16 %v8398_v1  ;;  %v8399_v6 = vunpack.i.l.bf16 %v8398_v1  ;;  %v2791_v61 = vsel %vm2745_vm2, %v10504_v47, -inf  ;;  %v8375_v60 = vunpack.i.h.bf16 %v10349_v16 }
 0x3a9   : > { %v2788_v27 = vsel %vm2745_vm2, %v10479_v54, -inf  ;;  %v4976_v9 = vunpack.c.l.b16 %v1935_v8 }
 0x3aa   : > { %v2198_v2 = vpop.f32.mrf.mxu0  ;;  %v10488_v44 = vpop.eup %8586  ;;  %v1471_v38 = vpack.c.bf16 %v8400_v52, %v8400_v52  ;;  %v1470_v57 = vpack.c.bf16 %v8399_v6, %v8399_v6  ;;  %v1485_v0 = vpack.c.bf16 %v8375_v60, %v8375_v60 }
 0x3ab   : > { %4832 = vmatpush.bf16.msrb.mxu3 %v4809_v34  ;;  %v10481_v19 = vmul.f32 0.17677669, %v2198_v2  ;;  %v3130_v34 = vsel %vm2745_vm2, %v10488_v44, 0.0 }
 0x3ac   : > { %v2417_v40 = vunpack.c.l.b16 %v1471_v38 }
 0x3ad   : > { %v2797_v5 = vsel %vm2745_vm2, %v10481_v19, -inf }
 0x3ae   : > { %7524 = vmatmul.msk.bf16.gmra.mxu1 %vm1976_vm1, %v2234_v7  ;;  %2789 = vmax.xlane.f32.xlu0 %v2788_v27  ;;  %v8345_v7 = vunpack.i.h.bf16 %v10351_v17 }
 0x3af   : > { %4661 = vmatpush.bf16.msrb.mxu1 %v4640_v20  ;;  %4833 = vmatpush.bf16.msrb.mxu3 %v4808_v13  ;;  %v1454_v20 = vpack.c.bf16 %v8394_v62, %v8394_v62  ;;  %v2416_v13 = vunpack.c.l.b16 %v1470_v57 }
 0x3b0   : > { %2798 = vmax.xlane.f32.xlu2 %v2797_v5  ;;  %v1483_v62 = vpack.c.bf16 %v8345_v7, %v8345_v7 }
 0x3b1   : > { %v2230_v31 = vunpack.c.l.b16 %v1454_v20  ;;  %v2421_v63 = vpack.c.b16 %v2417_v40, %v2416_v13  ;;  %v3004_v20 = vmul.f32 1.442695, %v2939_v37  ;;  %v2760_v40 = vpop.xlane.xlu2 %2759  ;;  %v8403_v37 = vpop.permute.xlu0 %8402 }
 0x3b2   : > { %v2201_v41 = vpop.f32.mrf.mxu0 }
 0x3b3   : > { %4662 = vmatpush.bf16.msrb.mxu1 %v4639_v43  ;;  %v2235_v48 = vpack.c.b16 %v2231_v11, %v2230_v31  ;;  %v8315_v43 = vunpack.i.h.bf16 %v10406_v21  ;;  %v10515_v17 = vmul.f32 0.17677669, %v2201_v41  ;;  %v2599_v31 = vunpack.c.l.b16 %v1483_v62 }
 0x3b4   : > { %8588 = vpow2.f32 %v3004_v20 }
 0x3b5   : > { %v1481_v46 = vpack.c.bf16 %v8315_v43, %v8315_v43  ;;  %v2800_v57 = vsel %vm2745_vm2, %v10515_v17, -inf }
 0x3b6   : > { %7532 = vmatmul.msk.bf16.gmra.mxu3 %vm1976_vm1, %v2420_v22  ;;  %v1482_v22 = vpack.c.bf16 %v8344_v32, %v8344_v32 }
 0x3b7   : > { %4663 = vmatpush.bf16.msrb.mxu1 %v4638_v12  ;;  %v2597_v59 = vunpack.c.l.b16 %v1481_v46  ;;  %v2596_v12 = vunpack.c.l.b16 %v1480_v36  ;;  %v2942_v36 = vsub.f32 %v10217_v35, %v2760_v40 }
 0x3b8   : > { %3131 = vadd.xlane.f32.xlu2 %v3130_v34  ;;  %v2754_v34 = vpop.xlane.xlu1 %2753  ;;  %v2598_v58 = vunpack.c.l.b16 %v1482_v22  ;;  %v8405_v22 = vunpack.i.h.bf16 %v8403_v37 }
 0x3b9   : > { %v2604_v42 = vpack.c.b16 %v2597_v59, %v2596_v12  ;;  %v2940_v6 = vsub.f32 %v10251_v45, %v2754_v34  ;;  %v1484_v59 = vpack.c.bf16 %v8374_v18, %v8374_v18 }
 0x3ba   : > { %v2203_v23 = vpop.f32.mrf.mxu0  ;;  %v2605_v43 = vpack.c.b16 %v2599_v31, %v2598_v58  ;;  %v10531_v13 = vpop.eup %8588 }
 0x3bb   : > { %4664 = vmatpush.bf16.msrb.mxu1 %v4637_v10  ;;  %v4980_v10 = vpack.c.b16 %v4976_v9, %v4975_v24  ;;  %v10517_v11 = vmul.f32 0.17677669, %v2203_v23  ;;  %v3006_v15 = vmul.f32 1.442695, %v2940_v6  ;;  %v2601_v24 = vunpack.c.l.b16 %v1485_v0 }
 0x3bd   : > { %8590 = vpow2.f32 %v3006_v15 }
 0x3be   : > { %7525 = vmatmul.msk.bf16.gmra.mxu1 %vm1976_vm1, %v2235_v48  ;;  %v2803_v48 = vsel %vm2745_vm2, %v10517_v11, -inf }
 0x3c0   : > { %v2763_v12 = vpop.xlane.xlu1 %2762 }
 0x3c2   : > { %v2206_v2 = vpop.f32.mrf.mxu0 }
 0x3c3   : > { %v10529_v45 = vmul.f32 0.17677669, %v2206_v2  ;;  %v10542_v16 = vpop.eup %8590  ;;  %v14295_v2 = vld [vmem:[#allocation32_spill] sm:$0xff] }
 0x3c4   : > { %v3136_v7 = vsel %vm2745_vm2, %v10542_v16, 0.0 }
 0x3c5   : > { %v2806_v8 = vsel %vm2745_vm2, %v10529_v45, -inf }
 0x3c6   : > { %7533 = vmatmul.msk.bf16.gmra.mxu3 %vm1976_vm1, %v2421_v63  ;;  %v3133_v63 = vsel %vm2745_vm2, %v10531_v13, 0.0 }
 0x3c9   : > { %v2382_v26 = vpop.f32.mrf.mxu2 }
 0x3ca   : > { %v10499_v21 = vmul.f32 0.17677669, %v2382_v26  ;;  %v2208_v1 = vpop.f32.mrf.mxu0  ;;  %v3010_v26 = vmul.f32 1.442695, %v2942_v36 }
 0x3cb   : > { %v10558_v20 = vmul.f32 0.17677669, %v2208_v1 }
 0x3cc   : > { %v2842_v28 = vsel %vm2745_vm2, %v10499_v21, -inf  ;;  %8592 = vpow2.f32 %v3010_v26 }
 0x3cd   : > { %2843 = vmax.xlane.f32.xlu1 %v2842_v28  ;;  %v2600_v28 = vunpack.c.l.b16 %v1484_v59  ;;  %v2809_v1 = vsel %vm2745_vm2, %v10558_v20, -inf }
 0x3ce   : > { %7538 = vmatmul.msk.bf16.vlgmr.msra.gmra.mxu1 %vm1976_vm1, %v2604_v42 }
 0x3cf   : > { %5001 = vmatpush.bf16.msra.mxu1 %v4980_v10  ;;  %v2941_v10 = vsub.f32 %v14295_v2, %v2757_v51  ;;  %v2606_v32 = vpack.c.b16 %v2601_v24, %v2600_v28  ;;  %v8404_v51 = vunpack.i.l.bf16 %v8403_v37 }
 0x3d1   : > { %v2384_v27 = vpop.f32.mrf.mxu2 }
 0x3d2   : > { %v10508_v5 = vmul.f32 0.17677669, %v2384_v27  ;;  %v2211_v23 = vpop.f32.mrf.mxu0  ;;  %v10556_v62 = vpop.eup %8592 }
 0x3d3   : > { %v3142_v6 = vsel %vm2745_vm2, %v10556_v62, 0.0  ;;  %v10572_v18 = vmul.f32 0.17677669, %v2211_v23 }
 0x3d4   : > { %v2845_v39 = vsel %vm2745_vm2, %v10508_v5, -inf }
 0x3d5   : > { %2792 = vmax.xlane.f32.xlu1 %v2791_v61  ;;  %2846 = vmax.xlane.f32.xlu0 %v2845_v39  ;;  %v3008_v61 = vmul.f32 1.442695, %v2941_v10  ;;  %v2766_v39 = vpop.xlane.xlu1 %2765  ;;  %v2812_v59 = vsel %vm2745_vm2, %v10572_v18, -inf }
 0x3d6   : > { %v2944_v31 = vsub.f32 %v10287_v14, %v2766_v39 }
 0x3d7   : > { %8594 = vpow2.f32 %v3008_v61 }
 0x3d8   : > { %v3014_v14 = vmul.f32 1.442695, %v2944_v31 }
 0x3d9   : > { %v2387_v52 = vpop.f32.mrf.mxu2 }
 0x3da   : > { %v10520_v38 = vmul.f32 0.17677669, %v2387_v52  ;;  %v10544_v42 = vpop.f32.mrf.mxu0  ;;  %v2943_v52 = vsub.f32 %v10267_v56, %v2763_v12  ;;  %8596 = vpow2.f32 %v3014_v14  ;;  %v2769_v12 = vpop.xlane.xlu0 %2768 }
 0x3db   : > { %v10597_v61 = vmul.f32 0.17677669, %v10544_v42 }
 0x3dc   : > { %v2848_v41 = vsel %vm2745_vm2, %v10520_v38, -inf  ;;  %v3012_v15 = vmul.f32 1.442695, %v2943_v52 }
 0x3dd   : > { %2801 = vmax.xlane.f32.xlu1 %v2800_v57  ;;  %2804 = vmax.xlane.f32.xlu0 %v2803_v48  ;;  %v1487_v57 = vpack.c.bf16 %v8405_v22, %v8405_v22  ;;  %v1486_v48 = vpack.c.bf16 %v8404_v51, %v8404_v51  ;;  %v2815_v31 = vsel %vm2745_vm2, %v10597_v61, -inf }
 0x3de   : > { %2849 = vmax.xlane.f32.xlu2 %v2848_v41  ;;  %7539 = vmatmul.msk.bf16.gmra.mxu1 %vm1976_vm1, %v2605_v43  ;;  %8598 = vpow2.f32 %v3012_v15 }
 0x3df   : > { %v2603_v56 = vunpack.c.l.b16 %v1487_v57  ;;  %v2602_v60 = vunpack.c.l.b16 %v1486_v48 }
 0x3e1   : > { %v2389_v46 = vpop.f32.mrf.mxu2 }
 0x3e2   : > { %v10540_v9 = vmul.f32 0.17677669, %v2389_v46  ;;  %v2568_v43 = vpop.f32.mrf.mxu0  ;;  %v10574_v46 = vpop.eup %8594 }
 0x3e3   : > { %v10570_v40 = vmul.f32 0.17677669, %v2568_v43  ;;  %v3139_v0 = vsel %vm2745_vm2, %v10574_v46, 0.0  ;;  %v10583_v23 = vpop.eup %8596  ;;  %v2775_v37 = vpop.xlane.xlu0 %2774 }
 0x3e4   : > { %v2851_v25 = vsel %vm2745_vm2, %v10540_v9, -inf  ;;  %v10587_v28 = vpop.eup %8598  ;;  %v3148_v2 = vsel %vm2745_vm2, %v10583_v23, 0.0  ;;  %v2947_v22 = vsub.f32 %v10322_v3, %v2775_v37 }
 0x3e5   : > { %3134 = vadd.xlane.f32.xlu1 %v3133_v63  ;;  %2807 = vmax.xlane.f32.xlu0 %v2806_v8  ;;  %14296 = vst [vmem:[#allocation25_spill] sm:$0xff] %v10570_v40  ;;  %v2890_v63 = vsel %vm2745_vm2, %v10570_v40, -inf  ;;  %v2607_v8 = vpack.c.b16 %v2603_v56, %v2602_v60 }
 0x3e6   : > { %v3020_v52 = vmul.f32 1.442695, %v2947_v22 }
 0x3e9   : > { %v2392_v35 = vpop.f32.mrf.mxu2 }
 0x3ea   : > { %v10546_v50 = vmul.f32 0.17677669, %v2392_v35  ;;  %v2570_v26 = vpop.f32.mrf.mxu0  ;;  %v2945_v35 = vsub.f32 %v10275_v33, %v2769_v12 }
 0x3eb   : > { %v10637_v37 = vmul.f32 0.17677669, %v2570_v26 }
 0x3ec   : > { %v2854_v27 = vsel %vm2745_vm2, %v10546_v50, -inf }
 0x3ed   : > { %2852 = vmax.xlane.f32.xlu1 %v2851_v25  ;;  %3137 = vadd.xlane.f32.xlu0 %v3136_v7  ;;  %v3145_v25 = vsel %vm2745_vm2, %v10587_v28, 0.0 }
 0x3ee   : > { %2855 = vmax.xlane.f32.xlu2 %v2854_v27  ;;  %7540 = vmatmul.msk.bf16.gmra.mxu1 %vm1976_vm1, %v2606_v32  ;;  %v3016_v32 = vmul.f32 1.442695, %v2945_v35  ;;  %v2772_v27 = vpop.xlane.xlu1 %2771 }
 0x3f0   : > { %8600 = vpow2.f32 %v3016_v32 }
 0x3f1   : > { %v2394_v34 = vpop.f32.mrf.mxu2  ;;  %8602 = vpow2.f32 %v3020_v52 }
 0x3f2   : > { %v10561_v58 = vmul.f32 0.17677669, %v2394_v34  ;;  %v2573_v39 = vpop.f32.mrf.mxu0 }
 0x3f4   : > { %v2857_v41 = vsel %vm2745_vm2, %v10561_v58, -inf }
 0x3f5   : > { %3143 = vadd.xlane.f32.xlu1 %v3142_v6  ;;  %2858 = vmax.xlane.f32.xlu0 %v2857_v41 }
 0x3f6   : > { %2810 = vmax.xlane.f32.xlu2 %v2809_v1  ;;  %v10606_v6 = vpop.xlane.xlu1 %2777  ;;  %v10610_v57 = vpop.eup %8600 }
 0x3f7   : > { %v3151_v41 = vsel %vm2745_vm2, %v10610_v57, 0.0  ;;  %v10616_v1 = vpop.eup %8602 }
 0x3f8   : > { %14298 = vst [vmem:[#allocation27_spill] sm:$0xff] %v10616_v1 }
 0x3f9   : > { %v2397_v36 = vpop.f32.mrf.mxu2 }
 0x3fa   : > { %v10585_v24 = vmul.f32 0.17677669, %v2397_v36  ;;  %v2575_v43 = vpop.f32.mrf.mxu0 }
 0x3fc   : > { %v2860_v10 = vsel %vm2745_vm2, %v10585_v24, -inf }
 0x3fd   : > { %2891 = vmax.xlane.f32.xlu1 %v2890_v63  ;;  %2813 = vmax.xlane.f32.xlu0 %v2812_v59 }
 0x3fe   : > { %3140 = vadd.xlane.f32.xlu2 %v3139_v0  ;;  %7541 = vmatmul.msk.bf16.gmra.mxu1 %vm1976_vm1, %v2607_v8  ;;  %v2781_v14 = vpop.xlane.xlu1 %2780  ;;  %v3157_v8 = vsel %vm2745_vm2, %v10616_v1, 0.0 }
 0x3ff   : > { %v2949_v36 = vsub.f32 %v10347_v49, %v2781_v14 }
 0x401   : > { %v2399_v7 = vpop.f32.mrf.mxu2  ;;  %v3024_v59 = vmul.f32 1.442695, %v2949_v36 }
 0x402   : > { %v10599_v33 = vmul.f32 0.17677669, %v2399_v7  ;;  %v2578_v0 = vpop.f32.mrf.mxu0 }
 0x403   : > { %v10627_v35 = vmul.f32 0.17677669, %v2578_v0  ;;  %8604 = vpow2.f32 %v3024_v59 }
 0x404   : > { %v2863_v34 = vsel %vm2745_vm2, %v10599_v33, -inf }
 0x405   : > { %3149 = vadd.xlane.f32.xlu1 %v3148_v2  ;;  %3146 = vadd.xlane.f32.xlu0 %v3145_v25  ;;  %14299 = vst [vmem:[#allocation24_spill] sm:$0xff] %v10627_v35  ;;  %v2902_v32 = vsel %vm2745_vm2, %v10627_v35, -inf }
 0x406   : > { %2861 = vmax.xlane.f32.xlu2 %v2860_v10 }
 0x40b   : > { %v2289_v51 = vpop.f32.mrf.mxu1 }
 0x40c   : > { %v10608_v42 = vmul.f32 0.17677669, %v2289_v51  ;;  %v10641_v51 = vpop.eup %8604 }
 0x40d   : > { %2864 = vmax.xlane.f32.xlu0 %v2863_v34  ;;  %14301 = vst [vmem:[#allocation29_spill] sm:$0xff] %v10641_v51  ;;  %v2946_v34 = vsub.f32 %v10309_v55, %v2772_v27  ;;  %v3163_v26 = vsel %vm2745_vm2, %v10641_v51, 0.0  ;;  %v10654_v55 = vpop.f32.mrf.mxu0 }
 0x40e   : > { %2816 = vmax.xlane.f32.xlu2 %v2815_v31  ;;  %14297 = vst [vmem:[#allocation31_spill] sm:$0xff] %v10608_v42  ;;  %v2818_v3 = vsel %vm2745_vm2, %v10608_v42, -inf }
 0x40f   : > { %v3018_v14 = vmul.f32 1.442695, %v2946_v34 }
 0x411   : > { %8606 = vpow2.f32 %v3018_v14 }
 0x413   : > { %v2291_v48 = vpop.f32.mrf.mxu1 }
 0x414   : > { %v10625_v12 = vmul.f32 0.17677669, %v2291_v48  ;;  %v2784_v48 = vpop.xlane.xlu0 %2783 }
 0x415   : > { %2819 = vmax.xlane.f32.xlu0 %v2818_v3  ;;  %v2950_v0 = vsub.f32 %v10365_v4, %v2784_v48  ;;  %v10671_v34 = vpop.f32.mrf.mxu0 }
 0x416   : > { %3152 = vadd.xlane.f32.xlu2 %v3151_v41  ;;  %v2821_v49 = vsel %vm2745_vm2, %v10625_v12, -inf  ;;  %v2893_v41 = vsel %vm2745_vm2, %v10637_v37, -inf }
 0x419   : > { %v2475_v15 = vpop.f32.mrf.mxu3 }
 0x41a   : > { %v10618_v56 = vmul.f32 0.17677669, %v2475_v15  ;;  %v10650_v15 = vmul.f32 0.17677669, %v2573_v39  ;;  %v10663_v39 = vpop.xlane.xlu1 %2786 }
 0x41b   : > { %v2294_v60 = vpop.f32.mrf.mxu1 }
 0x41c   : > { %v2866_v63 = vsel %vm2745_vm2, %v10618_v56, -inf  ;;  %v10639_v22 = vmul.f32 0.17677669, %v2294_v60  ;;  %14302 = vst [vmem:[#allocation28_spill] sm:$0xff] %v10650_v15  ;;  %v10656_v36 = vpop.xlane.xlu0 %2795 }
 0x41d   : > { %2867 = vmax.xlane.f32.xlu0 %v2866_v63 }
 0x41e   : > { %3158 = vadd.xlane.f32.xlu2 %v3157_v8  ;;  %v2824_v3 = vsel %vm2745_vm2, %v10639_v22, -inf  ;;  %v2896_v8 = vsel %vm2745_vm2, %v10650_v15, -inf }
 0x421   : > { %v2477_v2 = vpop.f32.mrf.mxu3 }
 0x422   : > { %v10629_v10 = vmul.f32 0.17677669, %v2477_v2  ;;  %v10665_v2 = vmul.f32 0.17677669, %v2575_v43 }
 0x423   : > { %v2296_v25 = vpop.f32.mrf.mxu1 }
 0x424   : > { %14300 = vst [vmem:[#allocation23_spill] sm:$0xff] %v10629_v10  ;;  %v2869_v7 = vsel %vm2745_vm2, %v10629_v10, -inf  ;;  %v10652_v60 = vmul.f32 0.17677669, %v2296_v25  ;;  %v10667_v25 = vpop.eup %8606  ;;  %v2899_v48 = vsel %vm2745_vm2, %v10665_v2, -inf  ;;  %v2790_v43 = vpop.xlane.xlu0 %2789 }
 0x425   : > { %2822 = vmax.xlane.f32.xlu0 %v2821_v49  ;;  %2870 = vmax.xlane.f32.xlu1 %v2869_v7  ;;  %14304 = vst [vmem:[#allocation19_spill] sm:$0xff] %v10665_v2  ;;  %v3026_v49 = vmul.f32 1.442695, %v2950_v0  ;;  %v10669_v7 = vpop.xlane.xlu2 %2798  ;;  %v3154_v4 = vsel %vm2745_vm2, %v10667_v25, 0.0 }
 0x426   : > { %2903 = vmax.xlane.f32.xlu2 %v2902_v32  ;;  %14303 = vst [vmem:[#allocation20_spill] sm:$0xff] %v10652_v60  ;;  %v2827_v63 = vsel %vm2745_vm2, %v10652_v60, -inf }
 0x427   : > { %14305 = vst [vmem:[#allocation26_spill] sm:$0xff] %v10667_v25  ;;  %8608 = vpow2.f32 %v3026_v49 }
 0x429   : > { %v2480_v31 = vpop.f32.mrf.mxu3 }
 0x42b   : > { %v2299_v52 = vpop.f32.mrf.mxu1 }
 0x42d   : > { %2825 = vmax.xlane.f32.xlu1 %v2824_v3  ;;  %2894 = vmax.xlane.f32.xlu0 %v2893_v41  ;;  %v10687_v0 = vpop.eup %8608 }
 0x42e   : > { %3164 = vadd.xlane.f32.xlu2 %v3163_v26  ;;  %14309 = vst [vmem:[#allocation34_spill] sm:$0xff] %v10687_v0 }
 0x431   : > { %v2482_v59 = vpop.f32.mrf.mxu3 }
 0x433   : > { %v2301_v27 = vpop.f32.mrf.mxu1 }
 0x434   : > { %v10709_v35 = vmul.f32 0.17677669, %v2301_v27 }
 0x435   : > { %2828 = vmax.xlane.f32.xlu0 %v2827_v63  ;;  %2897 = vmax.xlane.f32.xlu1 %v2896_v8  ;;  %v10683_v63 = vmul.f32 0.17677669, %v2480_v31  ;;  %v10685_v8 = vmul.f32 0.17677669, %v2482_v59  ;;  %v2952_v31 = vsub.f32 %v10479_v54, %v2790_v43  ;;  %v2585_v59 = vpop.f32.mrf.mxu0 }
 0x436   : > { %14311 = vst [vmem:[#allocation36_spill] sm:$0xff] %v10709_v35  ;;  %v10711_v43 = vmul.f32 0.17677669, %v2585_v59 }
 0x437   : > { %14307 = vst [vmem:[#allocation32_spill] sm:$0xff] %v10683_v63 }
 0x438   : > { %14308 = vst [vmem:[#allocation33_spill] sm:$0xff] %v10685_v8 }
 0x439   : > { %v2485_v26 = vpop.f32.mrf.mxu3  ;;  %14312 = vst [vmem:[#allocation37_spill] sm:$0xff] %v10711_v43 }
 0x43a   : > { %v10750_v60 = vmul.f32 0.17677669, %v2485_v26 }
 0x43b   : > { %v2304_v32 = vpop.f32.mrf.mxu1 }
 0x43c   : > { %v10673_v3 = vmul.f32 0.17677669, %v2304_v32  ;;  %v2948_v32 = vsub.f32 %v10333_v53, %v10606_v6  ;;  %14317 = vst [vmem:[#allocation42_spill] sm:$0xff] %v10750_v60 }
 0x43d   : > { %3155 = vadd.xlane.f32.xlu1 %v3154_v4  ;;  %2900 = vmax.xlane.f32.xlu0 %v2899_v48  ;;  %v10693_v4 = vpop.xlane.xlu2 %3131  ;;  %v2872_v48 = vsel %vm2745_vm2, %v10683_v63, -inf  ;;  %v10707_v63 = vmul.f32 0.17677669, %v2299_v52  ;;  %v2911_v52 = vsel %vm2745_vm2, %v10711_v43, -inf }
 0x43e   : > { %14306 = vst [vmem:[#allocation30_spill] sm:$0xff] %v10673_v3  ;;  %v2836_v41 = vsel %vm2745_vm2, %v10673_v3, -inf  ;;  %v3166_v3 = vsel %vm2745_vm2, %v10687_v0, 0.0  ;;  %v3022_v51 = vmul.f32 1.442695, %v2948_v32  ;;  %8610 = vrcp.f32 %v10693_v4 }
 0x43f   : > { %2837 = vmax.xlane.f32.xlu2 %v2836_v41  ;;  %v2875_v41 = vsel %vm2745_vm2, %v10685_v8, -inf  ;;  %14310 = vst [vmem:[#allocation35_spill] sm:$0xff] %v10707_v63  ;;  %v3030_v8 = vmul.f32 1.442695, %v2952_v31  ;;  %v2833_v32 = vsel %vm2745_vm2, %v10709_v35, -inf  ;;  %vm3327_vm4 = vweird.f32 %v10693_v4 }
 0x440   : > { %v10681_v14 = vpop.xlane.xlu1 %2843  ;;  %8612 = vpow2.f32 %v3022_v51 }
 0x441   : > { %v2487_v54 = vpop.f32.mrf.mxu3  ;;  %8614 = vpow2.f32 %v3030_v8 }
 0x442   : > { %v10727_v59 = vmul.f32 0.17677669, %v2487_v54 }
 0x443   : > { %v10691_v49 = vpop.f32.mrf.mxu1 }
 0x444   : > { %14313 = vst [vmem:[#allocation38_spill] sm:$0xff] %v10727_v59  ;;  %v2881_v43 = vsel %vm2745_vm2, %v10727_v59, -inf }
 0x445   : > { %2873 = vmax.xlane.f32.xlu1 %v2872_v48  ;;  %2876 = vmax.xlane.f32.xlu0 %v2875_v41  ;;  %v10719_v41 = vpop.eup %8610 }
 0x446   : > { %v3323_v51 = vmul.f32 %v10719_v41, %v10693_v4  ;;  %v10730_v35 = vpop.eup %8612  ;;  %vm3328_vm3 = vweird.f32 %v10719_v41 }
 0x447   : > { %3167 = vadd.xlane.f32.xlu2 %v3166_v3  ;;  %v2830_v3 = vsel %vm2745_vm2, %v10707_v63, -inf  ;;  %14314 = vst [vmem:[#allocation39_spill] sm:$0xff] %v10730_v35  ;;  %v10732_v8 = vpop.eup %8614  ;;  %v3160_v25 = vsel %vm2745_vm2, %v10730_v35, 0.0  ;;  %v3331_v35 = vand.u32 2147483647, %v10693_v4  ;;  %vm10771_vm5 = vmor %vm3327_vm4, %vm3328_vm3 }
 0x448   : > { %v10703_v53 = vpop.xlane.xlu1 %2792  ;;  %v10705_v6 = vpop.xlane.xlu0 %2846  ;;  %14315 = vst [vmem:[#allocation40_spill] sm:$0xff] %v10732_v8 }
 0x449   : > { %vm3332_vm6 = vcmp.eq.f32.partialorder %v3331_v35, 8.507059e+37 }
 0x44b   : > { %v10713_v48 = vpop.f32.mrf.mxu1 }
 0x44d   : > { %2834 = vmax.xlane.f32.xlu1 %v2833_v32  ;;  %2831 = vmax.xlane.f32.xlu0 %v2830_v3  ;;  %v10734_v32 = vpop.f32.mrf.mxu3 }
 0x44f   : > { %2912 = vmax.xlane.f32.xlu2 %v2911_v52  ;;  %v3324_v52 = vsub.f32 1.0, %v3323_v51 }
 0x450   : > { %v2802_v27 = vpop.xlane.xlu1 %2801  ;;  %v10723_v31 = vpop.xlane.xlu0 %2804 }
 0x451   : > { %v2956_v0 = vsub.f32 %v10515_v17, %v2802_v27  ;;  %v3172_v17 = vsel %vm2745_vm2, %v10732_v8, 0.0  ;;  %v10747_v27 = vmul.f32 0.17677669, %v10671_v34  ;;  %v3325_v51 = vmul.f32 %v10719_v41, %v3324_v52  ;;  %v10752_v59 = vpop.xlane.xlu2 %2849 }
 0x452   : > { %v2878_v34 = vsel %vm2745_vm2, %v10750_v60, -inf  ;;  %v3333_v52 = vand.u32 2147483648, %v10693_v4 }
 0x453   : > { %v3038_v63 = vmul.f32 1.442695, %v2956_v0  ;;  %v10736_v3 = vpop.f32.mrf.mxu1  ;;  %14316 = vst [vmem:[#allocation41_spill] sm:$0xff] %v10747_v27  ;;  %v2908_v26 = vsel %vm2745_vm2, %v10747_v27, -inf }
 0x455   : > { %8616 = vpow2.f32 %v3038_v63  ;;  %2882 = vmax.xlane.f32.xlu1 %v2881_v43  ;;  %3161 = vadd.xlane.f32.xlu0 %v3160_v25  ;;  %v2954_v25 = vsub.f32 %v10471_v29, %v10656_v36  ;;  %v2492_v8 = vpop.f32.mrf.mxu3 }
 0x457   : > { %3173 = vadd.xlane.f32.xlu2 %v3172_v17  ;;  %v3326_v17 = vadd.f32 %v10719_v41, %v3325_v51  ;;  %v3034_v36 = vmul.f32 1.442695, %v2954_v25  ;;  %v10785_v25 = vmul.f32 0.17677669, %v2492_v8 }
 0x458   : > { %v3135_v0 = vpop.xlane.xlu1 %3134  ;;  %v10744_v54 = vpop.xlane.xlu0 %2807 }
 0x459   : > { %8618 = vrcp.f32 %v3135_v0  ;;  %v3330_v4 = vsel %vm10771_vm5, %v10719_v41, %v3326_v17  ;;  %v2887_v1 = vsel %vm2745_vm2, %v10785_v25, -inf  ;;  %vm3342_vm8 = vweird.f32 %v3135_v0 }
 0x45b   : > { %v10756_v63 = vpop.eup %8616  ;;  %v10758_v43 = vpop.f32.mrf.mxu1 }
 0x45c   : > { %14318 = vst [vmem:[#allocation43_spill] sm:$0xff] %v10756_v63  ;;  %v3184_v51 = vsel %vm2745_vm2, %v10756_v63, 0.0  ;;  %v3334_v63 = vor.u32 1.1754944e-38, %v3333_v52 }
 0x45d   : > { %2879 = vmax.xlane.f32.xlu0 %v2878_v34  ;;  %2909 = vmax.xlane.f32.xlu1 %v2908_v26  ;;  %v10780_v34 = vmul.f32 0.17677669, %v10654_v55  ;;  %v3346_v55 = vand.u32 2147483647, %v3135_v0 }
 0x45e   : > { %v3335_v40 = vsel %vm3332_vm6, %v3334_v63, %v3330_v4 }
 0x45f   : > { %v8619_v29 = vpop.eup %8618  ;;  %3185 = vadd.xlane.f32.xlu2 %v3184_v51  ;;  %v3348_v51 = vand.u32 2147483648, %v3135_v0  ;;  %v2905_v42 = vsel %vm2745_vm2, %v10780_v34, -inf  ;;  %vm3347_vm10 = vcmp.eq.f32.partialorder %v3346_v55, 8.507059e+37 }
 0x460   : > { %v3338_v60 = vmul.f32 %v8619_v29, %v3135_v0  ;;  %v10775_v27 = vpop.xlane.xlu1 %2852  ;;  %v10777_v2 = vpop.xlane.xlu0 %3137  ;;  %vm3343_vm7 = vweird.f32 %v8619_v29 }
 0x461   : > { %v10787_v26 = vpop.xlane.xlu2 %2855  ;;  %8620 = vrcp.f32 %v10777_v2  ;;  %vm3344_vm9 = vmor %vm3342_vm8, %vm3343_vm7  ;;  %v3349_v35 = vor.u32 1.1754944e-38, %v3348_v51  ;;  %vm3357_vm12 = vweird.f32 %v10777_v2 }
 0x462   : > { %v3339_v10 = vsub.f32 1.0, %v3338_v60  ;;  %8622 = vpow2.f32 %v3034_v36 }
 0x463   : > { %v10794_v8 = vpop.f32.mrf.mxu1 }
 0x464   : > { %v3340_v15 = vmul.f32 %v8619_v29, %v3339_v10  ;;  %v3336_v10 = vmul.f32 %v10488_v44, %v3335_v40  ;;  %v2951_v44 = vsub.f32 %v10383_v30, %v10663_v39 }
 0x465   : > { %2906 = vmax.xlane.f32.xlu0 %v2905_v42  ;;  %2888 = vmax.xlane.f32.xlu1 %v2887_v1 }
 0x466   : > { %v3341_v41 = vadd.f32 %v8619_v29, %v3340_v15  ;;  %v10806_v15 = vmul.f32 0.17677669, %v10734_v32 }
 0x467   : > { %v10796_v60 = vpop.eup %8620 }
 0x468   : > { %v3345_v63 = vsel %vm3344_vm9, %v8619_v29, %v3341_v41  ;;  %v3353_v17 = vmul.f32 %v10796_v60, %v10777_v2  ;;  %v10801_v52 = vpop.xlane.xlu1 %3143  ;;  %v10803_v36 = vpop.eup %8622  ;;  %14321 = vst [vmem:[#allocation44_spill] sm:$0xff] %v10806_v15  ;;  %v4282_v29 = vpack.c.bf16 %v3336_v10, %v3336_v10  ;;  %v2884_v41 = vsel %vm2745_vm2, %v10806_v15, -inf }
 0x469   : > { %v3350_v42 = vsel %vm3347_vm10, %v3349_v35, %v3345_v63  ;;  %v10808_v0 = vpop.xlane.xlu0 %2858  ;;  %v2811_v4 = vpop.xlane.xlu2 %2810  ;;  %v3178_v32 = vsel %vm2745_vm2, %v10803_v36, 0.0  ;;  %8624 = vrcp.f32 %v10801_v52  ;;  %vm3358_vm11 = vweird.f32 %v10796_v60 }
 0x46a   : > { %v2959_v51 = vsub.f32 %v10558_v20, %v2811_v4  ;;  %v3351_v40 = vmul.f32 %v10531_v13, %v3350_v42  ;;  %v3354_v55 = vsub.f32 1.0, %v3353_v17  ;;  %v3028_v20 = vmul.f32 1.442695, %v2951_v44  ;;  %vm10855_vm13 = vmor %vm3357_vm12, %vm3358_vm11 }
 0x46b   : > { %v4354_v63 = vunpack.c.l.b16 %v4282_v29  ;;  %v2970_v13 = vsub.f32 %v10499_v21, %v10681_v14  ;;  %v10822_v10 = vpop.f32.mrf.mxu1  ;;  %v10825_v17 = vmul.f32 0.17677669, %v10691_v49  ;;  %v2971_v42 = vsub.f32 %v10508_v5, %v10705_v6 }
 0x46c   : > { %v3044_v1 = vmul.f32 1.442695, %v2959_v51  ;;  %v4283_v35 = vpack.c.bf16 %v3351_v40, %v3351_v40  ;;  %v3355_v39 = vmul.f32 %v10796_v60, %v3354_v55  ;;  %v10830_v4 = vmul.f32 0.17677669, %v10713_v48 }
 0x46d   : > { %2885 = vmax.xlane.f32.xlu0 %v2884_v41  ;;  %3179 = vadd.xlane.f32.xlu1 %v3178_v32  ;;  %v3066_v49 = vmul.f32 1.442695, %v2970_v13  ;;  %v3068_v48 = vmul.f32 1.442695, %v2971_v42  ;;  %v3363_v29 = vand.u32 2147483648, %v10777_v2  ;;  %v2839_v55 = vsel %vm2745_vm2, %v10825_v17, -inf }
 0x46e   : > { %8626 = vpow2.f32 %v3044_v1  ;;  %v4355_v30 = vunpack.c.l.b16 %v4283_v35  ;;  %v3356_v5 = vadd.f32 %v10796_v60, %v3355_v39  ;;  %v2914_v1 = vsel %vm2745_vm2, %v10830_v4, -inf }
 0x46f   : > { %v10840_v14 = vpop.eup %8624  ;;  %v3361_v32 = vand.u32 2147483647, %v10777_v2  ;;  %v10869_v2 = vmul.f32 0.17677669, %v10736_v3  ;;  %v3364_v42 = vor.u32 1.1754944e-38, %v3363_v29  ;;  %vm3387_vm5 = vweird.f32 %v10801_v52 }
 0x470   : > { %v4362_v40 = vpack.c.b16 %v4355_v30, %v4354_v63  ;;  %v10837_v21 = vpop.xlane.xlu1 %2891  ;;  %v2955_v63 = vsub.f32 %v10481_v19, %v10669_v7  ;;  %v3383_v30 = vmul.f32 %v10840_v14, %v10801_v52  ;;  %v3360_v13 = vsel %vm10855_vm13, %v10796_v60, %v3356_v5 }
 0x471   : > { %v10832_v51 = vpop.xlane.xlu2 %3140  ;;  %v10834_v44 = vpop.xlane.xlu0 %2813  ;;  %14325 = vst [vmem:[#allocation46_spill] sm:$0xff] %v10869_v2  ;;  %v2953_v7 = vsub.f32 %v10504_v47, %v10703_v53  ;;  %vm3362_vm14 = vcmp.eq.f32.partialorder %v3361_v32, 8.507059e+37  ;;  %v2917_v47 = vsel %vm2745_vm2, %v10869_v2, -inf  ;;  %vm3388_vm6 = vweird.f32 %v10840_v14 }
 0x472   : > { %8628 = vrcp.f32 %v10832_v51  ;;  %7542 = vmatmul.msk.bf16.vlgmr.msra.gmra.mxu2 %vm2745_vm2, %v4362_v40  ;;  %v3365_v5 = vsel %vm3362_vm14, %v3364_v42, %v3360_v13  ;;  %v3384_v3 = vsub.f32 1.0, %v3383_v30  ;;  %v3378_v29 = vand.u32 2147483648, %v10832_v51  ;;  %vm10926_vm8 = vmor %vm3387_vm5, %vm3388_vm6 }
 0x473   : > { %8630 = vpow2.f32 %v3028_v20  ;;  %v3376_v53 = vand.u32 2147483647, %v10832_v51  ;;  %v2973_v13 = vsub.f32 %v10540_v9, %v10775_v27  ;;  %vm3372_vm0 = vweird.f32 %v10832_v51 }
 0x474   : > { %v10844_v6 = vpop.eup %8626  ;;  %8632 = vpow2.f32 %v3066_v49  ;;  %v10879_v49 = vpop.f32.mrf.mxu1  ;;  %v3379_v15 = vor.u32 1.1754944e-38, %v3378_v29 }
 0x475   : > { %14322 = vst [vmem:[#allocation45_spill] sm:$0xff] %v10844_v6  ;;  %2840 = vmax.xlane.f32.xlu0 %v2839_v55  ;;  %2915 = vmax.xlane.f32.xlu1 %v2914_v1  ;;  %v3193_v41 = vsel %vm2745_vm2, %v10844_v6, 0.0  ;;  %8634 = vpow2.f32 %v3068_v48  ;;  %v3036_v48 = vmul.f32 1.442695, %v2955_v63  ;;  %v3366_v63 = vmul.f32 %v10542_v16, %v3365_v5 }
 0x476   : > { %3194 = vadd.xlane.f32.xlu2 %v3193_v41  ;;  %v3385_v6 = vmul.f32 %v10840_v14, %v3384_v3  ;;  %vm3377_vm4 = vcmp.eq.f32.partialorder %v3376_v53, 8.507059e+37 }
 0x478   : > { %v8629_v20 = vpop.eup %8628  ;;  %v10882_v1 = vpop.xlane.xlu1 %3149  ;;  %v3386_v2 = vadd.f32 %v10840_v14, %v3385_v6  ;;  %v3393_v6 = vand.u32 2147483648, %v10801_v52 }
 0x479   : > { %v10866_v39 = vpop.eup %8630  ;;  %v3368_v40 = vmul.f32 %v8629_v20, %v10832_v51  ;;  %v10872_v55 = vpop.xlane.xlu2 %2861  ;;  %vm3373_vm15 = vweird.f32 %v8629_v20 }
 0x47a   : > { %v10874_v19 = vpop.xlane.xlu0 %3146  ;;  %v3169_v41 = vsel %vm2745_vm2, %v10866_v39, 0.0  ;;  %v10889_v32 = vpop.eup %8632  ;;  %vm3374_vm3 = vmor %vm3372_vm0, %vm3373_vm15  ;;  %vm3417_vm15 = vweird.f32 %v10882_v1 }
 0x47b   : > { %8636 = vrcp.f32 %v10874_v19  ;;  %v3369_v60 = vsub.f32 1.0, %v3368_v40  ;;  %v3032_v40 = vmul.f32 1.442695, %v2953_v7  ;;  %v10892_v30 = vpop.eup %8634  ;;  %v3226_v9 = vsel %vm2745_vm2, %v10889_v32, 0.0 }
 0x47c   : > { %8638 = vrcp.f32 %v10882_v1  ;;  %v3229_v29 = vsel %vm2745_vm2, %v10892_v30, 0.0  ;;  %vm3402_vm9 = vweird.f32 %v10874_v19 }
 0x47d   : > { %v3370_v35 = vmul.f32 %v8629_v20, %v3369_v60  ;;  %3170 = vadd.xlane.f32.xlu0 %v3169_v41  ;;  %2918 = vmax.xlane.f32.xlu1 %v2917_v47  ;;  %8640 = vpow2.f32 %v3036_v48  ;;  %v4284_v48 = vpack.c.bf16 %v3366_v63, %v3366_v63 }
 0x47e   : > { %8642 = vpow2.f32 %v3032_v40 }
 0x47f   : > { %v3371_v42 = vadd.f32 %v8629_v20, %v3370_v35  ;;  %v3072_v35 = vmul.f32 1.442695, %v2973_v13 }
 0x481   : > { %v8637_v60 = vpop.eup %8636  ;;  %v2817_v5 = vpop.xlane.xlu2 %2816  ;;  %v3375_v27 = vsel %vm3374_vm3, %v8629_v20, %v3371_v42  ;;  %v4356_v42 = vunpack.c.l.b16 %v4284_v48  ;;  %v10936_v48 = vmul.f32 0.17677669, %v10758_v43  ;;  %v3394_v43 = vor.u32 1.1754944e-38, %v3393_v6 }
 0x482   : > { %v3398_v7 = vmul.f32 %v8637_v60, %v10874_v19  ;;  %v10901_v16 = vpop.xlane.xlu0 %2864  ;;  %v2961_v51 = vsub.f32 %v10597_v61, %v2817_v5  ;;  %v3380_v41 = vsel %vm3377_vm4, %v3379_v15, %v3375_v27  ;;  %v10912_v53 = vpop.eup %8638  ;;  %v3408_v61 = vand.u32 2147483648, %v10874_v19 }
 0x483   : > { %v3381_v47 = vmul.f32 %v10574_v46, %v3380_v41  ;;  %v10915_v15 = vpop.f32.mrf.mxu1  ;;  %vm3403_vm7 = vweird.f32 %v8637_v60  ;;  %v10917_v13 = vpop.eup %8640  ;;  %v3391_v46 = vand.u32 2147483647, %v10801_v52  ;;  %v3413_v52 = vmul.f32 %v10912_v53, %v10882_v1 }
 0x484   : > { %v3399_v3 = vsub.f32 1.0, %v3398_v7  ;;  %v3048_v20 = vmul.f32 1.442695, %v2961_v51  ;;  %v3406_v7 = vand.u32 2147483647, %v10874_v19  ;;  %v10931_v41 = vpop.eup %8642  ;;  %vm3404_vm10 = vmor %vm3402_vm9, %vm3403_vm7  ;;  %vm3418_vm13 = vweird.f32 %v10912_v53 }
 0x485   : > { %v4285_v63 = vpack.c.bf16 %v3381_v47, %v3381_v47  ;;  %3227 = vadd.xlane.f32.xlu0 %v3226_v9  ;;  %3230 = vadd.xlane.f32.xlu1 %v3229_v29  ;;  %v2972_v9 = vsub.f32 %v10520_v38, %v10752_v59  ;;  %v2958_v59 = vsub.f32 %v10529_v45, %v10744_v54  ;;  %vm3392_vm12 = vcmp.eq.f32.partialorder %v3391_v46, 8.507059e+37  ;;  %vm10989_vm0 = vmor %vm3417_vm15, %vm3418_vm13 }
 0x486   : > { %v3400_v40 = vmul.f32 %v8637_v60, %v3399_v3  ;;  %8644 = vpow2.f32 %v3048_v20  ;;  %v3409_v3 = vor.u32 1.1754944e-38, %v3408_v61  ;;  %v3390_v20 = vsel %vm10926_vm8, %v10840_v14, %v3386_v2 }
 0x487   : > { %v4357_v27 = vunpack.c.l.b16 %v4285_v63  ;;  %8646 = vpow2.f32 %v3072_v35  ;;  %vm3407_vm11 = vcmp.eq.f32.partialorder %v3406_v7, 8.507059e+37  ;;  %v2977_v61 = vsub.f32 %v10599_v33, %v10901_v16 }
 0x488   : > { %v3401_v51 = vadd.f32 %v8637_v60, %v3400_v40  ;;  %v3414_v40 = vsub.f32 1.0, %v3413_v52  ;;  %v3395_v63 = vsel %vm3392_vm12, %v3394_v43, %v3390_v20  ;;  %v3070_v14 = vmul.f32 1.442695, %v2972_v9 }
 0x489   : > { %v10943_v19 = vpop.xlane.xlu2 %3152  ;;  %v4363_v47 = vpack.c.b16 %v4357_v27, %v4356_v42  ;;  %v3181_v2 = vsel %vm2745_vm2, %v10917_v13, 0.0  ;;  %v2920_v45 = vsel %vm2745_vm2, %v10936_v48, -inf  ;;  %v3042_v46 = vmul.f32 1.442695, %v2958_v59 }
 0x48a   : > { %v10941_v29 = vpop.xlane.xlu0 %2819  ;;  %v3405_v38 = vsel %vm3404_vm10, %v8637_v60, %v3401_v51  ;;  %8648 = vrcp.f32 %v10943_v19  ;;  %v3396_v6 = vmul.f32 %v10556_v62, %v3395_v63  ;;  %v3415_v5 = vmul.f32 %v10912_v53, %v3414_v40 }
 0x48b   : > { %7543 = vmatmul.msk.bf16.gmra.mxu2 %vm2745_vm2, %v4363_v47  ;;  %v3410_v35 = vsel %vm3407_vm11, %v3409_v3, %v3405_v38  ;;  %v2678_v16 = vpop.f32.mrf.mxu1  ;;  %v3080_v27 = vmul.f32 1.442695, %v2977_v61  ;;  %8650 = vpow2.f32 %v3070_v14  ;;  %v2957_v52 = vsub.f32 %v10517_v11, %v10723_v31 }
 0x48c   : > { %v10954_v42 = vpop.eup %8644  ;;  %v3411_v54 = vmul.f32 %v10587_v28, %v3410_v35  ;;  %8652 = vpow2.f32 %v3042_v46  ;;  %v10970_v3 = vmul.f32 0.17677669, %v2678_v16  ;;  %v3175_v47 = vsel %vm2745_vm2, %v10931_v41, 0.0 }
 0x48d   : > { %14328 = vst [vmem:[#allocation47_spill] sm:$0xff] %v10954_v42  ;;  %v10961_v60 = vpop.eup %8646  ;;  %3182 = vadd.xlane.f32.xlu0 %v3181_v2  ;;  %2921 = vmax.xlane.f32.xlu1 %v2920_v45  ;;  %v3199_v33 = vsel %vm2745_vm2, %v10954_v42, 0.0  ;;  %v4286_v38 = vpack.c.bf16 %v3396_v6, %v3396_v6  ;;  %v3416_v59 = vadd.f32 %v10912_v53, %v3415_v5  ;;  %8654 = vpow2.f32 %v3080_v27 }
 0x48e   : > { %3200 = vadd.xlane.f32.xlu2 %v3199_v33  ;;  %v4287_v9 = vpack.c.bf16 %v3411_v54, %v3411_v54  ;;  %v3235_v20 = vsel %vm2745_vm2, %v10961_v60, 0.0  ;;  %v3436_v43 = vand.u32 2147483647, %v10943_v19  ;;  %v3438_v11 = vand.u32 2147483648, %v10943_v19 }
 0x48f   : > { %v3040_v61 = vmul.f32 1.442695, %v2957_v52  ;;  %v3423_v63 = vand.u32 2147483648, %v10882_v1  ;;  %v2935_v14 = vsel %vm2745_vm2, %v10970_v3, -inf  ;;  %vm3432_vm3 = vweird.f32 %v10943_v19 }
 0x490   : > { %v8649_v7 = vpop.eup %8648  ;;  %v4359_v40 = vunpack.c.l.b16 %v4287_v9  ;;  %v4358_v46 = vunpack.c.l.b16 %v4286_v38  ;;  %v3439_v16 = vor.u32 1.1754944e-38, %v3438_v11  ;;  %v3420_v6 = vsel %vm10989_vm0, %v10912_v53, %v3416_v59 }
 0x491   : > { %v3428_v51 = vmul.f32 %v8649_v7, %v10943_v19  ;;  %vm3433_vm14 = vweird.f32 %v8649_v7  ;;  %v10985_v2 = vpop.eup %8650  ;;  %vm3437_vm5 = vcmp.eq.f32.partialorder %v3436_v43, 8.507059e+37  ;;  %v3424_v19 = vor.u32 1.1754944e-38, %v3423_v63 }
 0x492   : > { %v2868_v28 = vpop.xlane.xlu0 %2867  ;;  %v10995_v33 = vpop.eup %8652  ;;  %vm3434_vm4 = vmor %vm3432_vm3, %vm3433_vm14  ;;  %8656 = vpow2.f32 %v3040_v61  ;;  %v3232_v53 = vsel %vm2745_vm2, %v10985_v2, 0.0 }
 0x493   : > { %v3429_v62 = vsub.f32 1.0, %v3428_v51  ;;  %v2978_v35 = vsub.f32 %v10618_v56, %v2868_v28  ;;  %v3421_v56 = vand.u32 2147483647, %v10882_v1  ;;  %14331 = vst [vmem:[#allocation48_spill] sm:$0xff] %v10995_v33  ;;  %v4364_v1 = vpack.c.b16 %v4359_v40, %v4358_v46  ;;  %v11003_v9 = vpop.eup %8654 }
 0x494   : > { %14332 = vst [vmem:[#allocation49_spill] sm:$0xff] %v11003_v9  ;;  %v3190_v38 = vsel %vm2745_vm2, %v10995_v33, 0.0  ;;  %v3247_v43 = vsel %vm2745_vm2, %v11003_v9, 0.0 }
 0x495   : > { %v3430_v31 = vmul.f32 %v8649_v7, %v3429_v62  ;;  %3176 = vadd.xlane.f32.xlu0 %v3175_v47  ;;  %3236 = vadd.xlane.f32.xlu1 %v3235_v20  ;;  %v3082_v5 = vmul.f32 1.442695, %v2978_v35  ;;  %vm3422_vm6 = vcmp.eq.f32.partialorder %v3421_v56, 8.507059e+37  ;;  %v2960_v47 = vsub.f32 %v10572_v18, %v10834_v44  ;;  %v11010_v20 = vpop.xlane.xlu2 %3158 }
 0x496   : > { %2936 = vmax.xlane.f32.xlu2 %v2935_v14  ;;  %v3425_v62 = vsel %vm3422_vm6, %v3424_v19, %v3420_v6  ;;  %v11039_v6 = vmul.f32 0.17677669, %v10794_v8  ;;  %vm3462_vm8 = vweird.f32 %v11010_v20 }
 0x497   : > { %v3431_v54 = vadd.f32 %v8649_v7, %v3430_v31  ;;  %8658 = vpow2.f32 %v3082_v5  ;;  %v3426_v18 = vmul.f32 %v10583_v23, %v3425_v62  ;;  %v3046_v44 = vmul.f32 1.442695, %v2960_v47 }
 0x498   : > { %v11001_v51 = vpop.xlane.xlu1 %2870  ;;  %8660 = vrcp.f32 %v11010_v20  ;;  %v11020_v11 = vpop.eup %8656 }
 0x499   : > { %v3435_v28 = vsel %vm3434_vm4, %v8649_v7, %v3431_v54  ;;  %v4288_v63 = vpack.c.bf16 %v3426_v18, %v3426_v18  ;;  %8662 = vpow2.f32 %v3046_v44  ;;  %v3187_v14 = vsel %vm2745_vm2, %v11020_v11, 0.0 }
 0x49a   : > { %v2823_v27 = vpop.xlane.xlu0 %2822  ;;  %v3440_v52 = vsel %vm3437_vm5, %v3439_v16, %v3435_v28  ;;  %v2974_v16 = vsub.f32 %v10546_v50, %v10787_v26 }
 0x49b   : > { %7544 = vmatmul.msk.bf16.gmra.mxu2 %vm2745_vm2, %v4364_v1  ;;  %v2963_v7 = vsub.f32 %v10625_v12, %v2823_v27  ;;  %v3441_v59 = vmul.f32 %v10610_v57, %v3440_v52  ;;  %v11023_v12 = vmul.f32 0.17677669, %v10879_v49  ;;  %v4360_v46 = vunpack.c.l.b16 %v4288_v63 }
 0x49c   : > { %v3074_v50 = vmul.f32 1.442695, %v2974_v16  ;;  %v3466_v16 = vand.u32 2147483647, %v11010_v20 }
 0x49d   : > { %3233 = vadd.xlane.f32.xlu0 %v3232_v53  ;;  %3191 = vadd.xlane.f32.xlu1 %v3190_v38  ;;  %v3052_v31 = vmul.f32 1.442695, %v2963_v7  ;;  %v4289_v57 = vpack.c.bf16 %v3441_v59, %v3441_v59  ;;  %v11025_v61 = vpop.eup %8658  ;;  %v2929_v45 = vsel %vm2745_vm2, %v11023_v12, -inf  ;;  %v11049_v47 = vpop.xlane.xlu2 %2903  ;;  %v11062_v38 = vmul.f32 0.17677669, %v10822_v10  ;;  %v14335_v10 = vld [vmem:[#allocation31_spill] sm:$0xff] }
 0x49e   : > { %3248 = vadd.xlane.f32.xlu2 %v3247_v43  ;;  %v11032_v49 = vpop.eup %8660  ;;  %v3250_v54 = vsel %vm2745_vm2, %v11025_v61, 0.0  ;;  %v11065_v59 = vmul.f32 0.17677669, %v10915_v15  ;;  %v14336_v15 = vld [vmem:[#allocation28_spill] sm:$0xff]  ;;  %vm3467_vm10 = vcmp.eq.f32.partialorder %v3466_v16, 8.507059e+37 }
 0x49f   : > { %8664 = vpow2.f32 %v3052_v31  ;;  %v4361_v56 = vunpack.c.l.b16 %v4289_v57  ;;  %v3458_v5 = vmul.f32 %v11032_v49, %v11010_v20  ;;  %v11047_v52 = vpop.eup %8662  ;;  %v2975_v31 = vsub.f32 %v10561_v58, %v10808_v0 }
 0x4a0   : > { %v2826_v35 = vpop.xlane.xlu1 %2825  ;;  %14333 = vst [vmem:[#allocation50_spill] sm:$0xff] %v11047_v52  ;;  %v3196_v62 = vsel %vm2745_vm2, %v11047_v52, 0.0  ;;  %vm3463_vm7 = vweird.f32 %v11032_v49  ;;  %v2932_v58 = vsel %vm2745_vm2, %v11065_v59, -inf }
 0x4a1   : > { %v4365_v19 = vpack.c.b16 %v4361_v56, %v4360_v46  ;;  %v3459_v8 = vsub.f32 1.0, %v3458_v5  ;;  %vm11100_vm9 = vmor %vm3462_vm8, %vm3463_vm7 }
 0x4a2   : > { %v2895_v40 = vpop.xlane.xlu0 %2894 }
 0x4a3   : > { %v2987_v23 = vsub.f32 %v10637_v37, %v2895_v40  ;;  %v2976_v37 = vsub.f32 %v10585_v24, %v10872_v55  ;;  %v2923_v24 = vsel %vm2745_vm2, %v11039_v6, -inf  ;;  %v2964_v55 = vsub.f32 %v10639_v22, %v2826_v35 }
 0x4a4   : > { %v3460_v22 = vmul.f32 %v11032_v49, %v3459_v8  ;;  %v2962_v40 = vsub.f32 %v14335_v10, %v10941_v29  ;;  %v3468_v29 = vand.u32 2147483648, %v11010_v20 }
 0x4a5   : > { %3188 = vadd.xlane.f32.xlu0 %v3187_v14  ;;  %2930 = vmax.xlane.f32.xlu1 %v2929_v45  ;;  %v3100_v27 = vmul.f32 1.442695, %v2987_v23  ;;  %v11051_v53 = vpop.eup %8664  ;;  %v3078_v26 = vmul.f32 1.442695, %v2976_v37  ;;  %v3054_v43 = vmul.f32 1.442695, %v2964_v55  ;;  %v11079_v57 = vpop.xlane.xlu2 %3164 }
 0x4a6   : > { %3251 = vadd.xlane.f32.xlu2 %v3250_v54  ;;  %v3205_v7 = vsel %vm2745_vm2, %v11051_v53, 0.0  ;;  %v2926_v14 = vsel %vm2745_vm2, %v11062_v38, -inf  ;;  %v3461_v23 = vadd.f32 %v11032_v49, %v3460_v22  ;;  %v3076_v45 = vmul.f32 1.442695, %v2975_v31 }
 0x4a7   : > { %8666 = vpow2.f32 %v3100_v27  ;;  %v3050_v46 = vmul.f32 1.442695, %v2962_v40  ;;  %v3469_v8 = vor.u32 1.1754944e-38, %v3468_v29  ;;  %vm3492_vm0 = vweird.f32 %v11079_v57 }
 0x4a8   : > { %v2898_v28 = vpop.xlane.xlu1 %2897  ;;  %8668 = vpow2.f32 %v3074_v50 }
 0x4a9   : > { %8670 = vpow2.f32 %v3078_v26  ;;  %v2988_v63 = vsub.f32 %v14336_v15, %v2898_v28  ;;  %v3465_v28 = vsel %vm11100_vm9, %v11032_v49, %v3461_v23  ;;  %v14341_v26 = vld [vmem:[#allocation25_spill] sm:$0xff] }
 0x4aa   : > { %v11045_v1 = vpop.xlane.xlu0 %2828  ;;  %v3470_v22 = vsel %vm3467_vm10, %v3469_v8, %v3465_v28 }
 0x4ab   : > { %7545 = vmatmul.msk.bf16.gmra.mxu2 %vm2745_vm2, %v4365_v19  ;;  %v3102_v27 = vmul.f32 1.442695, %v2988_v63  ;;  %v14344_v63 = vld [vmem:[#allocation19_spill] sm:$0xff] }
 0x4ad   : > { %2924 = vmax.xlane.f32.xlu0 %v2923_v24  ;;  %3197 = vadd.xlane.f32.xlu1 %v3196_v62  ;;  %v11075_v35 = vpop.eup %8666  ;;  %v2986_v24 = vsub.f32 %v14341_v26, %v10837_v21 }
 0x4ae   : > { %3206 = vadd.xlane.f32.xlu2 %v3205_v7  ;;  %14334 = vst [vmem:[#allocation51_spill] sm:$0xff] %v11075_v35  ;;  %v11088_v0 = vpop.eup %8668  ;;  %v3277_v56 = vsel %vm2745_vm2, %v11075_v35, 0.0 }
 0x4af   : > { %14337 = vst [vmem:[#allocation31_spill] sm:$0xff] %v11088_v0  ;;  %v11093_v54 = vpop.eup %8670  ;;  %v3238_v55 = vsel %vm2745_vm2, %v11088_v0, 0.0 }
 0x4b0   : > { %v11068_v18 = vpop.xlane.xlu1 %3155  ;;  %14338 = vst [vmem:[#allocation28_spill] sm:$0xff] %v11093_v54  ;;  %v3244_v49 = vsel %vm2745_vm2, %v11093_v54, 0.0 }
 0x4b1   : > { %8672 = vrcp.f32 %v11068_v18  ;;  %v3453_v10 = vand.u32 2147483648, %v11068_v18  ;;  %v3451_v15 = vand.u32 2147483647, %v11068_v18  ;;  %vm3447_vm12 = vweird.f32 %v11068_v18 }
 0x4b2   : > { %v11070_v44 = vpop.xlane.xlu0 %2900  ;;  %8674 = vpow2.f32 %v3054_v43  ;;  %v14343_v43 = vld [vmem:[#allocation23_spill] sm:$0xff]  ;;  %v11136_v5 = vpop.xlane.xlu2 %2837 }
 0x4b3   : > { %8676 = vrcp.f32 %v11079_v57  ;;  %v2979_v31 = vsub.f32 %v14343_v43, %v11001_v51  ;;  %vm3452_vm14 = vcmp.eq.f32.partialorder %v3451_v15, 8.507059e+37 }
 0x4b4   : > { %8678 = vpow2.f32 %v3076_v45  ;;  %v14345_v45 = vld [vmem:[#allocation27_spill] sm:$0xff] }
 0x4b5   : > { %2927 = vmax.xlane.f32.xlu0 %v2926_v14  ;;  %2933 = vmax.xlane.f32.xlu1 %v2932_v58  ;;  %8680 = vpow2.f32 %v3050_v46  ;;  %v2989_v14 = vsub.f32 %v14344_v63, %v11070_v44  ;;  %v3098_v58 = vmul.f32 1.442695, %v2986_v24  ;;  %v3471_v51 = vmul.f32 %v14345_v45, %v3470_v22  ;;  %v14350_v22 = vld [vmem:[#allocation26_spill] sm:$0xff] }
 0x4b6   : > { %3278 = vadd.xlane.f32.xlu2 %v3277_v56  ;;  %8682 = vpow2.f32 %v3102_v27  ;;  %v3084_v46 = vmul.f32 1.442695, %v2979_v31  ;;  %v3454_v44 = vor.u32 1.1754944e-38, %v3453_v10  ;;  %v14351_v10 = vld [vmem:[#allocation35_spill] sm:$0xff] }
 0x4b7   : > { %v8673_v37 = vpop.eup %8672  ;;  %8684 = vpow2.f32 %v3098_v58 }
 0x4b8   : > { %v3443_v19 = vmul.f32 %v8673_v37, %v11068_v18  ;;  %v11108_v50 = vpop.xlane.xlu1 %2873  ;;  %v11116_v62 = vpop.eup %8674  ;;  %vm3448_vm11 = vweird.f32 %v8673_v37  ;;  %8686 = vpow2.f32 %v3084_v46 }
 0x4b9   : > { %14342 = vst [vmem:[#allocation25_spill] sm:$0xff] %v11116_v62  ;;  %v11123_v21 = vpop.eup %8676  ;;  %v3208_v23 = vsel %vm2745_vm2, %v11116_v62, 0.0  ;;  %vm3449_vm13 = vmor %vm3447_vm12, %vm3448_vm11 }
 0x4ba   : > { %v11110_v20 = vpop.xlane.xlu0 %2876  ;;  %v3444_v7 = vsub.f32 1.0, %v3443_v19  ;;  %v11132_v56 = vpop.eup %8678  ;;  %v3488_v16 = vmul.f32 %v11123_v21, %v11079_v57  ;;  %v3104_v19 = vmul.f32 1.442695, %v2989_v14  ;;  %vm3493_vm15 = vweird.f32 %v11123_v21 }
 0x4bb   : > { %14346 = vst [vmem:[#allocation23_spill] sm:$0xff] %v11132_v56  ;;  %v11138_v27 = vpop.eup %8680  ;;  %vm3494_vm3 = vmor %vm3492_vm0, %vm3493_vm15 }
 0x4bc   : > { %v3445_v40 = vmul.f32 %v8673_v37, %v3444_v7  ;;  %14347 = vst [vmem:[#allocation19_spill] sm:$0xff] %v11138_v27  ;;  %v11140_v8 = vpop.eup %8682  ;;  %v14349_v7 = vld [vmem:[#allocation20_spill] sm:$0xff]  ;;  %v3489_v31 = vsub.f32 1.0, %v3488_v16  ;;  %8688 = vpow2.f32 %v3104_v19  ;;  %v3202_v15 = vsel %vm2745_vm2, %v11138_v27, 0.0  ;;  %v11159_v19 = vpop.xlane.xlu2 %3167 }
 0x4bd   : > { %3239 = vadd.xlane.f32.xlu0 %v3238_v55  ;;  %3245 = vadd.xlane.f32.xlu1 %v3244_v49  ;;  %14348 = vst [vmem:[#allocation27_spill] sm:$0xff] %v11140_v8  ;;  %v4291_v55 = vpack.c.bf16 %v3471_v51, %v3471_v51  ;;  %v2965_v49 = vsub.f32 %v14349_v7, %v11045_v1  ;;  %v3280_v14 = vsel %vm2745_vm2, %v11140_v8, 0.0  ;;  %vm3507_vm10 = vweird.f32 %v11159_v19 }
 0x4be   : > { %v3446_v29 = vadd.f32 %v8673_v37, %v3445_v40  ;;  %3209 = vadd.xlane.f32.xlu2 %v3208_v23  ;;  %v3490_v45 = vmul.f32 %v11123_v21, %v3489_v31 }
 0x4bf   : > { %v4440_v1 = vunpack.c.l.b16 %v4291_v55  ;;  %v3056_v23 = vmul.f32 1.442695, %v2965_v49  ;;  %v14356_v49 = vld [vmem:[#allocation36_spill] sm:$0xff] }
 0x4c0   : > { %v3450_v28 = vsel %vm3449_vm13, %v8673_v37, %v3446_v29  ;;  %v2835_v26 = vpop.xlane.xlu1 %2834  ;;  %v3241_v37 = vsel %vm2745_vm2, %v11132_v56, 0.0  ;;  %v11153_v29 = vpop.eup %8684  ;;  %v3491_v7 = vadd.f32 %v11123_v21, %v3490_v45 }
 0x4c1   : > { %v3455_v18 = vsel %vm3452_vm14, %v3454_v44, %v3450_v28  ;;  %14352 = vst [vmem:[#allocation20_spill] sm:$0xff] %v11153_v29  ;;  %v11157_v28 = vpop.eup %8686 }
 0x4c2   : > { %v2832_v24 = vpop.xlane.xlu0 %2831  ;;  %v3456_v43 = vmul.f32 %v14350_v22, %v3455_v18  ;;  %14353 = vst [vmem:[#allocation26_spill] sm:$0xff] %v11157_v28  ;;  %v14355_v18 = vld [vmem:[#allocation24_spill] sm:$0xff]  ;;  %v2967_v22 = vsub.f32 %v14356_v49, %v2835_v26  ;;  %v3253_v31 = vsel %vm2745_vm2, %v11157_v28, 0.0  ;;  %v14359_v49 = vld [vmem:[#allocation41_spill] sm:$0xff] }
 0x4c3   : > { %v2966_v40 = vsub.f32 %v14351_v10, %v2832_v24  ;;  %v11161_v24 = vpop.eup %8688  ;;  %v2990_v55 = vsub.f32 %v14355_v18, %v11049_v47  ;;  %v3274_v10 = vsel %vm2745_vm2, %v11153_v29, 0.0  ;;  %v3496_v47 = vand.u32 2147483647, %v11079_v57 }
 0x4c4   : > { %v4290_v63 = vpack.c.bf16 %v3456_v43, %v3456_v43  ;;  %14354 = vst [vmem:[#allocation35_spill] sm:$0xff] %v11161_v24  ;;  %v3498_v43 = vand.u32 2147483648, %v11079_v57  ;;  %v11185_v18 = vpop.xlane.xlu2 %2912 }
 0x4c5   : > { %3242 = vadd.xlane.f32.xlu0 %v3241_v37  ;;  %3203 = vadd.xlane.f32.xlu1 %v3202_v15  ;;  %v3058_v51 = vmul.f32 1.442695, %v2966_v40  ;;  %v3283_v40 = vsel %vm2745_vm2, %v11161_v24, 0.0  ;;  %v3495_v37 = vsel %vm3494_vm3, %v11123_v21, %v3491_v7  ;;  %v3060_v15 = vmul.f32 1.442695, %v2967_v22 }
 0x4c6   : > { %v4439_v58 = vunpack.c.l.b16 %v4290_v63  ;;  %3281 = vadd.xlane.f32.xlu2 %v3280_v14  ;;  %v3106_v63 = vmul.f32 1.442695, %v2990_v55  ;;  %vm3497_vm4 = vcmp.eq.f32.partialorder %v3496_v47, 8.507059e+37  ;;  %v14360_v47 = vld [vmem:[#allocation29_spill] sm:$0xff] }
 0x4c8   : > { %v4447_v46 = vpack.c.b16 %v4440_v1, %v4439_v58  ;;  %v11155_v16 = vpop.xlane.xlu1 %2882  ;;  %v3499_v1 = vor.u32 1.1754944e-38, %v3498_v43 }
 0x4ca   : > { %v3162_v44 = vpop.xlane.xlu0 %3161  ;;  %7546 = vmatmul.msk.bf16.vlgmr.msra.gmra.mxu3 %vm2745_vm2, %v4447_v46 }
 0x4cb   : > { %8690 = vrcp.f32 %v3162_v44  ;;  %v3483_v55 = vand.u32 2147483648, %v3162_v44  ;;  %v3481_v43 = vand.u32 2147483647, %v3162_v44  ;;  %vm3477_vm6 = vweird.f32 %v3162_v44 }
 0x4cc   : > { %8692 = vpow2.f32 %v3056_v23 }
 0x4cd   : > { %8694 = vpow2.f32 %v3058_v51  ;;  %3254 = vadd.xlane.f32.xlu0 %v3253_v31  ;;  %3275 = vadd.xlane.f32.xlu1 %v3274_v10  ;;  %v3500_v51 = vsel %vm3497_vm4, %v3499_v1, %v3495_v37  ;;  %vm3482_vm8 = vcmp.eq.f32.partialorder %v3481_v43, 8.507059e+37 }
 0x4ce   : > { %3284 = vadd.xlane.f32.xlu2 %v3283_v40  ;;  %8696 = vpow2.f32 %v3106_v63  ;;  %v3501_v40 = vmul.f32 %v14360_v47, %v3500_v51  ;;  %v3484_v63 = vor.u32 1.1754944e-38, %v3483_v55 }
 0x4cf   : > { %8698 = vpow2.f32 %v3060_v15 }
 0x4d0   : > { %v2910_v45 = vpop.xlane.xlu1 %2909  ;;  %8700 = vrcp.f32 %v11159_v19  ;;  %v4293_v47 = vpack.c.bf16 %v3501_v40, %v3501_v40 }
 0x4d1   : > { %v8691_v26 = vpop.eup %8690  ;;  %v2992_v21 = vsub.f32 %v14359_v49, %v2910_v45 }
 0x4d2   : > { %v11179_v14 = vpop.eup %8692  ;;  %v3473_v23 = vmul.f32 %v8691_v26, %v3162_v44  ;;  %v11181_v58 = vpop.xlane.xlu0 %2879  ;;  %vm3478_vm5 = vweird.f32 %v8691_v26 }
 0x4d3   : > { %14357 = vst [vmem:[#allocation24_spill] sm:$0xff] %v11179_v14  ;;  %v11183_v57 = vpop.eup %8694  ;;  %v3211_v7 = vsel %vm2745_vm2, %v11179_v14, 0.0  ;;  %vm3479_vm7 = vmor %vm3477_vm6, %vm3478_vm5  ;;  %v3110_v37 = vmul.f32 1.442695, %v2992_v21  ;;  %v14365_v21 = vld [vmem:[#allocation33_spill] sm:$0xff] }
 0x4d4   : > { %14358 = vst [vmem:[#allocation36_spill] sm:$0xff] %v11183_v57  ;;  %v3474_v46 = vsub.f32 1.0, %v3473_v23  ;;  %v3214_v31 = vsel %vm2745_vm2, %v11183_v57, 0.0  ;;  %v11194_v15 = vpop.eup %8696 }
 0x4d5   : > { %3212 = vadd.xlane.f32.xlu0 %v3211_v7  ;;  %3215 = vadd.xlane.f32.xlu1 %v3214_v31  ;;  %14361 = vst [vmem:[#allocation41_spill] sm:$0xff] %v11194_v15  ;;  %v14364_v31 = vld [vmem:[#allocation39_spill] sm:$0xff]  ;;  %8702 = vpow2.f32 %v3110_v37 }
 0x4d6   : > { %v3475_v22 = vmul.f32 %v8691_v26, %v3474_v46  ;;  %v11198_v46 = vpop.eup %8698 }
 0x4d7   : > { %14362 = vst [vmem:[#allocation29_spill] sm:$0xff] %v11198_v46  ;;  %v11204_v55 = vpop.eup %8700 }
 0x4d8   : > { %v3476_v10 = vadd.f32 %v8691_v26, %v3475_v22  ;;  %v11196_v45 = vpop.xlane.xlu1 %2888  ;;  %v14363_v22 = vld [vmem:[#allocation30_spill] sm:$0xff]  ;;  %v3503_v40 = vmul.f32 %v11204_v55, %v11159_v19  ;;  %vm3508_vm9 = vweird.f32 %v11204_v55 }
 0x4d9   : > { %v2968_v44 = vsub.f32 %v14363_v22, %v11136_v5  ;;  %vm3509_vm11 = vmor %vm3507_vm10, %vm3508_vm9 }
 0x4da   : > { %v3480_v1 = vsel %vm3479_vm7, %v8691_v26, %v3476_v10  ;;  %v2907_v23 = vpop.xlane.xlu0 %2906  ;;  %v2981_v26 = vsub.f32 %v14365_v21, %v11110_v20  ;;  %v3217_v10 = vsel %vm2745_vm2, %v11198_v46, 0.0  ;;  %v4442_v20 = vunpack.c.l.b16 %v4293_v47 }
 0x4db   : > { %v3485_v49 = vsel %vm3482_vm8, %v3484_v63, %v3480_v1  ;;  %v2991_v7 = vsub.f32 %v10780_v34, %v2907_v23  ;;  %v3286_v63 = vsel %vm2745_vm2, %v11194_v15, 0.0  ;;  %v11212_v1 = vpop.xlane.xlu2 %3173  ;;  %v3062_v5 = vmul.f32 1.442695, %v2968_v44 }
 0x4dc   : > { %v3486_v51 = vmul.f32 %v14364_v31, %v3485_v49  ;;  %v3088_v37 = vmul.f32 1.442695, %v2981_v26  ;;  %v11220_v31 = vpop.eup %8702  ;;  %vm3537_vm5 = vweird.f32 %v11212_v1 }
 0x4dd   : > { %v3108_v43 = vmul.f32 1.442695, %v2991_v7  ;;  %3218 = vadd.xlane.f32.xlu0 %v3217_v10  ;;  %3287 = vadd.xlane.f32.xlu1 %v3286_v63  ;;  %14366 = vst [vmem:[#allocation30_spill] sm:$0xff] %v11220_v31  ;;  %v3292_v44 = vsel %vm2745_vm2, %v11220_v31, 0.0 }
 0x4de   : > { %v4292_v34 = vpack.c.bf16 %v3486_v51, %v3486_v51  ;;  %v3504_v51 = vsub.f32 1.0, %v3503_v40 }
 0x4df   : > { %8704 = vpow2.f32 %v3108_v43 }
 0x4e0   : > { %v4441_v23 = vunpack.c.l.b16 %v4292_v34  ;;  %v11218_v7 = vpop.xlane.xlu1 %3179  ;;  %8706 = vpow2.f32 %v3062_v5  ;;  %v3505_v26 = vmul.f32 %v11204_v55, %v3504_v51 }
 0x4e1   : > { %8708 = vpow2.f32 %v3088_v37  ;;  %v3513_v37 = vand.u32 2147483648, %v11159_v19  ;;  %vm3567_vm15 = vweird.f32 %v11218_v7  ;;  %v3573_v46 = vand.u32 2147483648, %v11218_v7 }
 0x4e2   : > { %v11216_v49 = vpop.xlane.xlu0 %2885  ;;  %v4448_v22 = vpack.c.b16 %v4442_v20, %v4441_v23  ;;  %8710 = vrcp.f32 %v11212_v1  ;;  %v3506_v20 = vadd.f32 %v11204_v55, %v3505_v26 }
 0x4e3   : > { %v11230_v43 = vpop.xlane.xlu2 %3185 }
 0x4e4   : > { %7547 = vmatmul.msk.bf16.gmra.mxu3 %vm2745_vm2, %v4448_v22  ;;  %8712 = vrcp.f32 %v11230_v43  ;;  %vm3597_vm9 = vweird.f32 %v11230_v43 }
 0x4e5   : > { %v11223_v21 = vpop.eup %8704  ;;  %3293 = vadd.xlane.f32.xlu1 %v3292_v44  ;;  %v3511_v44 = vand.u32 2147483647, %v11159_v19  ;;  %8714 = vrcp.f32 %v11218_v7  ;;  %v14370_v19 = vld [vmem:[#allocation32_spill] sm:$0xff] }
 0x4e6   : > { %14367 = vst [vmem:[#allocation39_spill] sm:$0xff] %v11223_v21  ;;  %v3289_v47 = vsel %vm2745_vm2, %v11223_v21, 0.0  ;;  %v11232_v10 = vpop.eup %8706 }
 0x4e7   : > { %3290 = vadd.xlane.f32.xlu2 %v3289_v47  ;;  %14368 = vst [vmem:[#allocation33_spill] sm:$0xff] %v11232_v10  ;;  %v11234_v5 = vpop.eup %8708  ;;  %v3510_v47 = vsel %vm3509_vm11, %v11204_v55, %v3506_v20  ;;  %vm3512_vm12 = vcmp.eq.f32.partialorder %v3511_v44, 8.507059e+37 }
 0x4e8   : > { %v2916_v34 = vpop.xlane.xlu1 %2915  ;;  %14369 = vst [vmem:[#allocation52_spill] sm:$0xff] %v11234_v5  ;;  %v11251_v26 = vpop.eup %8710 }
 0x4e9   : > { %v2994_v23 = vsub.f32 %v10830_v4, %v2916_v34  ;;  %v3220_v4 = vsel %vm2745_vm2, %v11232_v10, 0.0  ;;  %v3533_v55 = vmul.f32 %v11251_v26, %v11212_v1  ;;  %vm3538_vm3 = vweird.f32 %v11251_v26 }
 0x4ea   : > { %v2841_v63 = vpop.xlane.xlu0 %2840  ;;  %v11253_v34 = vpop.eup %8712 }
 0x4eb   : > { %v2969_v40 = vsub.f32 %v10825_v17, %v2841_v63  ;;  %v3114_v51 = vmul.f32 1.442695, %v2994_v23  ;;  %v3259_v17 = vsel %vm2745_vm2, %v11234_v5, 0.0  ;;  %v3514_v63 = vor.u32 1.1754944e-38, %v3513_v37  ;;  %v14372_v37 = vld [vmem:[#allocation37_spill] sm:$0xff] }
 0x4ec   : > { %v3534_v10 = vsub.f32 1.0, %v3533_v55  ;;  %vm3598_vm6 = vweird.f32 %v11253_v34 }
 0x4ed   : > { %v3064_v22 = vmul.f32 1.442695, %v2969_v40  ;;  %3260 = vadd.xlane.f32.xlu1 %v3259_v17  ;;  %v2980_v40 = vsub.f32 %v14370_v19, %v11108_v50  ;;  %v3515_v31 = vsel %vm3512_vm12, %v3514_v63, %v3510_v47  ;;  %v3593_v50 = vmul.f32 %v11253_v34, %v11230_v43  ;;  %v14374_v47 = vld [vmem:[#allocation34_spill] sm:$0xff] }
 0x4ee   : > { %v3516_v63 = vmul.f32 %v14374_v47, %v3515_v31  ;;  %v14375_v19 = vld [vmem:[#allocation42_spill] sm:$0xff] }
 0x4ef   : > { %8716 = vpow2.f32 %v3064_v22  ;;  %3221 = vadd.xlane.f32.xlu2 %v3220_v4  ;;  %v11262_v22 = vpop.eup %8714  ;;  %v3086_v17 = vmul.f32 1.442695, %v2980_v40  ;;  %v2982_v15 = vsub.f32 %v14375_v19, %v11181_v58  ;;  %v3594_v24 = vsub.f32 1.0, %v3593_v50  ;;  %v11292_v19 = vpop.xlane.xlu2 %3194 }
 0x4f0   : > { %8718 = vpow2.f32 %v3114_v51  ;;  %v11259_v5 = vpop.xlane.xlu1 %2918  ;;  %v2993_v51 = vsub.f32 %v14372_v37, %v11185_v18  ;;  %v3563_v18 = vmul.f32 %v11262_v22, %v11218_v7  ;;  %v4294_v47 = vpack.c.bf16 %v3516_v63, %v3516_v63 }
 0x4f1   : > { %v3090_v55 = vmul.f32 1.442695, %v2982_v15  ;;  %v3595_v8 = vmul.f32 %v11253_v34, %v3594_v24  ;;  %vm3568_vm4 = vweird.f32 %v11262_v22 }
 0x4f2   : > { %v11257_v23 = vpop.xlane.xlu0 %3170  ;;  %v3112_v40 = vmul.f32 1.442695, %v2993_v51  ;;  %v3564_v51 = vsub.f32 1.0, %v3563_v18  ;;  %v11304_v57 = vunpack.c.l.b16 %v4294_v47  ;;  %vm11371_vm10 = vmor %vm3567_vm15, %vm3568_vm4 }
 0x4f3   : > { %8720 = vrcp.f32 %v11257_v23  ;;  %vm3522_vm14 = vweird.f32 %v11257_v23  ;;  %v3526_v18 = vand.u32 2147483647, %v11257_v23 }
 0x4f4   : > { %8722 = vpow2.f32 %v3086_v17  ;;  %v14376_v17 = vld [vmem:[#allocation38_spill] sm:$0xff]  ;;  %v3565_v24 = vmul.f32 %v11262_v22, %v3564_v51  ;;  %v3571_v51 = vand.u32 2147483647, %v11218_v7 }
 0x4f5   : > { %v11266_v20 = vpop.eup %8716  ;;  %vm3527_vm7 = vcmp.eq.f32.partialorder %v3526_v18, 8.507059e+37 }
 0x4f6   : > { %14371 = vst [vmem:[#allocation32_spill] sm:$0xff] %v11266_v20  ;;  %v11272_v44 = vpop.eup %8718  ;;  %v3223_v4 = vsel %vm2745_vm2, %v11266_v20, 0.0  ;;  %v3543_v20 = vand.u32 2147483648, %v11212_v1  ;;  %v3566_v62 = vadd.f32 %v11262_v22, %v3565_v24  ;;  %vm11375_vm11 = vcmp.eq.f32.partialorder %v3571_v51, 8.507059e+37 }
 0x4f7   : > { %14373 = vst [vmem:[#allocation37_spill] sm:$0xff] %v11272_v44  ;;  %3224 = vadd.xlane.f32.xlu0 %v3223_v4  ;;  %v3298_v21 = vsel %vm2745_vm2, %v11272_v44, 0.0 }
 0x4f8   : > { %3299 = vadd.xlane.f32.xlu1 %v3298_v21  ;;  %v11290_v4 = vpop.xlane.xlu1 %3230  ;;  %v3535_v21 = vmul.f32 %v11251_v26, %v3534_v10  ;;  %v11301_v63 = vor.u32 1.1754944e-38, %v3543_v20  ;;  %v3570_v7 = vsel %vm11371_vm10, %v11262_v22, %v3566_v62  ;;  %vm11427_vm10 = vmor %vm3537_vm5, %vm3538_vm3 }
 0x4f9   : > { %v11283_v37 = vpop.eup %8720  ;;  %v3828_v24 = vand.u32 2147483648, %v11290_v4  ;;  %vm3822_vm15 = vweird.f32 %v11290_v4  ;;  %vm11444_vm3 = vmor %vm3597_vm9, %vm3598_vm6 }
 0x4fa   : > { %v3518_v31 = vmul.f32 %v11283_v37, %v11257_v23  ;;  %v11288_v58 = vpop.xlane.xlu0 %3227  ;;  %vm3523_vm13 = vweird.f32 %v11283_v37 }
 0x4fb   : > { %8724 = vrcp.f32 %v11288_v58  ;;  %vm11333_vm0 = vmor %vm3522_vm14, %vm3523_vm13  ;;  %vm3807_vm13 = vweird.f32 %v11288_v58 }
 0x4fc   : > { %v3519_v50 = vsub.f32 1.0, %v3518_v31  ;;  %8726 = vrcp.f32 %v11290_v4  ;;  %v11312_v31 = vadd.f32 %v11251_v26, %v3535_v21 }
 0x4fd   : > { %8728 = vpow2.f32 %v3112_v40  ;;  %v11309_v40 = vpop.eup %8722 }
 0x4fe   : > { %v3520_v15 = vmul.f32 %v11283_v37, %v3519_v50  ;;  %8730 = vpow2.f32 %v3090_v55  ;;  %v3528_v50 = vand.u32 2147483648, %v11257_v23  ;;  %v11320_v55 = vadd.f32 %v11253_v34, %v3595_v8 }
 0x4ff   : > { %8732 = vrcp.f32 %v11292_v19 }
 0x500   : > { %v3521_v20 = vadd.f32 %v11283_v37, %v3520_v15  ;;  %v11341_v23 = vpop.xlane.xlu1 %2921  ;;  %v3529_v29 = vor.u32 1.1754944e-38, %v3528_v50 }
 0x501   : > { %v11317_v47 = vpop.eup %8724  ;;  %v11353_v14 = vpop.xlane.xlu2 %3200 }
 0x502   : > { %v11326_v21 = vpop.eup %8726  ;;  %v3803_v15 = vmul.f32 %v11317_v47, %v11288_v58  ;;  %v11339_v10 = vpop.xlane.xlu0 %3182  ;;  %v3525_v9 = vsel %vm11333_vm0, %v11283_v37, %v3521_v20  ;;  %v3811_v37 = vand.u32 2147483647, %v11288_v58  ;;  %v3813_v20 = vand.u32 2147483648, %v11288_v58 }
 0x503   : > { %v11343_v44 = vpop.eup %8728  ;;  %v3818_v54 = vmul.f32 %v11326_v21, %v11290_v4  ;;  %8734 = vrcp.f32 %v11339_v10  ;;  %v3530_v0 = vsel %vm3527_vm7, %v3529_v29, %v3525_v9  ;;  %vm3808_vm8 = vweird.f32 %v11317_v47  ;;  %v14384_v29 = vld [vmem:[#allocation18_spill] sm:$0xff] }
 0x504   : > { %v3804_v28 = vsub.f32 1.0, %v3803_v15  ;;  %v11357_v56 = vpop.eup %8730  ;;  %vm3823_vm12 = vweird.f32 %v11326_v21  ;;  %v3574_v15 = vor.u32 1.1754944e-38, %v3573_v46  ;;  %vm3809_vm14 = vmor %vm3807_vm13, %vm3808_vm8  ;;  %v3531_v33 = vmul.f32 %v10866_v39, %v3530_v0 }
 0x505   : > { %14379 = vst [vmem:[#allocation34_spill] sm:$0xff] %v11357_v56  ;;  %v3819_v8 = vsub.f32 1.0, %v3818_v54  ;;  %v3826_v54 = vand.u32 2147483647, %v11290_v4  ;;  %vm3812_vm0 = vcmp.eq.f32.partialorder %v3811_v37, 8.507059e+37  ;;  %vm3824_vm4 = vmor %vm3822_vm15, %vm3823_vm12  ;;  %v14388_v37 = vld [vmem:[#allocation22_spill] sm:$0xff]  ;;  %vm3582_vm5 = vweird.f32 %v11339_v10 }
 0x506   : > { %v3805_v42 = vmul.f32 %v11317_v47, %v3804_v28  ;;  %v11384_v28 = vpop.eup %8732  ;;  %v14385_v58 = vand.u32 2147483647, %v11212_v1  ;;  %v3575_v39 = vsel %vm11375_vm11, %v3574_v15, %v3570_v7  ;;  %v3588_v50 = vand.u32 2147483648, %v11339_v10  ;;  %v14400_v1 = vld [vmem:[#allocation43_spill] sm:$0xff] }
 0x507   : > { %v3820_v9 = vmul.f32 %v11326_v21, %v3819_v8  ;;  %8412 = vrot.lane.b32.xlu2 %v14384_v29, %s9221_s9  ;;  %v3814_v8 = vor.u32 1.1754944e-38, %v3813_v20  ;;  %vm3827_vm8 = vcmp.eq.f32.partialorder %v3826_v54, 8.507059e+37  ;;  %vm3643_vm13 = vweird.f32 %v11384_v28 }
 0x508   : > { %v3806_v51 = vadd.f32 %v11317_v47, %v3805_v42  ;;  %v3829_v42 = vor.u32 1.1754944e-38, %v3828_v24  ;;  %v11402_v22 = vpop.xlane.xlu1 %3236  ;;  %vm11406_vm7 = vcmp.eq.f32.partialorder %v14385_v58, 8.507059e+37  ;;  %v3638_v24 = vmul.f32 %v11384_v28, %v11292_v19 }
 0x509   : > { %v8735_v52 = vpop.eup %8734  ;;  %v3821_v27 = vadd.f32 %v11326_v21, %v3820_v9 }
 0x50a   : > { %v3810_v35 = vsel %vm3809_vm14, %v11317_v47, %v3806_v51  ;;  %v3578_v62 = vmul.f32 %v8735_v52, %v11339_v10  ;;  %v11400_v46 = vpop.xlane.xlu0 %3176  ;;  %v11413_v47 = vpop.xlane.xlu2 %2936  ;;  %vm3583_vm11 = vweird.f32 %v8735_v52  ;;  %vm3642_vm14 = vweird.f32 %v11292_v19 }
 0x50b   : > { %v3815_v0 = vsel %vm3812_vm0, %v3814_v8, %v3810_v35  ;;  %v3825_v4 = vsel %vm3824_vm4, %v11326_v21, %v3821_v27  ;;  %8407 = vrot.lane.b32.xlu0 %v14388_v37, %s9223_s26  ;;  %8736 = vrcp.f32 %v11400_v46  ;;  %v4295_v35 = vpack.c.bf16 %v3531_v33, %v3531_v33  ;;  %vm3584_vm12 = vmor %vm3582_vm5, %vm3583_vm11 }
 0x50c   : > { %v3816_v18 = vmul.f32 %v10889_v32, %v3815_v0  ;;  %v3830_v9 = vsel %vm3827_vm8, %v3829_v42, %v3825_v4  ;;  %v3579_v51 = vsub.f32 1.0, %v3578_v62  ;;  %v3586_v32 = vand.u32 2147483647, %v11339_v10  ;;  %v14394_v4 = vld [vmem:[#allocation46_spill] sm:$0xff]  ;;  %vm11511_vm15 = vmor %vm3642_vm14, %vm3643_vm13 }
 0x50d   : > { %v3831_v58 = vmul.f32 %v10892_v30, %v3830_v9  ;;  %v3540_v30 = vsel %vm11427_vm10, %v11251_v26, %v11312_v31  ;;  %v14391_v33 = vsub.f32 %v10785_v25, %v11196_v45  ;;  %8738 = vrcp.f32 %v11353_v14 }
 0x50e   : > { %v4314_v21 = vpack.c.bf16 %v3816_v18, %v3816_v18  ;;  %v3580_v54 = vmul.f32 %v8735_v52, %v3579_v51  ;;  %v3576_v8 = vmul.f32 %v10803_v36, %v3575_v39  ;;  %v3639_v26 = vsub.f32 1.0, %v3638_v24 }
 0x50f   : > { %v3096_v7 = vmul.f32 1.442695, %v14391_v33  ;;  %v4315_v15 = vpack.c.bf16 %v3831_v58, %v3831_v58  ;;  %v3589_v45 = vor.u32 1.1754944e-38, %v3588_v50  ;;  %v4444_v31 = vunpack.c.l.b16 %v4295_v35 }
 0x510   : > { %v4694_v42 = vunpack.c.l.b16 %v4314_v21  ;;  %v3581_v62 = vadd.f32 %v8735_v52, %v3580_v54  ;;  %v3600_v0 = vsel %vm11444_vm3, %v11253_v34, %v11320_v55  ;;  %v2995_v36 = vsub.f32 %v14394_v4, %v11259_v5  ;;  %v11460_v10 = vpop.xlane.xlu1 %3191  ;;  %v14397_v5 = vld [vmem:[#allocation44_spill] sm:$0xff] }
 0x511   : > { %v4695_v25 = vunpack.c.l.b16 %v4315_v15  ;;  %8422 = vrot.lane.b32.xlu1 %v14384_v29, %s9223_s26  ;;  %vm3587_vm6 = vcmp.eq.f32.partialorder %v3586_v32, 8.507059e+37  ;;  %v11462_v24 = vpop.eup %8736  ;;  %v14395_v18 = vand.u32 2147483647, %v11230_v43  ;;  %v14396_v29 = vand.u32 2147483648, %v11230_v43 }
 0x512   : > { %v3585_v39 = vsel %vm3584_vm12, %v8735_v52, %v3581_v62  ;;  %v11458_v37 = vpop.xlane.xlu0 %3233  ;;  %v11468_v34 = vpop.xlane.xlu2 %3248  ;;  %v3545_v52 = vsel %vm11406_vm7, %v11301_v63, %v3540_v30  ;;  %v2984_v55 = vsub.f32 %v14397_v5, %v11216_v49  ;;  %v4298_v50 = vpack.c.bf16 %v3576_v8, %v3576_v8  ;;  %v14399_v30 = vld [vmem:[#allocation40_spill] sm:$0xff] }
 0x513   : > { %vm3602_vm9 = vcmp.eq.f32.partialorder %v14395_v18, 8.507059e+37  ;;  %v3604_v9 = vor.u32 1.1754944e-38, %v14396_v29  ;;  %v4702_v51 = vpack.c.b16 %v4695_v25, %v4694_v42  ;;  %v3590_v58 = vsel %vm3587_vm6, %v3589_v45, %v3585_v39  ;;  %v11476_v27 = vpop.eup %8738 }
 0x514   : > { %v3591_v35 = vmul.f32 %v10917_v13, %v3590_v58  ;;  %v3640_v43 = vmul.f32 %v11384_v28, %v3639_v26  ;;  %8740 = vrcp.f32 %v11402_v22  ;;  %v4449_v54 = vpack.c.b16 %v4444_v31, %v11304_v57 }
 0x515   : > { %v3605_v21 = vsel %vm3602_vm9, %v3604_v9, %v3600_v0  ;;  %7558 = vmatmul.msk.bf16.vlgmr.msrb.gmra.mxu2 %vm2745_vm2, %v4702_v51  ;;  %8742 = vpow2.f32 %v3096_v7  ;;  %v3116_v20 = vmul.f32 1.442695, %v2995_v36  ;;  %v3548_v49 = vmul.f32 %v11462_v24, %v11400_v46 }
 0x516   : > { %v4299_v63 = vpack.c.bf16 %v3591_v35, %v3591_v35  ;;  %v14398_v13 = vsub.f32 %v14376_v17, %v11155_v16  ;;  %7548 = vmatmul.msk.bf16.gmra.mxu3 %vm2745_vm2, %v4449_v54  ;;  %8744 = vrcp.f32 %v11458_v37  ;;  %v3546_v33 = vmul.f32 %v14399_v30, %v3545_v52 }
 0x517   : > { %v4524_v15 = vunpack.c.l.b16 %v4298_v50  ;;  %v3668_v7 = vmul.f32 %v11476_v27, %v11353_v14  ;;  %v3606_v8 = vmul.f32 %v14400_v1, %v3605_v21  ;;  %v3094_v42 = vmul.f32 1.442695, %v2984_v55 }
 0x518   : > { %v3092_v32 = vmul.f32 1.442695, %v14398_v13  ;;  %v4525_v57 = vunpack.c.l.b16 %v4299_v63  ;;  %v3641_v62 = vadd.f32 %v11384_v28, %v3640_v43  ;;  %8746 = vpow2.f32 %v3116_v20  ;;  %v11497_v25 = vpop.xlane.xlu1 %2930 }
 0x519   : > { %v3549_v17 = vsub.f32 1.0, %v3548_v49  ;;  %v3648_v31 = vand.u32 2147483648, %v11292_v19  ;;  %v4296_v4 = vpack.c.bf16 %v3546_v33, %v3546_v33  ;;  %v11507_v36 = vsel %vm2745_vm2, %v11309_v40, 0.0 }
 0x51a   : > { %v4532_v16 = vpack.c.b16 %v4525_v57, %v4524_v15  ;;  %v11495_v26 = vpop.xlane.xlu0 %3188  ;;  %v11499_v45 = vpop.eup %8740  ;;  %8748 = vpow2.f32 %v3092_v32  ;;  %v3646_v29 = vand.u32 2147483647, %v11292_v19  ;;  %v3669_v9 = vsub.f32 1.0, %v3668_v7 }
 0x51b   : > { %v11503_v0 = vpop.xlane.xlu2 %3251  ;;  %v11509_v39 = vpop.eup %8742  ;;  %v4300_v51 = vpack.c.bf16 %v3606_v8, %v3606_v8  ;;  %8750 = vpow2.f32 %v3094_v42  ;;  %v3645_v52 = vsel %vm11511_vm15, %v11384_v28, %v3641_v62  ;;  %v2996_v5 = vsub.f32 %v10936_v48, %v11341_v23 }
 0x51c   : > { %14401 = vst [vmem:[#allocation42_spill] sm:$0xff] %v11509_v39  ;;  %7550 = vmatmul.msk.bf16.vlgmr.msrb.gmra.mxu0 %vm2745_vm2, %v4532_v16  ;;  %v11517_v58 = vpop.eup %8744  ;;  %v11526_v55 = vsel %vm2745_vm2, %v11343_v44, 0.0  ;;  %v3550_v19 = vmul.f32 %v11462_v24, %v3549_v17  ;;  %v3848_v50 = vmul.f32 %v11499_v45, %v11402_v22  ;;  %8752 = vrcp.f32 %v11460_v10 }
 0x51d   : > { %v3833_v35 = vmul.f32 %v11517_v58, %v11458_v37  ;;  %v3649_v21 = vor.u32 1.1754944e-38, %v3648_v31  ;;  %8754 = vrcp.f32 %v11495_v26  ;;  %v11535_v28 = vunpack.c.l.b16 %v4296_v4 }
 0x51e   : > { %v11539_v48 = vsel %vm2745_vm2, %v11357_v56, 0.0  ;;  %v11541_v23 = vpop.eup %8746  ;;  %vm3647_vm0 = vcmp.eq.f32.partialorder %v3646_v29, 8.507059e+37  ;;  %v3670_v43 = vmul.f32 %v11476_v27, %v3669_v9  ;;  %v11544_v54 = vunpack.c.l.b16 %v4300_v51 }
 0x51f   : > { %v11548_v20 = vsel %vm2745_vm2, %v11509_v39, 0.0  ;;  %v11550_v63 = vsel %vm3647_vm0, %v3649_v21, %v3645_v52  ;;  %v3118_v49 = vmul.f32 1.442695, %v2996_v5  ;;  %v3676_v13 = vand.u32 2147483647, %v11353_v14 }
 0x520   : > { %v3678_v32 = vand.u32 2147483648, %v11353_v14  ;;  %v11554_v30 = vpop.eup %8748  ;;  %v3551_v33 = vadd.f32 %v11462_v24, %v3550_v19  ;;  %vm3553_vm4 = vweird.f32 %v11462_v24  ;;  %v3849_v15 = vsub.f32 1.0, %v3848_v50  ;;  %v11565_v62 = vpop.xlane.xlu1 %3197 }
 0x521   : > { %v3834_v57 = vsub.f32 1.0, %v3833_v35  ;;  %v11560_v1 = vpop.eup %8750  ;;  %vm3672_vm7 = vweird.f32 %v11353_v14  ;;  %v3556_v8 = vand.u32 2147483647, %v11400_v46  ;;  %v3558_v42 = vand.u32 2147483648, %v11400_v46 }
 0x522   : > { %v11558_v7 = vpop.xlane.xlu0 %2924  ;;  %v11569_v16 = vsel %vm2745_vm2, %v11541_v23, 0.0  ;;  %v11571_v17 = vpop.eup %8752  ;;  %v3671_v31 = vadd.f32 %v11476_v27, %v3670_v43  ;;  %vm3673_vm8 = vweird.f32 %v11476_v27  ;;  %vm3552_vm10 = vweird.f32 %v11400_v46 }
 0x523   : > { %8756 = vrcp.f32 %v11503_v0  ;;  %v11577_v4 = vpop.xlane.xlu2 %3206  ;;  %v11579_v18 = vpop.eup %8754  ;;  %vm11581_vm11 = vcmp.eq.f32.partialorder %v3676_v13, 8.507059e+37  ;;  %v3679_v9 = vor.u32 1.1754944e-38, %v3678_v32  ;;  %vm11587_vm3 = vmor %vm3552_vm10, %vm3553_vm4  ;;  %v3856_v46 = vand.u32 2147483647, %v11402_v22 }
 0x524   : > { %8758 = vpow2.f32 %v3118_v49  ;;  %v3555_v52 = vsel %vm11587_vm3, %v11462_v24, %v3551_v33  ;;  %v3850_v5 = vmul.f32 %v11499_v45, %v3849_v15  ;;  %v3835_v19 = vmul.f32 %v11517_v58, %v3834_v57  ;;  %vm11600_vm5 = vmor %vm3672_vm7, %vm3673_vm8 }
 0x525   : > { %8760 = vrcp.f32 %v11468_v34  ;;  %vm3557_vm12 = vcmp.eq.f32.partialorder %v3556_v8, 8.507059e+37  ;;  %v3559_v35 = vor.u32 1.1754944e-38, %v3558_v42  ;;  %vm3852_vm6 = vweird.f32 %v11402_v22 }
 0x526   : > { %v3858_v21 = vand.u32 2147483648, %v11402_v22  ;;  %v3675_v24 = vsel %vm11600_vm5, %v11476_v27, %v3671_v31  ;;  %v3623_v14 = vmul.f32 %v11571_v17, %v11460_v10  ;;  %v3608_v49 = vmul.f32 %v11579_v18, %v11495_v26 }
 0x527   : > { %v3560_v13 = vsel %vm3557_vm12, %v3559_v35, %v3555_v52  ;;  %vm3853_vm9 = vweird.f32 %v11499_v45  ;;  %v3841_v32 = vand.u32 2147483647, %v11458_v37  ;;  %v3843_v33 = vand.u32 2147483648, %v11458_v37 }
 0x528   : > { %v3851_v27 = vadd.f32 %v11499_v45, %v3850_v5  ;;  %vm11621_vm13 = vcmp.eq.f32.partialorder %v3856_v46, 8.507059e+37  ;;  %v3836_v8 = vadd.f32 %v11517_v58, %v3835_v19  ;;  %vm3838_vm14 = vweird.f32 %v11517_v58  ;;  %vm11643_vm15 = vmor %vm3852_vm6, %vm3853_vm9  ;;  %v11660_v43 = vpop.xlane.xlu1 %2933 }
 0x529   : > { %v11618_v15 = vpop.eup %8756  ;;  %v11633_v51 = vsel %vm11581_vm11, %v3679_v9, %v3675_v24  ;;  %v3859_v52 = vor.u32 1.1754944e-38, %v3858_v21  ;;  %v3633_v50 = vand.u32 2147483648, %v11460_v10  ;;  %8762 = vrcp.f32 %v11577_v4 }
 0x52a   : > { %v11627_v42 = vpop.xlane.xlu0 %2927  ;;  %v11629_v31 = vpop.eup %8758  ;;  %vm3837_vm0 = vweird.f32 %v11458_v37  ;;  %v3624_v29 = vsub.f32 1.0, %v3623_v14  ;;  %v3609_v9 = vsub.f32 1.0, %v3608_v49  ;;  %v3561_v19 = vmul.f32 %v10931_v41, %v3560_v13 }
 0x52b   : > { %v11637_v46 = vpop.eup %8760  ;;  %vm11649_vm4 = vmor %vm3837_vm0, %vm3838_vm14  ;;  %vm11653_vm7 = vcmp.eq.f32.partialorder %v3841_v32, 8.507059e+37  ;;  %v3844_v24 = vor.u32 1.1754944e-38, %v3843_v33  ;;  %vm3627_vm8 = vweird.f32 %v11460_v10  ;;  %v3923_v22 = vmul.f32 %v11618_v15, %v11503_v0  ;;  %v11669_v13 = vpop.xlane.xlu2 %3278 }
 0x52c   : > { %v3855_v41 = vsel %vm11643_vm15, %v11499_v45, %v3851_v27  ;;  %v3840_v37 = vsel %vm11649_vm4, %v11517_v58, %v3836_v8  ;;  %v3631_v14 = vand.u32 2147483647, %v11460_v10  ;;  %v4297_v49 = vpack.c.bf16 %v3561_v19, %v3561_v19 }
 0x52d   : > { %v11671_v32 = vor.u32 1.1754944e-38, %v3633_v50  ;;  %v3908_v33 = vmul.f32 %v11637_v46, %v11468_v34  ;;  %v3918_v39 = vand.u32 2147483648, %v11468_v34  ;;  %v3616_v56 = vand.u32 2147483647, %v11495_v26 }
 0x52e   : > { %v3625_v45 = vmul.f32 %v11571_v17, %v3624_v29  ;;  %v3610_v27 = vmul.f32 %v11579_v18, %v3609_v9  ;;  %8764 = vrcp.f32 %v11565_v62  ;;  %v4446_v58 = vunpack.c.l.b16 %v4297_v49 }
 0x52f   : > { %v11681_v8 = vpop.eup %8762  ;;  %v3860_v50 = vsel %vm11621_vm13, %v3859_v52, %v3855_v41  ;;  %v3845_v5 = vsel %vm11653_vm7, %v3844_v24, %v3840_v37  ;;  %v3924_v19 = vsub.f32 1.0, %v3923_v22  ;;  %8766 = vrcp.f32 %v11669_v13 }
 0x530   : > { %3296 = vadd.xlane.f32.xlu2 %v11526_v55  ;;  %v3916_v29 = vand.u32 2147483647, %v11468_v34  ;;  %v3618_v9 = vand.u32 2147483648, %v11495_v26  ;;  %v2999_v35 = vsub.f32 %v11023_v12, %v11497_v25  ;;  %v4450_v55 = vpack.c.b16 %v4446_v58, %v11535_v28  ;;  %v11739_v58 = vpop.xlane.xlu1 %3245 }
 0x531   : > { %vm3628_vm10 = vweird.f32 %v11571_v17  ;;  %vm11694_vm11 = vcmp.eq.f32.partialorder %v3631_v14, 8.507059e+37  ;;  %v3909_v52 = vsub.f32 1.0, %v3908_v33  ;;  %vm3613_vm3 = vweird.f32 %v11579_v18 }
 0x532   : > { %v3698_v21 = vmul.f32 %v11681_v8, %v11577_v4  ;;  %v3626_v24 = vadd.f32 %v11571_v17, %v3625_v45  ;;  %v3611_v22 = vadd.f32 %v11579_v18, %v3610_v27  ;;  %7549 = vmatmul.msk.bf16.gmra.mxu3 %vm2745_vm2, %v4450_v55  ;;  %v3846_v12 = vmul.f32 %v10985_v2, %v3845_v5  ;;  %v11706_v28 = vpop.xlane.xlu0 %3239  ;;  %vm11724_vm9 = vmor %vm3627_vm8, %vm3628_vm10 }
 0x533   : > { %v3861_v25 = vmul.f32 %v10961_v60, %v3860_v50  ;;  %vm3912_vm5 = vweird.f32 %v11468_v34  ;;  %v11709_v41 = vor.u32 1.1754944e-38, %v3918_v39  ;;  %vm3612_vm12 = vweird.f32 %v11495_v26 }
 0x534   : > { %vm11712_vm6 = vcmp.eq.f32.partialorder %v3616_v56, 8.507059e+37  ;;  %v3925_v14 = vmul.f32 %v11618_v15, %v3924_v19  ;;  %v11718_v49 = vpop.eup %8764  ;;  %vm3913_vm13 = vweird.f32 %v11637_v46  ;;  %v3619_v2 = vor.u32 1.1754944e-38, %v3618_v9  ;;  %vm11735_vm14 = vmor %vm3612_vm12, %vm3613_vm3 }
 0x535   : > { %3257 = vadd.xlane.f32.xlu0 %v11507_v36  ;;  %v3124_v56 = vmul.f32 1.442695, %v2999_v35  ;;  %v3931_v26 = vand.u32 2147483647, %v11503_v0  ;;  %v11730_v39 = vpop.eup %8766  ;;  %v3910_v36 = vmul.f32 %v11637_v46, %v3909_v52  ;;  %v3699_v10 = vsub.f32 1.0, %v3698_v21  ;;  %vm11793_vm8 = vmor %vm3912_vm5, %vm3913_vm13 }
 0x536   : > { %v4316_v45 = vpack.c.bf16 %v3846_v12, %v3846_v12  ;;  %v4317_v27 = vpack.c.bf16 %v3861_v25, %v3861_v25  ;;  %v3630_v50 = vsel %vm11724_vm9, %v11571_v17, %v3626_v24  ;;  %v3615_v5 = vsel %vm11735_vm14, %v11579_v18, %v3611_v22 }
 0x537   : > { %vm3928_vm15 = vweird.f32 %v11618_v15  ;;  %v3933_v19 = vand.u32 2147483648, %v11503_v0  ;;  %v3926_v9 = vadd.f32 %v11618_v15, %v3925_v14  ;;  %v3653_v35 = vmul.f32 %v11718_v49, %v11565_v62 }
 0x538   : > { %3302 = vadd.xlane.f32.xlu2 %v11569_v16  ;;  %v4696_v55 = vunpack.c.l.b16 %v4316_v45  ;;  %v4697_v52 = vunpack.c.l.b16 %v4317_v27  ;;  %8768 = vpow2.f32 %v3124_v56  ;;  %vm3927_vm0 = vweird.f32 %v11503_v0 }
 0x539   : > { %v2997_v17 = vsub.f32 %v11039_v6, %v11558_v7  ;;  %v4058_v18 = vmul.f32 %v11730_v39, %v11669_v13  ;;  %v11759_v21 = vadd.f32 %v11637_v46, %v3910_v36  ;;  %v3620_v16 = vsel %vm11712_vm6, %v3619_v2, %v3615_v5  ;;  %vm11772_vm4 = vmor %vm3927_vm0, %vm3928_vm15 }
 0x53a   : > { %v3700_v24 = vmul.f32 %v11681_v8, %v3699_v10  ;;  %v4703_v22 = vpack.c.b16 %v4697_v52, %v4696_v55  ;;  %v11768_v0 = vsel %vm11694_vm11, %v11671_v32, %v3630_v50  ;;  %vm11776_vm7 = vcmp.eq.f32.partialorder %v3931_v26, 8.507059e+37  ;;  %v11806_v60 = vpop.xlane.xlu0 %3242  ;;  %v11827_v10 = vpop.xlane.xlu1 %3203 }
 0x53b   : > { %3272 = vadd.xlane.f32.xlu1 %v11548_v20  ;;  %v3934_v12 = vor.u32 1.1754944e-38, %v3933_v19  ;;  %v3661_v25 = vand.u32 2147483647, %v11565_v62  ;;  %v3930_v20 = vsel %vm11772_vm4, %v11618_v15, %v3926_v9  ;;  %v3654_v57 = vsub.f32 1.0, %v3653_v35 }
 0x53c   : > { %v2998_v32 = vsub.f32 %v11062_v38, %v11627_v42  ;;  %7559 = vmatmul.msk.bf16.gmra.mxu2 %vm2745_vm2, %v4703_v22  ;;  %8770 = vrcp.f32 %v11706_v28  ;;  %vm11799_vm10 = vcmp.eq.f32.partialorder %v3916_v29, 8.507059e+37  ;;  %v3120_v38 = vmul.f32 1.442695, %v2997_v17 }
 0x53d   : > { %3263 = vadd.xlane.f32.xlu0 %v11539_v48  ;;  %v3000_v42 = vsub.f32 %v11065_v59, %v11660_v43  ;;  %v4059_v14 = vsub.f32 1.0, %v4058_v18  ;;  %v3621_v48 = vmul.f32 %v11020_v11, %v3620_v16  ;;  %v3915_v2 = vsel %vm11793_vm8, %v11637_v46, %v11759_v21  ;;  %v11823_v46 = vpop.xlane.xlu2 %3209 }
 0x53e   : > { %vm3657_vm11 = vweird.f32 %v11565_v62  ;;  %v3663_v34 = vand.u32 2147483648, %v11565_v62  ;;  %v3701_v29 = vadd.f32 %v11681_v8, %v3700_v24  ;;  %vm3703_vm3 = vweird.f32 %v11681_v8  ;;  %v11816_v56 = vpop.eup %8768 }
 0x53f   : > { %v3935_v11 = vsel %vm11776_vm7, %v3934_v12, %v3930_v20  ;;  %vm3702_vm5 = vweird.f32 %v11577_v4  ;;  %v3706_v59 = vand.u32 2147483647, %v11577_v4  ;;  %v3708_v43 = vand.u32 2147483648, %v11577_v4 }
 0x540   : > { %v3655_v26 = vmul.f32 %v11718_v49, %v3654_v57  ;;  %v3122_v36 = vmul.f32 1.442695, %v2998_v32  ;;  %8772 = vrcp.f32 %v11739_v58  ;;  %v4301_v33 = vpack.c.bf16 %v3621_v48, %v3621_v48  ;;  %vm11830_vm6 = vmor %vm3702_vm5, %vm3703_vm3 }
 0x541   : > { %8774 = vpow2.f32 %v3120_v38  ;;  %vm3658_vm12 = vweird.f32 %v11718_v49  ;;  %v3126_v27 = vmul.f32 1.442695, %v3000_v42  ;;  %v4060_v4 = vmul.f32 %v11730_v39, %v4059_v14 }
 0x542   : > { %v11835_v50 = vpop.eup %8770  ;;  %v3936_v5 = vmul.f32 %v11025_v61, %v3935_v11  ;;  %v3705_v19 = vsel %vm11830_vm6, %v11681_v8, %v3701_v29  ;;  %8776 = vrcp.f32 %v11823_v46  ;;  %v4527_v9 = vunpack.c.l.b16 %v4301_v33  ;;  %vm11869_vm15 = vmor %vm3657_vm11, %vm3658_vm12  ;;  %v11907_v29 = vpop.xlane.xlu1 %3275 }
 0x543   : > { %vm3707_vm9 = vcmp.eq.f32.partialorder %v3706_v59, 8.507059e+37  ;;  %v3709_v35 = vor.u32 1.1754944e-38, %v3708_v43  ;;  %v4066_v55 = vand.u32 2147483647, %v11669_v13  ;;  %8778 = vrcp.f32 %v11827_v10 }
 0x544   : > { %v3656_v52 = vadd.f32 %v11718_v49, %v3655_v26  ;;  %8780 = vpow2.f32 %v3122_v36  ;;  %v4068_v17 = vand.u32 2147483648, %v11669_v13  ;;  %v4533_v61 = vpack.c.b16 %v4527_v9, %v11544_v54 }
 0x545   : > { %v3710_v18 = vsel %vm3707_vm9, %v3709_v35, %v3705_v19  ;;  %v4061_v21 = vadd.f32 %v11730_v39, %v4060_v4  ;;  %vm4063_vm13 = vweird.f32 %v11730_v39  ;;  %v3863_v8 = vmul.f32 %v11835_v50, %v11706_v28  ;;  %v11918_v26 = vpop.xlane.xlu2 %3281 }
 0x546   : > { %v11851_v16 = vpop.eup %8772  ;;  %v11856_v24 = vsel %vm11799_vm10, %v11709_v41, %v3915_v2  ;;  %v4322_v22 = vpack.c.bf16 %v3936_v5, %v3936_v5  ;;  %vm11858_vm14 = vcmp.eq.f32.partialorder %v3661_v25, 8.507059e+37  ;;  %8782 = vpow2.f32 %v3126_v27  ;;  %7551 = vmatmul.msk.bf16.gmra.mxu0 %vm2745_vm2, %v4533_v61  ;;  %v11876_v25 = vpop.xlane.xlu0 %3254 }
 0x547   : > { %v11863_v54 = vpop.eup %8774  ;;  %v3664_v41 = vor.u32 1.1754944e-38, %v3663_v34  ;;  %vm4062_vm0 = vweird.f32 %v11669_v13  ;;  %v3873_v12 = vand.u32 2147483648, %v11706_v28  ;;  %8784 = vrcp.f32 %v11806_v60 }
 0x548   : > { %v11878_v20 = vpop.eup %8776  ;;  %v3660_v57 = vsel %vm11869_vm15, %v11718_v49, %v3656_v52  ;;  %v3711_v62 = vmul.f32 %v11051_v53, %v3710_v18  ;;  %vm11886_vm4 = vmor %vm4062_vm0, %vm4063_vm13  ;;  %vm11890_vm7 = vcmp.eq.f32.partialorder %v4066_v55, 8.507059e+37  ;;  %v4069_v37 = vor.u32 1.1754944e-38, %v4068_v17 }
 0x549   : > { %v8779_v15 = vpop.eup %8778  ;;  %v4065_v38 = vsel %vm11886_vm4, %v11730_v39, %v4061_v21  ;;  %v3864_v42 = vsub.f32 1.0, %v3863_v8  ;;  %v3871_v49 = vand.u32 2147483647, %v11706_v28  ;;  %v3893_v53 = vmul.f32 %v11851_v16, %v11739_v58  ;;  %v14444_v21 = vld [vmem:[#allocation21_spill] sm:$0xff] }
 0x54a   : > { %v11900_v14 = vpop.eup %8780  ;;  %v11902_v48 = vunpack.c.l.b16 %v4322_v22  ;;  %v3903_v2 = vand.u32 2147483648, %v11739_v58  ;;  %v3683_v34 = vmul.f32 %v8779_v15, %v11827_v10  ;;  %8786 = vrcp.f32 %v11876_v25  ;;  %v14445_v22 = vld [vmem:[#allocation51_spill] sm:$0xff] }
 0x54b   : > { %v11911_v39 = vsel %vm11858_vm14, %v3664_v41, %v3660_v57  ;;  %v11913_v11 = vor.u32 1.1754944e-38, %v3873_v12  ;;  %v3901_v59 = vand.u32 2147483647, %v11739_v58  ;;  %v3713_v43 = vmul.f32 %v11878_v20, %v11823_v46 }
 0x54c   : > { %v11920_v36 = vpop.eup %8782  ;;  %v4307_v33 = vpack.c.bf16 %v3711_v62, %v3711_v62  ;;  %v4070_v45 = vsel %vm11890_vm7, %v4069_v37, %v4065_v38  ;;  %vm3867_vm8 = vweird.f32 %v11706_v28  ;;  %vm3868_vm10 = vweird.f32 %v11835_v50  ;;  %v14448_v38 = vld [vmem:[#allocation48_spill] sm:$0xff] }
 0x54d   : > { %v3684_v27 = vsub.f32 1.0, %v3683_v34  ;;  %v11926_v4 = vpop.eup %8784  ;;  %v3865_v5 = vmul.f32 %v11835_v50, %v3864_v42  ;;  %v3894_v19 = vsub.f32 1.0, %v3893_v53  ;;  %v3693_v9 = vand.u32 2147483648, %v11827_v10  ;;  %v14449_v42 = vld [vmem:[#allocation45_spill] sm:$0xff]  ;;  %vm11976_vm4 = vmor %vm3867_vm8, %vm3868_vm10 }
 0x54e   : > { %8788 = vrcp.f32 %v11907_v29  ;;  %v11931_v35 = vor.u32 1.1754944e-38, %v3903_v2  ;;  %vm3688_vm11 = vweird.f32 %v8779_v15  ;;  %v3691_v52 = vand.u32 2147483647, %v11827_v10 }
 0x54f   : > { %v3685_v55 = vmul.f32 %v8779_v15, %v3684_v27  ;;  %vm3898_vm3 = vweird.f32 %v11851_v16  ;;  %v3714_v17 = vsub.f32 1.0, %v3713_v43  ;;  %v3721_v61 = vand.u32 2147483647, %v11823_v46 }
 0x550   : > { %v3723_v18 = vand.u32 2147483648, %v11823_v46  ;;  %8417 = vrot.lane.b32.xlu2 %v14444_v21, %s9223_s26  ;;  %v11939_v8 = vpop.eup %8786  ;;  %v4071_v6 = vmul.f32 %v14445_v22, %v4070_v45  ;;  %vm3897_vm5 = vweird.f32 %v11739_v58  ;;  %v3878_v7 = vmul.f32 %v11926_v4, %v11806_v60  ;;  %v14452_v45 = vld [vmem:[#allocation19_spill] sm:$0xff] }
 0x551   : > { %v3686_v41 = vadd.f32 %v8779_v15, %v3685_v55  ;;  %vm3687_vm12 = vweird.f32 %v11827_v10  ;;  %v11946_v12 = vunpack.c.l.b16 %v4307_v33  ;;  %v3866_v57 = vadd.f32 %v11835_v50, %v3865_v5  ;;  %vm12007_vm8 = vmor %vm3897_vm5, %vm3898_vm3 }
 0x552   : > { %v3895_v62 = vmul.f32 %v11851_v16, %v3894_v19  ;;  %vm3717_vm6 = vweird.f32 %v11823_v46  ;;  %vm3689_vm9 = vmor %vm3687_vm12, %vm3688_vm11  ;;  %v3694_v32 = vor.u32 1.1754944e-38, %v3693_v9  ;;  %vm11952_vm13 = vcmp.eq.f32.partialorder %v3871_v49, 8.507059e+37  ;;  %v11986_v9 = vpop.xlane.xlu2 %3284 }
 0x553   : > { %v3690_v37 = vsel %vm3689_vm9, %v8779_v15, %v3686_v41  ;;  %vm3692_vm14 = vcmp.eq.f32.partialorder %v3691_v52, 8.507059e+37  ;;  %v3636_v10 = vmul.f32 %v14448_v38, %v11768_v0  ;;  %v3651_v53 = vmul.f32 %v14449_v42, %v11550_v63 }
 0x554   : > { %v11960_v2 = vpop.eup %8788  ;;  %v3715_v34 = vmul.f32 %v11878_v20, %v3714_v17  ;;  %v3695_v43 = vsel %vm3692_vm14, %v3694_v32, %v3690_v37  ;;  %8790 = vrcp.f32 %v11918_v26  ;;  %v3938_v49 = vmul.f32 %v11939_v8, %v11876_v25  ;;  %v11988_v17 = vpop.xlane.xlu0 %3212 }
 0x555   : > { %v4331_v33 = vpack.c.bf16 %v4071_v6, %v4071_v6  ;;  %vm11966_vm15 = vcmp.eq.f32.partialorder %v3901_v59, 8.507059e+37  ;;  %vm3718_vm0 = vweird.f32 %v11878_v20  ;;  %v3879_v0 = vsub.f32 1.0, %v3878_v7 }
 0x556   : > { %v3696_v63 = vmul.f32 %v14452_v45, %v3695_v43  ;;  %vm11980_vm7 = vcmp.eq.f32.partialorder %v3721_v61, 8.507059e+37  ;;  %v3886_v59 = vand.u32 2147483647, %v11806_v60  ;;  %v3888_v19 = vand.u32 2147483648, %v11806_v60  ;;  %vm12026_vm11 = vmor %vm3717_vm6, %vm3718_vm0 }
 0x557   : > { %v4302_v55 = vpack.c.bf16 %v3636_v10, %v3636_v10  ;;  %v4303_v52 = vpack.c.bf16 %v3651_v53, %v3651_v53  ;;  %v3870_v28 = vsel %vm11976_vm4, %v11835_v50, %v3866_v57  ;;  %v3896_v21 = vadd.f32 %v11851_v16, %v3895_v62  ;;  %v12013_v53 = vpop.xlane.xlu1 %3215 }
 0x558   : > { %v4306_v61 = vpack.c.bf16 %v3696_v63, %v3696_v63  ;;  %v4043_v22 = vmul.f32 %v11960_v2, %v11907_v29  ;;  %v3716_v6 = vadd.f32 %v11878_v20, %v3715_v34  ;;  %v3939_v7 = vsub.f32 1.0, %v3938_v49  ;;  %v12015_v34 = vpop.f32.mrf.mxu2 }
 0x559   : > { %v4528_v41 = vunpack.c.l.b16 %v4302_v55  ;;  %v4529_v32 = vunpack.c.l.b16 %v4303_v52  ;;  %v3880_v37 = vmul.f32 %v11926_v4, %v3879_v0  ;;  %8792 = vrcp.f32 %v11986_v9 }
 0x55a   : > { %v4609_v38 = vunpack.c.l.b16 %v4306_v61  ;;  %v3307_v10 = vsel %vm2745_vm2, %v11863_v54, 0.0  ;;  %v12001_v50 = vpop.eup %8790  ;;  %v3724_v62 = vor.u32 1.1754944e-38, %v3723_v18  ;;  %vm3882_vm10 = vweird.f32 %v11806_v60 }
 0x55b   : > { %v4534_v42 = vpack.c.b16 %v4529_v32, %v4528_v41  ;;  %3308 = vadd.xlane.f32.xlu0 %v3307_v10  ;;  %8794 = vrcp.f32 %v11988_v17  ;;  %v12017_v43 = vunpack.c.l.b16 %v4331_v33  ;;  %v3900_v58 = vsel %vm12007_vm8, %v11851_v16, %v3896_v21  ;;  %v14471_v16 = vld [vmem:[#allocation50_spill] sm:$0xff] }
 0x55c   : > { %v4617_v49 = vpack.c.b16 %v11946_v12, %v4609_v38  ;;  %v4044_v0 = vsub.f32 1.0, %v4043_v22  ;;  %v3875_v33 = vsel %vm11952_vm13, %v11913_v11, %v3870_v28  ;;  %v3720_v45 = vsel %vm12026_vm11, %v11878_v20, %v3716_v6  ;;  %v12077_v22 = vpop.xlane.xlu0 %3218 }
 0x55d   : > { %vm12037_vm3 = vcmp.eq.f32.partialorder %v3886_v59, 8.507059e+37  ;;  %v3940_v46 = vmul.f32 %v11939_v8, %v3939_v7  ;;  %7552 = vmatmul.msk.bf16.gmra.mxu0 %vm2745_vm2, %v4534_v42  ;;  %v3881_v63 = vadd.f32 %v11926_v4, %v3880_v37  ;;  %vm3883_vm5 = vweird.f32 %v11926_v4 }
 0x55e   : > { %v3889_v12 = vor.u32 1.1754944e-38, %v3888_v19  ;;  %v4073_v11 = vmul.f32 %v12001_v50, %v11918_v26  ;;  %7554 = vmatmul.msk.bf16.vlgmr.msrb.gmra.mxu1 %vm2745_vm2, %v4617_v49  ;;  %v12051_v20 = vsel %vm11966_vm15, %v11931_v35, %v3900_v58  ;;  %v4081_v13 = vand.u32 2147483647, %v11918_v26  ;;  %vm12069_vm6 = vmor %vm3882_vm10, %vm3883_vm5 }
 0x55f   : > { %v4083_v27 = vand.u32 2147483648, %v11918_v26  ;;  %vm3942_vm12 = vweird.f32 %v11876_v25  ;;  %v12056_v59 = vpop.eup %8792  ;;  %v12060_v19 = vsel %vm11980_vm7, %v3724_v62, %v3720_v45  ;;  %v3946_v55 = vand.u32 2147483647, %v11876_v25 }
 0x560   : > { %v3948_v52 = vand.u32 2147483648, %v11876_v25  ;;  %v4045_v15 = vmul.f32 %v11960_v2, %v4044_v0  ;;  %v3941_v21 = vadd.f32 %v11939_v8, %v3940_v46  ;;  %vm3943_vm9 = vweird.f32 %v11939_v8  ;;  %v12107_v25 = vpop.xlane.xlu1 %3287  ;;  %v12109_v42 = vpop.f32.mrf.mxu2 }
 0x561   : > { %v12065_v35 = vpop.eup %8794  ;;  %v4051_v5 = vand.u32 2147483647, %v11907_v29  ;;  %v4053_v61 = vand.u32 2147483648, %v11907_v29  ;;  %v3885_v6 = vsel %vm12069_vm6, %v11926_v4, %v3881_v63  ;;  %v4074_v7 = vsub.f32 1.0, %v4073_v11  ;;  %vm12095_vm15 = vmor %vm3942_vm12, %vm3943_vm9  ;;  %v14472_v63 = vld [vmem:[#allocation47_spill] sm:$0xff] }
 0x562   : > { %v3728_v60 = vmul.f32 %v12065_v35, %v11988_v17  ;;  %v3265_v41 = vsel %vm2745_vm2, %v11554_v30, 0.0  ;;  %v12086_v32 = vor.u32 1.1754944e-38, %v4083_v27  ;;  %vm4047_vm13 = vweird.f32 %v11907_v29  ;;  %v14473_v11 = vld [vmem:[#allocation31_spill] sm:$0xff] }
 0x563   : > { %v4088_v37 = vmul.f32 %v12056_v59, %v11986_v9  ;;  %8796 = vrcp.f32 %v12013_v53  ;;  %3266 = vadd.xlane.f32.xlu0 %v3265_v41  ;;  %vm4078_vm14 = vweird.f32 %v12001_v50  ;;  %v4046_v38 = vadd.f32 %v11960_v2, %v4045_v15  ;;  %v14474_v15 = vld [vmem:[#allocation23_spill] sm:$0xff]  ;;  %v14477_v41 = vld [vmem:[#allocation26_spill] sm:$0xff] }
 0x564   : > { %vm4048_vm0 = vweird.f32 %v11960_v2  ;;  %8798 = vrcp.f32 %v12077_v22  ;;  %v3890_v10 = vsel %vm12037_vm3, %v3889_v12, %v3885_v6  ;;  %v3945_v57 = vsel %vm12095_vm15, %v11939_v8, %v3941_v21 }
 0x565   : > { %vm3947_vm4 = vcmp.eq.f32.partialorder %v3946_v55, 8.507059e+37  ;;  %v3729_v62 = vsub.f32 1.0, %v3728_v60  ;;  %v4075_v58 = vmul.f32 %v12001_v50, %v4074_v7  ;;  %vm4077_vm7 = vweird.f32 %v11918_v26  ;;  %vm12119_vm10 = vmor %vm4047_vm13, %vm4048_vm0  ;;  %v12128_v55 = vpop.xlane.xlu2 %3290 }
 0x566   : > { %v3949_v18 = vor.u32 1.1754944e-38, %v3948_v52  ;;  %vm12113_vm8 = vcmp.eq.f32.partialorder %v4051_v5, 8.507059e+37  ;;  %v4054_v0 = vor.u32 1.1754944e-38, %v4053_v61  ;;  %v4089_v45 = vsub.f32 1.0, %v4088_v37  ;;  %vm12174_vm6 = vmor %vm4077_vm7, %vm4078_vm14 }
 0x567   : > { %v3666_v46 = vmul.f32 %v14471_v16, %v11911_v39  ;;  %v3681_v12 = vmul.f32 %v14472_v63, %v11633_v51  ;;  %v3876_v27 = vmul.f32 %v14473_v11, %v3875_v33  ;;  %v4050_v29 = vsel %vm12119_vm10, %v11960_v2, %v4046_v38 }
 0x568   : > { %v3950_v52 = vsel %vm3947_vm4, %v3949_v18, %v3945_v57  ;;  %8800 = vrcp.f32 %v12107_v25  ;;  %v3891_v28 = vmul.f32 %v14474_v15, %v3890_v10  ;;  %v4096_v39 = vand.u32 2147483647, %v11986_v9  ;;  %v12167_v16 = vpop.f32.mrf.mxu2 }
 0x569   : > { %v12135_v21 = vpop.eup %8796  ;;  %v3730_v5 = vmul.f32 %v12065_v35, %v3729_v62  ;;  %v4304_v51 = vpack.c.bf16 %v3666_v46, %v3666_v46  ;;  %v4305_v61 = vpack.c.bf16 %v3681_v12, %v3681_v12  ;;  %v4076_v6 = vadd.f32 %v12001_v50, %v4075_v58  ;;  %v14480_v46 = vld [vmem:[#allocation20_spill] sm:$0xff] }
 0x56a   : > { %v12139_v33 = vpop.eup %8798  ;;  %vm12142_vm11 = vcmp.eq.f32.partialorder %v4081_v13, 8.507059e+37  ;;  %vm4092_vm3 = vweird.f32 %v11986_v9  ;;  %v4098_v2 = vand.u32 2147483648, %v11986_v9  ;;  %v4318_v60 = vpack.c.bf16 %v3876_v27, %v3876_v27 }
 0x56b   : > { %v3951_v37 = vmul.f32 %v14477_v41, %v3950_v52  ;;  %v4055_v4 = vsel %vm12113_vm8, %v4054_v0, %v4050_v29  ;;  %v4090_v38 = vmul.f32 %v12056_v59, %v4089_v45  ;;  %v4530_v10 = vunpack.c.l.b16 %v4304_v51 }
 0x56c   : > { %vm3733_vm5 = vweird.f32 %v12065_v35  ;;  %v3738_v13 = vand.u32 2147483648, %v11988_v17  ;;  %v4531_v57 = vunpack.c.l.b16 %v4305_v61  ;;  %v4319_v62 = vpack.c.bf16 %v3891_v28, %v3891_v28 }
 0x56d   : > { %vm12154_vm12 = vcmp.eq.f32.partialorder %v4096_v39, 8.507059e+37  ;;  %v3731_v18 = vadd.f32 %v12065_v35, %v3730_v5  ;;  %v3743_v8 = vmul.f32 %v12135_v21, %v12013_v53  ;;  %v3758_v49 = vmul.f32 %v12139_v33, %v12077_v22 }
 0x56e   : > { %v3313_v0 = vsel %vm2745_vm2, %v11816_v56, 0.0  ;;  %v12165_v45 = vpop.eup %8800  ;;  %v4056_v63 = vmul.f32 %v14480_v46, %v4055_v4  ;;  %v4535_v12 = vpack.c.b16 %v4531_v57, %v4530_v10  ;;  %v4698_v11 = vunpack.c.l.b16 %v4318_v60 }
 0x56f   : > { %v4699_v27 = vunpack.c.l.b16 %v4319_v62  ;;  %3314 = vadd.xlane.f32.xlu0 %v3313_v0  ;;  %v4091_v29 = vadd.f32 %v12056_v59, %v4090_v38  ;;  %vm4093_vm9 = vweird.f32 %v12056_v59  ;;  %vm3732_vm13 = vweird.f32 %v11988_v17  ;;  %v14487_v0 = vld [vmem:[#allocation25_spill] sm:$0xff] }
 0x570   : > { %v3736_v15 = vand.u32 2147483647, %v11988_v17  ;;  %v4080_v28 = vsel %vm12174_vm6, %v12001_v50, %v4076_v6  ;;  %v4323_v39 = vpack.c.bf16 %v3951_v37, %v3951_v37  ;;  %vm12187_vm15 = vmor %vm3732_vm13, %vm3733_vm5  ;;  %7553 = vmatmul.msk.bf16.gmra.mxu0 %vm2745_vm2, %v4535_v12  ;;  %8802 = vrcp.f32 %v12128_v55  ;;  %v12198_v6 = vpop.xlane.xlu2 %3221  ;;  %v12244_v52 = vpop.f32.mrf.mxu2 }
 0x571   : > { %v4704_v5 = vpack.c.b16 %v4699_v27, %v4698_v11  ;;  %v3735_v17 = vsel %vm12187_vm15, %v12065_v35, %v3731_v18  ;;  %v3744_v51 = vsub.f32 1.0, %v3743_v8  ;;  %v3759_v61 = vsub.f32 1.0, %v3758_v49  ;;  %vm12204_vm14 = vmor %vm4092_vm3, %vm4093_vm9  ;;  %v14490_v27 = vld [vmem:[#allocation24_spill] sm:$0xff] }
 0x572   : > { %v4103_v50 = vmul.f32 %v12165_v45, %v12107_v25  ;;  %v4330_v60 = vpack.c.bf16 %v4056_v63, %v4056_v63  ;;  %v4099_v37 = vor.u32 1.1754944e-38, %v4098_v2  ;;  %v3739_v4 = vor.u32 1.1754944e-38, %v3738_v13 }
 0x573   : > { %v3753_v35 = vand.u32 2147483648, %v12013_v53  ;;  %7560 = vmatmul.msk.bf16.gmra.mxu2 %vm2745_vm2, %v4704_v5  ;;  %v12213_v38 = vsel %vm12142_vm11, %v12086_v32, %v4080_v28  ;;  %v4095_v10 = vsel %vm12204_vm14, %v12056_v59, %v4091_v29  ;;  %vm3737_vm0 = vcmp.eq.f32.partialorder %v3736_v15, 8.507059e+37  ;;  %v14491_v29 = vld [vmem:[#allocation28_spill] sm:$0xff] }
 0x574   : > { %v3751_v9 = vand.u32 2147483647, %v12013_v53  ;;  %v12219_v57 = vunpack.c.l.b16 %v4323_v39  ;;  %v3740_v2 = vsel %vm3737_vm0, %v3739_v4, %v3735_v17  ;;  %vm3747_vm4 = vweird.f32 %v12013_v53 }
 0x575   : > { %8804 = vrcp.f32 %v12198_v6  ;;  %v3745_v13 = vmul.f32 %v12135_v21, %v3744_v51  ;;  %v3760_v7 = vmul.f32 %v12139_v33, %v3759_v61  ;;  %v4104_v32 = vsub.f32 1.0, %v4103_v50  ;;  %v14492_v50 = vld [vmem:[#allocation49_spill] sm:$0xff] }
 0x576   : > { %v3316_v62 = vsel %vm2745_vm2, %v11920_v36, 0.0  ;;  %v12227_v18 = vpop.eup %8802  ;;  %v4864_v59 = vunpack.c.l.b16 %v4330_v60  ;;  %v12231_v8 = vsel %vm12154_vm12, %v4099_v37, %v4095_v10  ;;  %v3754_v49 = vor.u32 1.1754944e-38, %v3753_v35  ;;  %v12269_v10 = vpop.xlane.xlu0 %3224 }
 0x577   : > { %3317 = vadd.xlane.f32.xlu0 %v3316_v62  ;;  %v3726_v46 = vmul.f32 %v14487_v0, %v12060_v19  ;;  %vm12235_vm7 = vcmp.eq.f32.partialorder %v3751_v9, 8.507059e+37  ;;  %vm3762_vm8 = vweird.f32 %v12077_v22  ;;  %v3766_v12 = vand.u32 2147483647, %v12077_v22 }
 0x578   : > { %v4118_v11 = vmul.f32 %v12227_v18, %v12128_v55  ;;  %v3741_v58 = vmul.f32 %v14490_v27, %v3740_v2  ;;  %vm3748_vm10 = vweird.f32 %v12135_v21  ;;  %vm3763_vm11 = vweird.f32 %v12139_v33 }
 0x579   : > { %v4308_v19 = vpack.c.bf16 %v3726_v46, %v3726_v46  ;;  %v3906_v15 = vmul.f32 %v14491_v29, %v12051_v20  ;;  %v3746_v28 = vadd.f32 %v12135_v21, %v3745_v13  ;;  %v3761_v39 = vadd.f32 %v12139_v33, %v3760_v7  ;;  %vm12261_vm3 = vmor %vm3747_vm4, %vm3748_vm10 }
 0x57a   : > { %v4105_v26 = vmul.f32 %v12165_v45, %v4104_v32  ;;  %v4119_v5 = vsub.f32 1.0, %v4118_v11  ;;  %v3768_v51 = vand.u32 2147483648, %v12077_v22  ;;  %v4309_v61 = vpack.c.bf16 %v3741_v58, %v3741_v58  ;;  %vm12275_vm12 = vmor %vm3762_vm8, %vm3763_vm11 }
 0x57b   : > { %v12253_v17 = vpop.eup %8804  ;;  %v3921_v60 = vmul.f32 %v14492_v50, %v11856_v24  ;;  %v4320_v41 = vpack.c.bf16 %v3906_v15, %v3906_v15  ;;  %v4872_v37 = vpack.c.b16 %v12017_v43, %v4864_v59  ;;  %vm4108_vm5 = vweird.f32 %v12165_v45 }
 0x57c   : > { %v4113_v4 = vand.u32 2147483648, %v12107_v25  ;;  %v3773_v35 = vmul.f32 %v12253_v17, %v12198_v6  ;;  %v4611_v53 = vunpack.c.l.b16 %v4308_v19  ;;  %v4612_v43 = vunpack.c.l.b16 %v4309_v61  ;;  %v8413_v19 = vpop.permute.xlu2 %8412 }
 0x57d   : > { %v4321_v9 = vpack.c.bf16 %v3921_v60, %v3921_v60  ;;  %v4700_v2 = vunpack.c.l.b16 %v4320_v41  ;;  %v3750_v13 = vsel %vm12261_vm3, %v12135_v21, %v3746_v28  ;;  %v3765_v7 = vsel %vm12275_vm12, %v12139_v33, %v3761_v39  ;;  %v12323_v60 = vpop.xlane.xlu1 %3293 }
 0x57e   : > { %v12286_v32 = vadd.f32 %v12165_v45, %v4105_v26  ;;  %v4120_v22 = vmul.f32 %v12227_v18, %v4119_v5  ;;  %v3774_v62 = vsub.f32 1.0, %v3773_v35  ;;  %v4618_v59 = vpack.c.b16 %v4612_v43, %v4611_v53 }
 0x57f   : > { %v4701_v0 = vunpack.c.l.b16 %v4321_v9  ;;  %8806 = vrcp.f32 %v12269_v10  ;;  %v4787_v46 = vpack.c.b16 %v12219_v57, %v11902_v48  ;;  %vm3767_vm6 = vcmp.eq.f32.partialorder %v3766_v12, 8.507059e+37 }
 0x580   : > { %v3769_v11 = vor.u32 1.1754944e-38, %v3768_v51  ;;  %vm4107_vm9 = vweird.f32 %v12107_v25  ;;  %v3755_v21 = vsel %vm12235_vm7, %v3754_v49, %v3750_v13  ;;  %v4111_v33 = vand.u32 2147483647, %v12107_v25  ;;  %7555 = vmatmul.msk.bf16.gmra.mxu1 %vm2745_vm2, %v4618_v59  ;;  %7566 = vmatmul.msk.bf16.vlgmr.msra.gmra.mxu0 %vm2745_vm2, %v4872_v37  ;;  %v12311_v49 = vpop.f32.mrf.mxu2  ;;  %v14501_v37 = vld [vmem:[#allocation36_spill] sm:$0xff] }
 0x581   : > { %v12296_v27 = vor.u32 1.1754944e-38, %v4113_v4  ;;  %v4705_v58 = vpack.c.b16 %v4701_v0, %v4700_v2  ;;  %vm12302_vm13 = vmor %vm4107_vm9, %vm4108_vm5  ;;  %v12307_v63 = vadd.f32 %v12227_v18, %v4120_v22  ;;  %vm4122_vm15 = vweird.f32 %v12128_v55  ;;  %v14502_v4 = vld [vmem:[#allocation29_spill] sm:$0xff] }
 0x582   : > { %v3770_v29 = vsel %vm3767_vm6, %v3769_v11, %v3765_v7  ;;  %vm4123_vm14 = vweird.f32 %v12227_v18  ;;  %v4110_v15 = vsel %vm12302_vm13, %v12165_v45, %v12286_v32  ;;  %v4126_v28 = vand.u32 2147483647, %v12128_v55 }
 0x583   : > { %v4128_v39 = vand.u32 2147483648, %v12128_v55  ;;  %v3775_v26 = vmul.f32 %v12253_v17, %v3774_v62  ;;  %7561 = vmatmul.msk.bf16.gmra.mxu2 %vm2745_vm2, %v4705_v58  ;;  %vm3777_vm0 = vweird.f32 %v12198_v6  ;;  %v3781_v5 = vand.u32 2147483647, %v12198_v6  ;;  %vm12325_vm4 = vmor %vm4122_vm15, %vm4123_vm14  ;;  %v14505_v62 = vld [vmem:[#allocation27_spill] sm:$0xff] }
 0x584   : > { %v8415_v51 = vunpack.i.h.bf16 %v8413_v19  ;;  %v8414_v61 = vunpack.i.l.bf16 %v8413_v19  ;;  %vm3778_vm7 = vweird.f32 %v12253_v17  ;;  %v3783_v55 = vand.u32 2147483648, %v12198_v6  ;;  %v8408_v19 = vpop.permute.xlu0 %8407 }
 0x585   : > { %v8807_v50 = vpop.eup %8806  ;;  %v3756_v20 = vmul.f32 %v14501_v37, %v3755_v21  ;;  %v3771_v35 = vmul.f32 %v14502_v4, %v3770_v29  ;;  %v4125_v24 = vsel %vm12325_vm4, %v12227_v18, %v12307_v63  ;;  %v3798_v43 = vand.u32 2147483648, %v12269_v10  ;;  %v14506_v18 = vld [vmem:[#allocation35_spill] sm:$0xff]  ;;  %vm12356_vm3 = vmor %vm3777_vm0, %vm3778_vm7 }
 0x586   : > { %v3788_v53 = vmul.f32 %v8807_v50, %v12269_v10  ;;  %v1913_v9 = vpack.c.bf16 %v8415_v51, %v8415_v51  ;;  %vm12339_vm8 = vcmp.eq.f32.partialorder %v4126_v28, 8.507059e+37  ;;  %v3776_v13 = vadd.f32 %v12253_v17, %v3775_v26 }
 0x587   : > { %v1912_v7 = vpack.c.bf16 %v8414_v61, %v8414_v61  ;;  %v4311_v22 = vpack.c.bf16 %v3771_v35, %v3771_v35  ;;  %v4086_v59 = vmul.f32 %v14505_v62, %v12213_v38  ;;  %v4101_v21 = vmul.f32 %v14506_v18, %v12231_v8 }
 0x588   : > { %v3789_v0 = vsub.f32 1.0, %v3788_v53  ;;  %v4800_v11 = vunpack.c.l.b16 %v1913_v9  ;;  %v3304_v58 = vsel %vm2745_vm2, %v11629_v31, 0.0  ;;  %vm3792_vm10 = vweird.f32 %v12269_v10 }
 0x589   : > { %v3796_v29 = vand.u32 2147483647, %v12269_v10  ;;  %v4799_v63 = vunpack.c.l.b16 %v1912_v7  ;;  %v4310_v28 = vpack.c.bf16 %v3756_v20, %v3756_v20  ;;  %3305 = vadd.xlane.f32.xlu2 %v3304_v58  ;;  %vm3793_vm11 = vweird.f32 %v8807_v50  ;;  %v12363_v7 = vpop.f32.mrf.mxu2 }
 0x58a   : > { %v3790_v26 = vmul.f32 %v8807_v50, %v3789_v0  ;;  %v4332_v51 = vpack.c.bf16 %v4086_v59, %v4086_v59  ;;  %v4333_v38 = vpack.c.bf16 %v4101_v21, %v4101_v21  ;;  %v4614_v41 = vunpack.c.l.b16 %v4311_v22  ;;  %vm3794_vm5 = vmor %vm3792_vm10, %vm3793_vm11  ;;  %v12367_v21 = vpop.xlane.xlu1 %3260 }
 0x58b   : > { %v4807_v61 = vpack.c.b16 %v4800_v11, %v4799_v63  ;;  %v8410_v37 = vunpack.i.h.bf16 %v8408_v19  ;;  %v8409_v4 = vunpack.i.l.bf16 %v8408_v19  ;;  %v3780_v20 = vsel %vm12356_vm3, %v12253_v17, %v3776_v13 }
 0x58c   : > { %v3791_v35 = vadd.f32 %v8807_v50, %v3790_v26  ;;  %v3799_v53 = vor.u32 1.1754944e-38, %v3798_v43  ;;  %v4867_v9 = vunpack.c.l.b16 %v4333_v38  ;;  %v4613_v6 = vunpack.c.l.b16 %v4310_v28  ;;  %v14513_v28 = vld [vmem:[#allocation41_spill] sm:$0xff] }
 0x58d   : > { %4834 = vmatpush.bf16.msrb.mxu3 %v4807_v61  ;;  %v4866_v62 = vunpack.c.l.b16 %v4332_v51  ;;  %v1933_v59 = vpack.c.bf16 %v8410_v37, %v8410_v37  ;;  %v1932_v0 = vpack.c.bf16 %v8409_v4, %v8409_v4  ;;  %v4129_v22 = vor.u32 1.1754944e-38, %v4128_v39 }
 0x58e   : > { %v3784_v11 = vor.u32 1.1754944e-38, %v3783_v55  ;;  %v3795_v18 = vsel %vm3794_vm5, %v8807_v50, %v3791_v35  ;;  %vm3797_vm12 = vcmp.eq.f32.partialorder %v3796_v29, 8.507059e+37  ;;  %vm3782_vm6 = vcmp.eq.f32.partialorder %v3781_v5, 8.507059e+37  ;;  %v14509_v50 = vld [vmem:[#allocation32_spill] sm:$0xff] }
 0x58f   : > { %v3800_v17 = vsel %vm3797_vm12, %v3799_v53, %v3795_v18  ;;  %v4619_v43 = vpack.c.b16 %v4614_v41, %v4613_v6  ;;  %v4873_v13 = vpack.c.b16 %v4867_v9, %v4866_v62  ;;  %v4130_v58 = vsel %vm12339_vm8, %v4129_v22, %v4125_v24  ;;  %v14512_v24 = vld [vmem:[#allocation39_spill] sm:$0xff] }
 0x590   : > { %v3785_v10 = vsel %vm3782_vm6, %v3784_v11, %v3780_v20  ;;  %7562 = vmatmul.msk.bf16.vlgmr.msrb.gmra.mxu3 %vm2745_vm2, %v4787_v46  ;;  %v4974_v19 = vunpack.c.l.b16 %v1933_v59  ;;  %v4973_v39 = vunpack.c.l.b16 %v1932_v0  ;;  %vm4112_vm9 = vcmp.eq.f32.partialorder %v4111_v33, 8.507059e+37  ;;  %v14511_v46 = vld [vmem:[#allocation33_spill] sm:$0xff] }
 0x591   : > { %7556 = vmatmul.msk.bf16.gmra.mxu1 %vm2745_vm2, %v4619_v43  ;;  %7567 = vmatmul.msk.bf16.gmra.mxu0 %vm2745_vm2, %v4873_v13  ;;  %v3310_v5 = vsel %vm2745_vm2, %v11900_v14, 0.0  ;;  %v3801_v55 = vmul.f32 %v14509_v50, %v3800_v17  ;;  %v4115_v48 = vsel %vm4112_vm9, %v12296_v27, %v4110_v15  ;;  %v14510_v25 = vsub.f32 %v10970_v3, %v11413_v47  ;;  %v12394_v12 = vpop.f32.mrf.mxu2 }
 0x592   : > { %3311 = vadd.xlane.f32.xlu2 %v3310_v5  ;;  %v3786_v33 = vmul.f32 %v14511_v46, %v3785_v10  ;;  %v4131_v2 = vmul.f32 %v14512_v24, %v4130_v58  ;;  %v4979_v29 = vpack.c.b16 %v4974_v19, %v4973_v39  ;;  %v4116_v26 = vmul.f32 %v14513_v28, %v4115_v48  ;;  %v12397_v27 = vpop.xlane.xlu1 %3299 }
 0x593   : > { %v3128_v57 = vmul.f32 1.442695, %v14510_v25  ;;  %v4313_v63 = vpack.c.bf16 %v3801_v55, %v3801_v55  ;;  %v3268_v15 = vsel %vm2745_vm2, %v11560_v1, 0.0  ;;  %v4143_v48 = vand.u32 2147483648, %v12323_v60 }
 0x594   : > { %5002 = vmatpush.bf16.msra.mxu1 %v4979_v29  ;;  %v4312_v45 = vpack.c.bf16 %v3786_v33, %v3786_v33  ;;  %v4335_v32 = vpack.c.bf16 %v4131_v2, %v4131_v2  ;;  %v4334_v47 = vpack.c.bf16 %v4116_v26, %v4116_v26  ;;  %vm4137_vm15 = vweird.f32 %v12323_v60 }
 0x595   : > { %8808 = vpow2.f32 %v3128_v57  ;;  %v4616_v3 = vunpack.c.l.b16 %v4313_v63  ;;  %v4141_v25 = vand.u32 2147483647, %v12323_v60  ;;  %v4173_v63 = vand.u32 2147483648, %v12397_v27 }
 0x596   : > { %8810 = vrcp.f32 %v12323_v60  ;;  %v4615_v51 = vunpack.c.l.b16 %v4312_v45  ;;  %v4869_v38 = vunpack.c.l.b16 %v4335_v32  ;;  %v4868_v37 = vunpack.c.l.b16 %v4334_v47 }
 0x597   : > { %8812 = vrcp.f32 %v12397_v27  ;;  %v4144_v28 = vor.u32 1.1754944e-38, %v4143_v48  ;;  %vm4142_vm4 = vcmp.eq.f32.partialorder %v4141_v25, 8.507059e+37  ;;  %v3976_v45 = vand.u32 2147483647, %v12367_v21 }
 0x598   : > { %v4620_v41 = vpack.c.b16 %v4616_v3, %v4615_v51  ;;  %v4874_v20 = vpack.c.b16 %v4869_v38, %v4868_v37  ;;  %8814 = vrcp.f32 %v12367_v21  ;;  %vm4167_vm7 = vweird.f32 %v12397_v27 }
 0x599   : > { %v4581_v8 = vpop.f32.mrf.mxu0  ;;  %v12404_v35 = vpop.f32.mrf.mxu2  ;;  %v3978_v38 = vand.u32 2147483648, %v12367_v21  ;;  %vm3972_vm5 = vweird.f32 %v12367_v21 }
 0x59a   : > { %3269 = vadd.xlane.f32.xlu2 %v3268_v15  ;;  %v8423_v26 = vpop.permute.xlu1 %8422 }
 0x59b   : > { %v12402_v61 = vpop.eup %8808  ;;  %v8424_v25 = vunpack.i.l.bf16 %v8423_v26 }
 0x59c   : > { %v8811_v4 = vpop.eup %8810  ;;  %v3319_v9 = vsel %vm2745_vm2, %v12402_v61, 0.0 }
 0x59d   : > { %v4133_v53 = vmul.f32 %v8811_v4, %v12323_v60  ;;  %v12411_v6 = vpop.eup %8812  ;;  %vm4138_vm13 = vweird.f32 %v8811_v4 }
 0x59e   : > { %v4163_v22 = vmul.f32 %v12411_v6, %v12397_v27  ;;  %v12420_v18 = vpop.eup %8814  ;;  %vm12440_vm14 = vmor %vm4137_vm15, %vm4138_vm13  ;;  %vm4168_vm0 = vweird.f32 %v12411_v6 }
 0x59f   : > { %v4134_v0 = vsub.f32 1.0, %v4133_v53  ;;  %v3968_v19 = vmul.f32 %v12420_v18, %v12367_v21  ;;  %vm12458_vm8 = vmor %vm4167_vm7, %vm4168_vm0  ;;  %vm3973_vm10 = vweird.f32 %v12420_v18 }
 0x5a0   : > { %v4164_v43 = vsub.f32 1.0, %v4163_v22  ;;  %vm12501_vm7 = vmor %vm3972_vm5, %vm3973_vm10  ;;  %vm3977_vm10 = vcmp.eq.f32.partialorder %v3976_v45, 8.507059e+37  ;;  %v14526_v45 = vld [vmem:[#allocation52_spill] sm:$0xff] }
 0x5a1   : > { %7557 = vmatmul.msk.bf16.gmra.mxu1 %vm2745_vm2, %v4620_v41  ;;  %7568 = vmatmul.msk.bf16.gmra.mxu0 %vm2745_vm2, %v4874_v20  ;;  %v4583_v62 = vpop.f32.mrf.mxu0  ;;  %v4135_v17 = vmul.f32 %v8811_v4, %v4134_v0  ;;  %v12422_v13 = vpop.f32.mrf.mxu2  ;;  %v3969_v33 = vsub.f32 1.0, %v3968_v19  ;;  %v4171_v41 = vand.u32 2147483647, %v12397_v27  ;;  %v8425_v20 = vunpack.i.h.bf16 %v8423_v26 }
 0x5a2   : > { %3320 = vadd.xlane.f32.xlu2 %v3319_v9  ;;  %v8426_v59 = vpack.i.bf16 %v4583_v62, %v4581_v8  ;;  %v4165_v5 = vmul.f32 %v12411_v6, %v4164_v43 }
 0x5a3   : > { %v12416_v11 = vpop.xlane.xlu2 %3296  ;;  %v4136_v39 = vadd.f32 %v8811_v4, %v4135_v17  ;;  %v3970_v51 = vmul.f32 %v12420_v18, %v3969_v33  ;;  %vm4172_vm6 = vcmp.eq.f32.partialorder %v4171_v41, 8.507059e+37  ;;  %v14520_v41 = vld [vmem:[#allocation37_spill] sm:$0xff] }
 0x5a4   : > { %8816 = vrcp.f32 %v12416_v11  ;;  %8427 = vrot.lane.b32.xlu0 %v8426_v59, %s9223_s26  ;;  %v4166_v29 = vadd.f32 %v12411_v6, %v4165_v5  ;;  %vm4152_vm11 = vweird.f32 %v12416_v11  ;;  %v4158_v43 = vand.u32 2147483648, %v12416_v11 }
 0x5a5   : > { %v4140_v2 = vsel %vm12440_vm14, %v8811_v4, %v4136_v39  ;;  %v4174_v4 = vor.u32 1.1754944e-38, %v4173_v63  ;;  %v3971_v48 = vadd.f32 %v12420_v18, %v3970_v51 }
 0x5a6   : > { %v4145_v15 = vsel %vm4142_vm4, %v4144_v28, %v4140_v2  ;;  %v4170_v37 = vsel %vm12458_vm8, %v12411_v6, %v4166_v29  ;;  %v4156_v6 = vand.u32 2147483647, %v12416_v11  ;;  %v4159_v63 = vor.u32 1.1754944e-38, %v4158_v43 }
 0x5a7   : > { %v4175_v33 = vsel %vm4172_vm6, %v4174_v4, %v4170_v37  ;;  %v1928_v37 = vpack.c.bf16 %v8424_v25, %v8424_v25 }
 0x5a8   : > { %v12424_v58 = vpop.xlane.xlu0 %3257  ;;  %vm4157_vm14 = vcmp.eq.f32.partialorder %v4156_v6, 8.507059e+37 }
 0x5a9   : > { %8818 = vrcp.f32 %v12424_v58  ;;  %v4753_v32 = vpop.f32.mrf.mxu2  ;;  %vm3957_vm8 = vweird.f32 %v12424_v58 }
 0x5aa   : > { %v12427_v10 = vpop.eup %8816  ;;  %v8431_v62 = vpack.i.bf16 %v4753_v32, %v12422_v13 }
 0x5ab   : > { %v4148_v50 = vmul.f32 %v12427_v10, %v12416_v11  ;;  %v12434_v55 = vpop.xlane.xlu2 %3302  ;;  %vm4153_vm3 = vweird.f32 %v12427_v10 }
 0x5ac   : > { %8820 = vrcp.f32 %v12434_v55  ;;  %v4186_v19 = vand.u32 2147483647, %v12434_v55  ;;  %v4188_v13 = vand.u32 2147483648, %v12434_v55  ;;  %vm12482_vm9 = vmor %vm4152_vm11, %vm4153_vm3  ;;  %vm4182_vm13 = vweird.f32 %v12434_v55 }
 0x5ad   : > { %v4149_v57 = vsub.f32 1.0, %v4148_v50 }
 0x5ae   : > { %v4189_v28 = vor.u32 1.1754944e-38, %v4188_v13  ;;  %vm4187_vm0 = vcmp.eq.f32.partialorder %v4186_v19, 8.507059e+37  ;;  %v4969_v13 = vunpack.c.l.b16 %v1928_v37 }
 0x5af   : > { %v12444_v24 = vpop.eup %8818  ;;  %v4150_v3 = vmul.f32 %v12427_v10, %v4149_v57 }
 0x5b0   : > { %v3953_v60 = vmul.f32 %v12444_v24, %v12424_v58  ;;  %vm3958_vm4 = vweird.f32 %v12444_v24 }
 0x5b1   : > { %v4151_v27 = vadd.f32 %v12427_v10, %v4150_v3  ;;  %vm12511_vm11 = vmor %vm3957_vm8, %vm3958_vm4 }
 0x5b2   : > { %v8821_v47 = vpop.eup %8820  ;;  %v3954_v59 = vsub.f32 1.0, %v3953_v60  ;;  %v1929_v60 = vpack.c.bf16 %v8425_v20, %v8425_v20  ;;  %v3961_v20 = vand.u32 2147483647, %v12424_v58 }
 0x5b3   : > { %v4178_v53 = vmul.f32 %v8821_v47, %v12434_v55  ;;  %v8418_v9 = vpop.permute.xlu2 %8417  ;;  %vm4183_vm12 = vweird.f32 %v8821_v47  ;;  %v4155_v2 = vsel %vm12482_vm9, %v12427_v10, %v4151_v27  ;;  %v4176_v10 = vmul.f32 %v14520_v41, %v4175_v33 }
 0x5b4   : > { %v8420_v22 = vunpack.i.h.bf16 %v8418_v9  ;;  %v8419_v17 = vunpack.i.l.bf16 %v8418_v9  ;;  %v3955_v46 = vmul.f32 %v12444_v24, %v3954_v59  ;;  %vm4184_vm15 = vmor %vm4182_vm13, %vm4183_vm12  ;;  %v4160_v3 = vsel %vm4157_vm14, %v4159_v63, %v4155_v2  ;;  %v14523_v9 = vld [vmem:[#allocation30_spill] sm:$0xff] }
 0x5b5   : > { %v4179_v0 = vsub.f32 1.0, %v4178_v53  ;;  %v3963_v55 = vand.u32 2147483648, %v12424_v58  ;;  %v3975_v59 = vsel %vm12501_vm7, %v12420_v18, %v3971_v48  ;;  %v4970_v19 = vunpack.c.l.b16 %v1929_v60 }
 0x5b6   : > { %v1931_v5 = vpack.c.bf16 %v8420_v22, %v8420_v22  ;;  %v1930_v50 = vpack.c.bf16 %v8419_v17, %v8419_v17  ;;  %v3956_v51 = vadd.f32 %v12444_v24, %v3955_v46  ;;  %v3979_v22 = vor.u32 1.1754944e-38, %v3978_v38 }
 0x5b7   : > { %v4180_v39 = vmul.f32 %v8821_v47, %v4179_v0  ;;  %v4161_v0 = vmul.f32 %v11343_v44, %v4160_v3  ;;  %v3964_v6 = vor.u32 1.1754944e-38, %v3963_v55  ;;  %vm3962_vm3 = vcmp.eq.f32.partialorder %v3961_v20, 8.507059e+37 }
 0x5b8   : > { %v4972_v11 = vunpack.c.l.b16 %v1931_v5  ;;  %v4971_v26 = vunpack.c.l.b16 %v1930_v50  ;;  %v3960_v17 = vsel %vm12511_vm11, %v12444_v24, %v3956_v51  ;;  %v3980_v43 = vsel %vm3977_vm10, %v3979_v22, %v3975_v59 }
 0x5b9   : > { %v4181_v29 = vadd.f32 %v8821_v47, %v4180_v39  ;;  %v4337_v18 = vpack.c.bf16 %v4161_v0, %v4161_v0  ;;  %v3264_v39 = vpop.xlane.xlu0 %3263  ;;  %v3965_v5 = vsel %vm3962_vm3, %v3964_v6, %v3960_v17  ;;  %v4977_v57 = vpack.c.b16 %v4970_v19, %v4969_v13 }
 0x5ba   : > { %8432 = vrot.lane.b32.xlu2 %v8431_v62, %s9221_s9  ;;  %v4978_v53 = vpack.c.b16 %v4972_v11, %v4971_v26  ;;  %v4146_v62 = vmul.f32 %v14523_v9, %v4145_v15  ;;  %v4338_v15 = vpack.c.bf16 %v4176_v10, %v4176_v10  ;;  %8822 = vrcp.f32 %v3264_v39 }
 0x5bb   : > { %v4185_v32 = vsel %vm4184_vm15, %v8821_v47, %v4181_v29  ;;  %v4871_v50 = vunpack.c.l.b16 %v4337_v18  ;;  %v3966_v21 = vmul.f32 %v11309_v40, %v3965_v5  ;;  %v3981_v46 = vmul.f32 %v14526_v45, %v3980_v43  ;;  %v14527_v18 = vld [vmem:[#allocation34_spill] sm:$0xff] }
 0x5bc   : > { %v4190_v8 = vsel %vm4187_vm0, %v4189_v28, %v4185_v32  ;;  %5003 = vmatpush.bf16.msra.mxu1 %v4978_v53  ;;  %v4336_v58 = vpack.c.bf16 %v4146_v62, %v4146_v62  ;;  %v4949_v25 = vunpack.c.l.b16 %v4338_v15  ;;  %v3993_v55 = vand.u32 2147483648, %v3264_v39 }
 0x5bd   : > { %v4191_v4 = vmul.f32 %v11541_v23, %v4190_v8  ;;  %v4324_v2 = vpack.c.bf16 %v3966_v21, %v3966_v21  ;;  %v4325_v29 = vpack.c.bf16 %v3981_v46, %v3981_v46  ;;  %vm3987_vm12 = vweird.f32 %v3264_v39  ;;  %v12529_v23 = vpop.f32.mrf.mxu3 }
 0x5be   : > { %v4870_v38 = vunpack.c.l.b16 %v4336_v58  ;;  %v3991_v47 = vand.u32 2147483647, %v3264_v39  ;;  %v3994_v9 = vor.u32 1.1754944e-38, %v3993_v55 }
 0x5bf   : > { %v4339_v27 = vpack.c.bf16 %v4191_v4, %v4191_v4  ;;  %v4781_v63 = vunpack.c.l.b16 %v4324_v2  ;;  %v4782_v28 = vunpack.c.l.b16 %v4325_v29 }
 0x5c0   : > { %v4875_v24 = vpack.c.b16 %v4871_v50, %v4870_v38  ;;  %5004 = vmatpush.bf16.msra.mxu1 %v4977_v57  ;;  %v8823_v11 = vpop.eup %8822  ;;  %vm3992_vm9 = vcmp.eq.f32.partialorder %v3991_v47, 8.507059e+37 }
 0x5c1   : > { %v4950_v44 = vunpack.c.l.b16 %v4339_v27  ;;  %v4788_v60 = vpack.c.b16 %v4782_v28, %v4781_v63  ;;  %v3983_v51 = vmul.f32 %v8823_v11, %v3264_v39  ;;  %vm3988_vm5 = vweird.f32 %v8823_v11  ;;  %v12552_v63 = vpop.f32.mrf.mxu2 }
 0x5c2   : > { %7569 = vmatmul.msk.bf16.gmra.mxu0 %vm2745_vm2, %v4875_v24  ;;  %vm3989_vm6 = vmor %vm3987_vm12, %vm3988_vm5 }
 0x5c3   : > { %v4586_v48 = vpop.f32.mrf.mxu0  ;;  %v4957_v33 = vpack.c.b16 %v4950_v44, %v4949_v25  ;;  %7563 = vmatmul.msk.bf16.gmra.mxu3 %vm2745_vm2, %v4788_v60  ;;  %v3984_v40 = vsub.f32 1.0, %v3983_v51 }
 0x5c5   : > { %7570 = vmatmul.msk.bf16.vlgmr.msra.gmra.mxu1 %vm2745_vm2, %v4957_v33  ;;  %v3985_v41 = vmul.f32 %v8823_v11, %v3984_v40  ;;  %v12535_v38 = vpop.f32.mrf.mxu3 }
 0x5c7   : > { %v3986_v37 = vadd.f32 %v8823_v11, %v3985_v41 }
 0x5c9   : > { %v3990_v53 = vsel %vm3989_vm6, %v8823_v11, %v3986_v37 }
 0x5ca   : > { %v3995_v27 = vsel %vm3992_vm9, %v3994_v9, %v3990_v53 }
 0x5cb   : > { %v4588_v26 = vpop.f32.mrf.mxu0  ;;  %v3996_v43 = vmul.f32 %v14527_v18, %v3995_v27 }
 0x5cc   : > { %v8441_v3 = vpack.i.bf16 %v4588_v26, %v4586_v48 }
 0x5cd   : > { %v4326_v5 = vpack.c.bf16 %v3996_v43, %v3996_v43  ;;  %v12543_v46 = vpop.f32.mrf.mxu3 }
 0x5ce   : > { %v12525_v32 = vpop.xlane.xlu0 %3308  ;;  %8442 = vrot.lane.b32.xlu2 %v8441_v3, %s9223_s26 }
 0x5cf   : > { %v4783_v48 = vunpack.c.l.b16 %v4326_v5  ;;  %v4218_v41 = vand.u32 2147483648, %v12525_v32  ;;  %vm4212_vm7 = vweird.f32 %v12525_v32  ;;  %v4216_v37 = vand.u32 2147483647, %v12525_v32 }
 0x5d1   : > { %vm4217_vm11 = vcmp.eq.f32.partialorder %v4216_v37, 8.507059e+37 }
 0x5d5   : > { %v12559_v3 = vpop.f32.mrf.mxu3 }
 0x5d6   : > { %v3267_v8 = vpop.xlane.xlu0 %3266 }
 0x5d7   : > { %8824 = vrcp.f32 %v3267_v8  ;;  %v4008_v59 = vand.u32 2147483648, %v3267_v8  ;;  %v4006_v22 = vand.u32 2147483647, %v3267_v8  ;;  %vm4002_vm15 = vweird.f32 %v3267_v8 }
 0x5d8   : > { %8826 = vrcp.f32 %v12525_v32 }
 0x5d9   : > { %v4009_v6 = vor.u32 1.1754944e-38, %v4008_v59  ;;  %vm4007_vm0 = vcmp.eq.f32.partialorder %v4006_v22, 8.507059e+37 }
 0x5da   : > { %v4591_v10 = vpop.f32.mrf.mxu0 }
 0x5db   : > { %v12539_v24 = vpop.f32.mrf.mxu1 }
 0x5dd   : > { %v8825_v4 = vpop.eup %8824 }
 0x5de   : > { %v3998_v20 = vmul.f32 %v8825_v4, %v3267_v8  ;;  %vm4003_vm13 = vweird.f32 %v8825_v4  ;;  %v8827_v21 = vpop.eup %8826 }
 0x5df   : > { %vm4004_vm14 = vmor %vm4002_vm15, %vm4003_vm13  ;;  %v4208_v45 = vmul.f32 %v8827_v21, %v12525_v32  ;;  %vm4213_vm4 = vweird.f32 %v8827_v21  ;;  %v12577_v32 = vpop.f32.mrf.mxu3 }
 0x5e0   : > { %v3999_v62 = vsub.f32 1.0, %v3998_v20  ;;  %vm4214_vm8 = vmor %vm4212_vm7, %vm4213_vm4 }
 0x5e1   : > { %v4209_v29 = vsub.f32 1.0, %v4208_v45 }
 0x5e2   : > { %v4000_v0 = vmul.f32 %v8825_v4, %v3999_v62  ;;  %v4593_v17 = vpop.f32.mrf.mxu0  ;;  %v12549_v2 = vpop.xlane.xlu0 %3314  ;;  %v4219_v62 = vor.u32 1.1754944e-38, %v4218_v41 }
 0x5e3   : > { %v8456_v58 = vpack.i.bf16 %v4593_v17, %v4591_v10  ;;  %v12554_v28 = vpop.f32.mrf.mxu1  ;;  %v4210_v11 = vmul.f32 %v8827_v21, %v4209_v29 }
 0x5e4   : > { %v4001_v15 = vadd.f32 %v8825_v4, %v4000_v0 }
 0x5e5   : > { %8457 = vrot.lane.b32.xlu2 %v8456_v58, %s9223_s26  ;;  %v4211_v8 = vadd.f32 %v8827_v21, %v4210_v11 }
 0x5e6   : > { %v4005_v19 = vsel %vm4004_vm14, %v8825_v4, %v4001_v15  ;;  %v12568_v4 = vpop.f32.mrf.mxu2 }
 0x5e7   : > { %v4010_v13 = vsel %vm4007_vm0, %v4009_v6, %v4005_v19  ;;  %v4215_v53 = vsel %vm4214_vm8, %v8827_v21, %v4211_v8  ;;  %v8446_v41 = vpack.i.bf16 %v12568_v4, %v12552_v63  ;;  %vm4242_vm0 = vweird.f32 %v12549_v2 }
 0x5e8   : > { %v4011_v39 = vmul.f32 %v11554_v30, %v4010_v13  ;;  %v12545_v30 = vpop.xlane.xlu1 %3272  ;;  %v4220_v22 = vsel %vm4217_vm11, %v4219_v62, %v4215_v53 }
 0x5e9   : > { %8828 = vrcp.f32 %v12545_v30  ;;  %vm4032_vm6 = vweird.f32 %v12545_v30  ;;  %v4036_v45 = vand.u32 2147483647, %v12545_v30 }
 0x5ea   : > { %v4327_v44 = vpack.c.bf16 %v4011_v39, %v4011_v39  ;;  %8830 = vrcp.f32 %v12549_v2  ;;  %v12579_v6 = vpop.xlane.xlu0 %3317 }
 0x5ec   : > { %v4784_v25 = vunpack.c.l.b16 %v4327_v44 }
 0x5ed   : > { %v12537_v50 = vpop.f32.mrf.mxu0 }
 0x5ee   : > { %v4789_v57 = vpack.c.b16 %v4784_v25, %v4783_v48  ;;  %v4221_v48 = vmul.f32 %v11863_v54, %v4220_v22  ;;  %v4038_v54 = vand.u32 2147483648, %v12545_v30 }
 0x5ef   : > { %v12557_v60 = vpop.eup %8828 }
 0x5f0   : > { %7564 = vmatmul.msk.bf16.gmra.mxu3 %vm2745_vm2, %v4789_v57  ;;  %v12561_v40 = vpop.eup %8830  ;;  %v4028_v10 = vmul.f32 %v12557_v60, %v12545_v30  ;;  %vm4033_vm9 = vweird.f32 %v12557_v60 }
 0x5f1   : > { %v4238_v47 = vmul.f32 %v12561_v40, %v12549_v2  ;;  %vm4243_vm13 = vweird.f32 %v12561_v40  ;;  %vm12612_vm15 = vmor %vm4032_vm6, %vm4033_vm9 }
 0x5f2   : > { %v4029_v27 = vsub.f32 1.0, %v4028_v10  ;;  %vm12625_vm4 = vmor %vm4242_vm0, %vm4243_vm13 }
 0x5f3   : > { %v4239_v17 = vsub.f32 1.0, %v4238_v47  ;;  %v4341_v47 = vpack.c.bf16 %v4221_v48, %v4221_v48 }
 0x5f4   : > { %v4030_v13 = vmul.f32 %v12557_v60, %v4029_v27 }
 0x5f5   : > { %v12547_v33 = vpop.f32.mrf.mxu0  ;;  %v4240_v57 = vmul.f32 %v12561_v40, %v4239_v17 }
 0x5f6   : > { %v12584_v5 = vpop.f32.mrf.mxu2  ;;  %v4031_v8 = vadd.f32 %v12557_v60, %v4030_v13 }
 0x5f7   : > { %v4241_v53 = vadd.f32 %v12561_v40, %v4240_v57 }
 0x5f8   : > { %v4035_v17 = vsel %vm12612_vm15, %v12557_v60, %v4031_v8 }
 0x5f9   : > { %v4245_v60 = vsel %vm12625_vm4, %v12561_v40, %v4241_v53 }
 0x5fc   : > { %v3306_v26 = vpop.xlane.xlu2 %3305 }
 0x5fd   : > { %8832 = vrcp.f32 %v3306_v26  ;;  %v4921_v51 = vpop.f32.mrf.mxu0  ;;  %v12572_v20 = vpop.f32.mrf.mxu1  ;;  %v4203_v15 = vand.u32 2147483648, %v3306_v26  ;;  %v4201_v19 = vand.u32 2147483647, %v3306_v26  ;;  %vm4197_vm3 = vweird.f32 %v3306_v26 }
 0x5fe   : > { %v4763_v48 = vpop.f32.mrf.mxu2 }
 0x5ff   : > { %v4204_v44 = vor.u32 1.1754944e-38, %v4203_v15  ;;  %vm4202_vm12 = vcmp.eq.f32.partialorder %v4201_v19, 8.507059e+37  ;;  %v4246_v15 = vand.u32 2147483647, %v12549_v2  ;;  %v4952_v19 = vunpack.c.l.b16 %v4341_v47 }
 0x603   : > { %v8833_v55 = vpop.eup %8832 }
 0x604   : > { %v4193_v9 = vmul.f32 %v8833_v55, %v3306_v26  ;;  %vm4198_vm10 = vweird.f32 %v8833_v55 }
 0x605   : > { %v12574_v59 = vpop.xlane.xlu2 %3311  ;;  %v4923_v58 = vpop.f32.mrf.mxu0  ;;  %vm4199_vm5 = vmor %vm4197_vm3, %vm4198_vm10  ;;  %vm4037_vm10 = vcmp.eq.f32.partialorder %v4036_v45, 8.507059e+37  ;;  %vm4247_vm3 = vcmp.eq.f32.partialorder %v4246_v15, 8.507059e+37 }
 0x606   : > { %v4194_v0 = vsub.f32 1.0, %v4193_v9  ;;  %8834 = vrcp.f32 %v12574_v59  ;;  %v8436_v18 = vpack.i.bf16 %v4923_v58, %v4921_v51  ;;  %v12590_v29 = vpop.f32.mrf.mxu1  ;;  %v4248_v9 = vand.u32 2147483648, %v12549_v2 }
 0x607   : > { %8836 = vrcp.f32 %v12579_v6  ;;  %v4233_v62 = vand.u32 2147483648, %v12574_v59  ;;  %v4231_v4 = vand.u32 2147483647, %v12574_v59  ;;  %v4039_v58 = vor.u32 1.1754944e-38, %v4038_v54 }
 0x608   : > { %v4195_v43 = vmul.f32 %v8833_v55, %v4194_v0  ;;  %8437 = vrot.lane.b32.xlu0 %v8436_v18, %s9222_s13  ;;  %v12608_v0 = vpop.f32.mrf.mxu3  ;;  %vm4227_vm7 = vweird.f32 %v12574_v59 }
 0x609   : > { %vm4232_vm11 = vcmp.eq.f32.partialorder %v4231_v4, 8.507059e+37  ;;  %v4040_v40 = vsel %vm4037_vm10, %v4039_v58, %v4035_v17  ;;  %v14532_v4 = vld [vmem:[#allocation42_spill] sm:$0xff]  ;;  %vm5250_vm10 = vcmask 785408  }
 0x60a   : > { %v4196_v39 = vadd.f32 %v8833_v55, %v4195_v43 }
 0x60c   : > { %v8835_v25 = vpop.eup %8834  ;;  %v4200_v21 = vsel %vm4199_vm5, %v8833_v55, %v4196_v39  ;;  %v4249_v39 = vor.u32 1.1754944e-38, %v4248_v9 }
 0x60d   : > { %v4205_v11 = vsel %vm4202_vm12, %v4204_v44, %v4200_v21  ;;  %v4223_v26 = vmul.f32 %v8835_v25, %v12574_v59  ;;  %v12593_v51 = vpop.xlane.xlu2 %3269  ;;  %v12606_v27 = vpop.eup %8836  ;;  %vm4228_vm14 = vweird.f32 %v8835_v25  ;;  %v4234_v44 = vor.u32 1.1754944e-38, %v4233_v62 }
 0x60e   : > { %8838 = vrcp.f32 %v12593_v51  ;;  %v4926_v10 = vpop.f32.mrf.mxu0  ;;  %v4206_v55 = vmul.f32 %v11629_v31, %v4205_v11  ;;  %v4253_v2 = vmul.f32 %v12606_v27, %v12579_v6  ;;  %vm4229_vm8 = vmor %vm4227_vm7, %vm4228_vm14  ;;  %v4250_v8 = vsel %vm4247_vm3, %v4249_v39, %v4245_v60  ;;  %v12640_v54 = vpop.f32.mrf.mxu1 }
 0x60f   : > { %v4224_v37 = vsub.f32 1.0, %v4223_v26  ;;  %v4023_v53 = vand.u32 2147483648, %v12593_v51  ;;  %v4021_v62 = vand.u32 2147483647, %v12593_v51  ;;  %vm4017_vm12 = vweird.f32 %v12593_v51 }
 0x610   : > { %v4340_v22 = vpack.c.bf16 %v4206_v55, %v4206_v55  ;;  %8447 = vrot.lane.b32.xlu0 %v8446_v41, %s9221_s9  ;;  %v8461_v55 = vpack.i.bf16 %v4763_v48, %v12584_v5  ;;  %v12645_v9 = vpop.f32.mrf.mxu3  ;;  %v4041_v5 = vmul.f32 %v14532_v4, %v4040_v40  ;;  %vm4258_vm13 = vweird.f32 %v12606_v27 }
 0x611   : > { %v4225_v31 = vmul.f32 %v8835_v25, %v4224_v37  ;;  %v4024_v58 = vor.u32 1.1754944e-38, %v4023_v53  ;;  %vm4022_vm9 = vcmp.eq.f32.partialorder %v4021_v62, 8.507059e+37  ;;  %vm4257_vm14 = vweird.f32 %v12579_v6 }
 0x612   : > { %v4951_v43 = vunpack.c.l.b16 %v4340_v22  ;;  %v4329_v60 = vpack.c.bf16 %v4041_v5, %v4041_v5  ;;  %vm12675_vm4 = vmor %vm4257_vm14, %vm4258_vm13 }
 0x613   : > { %v4226_v18 = vadd.f32 %v8835_v25, %v4225_v31 }
 0x614   : > { %v8839_v13 = vpop.eup %8838  ;;  %v4958_v11 = vpack.c.b16 %v4952_v19, %v4951_v43 }
 0x615   : > { %v4230_v57 = vsel %vm4229_vm8, %v8835_v25, %v4226_v18  ;;  %v4013_v21 = vmul.f32 %v8839_v13, %v12593_v51  ;;  %v12637_v59 = vpop.xlane.xlu2 %3320  ;;  %v4254_v25 = vsub.f32 1.0, %v4253_v2  ;;  %vm4018_vm5 = vweird.f32 %v8839_v13 }
 0x616   : > { %v4235_v26 = vsel %vm4232_vm11, %v4234_v44, %v4230_v57  ;;  %8840 = vrcp.f32 %v12637_v59  ;;  %v4928_v41 = vpop.f32.mrf.mxu0  ;;  %7571 = vmatmul.msk.bf16.gmra.mxu1 %vm2745_vm2, %v4958_v11  ;;  %vm4019_vm6 = vmor %vm4017_vm12, %vm4018_vm5  ;;  %v8486_v18 = vpack.i.bf16 %v12554_v28, %v12539_v24  ;;  %v4276_v44 = vand.u32 2147483647, %v12637_v59  ;;  %v4678_v57 = vpop.f32.mrf.mxu1 }
 0x617   : > { %v4014_v37 = vsub.f32 1.0, %v4013_v21  ;;  %v8451_v47 = vpack.i.bf16 %v4928_v41, %v4926_v10  ;;  %v4236_v63 = vmul.f32 %v11900_v14, %v4235_v26  ;;  %v4251_v10 = vmul.f32 %v11816_v56, %v4250_v8  ;;  %v4766_v26 = vpop.f32.mrf.mxu2 }
 0x618   : > { %8462 = vrot.lane.b32.xlu0 %v8461_v55, %s9221_s9  ;;  %v4255_v17 = vmul.f32 %v12606_v27, %v4254_v25  ;;  %v4278_v48 = vand.u32 2147483648, %v12637_v59  ;;  %v4263_v11 = vand.u32 2147483648, %v12579_v6  ;;  %vm4272_vm0 = vweird.f32 %v12637_v59 }
 0x619   : > { %v4015_v45 = vmul.f32 %v8839_v13, %v4014_v37  ;;  %8452 = vrot.lane.b32.xlu1 %v8451_v47, %s9222_s13  ;;  %v4342_v30 = vpack.c.bf16 %v4236_v63, %v4236_v63  ;;  %v4343_v39 = vpack.c.bf16 %v4251_v10, %v4251_v10  ;;  %v4786_v41 = vunpack.c.l.b16 %v4329_v60  ;;  %v7902_v60 = vld [vmem:[%s12695_s19 + $0x20] sm:$0xff] }
 0x61a   : > { %v4256_v2 = vadd.f32 %v12606_v27, %v4255_v17  ;;  %vm4277_vm8 = vcmp.eq.f32.partialorder %v4276_v44, 8.507059e+37  ;;  %v4264_v53 = vor.u32 1.1754944e-38, %v4263_v11  ;;  %v7905_v17 = vld [vmem:[%s12695_s19 + $0x38] sm:$0xff] }
 0x61b   : > { %v4016_v31 = vadd.f32 %v8839_v13, %v4015_v45  ;;  %v4953_v28 = vunpack.c.l.b16 %v4342_v30  ;;  %v4954_v37 = vunpack.c.l.b16 %v4343_v39  ;;  %5347 = vmatpush.bf16.msra.mxu2 %v7905_v17  ;;  %v7904_v30 = vld [vmem:[%s12695_s19 + $0x30] sm:$0xff]  ;;  %v7901_v39 = vld [vmem:[%s12695_s19 + $0x18] sm:$0xff] }
 0x61c   : > { %v8841_v22 = vpop.eup %8840 }
 0x61d   : > { %v4020_v15 = vsel %vm4019_vm6, %v8839_v13, %v4016_v31  ;;  %v4268_v14 = vmul.f32 %v8841_v22, %v12637_v59  ;;  %v8471_v13 = vpack.i.bf16 %v12547_v33, %v12537_v50  ;;  %vm4273_vm15 = vweird.f32 %v8841_v22  ;;  %v12671_v50 = vpop.f32.mrf.mxu3 }
 0x61e   : > { %v4025_v51 = vsel %vm4022_vm9, %v4024_v58, %v4020_v15  ;;  %v4931_v43 = vpop.f32.mrf.mxu0  ;;  %vm4274_vm7 = vmor %vm4272_vm0, %vm4273_vm15  ;;  %v4279_v59 = vor.u32 1.1754944e-38, %v4278_v48  ;;  %v4959_v47 = vpack.c.b16 %v4954_v37, %v4953_v28  ;;  %v4681_v10 = vpop.f32.mrf.mxu1  ;;  %v8516_v15 = vpack.i.bf16 %v4678_v57, %v12640_v54 }
 0x61f   : > { %v4269_v19 = vsub.f32 1.0, %v4268_v14  ;;  %v4026_v56 = vmul.f32 %v11560_v1, %v4025_v51  ;;  %v4261_v1 = vand.u32 2147483647, %v12579_v6  ;;  %v4260_v6 = vsel %vm12675_vm4, %v12606_v27, %v4256_v2  ;;  %5348 = vmatpush.bf16.msra.mxu2 %v7904_v30  ;;  %v7900_v2 = vld [vmem:[%s12695_s19 + $0x10] sm:$0xff] }
 0x620   : > { %8472 = vrot.lane.b32.xlu0 %v8471_v13, %s9223_s26  ;;  %v8501_v27 = vpack.i.bf16 %v12590_v29, %v12572_v20  ;;  %v4768_v20 = vpop.f32.mrf.mxu2 }
 0x621   : > { %v4270_v21 = vmul.f32 %v8841_v22, %v4269_v19  ;;  %v4328_v24 = vpack.c.bf16 %v4026_v56, %v4026_v56  ;;  %8487 = vrot.lane.b32.xlu1 %v8486_v18, %s9223_s26  ;;  %vm4262_vm11 = vcmp.eq.f32.partialorder %v4261_v1, 8.507059e+37  ;;  %v8476_v58 = vpack.i.bf16 %v4768_v20, %v4766_v26  ;;  %v7903_v19 = vld [vmem:[%s12695_s19 + $0x28] sm:$0xff]  ;;  %v7898_v26 = vld [vmem:[%s12695_s19] sm:$0xff] }
 0x622   : > { %v4265_v63 = vsel %vm4262_vm11, %v4264_v53, %v4260_v6  ;;  %v7899_v1 = vld [vmem:[%s12695_s19 + $0x8] sm:$0xff]  ;;  %v8433_v6 = vpop.permute.xlu2 %8432 }
 0x623   : > { %v4271_v40 = vadd.f32 %v8841_v22, %v4270_v21  ;;  %v4785_v8 = vunpack.c.l.b16 %v4328_v24  ;;  %5349 = vmatpush.bf16.msra.mxu2 %v7903_v19 }
 0x625   : > { %v4275_v25 = vsel %vm4274_vm7, %v8841_v22, %v4271_v40  ;;  %v4790_v55 = vpack.c.b16 %v4786_v41, %v4785_v8  ;;  %v4836_v5 = vpop.f32.mrf.mxu3  ;;  %v4266_v22 = vmul.f32 %v11920_v36, %v4265_v63  ;;  %v8428_v40 = vpop.permute.xlu0 %8427 }
 0x626   : > { %v4280_v45 = vsel %vm4277_vm8, %v4279_v59, %v4275_v25  ;;  %v4933_v62 = vpop.f32.mrf.mxu0  ;;  %7572 = vmatmul.msk.bf16.gmra.mxu1 %vm2745_vm2, %v4959_v47  ;;  %v4683_v51 = vpop.f32.mrf.mxu1  ;;  %v8430_v41 = vunpack.i.h.bf16 %v8428_v40  ;;  %v8429_v37 = vunpack.i.l.bf16 %v8428_v40  ;;  %v8434_v47 = vunpack.i.l.bf16 %v8433_v6 }
 0x627   : > { %7565 = vmatmul.msk.bf16.gmra.mxu3 %vm2745_vm2, %v4790_v55  ;;  %v8466_v31 = vpack.i.bf16 %v4933_v62, %v4931_v43  ;;  %v4281_v4 = vmul.f32 %v12402_v61, %v4280_v45  ;;  %v4344_v61 = vpack.c.bf16 %v4266_v22, %v4266_v22  ;;  %v8531_v54 = vpack.i.bf16 %v4683_v51, %v4681_v10 }
 0x628   : > { %5350 = vmatpush.bf16.msra.mxu2 %v7902_v60  ;;  %v5219_v59 = vsel %vm1976_vm1, %v12109_v42, %v8430_v41  ;;  %v5218_v25 = vsel %vm1976_vm1, %v12015_v34, %v8429_v37  ;;  %v8435_v55 = vunpack.i.h.bf16 %v8433_v6 }
 0x629   : > { %8502 = vrot.lane.b32.xlu1 %v8501_v27, %s9223_s26  ;;  %8467 = vrot.lane.b32.xlu2 %v8466_v31, %s9222_s13  ;;  %v4345_v29 = vpack.c.bf16 %v4281_v4, %v4281_v4  ;;  %v4955_v36 = vunpack.c.l.b16 %v4344_v61  ;;  %v5234_v27 = vsel %vm2745_vm2, %v5218_v25, %v8434_v47 }
 0x62a   : > { %v5235_v31 = vsel %vm2745_vm2, %v5219_v59, %v8435_v55  ;;  %v8443_v34 = vpop.permute.xlu2 %8442 }
 0x62b   : > { %v4956_v14 = vunpack.c.l.b16 %v4345_v29  ;;  %v8445_v20 = vunpack.i.h.bf16 %v8443_v34  ;;  %v8444_v29 = vunpack.i.l.bf16 %v8443_v34 }
 0x62c   : > { %5351 = vmatpush.bf16.msra.mxu2 %v7901_v39 }
 0x62d   : > { %v4838_v18 = vpop.f32.mrf.mxu3  ;;  %v4960_v43 = vpack.c.b16 %v4956_v14, %v4955_v36  ;;  %v5220_v14 = vsel %vm1976_vm1, %v12167_v16, %v8444_v29 }
 0x62e   : > { %v8491_v56 = vpack.i.bf16 %v4838_v18, %v4836_v5 }
 0x630   : > { %5352 = vmatpush.bf16.msra.mxu2 %v7900_v2 }
 0x631   : > { %8517 = vrot.lane.b32.xlu1 %v8516_v15, %s9223_s26  ;;  %8477 = vrot.lane.b32.xlu2 %v8476_v58, %s9221_s9  ;;  %v5221_v15 = vsel %vm1976_vm1, %v12244_v52, %v8445_v20 }
 0x634   : > { %5353 = vmatpush.bf16.msra.mxu2 %v7899_v1 }
 0x636   : > { %7573 = vmatmul.msk.bf16.gmra.mxu1 %vm2745_vm2, %v4960_v43 }
 0x638   : > { %5354 = vmatpush.bf16.msra.mxu2 %v7898_v26 }
 0x639   : > { %8532 = vrot.lane.b32.xlu1 %v8531_v54, %s9223_s26  ;;  %8492 = vrot.lane.b32.xlu2 %v8491_v56, %s9221_s9 }
 0x63f   : > { %v4936_v13 = vpop.f32.mrf.mxu0  ;;  %v8458_v56 = vpop.permute.xlu2 %8457 }
 0x640   : > { %v8460_v39 = vunpack.i.h.bf16 %v8458_v56  ;;  %v8459_v2 = vunpack.i.l.bf16 %v8458_v56 }
 0x642   : > { %v5006_v44 = vpop.f32.mrf.mxu1 }
 0x646   : > { %v4841_v24 = vpop.f32.mrf.mxu3 }
 0x647   : > { %v4938_v48 = vpop.f32.mrf.mxu0 }
 0x648   : > { %v8481_v57 = vpack.i.bf16 %v4938_v48, %v4936_v13  ;;  %v5223_v48 = vsel %vm1976_vm1, %v12363_v7, %v8460_v39 }
 0x64a   : > { %8482 = vrot.lane.b32.xlu0 %v8481_v57, %s9222_s13  ;;  %v5008_v21 = vpop.f32.mrf.mxu1  ;;  %v5222_v57 = vsel %vm1976_vm1, %v12311_v49, %v8459_v2 }
 0x64b   : > { %v8496_v28 = vpack.i.bf16 %v5008_v21, %v5006_v44 }
 0x64e   : > { %v4843_v11 = vpop.f32.mrf.mxu3 }
 0x64f   : > { %v8506_v33 = vpack.i.bf16 %v4843_v11, %v4841_v24 }
 0x651   : > { %8507 = vrot.lane.b32.xlu2 %v8506_v33, %s9221_s9 }
 0x652   : > { %8497 = vrot.lane.b32.xlu0 %v8496_v28, %s9222_s13 }
 0x673   : > { %v4846_v8 = vpop.f32.mrf.mxu3 }
 0x67a   : > { %v8438_v53 = vpop.permute.xlu0 %8437 }
 0x67b   : > { %v8440_v45 = vunpack.i.h.bf16 %v8438_v53  ;;  %v8439_v62 = vunpack.i.l.bf16 %v8438_v53  ;;  %v4848_v63 = vpop.f32.mrf.mxu3 }
 0x67c   : > { %v8521_v4 = vpack.i.bf16 %v4848_v63, %v4846_v8 }
 0x67d   : > { %v5251_v5 = vsel %vm5250_vm10, %v5234_v27, %v8439_v62  ;;  %v5252_v10 = vsel %vm5250_vm10, %v5235_v31, %v8440_v45 }
 0x67e   : > { %v5267_v42 = vpack.c.bf16 %v5252_v10, %v5251_v5  ;;  %8522 = vrot.lane.b32.xlu2 %v8521_v4, %s9221_s9 }
 0x680   : > { %5355 = vmatmul.bf16.vlgmr.msra.gmra.mxu2 %v5267_v42 }
 0x682   : > { %v8448_v22 = vpop.permute.xlu0 %8447 }
 0x683   : > { %v8450_v61 = vunpack.i.h.bf16 %v8448_v22  ;;  %v8449_v17 = vunpack.i.l.bf16 %v8448_v22  ;;  %v8468_v16 = vpop.permute.xlu2 %8467 }
 0x684   : > { %v8470_v28 = vunpack.i.h.bf16 %v8468_v16  ;;  %v8469_v1 = vunpack.i.l.bf16 %v8468_v16 }
 0x685   : > { %v5236_v18 = vsel %vm2745_vm2, %v5220_v14, %v8449_v17  ;;  %v5237_v51 = vsel %vm2745_vm2, %v5221_v15, %v8450_v61 }
 0x68a   : > { %v8463_v60 = vpop.permute.xlu0 %8462 }
 0x68b   : > { %v8453_v58 = vpop.permute.xlu1 %8452  ;;  %v8465_v13 = vunpack.i.h.bf16 %v8463_v60  ;;  %v8464_v44 = vunpack.i.l.bf16 %v8463_v60  ;;  %v8478_v63 = vpop.permute.xlu2 %8477 }
 0x68c   : > { %v8455_v36 = vunpack.i.h.bf16 %v8453_v58  ;;  %v8454_v30 = vunpack.i.l.bf16 %v8453_v58  ;;  %v8480_v4 = vunpack.i.h.bf16 %v8478_v63  ;;  %v8479_v5 = vunpack.i.l.bf16 %v8478_v63 }
 0x68d   : > { %v5238_v21 = vsel %vm2745_vm2, %v5222_v57, %v8464_v44  ;;  %v5239_v24 = vsel %vm2745_vm2, %v5223_v48, %v8465_v13  ;;  %v9002_v13 = vld [vmem:[#allocation10] sm:$0xff] }
 0x68e   : > { %v5253_v43 = vsel %vm5250_vm10, %v5236_v18, %v8454_v30  ;;  %v5254_v19 = vsel %vm5250_vm10, %v5237_v51, %v8455_v36  ;;  %v5255_v11 = vsel %vm5250_vm10, %v5238_v21, %v8469_v1  ;;  %v5256_v33 = vsel %vm5250_vm10, %v5239_v24, %v8470_v28 }
 0x68f   : > { %v5268_v54 = vpack.c.bf16 %v5254_v19, %v5253_v43  ;;  %v5269_v8 = vpack.c.bf16 %v5256_v33, %v5255_v11  ;;  %v9003_v33 = vld [vmem:[#allocation10 + $0x8] sm:$0xff] }
 0x691   : > { %5360 = vmatmul.bf16.gmra.mxu2 %v5268_v54 }
 0x692   : > { %v8473_v55 = vpop.permute.xlu0 %8472 }
 0x693   : > { %v5011_v52 = vpop.f32.mrf.mxu1  ;;  %v8475_v53 = vunpack.i.h.bf16 %v8473_v55  ;;  %v8474_v45 = vunpack.i.l.bf16 %v8473_v55  ;;  %v8488_v58 = vpop.permute.xlu1 %8487 }
 0x694   : > { %v8489_v15 = vunpack.i.l.bf16 %v8488_v58 }
 0x695   : > { %v5225_v27 = vsel %vm1976_vm1, %v12404_v35, %v8475_v53  ;;  %v5224_v31 = vsel %vm1976_vm1, %v12394_v12, %v8474_v45  ;;  %v8490_v35 = vunpack.i.h.bf16 %v8488_v58  ;;  %v8493_v12 = vpop.permute.xlu2 %8492  ;;  %v9004_v45 = vld [vmem:[#allocation10 + $0x10] sm:$0xff] }
 0x696   : > { %v5240_v22 = vsel %vm2745_vm2, %v5224_v31, %v8479_v5  ;;  %v5241_v20 = vsel %vm2745_vm2, %v5225_v27, %v8480_v4  ;;  %v8495_v36 = vunpack.i.h.bf16 %v8493_v12  ;;  %v8494_v30 = vunpack.i.l.bf16 %v8493_v12 }
 0x697   : > { %v5227_v18 = vsel %vm1976_vm1, %v12535_v38, %v8490_v35  ;;  %v5226_v51 = vsel %vm1976_vm1, %v12529_v23, %v8489_v15  ;;  %v12768_v38 = vld [vmem:[%s5294_s30] ss:$0 sm:$0xff] }
 0x698   : > { %v5243_v56 = vsel %vm2745_vm2, %v5227_v18, %v8495_v36  ;;  %v5242_v54 = vsel %vm2745_vm2, %v5226_v51, %v8494_v30  ;;  %v9006_v18 = vld [vmem:[#allocation10 + $0x20] sm:$0xff] }
 0x69b   : > { %v5013_v26 = vpop.f32.mrf.mxu1  ;;  %v8503_v16 = vpop.permute.xlu1 %8502 }
 0x69c   : > { %v8511_v40 = vpack.i.bf16 %v5013_v26, %v5011_v52  ;;  %v8505_v24 = vunpack.i.h.bf16 %v8503_v16  ;;  %v8504_v28 = vunpack.i.l.bf16 %v8503_v16 }
 0x69e   : > { %8512 = vrot.lane.b32.xlu0 %v8511_v40, %s9222_s13 }
 0x6a1   : > { %5365 = vmatmul.bf16.gmra.mxu2 %v5269_v8  ;;  %v5229_v8 = vsel %vm1976_vm1, %v12559_v3, %v8505_v24 }
 0x6a3   : > { %v5016_v7 = vpop.f32.mrf.mxu1 }
 0x6aa   : > { %v4851_v41 = vpop.f32.mrf.mxu3 }
 0x6ab   : > { %v5018_v37 = vpop.f32.mrf.mxu1  ;;  %v8508_v48 = vpop.permute.xlu2 %8507 }
 0x6ac   : > { %v8526_v49 = vpack.i.bf16 %v5018_v37, %v5016_v7  ;;  %v8510_v1 = vunpack.i.h.bf16 %v8508_v48  ;;  %v8509_v11 = vunpack.i.l.bf16 %v8508_v48  ;;  %v5228_v7 = vsel %vm1976_vm1, %v12543_v46, %v8504_v28  ;;  %v8518_v46 = vpop.permute.xlu1 %8517 }
 0x6ad   : > { %v8520_v31 = vunpack.i.h.bf16 %v8518_v46  ;;  %v8519_v4 = vunpack.i.l.bf16 %v8518_v46 }
 0x6ae   : > { %8527 = vrot.lane.b32.xlu0 %v8526_v49, %s9222_s13  ;;  %v5245_v49 = vsel %vm2745_vm2, %v5229_v8, %v8510_v1 }
 0x6b2   : > { %v4853_v6 = vpop.f32.mrf.mxu3 }
 0x6b3   : > { %v8536_v59 = vpack.i.bf16 %v4853_v6, %v4851_v41  ;;  %v5021_v25 = vpop.f32.mrf.mxu1  ;;  %v5244_v6 = vsel %vm2745_vm2, %v5228_v7, %v8509_v11  ;;  %v14542_v7 = vld [vmem:[#allocation17_spill] sm:$0xff] }
 0x6b5   : > { %8537 = vrot.lane.b32.xlu2 %v8536_v59, %s9221_s9  ;;  %s12911_s9 = scalar_lea.vmem [#allocation7], %s7906_s0  ;;  %s9225_s0 = smov 128  }
 0x6bb   : > { %v5023_v47 = vpop.f32.mrf.mxu1 }
 0x6bc   : > { %v8541_v62 = vpack.i.bf16 %v5023_v47, %v5021_v25  ;;  %v8483_v10 = vpop.permute.xlu0 %8482 }
 0x6bd   : > { %v8485_v42 = vunpack.i.h.bf16 %v8483_v10  ;;  %v8484_v34 = vunpack.i.l.bf16 %v8483_v10 }
 0x6be   : > { %8542 = vrot.lane.b32.xlu0 %v8541_v62, %s9222_s13  ;;  %s7610_s13 = sshll.u32 %s14614_s27, 2  ;;  %s14601_s27 = sld [smem:[#allocation16_spill]] }
 0x6bf   : > { %v5257_v29 = vsel %vm5250_vm10, %v5240_v22, %v8484_v34  ;;  %v5258_v61 = vsel %vm5250_vm10, %v5241_v20, %v8485_v42  ;;  %v9005_v42 = vld [vmem:[#allocation10 + $0x18] sm:$0xff]  ;;  %v5231_v20 = vsel %vm1976_vm1, %v12608_v0, %v8520_v31  ;;  %s5818_s15 = scalar_lea.vmem %s14129_s10, %s7610_s13 }
 0x6c0   : > { %v5270_v17 = vpack.c.bf16 %v5258_v61, %v5257_v29  ;;  %v5230_v29 = vsel %vm1976_vm1, %v12577_v32, %v8519_v4  ;;  %v8533_v32 = vpop.permute.xlu1 %8532 }
 0x6c2   : > { %5370 = vmatmul.bf16.gmra.mxu2 %v5270_v17 }
 0x6c4   : > { %v8498_v14 = vpop.permute.xlu0 %8497 }
 0x6c5   : > { %v8500_v43 = vunpack.i.h.bf16 %v8498_v14  ;;  %v8499_v19 = vunpack.i.l.bf16 %v8498_v14 }
 0x6c7   : > { %v5259_v60 = vsel %vm5250_vm10, %v5242_v54, %v8499_v19  ;;  %v5260_v39 = vsel %vm5250_vm10, %v5243_v56, %v8500_v43  ;;  %v8535_v56 = vunpack.i.h.bf16 %v8533_v32  ;;  %v8534_v54 = vunpack.i.l.bf16 %v8533_v32  ;;  %v9012_v32 = vld [vmem:[#allocation10 + $0x50] sm:$0xff] }
 0x6c8   : > { %v5271_v2 = vpack.c.bf16 %v5260_v39, %v5259_v60 }
 0x6c9   : > { %v5232_v16 = vsel %vm1976_vm1, %v12645_v9, %v8534_v54 }
 0x6d2   : > { %5375 = vmatmul.bf16.gmra.mxu2 %v5271_v2  ;;  %v9007_v2 = vld [vmem:[#allocation10 + $0x28] sm:$0xff] }
 0x6d8   : > { %v8523_v3 = vpop.permute.xlu2 %8522 }
 0x6d9   : > { %v8525_v5 = vunpack.i.h.bf16 %v8523_v3  ;;  %v8524_v10 = vunpack.i.l.bf16 %v8523_v3 }
 0x6db   : > { %v5247_v58 = vsel %vm2745_vm2, %v5231_v20, %v8525_v5  ;;  %v5246_v35 = vsel %vm2745_vm2, %v5230_v29, %v8524_v10  ;;  %v9010_v5 = vld [vmem:[#allocation10 + $0x40] sm:$0xff] }
 0x703   : > { %v5356_v52 = vpop.f32.mrf.mxu2 }
 0x704   : > { %v5357_v23 = vadd.f32 %v12768_v38, %v5356_v52 }
 0x706   : > { %v12771_v44 = vadd.f32 %v9002_v13, %v5357_v23  ;;  %v5233_v13 = vsel %vm1976_vm1, %v12671_v50, %v8535_v56  ;;  %v9008_v50 = vld [vmem:[#allocation10 + $0x30] sm:$0xff] }
 0x708   : > { %14535 = vst [vmem:[#allocation38_spill] sm:$0xff] %v12771_v44  ;;  %5416 = vadd.xlane.f32.xlu1 %v12771_v44 }
 0x70b   : > { %v5358_v57 = vpop.f32.mrf.mxu2 }
 0x70c   : > { %v5359_v21 = vadd.f32 %v12768_v38, %v5358_v57 }
 0x70e   : > { %v12775_v26 = vadd.f32 %v9003_v33, %v5359_v21 }
 0x70f   : > { %v8538_v0 = vpop.permute.xlu2 %8537 }
 0x710   : > { %14536 = vst [vmem:[#allocation18_spill] sm:$0xff] %v12775_v26  ;;  %5418 = vadd.xlane.f32.xlu2 %v12775_v26  ;;  %v8513_v40 = vpop.permute.xlu0 %8512  ;;  %v8540_v60 = vunpack.i.h.bf16 %v8538_v0  ;;  %v8539_v39 = vunpack.i.l.bf16 %v8538_v0 }
 0x711   : > { %v8515_v41 = vunpack.i.h.bf16 %v8513_v40  ;;  %v8514_v37 = vunpack.i.l.bf16 %v8513_v40 }
 0x712   : > { %v5249_v21 = vsel %vm2745_vm2, %v5233_v13, %v8540_v60  ;;  %v5248_v24 = vsel %vm2745_vm2, %v5232_v16, %v8539_v39 }
 0x713   : > { %v5261_v25 = vsel %vm5250_vm10, %v5244_v6, %v8514_v37  ;;  %v5262_v55 = vsel %vm5250_vm10, %v5245_v49, %v8515_v41 }
 0x714   : > { %v5361_v59 = vpop.f32.mrf.mxu2  ;;  %v5272_v53 = vpack.c.bf16 %v5262_v55, %v5261_v25 }
 0x715   : > { %v5362_v47 = vadd.f32 %v12768_v38, %v5361_v59 }
 0x716   : > { %5380 = vmatmul.bf16.gmra.mxu2 %v5272_v53 }
 0x717   : > { %v12787_v62 = vadd.f32 %v9004_v45, %v5362_v47  ;;  %v9009_v45 = vld [vmem:[#allocation10 + $0x38] sm:$0xff] }
 0x719   : > { %14537 = vst [vmem:[#allocation22_spill] sm:$0xff] %v12787_v62  ;;  %5420 = vadd.xlane.f32.xlu0 %v12787_v62 }
 0x71c   : > { %v5363_v63 = vpop.f32.mrf.mxu2 }
 0x71d   : > { %v5364_v27 = vadd.f32 %v12768_v38, %v5363_v63 }
 0x71f   : > { %v12791_v34 = vadd.f32 %v9005_v42, %v5364_v27 }
 0x720   : > { %v8528_v22 = vpop.permute.xlu0 %8527 }
 0x721   : > { %14538 = vst [vmem:[#allocation46_spill] sm:$0xff] %v12791_v34  ;;  %5422 = vadd.xlane.f32.xlu1 %v12791_v34  ;;  %v8530_v61 = vunpack.i.h.bf16 %v8528_v22  ;;  %v8529_v17 = vunpack.i.l.bf16 %v8528_v22 }
 0x723   : > { %v5263_v12 = vsel %vm5250_vm10, %v5246_v35, %v8529_v17  ;;  %v5264_v14 = vsel %vm5250_vm10, %v5247_v58, %v8530_v61  ;;  %v9011_v58 = vld [vmem:[#allocation10 + $0x48] sm:$0xff] }
 0x724   : > { %v5366_v15 = vpop.f32.mrf.mxu2  ;;  %v5273_v30 = vpack.c.bf16 %v5264_v14, %v5263_v12 }
 0x725   : > { %v5367_v36 = vadd.f32 %v12768_v38, %v5366_v15 }
 0x726   : > { %5385 = vmatmul.bf16.gmra.mxu2 %v5273_v30 }
 0x727   : > { %v12803_v51 = vadd.f32 %v9006_v18, %v5367_v36 }
 0x729   : > { %14539 = vst [vmem:[#allocation44_spill] sm:$0xff] %v12803_v51  ;;  %5424 = vadd.xlane.f32.xlu2 %v12803_v51 }
 0x72c   : > { %v5368_v43 = vpop.f32.mrf.mxu2 }
 0x72d   : > { %v5369_v19 = vadd.f32 %v12768_v38, %v5368_v43 }
 0x72f   : > { %v12807_v52 = vadd.f32 %v9007_v2, %v5369_v19  ;;  %v9013_v2 = vld [vmem:[#allocation10 + $0x58] sm:$0xff] }
 0x730   : > { %v8543_v23 = vpop.permute.xlu0 %8542 }
 0x731   : > { %14540 = vst [vmem:[#allocation40_spill] sm:$0xff] %v12807_v52  ;;  %5426 = vadd.xlane.f32.xlu0 %v12807_v52  ;;  %v8545_v48 = vunpack.i.h.bf16 %v8543_v23  ;;  %v8544_v57 = vunpack.i.l.bf16 %v8543_v23 }
 0x733   : > { %v5265_v28 = vsel %vm5250_vm10, %v5248_v24, %v8544_v57  ;;  %v5266_v1 = vsel %vm5250_vm10, %v5249_v21, %v8545_v48  ;;  %v9014_v57 = vld [vmem:[#allocation10 + $0x60] sm:$0xff] }
 0x734   : > { %v5274_v11 = vpack.c.bf16 %v5266_v1, %v5265_v28 }
 0x736   : > { %5390 = vmatmul.bf16.gmra.mxu2 %v5274_v11 }
 0x745   : > { %v5371_v33 = vpop.f32.mrf.mxu2 }
 0x746   : > { %v5372_v40 = vadd.f32 %v12768_v38, %v5371_v33 }
 0x748   : > { %v12819_v8 = vadd.f32 %v9008_v50, %v5372_v40  ;;  %v9015_v50 = vld [vmem:[#allocation10 + $0x68] sm:$0xff] }
 0x74a   : > { %14541 = vst [vmem:[#allocation43_spill] sm:$0xff] %v12819_v8  ;;  %5428 = vadd.xlane.f32.xlu0 %v12819_v8 }
 0x74d   : > { %v5373_v37 = vpop.f32.mrf.mxu2 }
 0x74e   : > { %v5374_v25 = vadd.f32 %v12768_v38, %v5373_v37 }
 0x750   : > { %v12845_v46 = vadd.f32 %v9009_v45, %v5374_v25  ;;  %v7935_v25 = vld [vmem:[%s12911_s9 + $0xe4] sm:$0xf] }
 0x752   : > { %14543 = vst [vmem:[#allocation21_spill] sm:$0xff] %v12845_v46 }
 0x755   : > { %v5376_v53 = vpop.f32.mrf.mxu2 }
 0x756   : > { %v5377_v27 = vadd.f32 %v12768_v38, %v5376_v53  ;;  %v7936_v53 = vld [vmem:[%s12911_s9 + $0xec] sm:$0xf] }
 0x758   : > { %v12855_v10 = vadd.f32 %v9010_v5, %v5377_v27  ;;  %v7937_v27 = vld [vmem:[%s12911_s9 + $0xec] sm:$0xf0] }
 0x75a   : > { %14544 = vst [vmem:[#allocation51_spill] sm:$0xff] %v12855_v10 }
 0x75d   : > { %v5378_v22 = vpop.f32.mrf.mxu2 }
 0x75e   : > { %v5379_v29 = vadd.f32 %v12768_v38, %v5378_v22  ;;  %v7938_v22 = vld [vmem:[%s12911_s9 + $0xf4] sm:$0xf0] }
 0x760   : > { %v12865_v35 = vadd.f32 %v9011_v58, %v5379_v29 }
 0x762   : > { %14545 = vst [vmem:[#allocation48_spill] sm:$0xff] %v12865_v35 }
 0x77b   : > { %v5417_v9 = vpop.xlane.xlu1 %5416 }
 0x77c   : > { %v5448_v41 = vmul.f32 %v5417_v9, %v14542_v7 }
 0x77e   : > { %v12836_v49 = vsub.f32 %v12771_v44, %v5448_v41 }
 0x780   : > { %v5480_v6 = vmul.f32 %v12836_v49, %v12836_v49 }
 0x782   : > { %5496 = vadd.xlane.f32.xlu1 %v5480_v6  ;;  %v9016_v6 = vld [vmem:[#allocation10 + $0x70] sm:$0xff] }
 0x783   : > { %v5419_v59 = vpop.xlane.xlu2 %5418 }
 0x784   : > { %v5449_v55 = vmul.f32 %v5419_v59, %v14542_v7 }
 0x786   : > { %v12843_v47 = vsub.f32 %v12775_v26, %v5449_v55  ;;  %v7727_v55 = vld [vmem:[%s12911_s9 + $0xf0] sm:$0xf0] }
 0x787   : > { %v7730_v45 = vor.u32 %v7935_v25, %v7727_v55  ;;  %v7677_v25 = vld [vmem:[%s12911_s9 + $0x80] sm:$0xf] }
 0x788   : > { %v5481_v3 = vmul.f32 %v12843_v47, %v12843_v47 }
 0x789   : > { %6038 = vmatpush.bf16.msrb.mxu0 %v7730_v45 }
 0x78a   : > { %5430 = vadd.xlane.f32.xlu1 %v12845_v46  ;;  %5498 = vadd.xlane.f32.xlu2 %v5481_v3  ;;  %v7735_v3 = vld [vmem:[%s12911_s9 + $0xf8] sm:$0xf0] }
 0x78c   : > { %v5421_v63 = vpop.xlane.xlu0 %5420 }
 0x78d   : > { %v5450_v31 = vmul.f32 %v5421_v63, %v14542_v7  ;;  %v7725_v63 = vld [vmem:[%s12911_s9 + $0xe0] sm:$0xf] }
 0x78e   : > { %v7726_v5 = vor.u32 %v7937_v27, %v7725_v63  ;;  %v7923_v63 = vld [vmem:[%s12911_s9 + $0x84] sm:$0xf]  ;;  %v7679_v27 = vld [vmem:[%s12911_s9 + $0x90] sm:$0xf0] }
 0x78f   : > { %v12853_v4 = vsub.f32 %v12787_v62, %v5450_v31  ;;  %v7738_v31 = vor.u32 %v7936_v53, %v7735_v3  ;;  %v7925_v3 = vld [vmem:[%s12911_s9 + $0x8c] sm:$0xf0] }
 0x790   : > { %5989 = vmatpush.bf16.msra.mxu3 %v7726_v5  ;;  %v7685_v5 = vld [vmem:[%s12911_s9 + $0x88] sm:$0xf] }
 0x791   : > { %v5482_v42 = vmul.f32 %v12853_v4, %v12853_v4  ;;  %6136 = vmatpush.bf16.msrb.mxu2 %v7738_v31  ;;  %v7678_v31 = vor.u32 %v7925_v3, %v7677_v25  ;;  %v7918_v3 = vld [vmem:[%s12911_s9 + $0x54] sm:$0xf0] }
 0x792   : > { %5432 = vadd.xlane.f32.xlu1 %v12855_v10 }
 0x793   : > { %5500 = vadd.xlane.f32.xlu2 %v5482_v42  ;;  %v7733_v42 = vld [vmem:[%s12911_s9 + $0xe8] sm:$0xf] }
 0x794   : > { %v5423_v20 = vpop.xlane.xlu1 %5422 }
 0x795   : > { %v5451_v61 = vmul.f32 %v5423_v20, %v14542_v7  ;;  %v7734_v20 = vor.u32 %v7938_v22, %v7733_v42  ;;  %v7926_v42 = vld [vmem:[%s12911_s9 + $0x94] sm:$0xf0]  ;;  %v7924_v22 = vld [vmem:[%s12911_s9 + $0x8c] sm:$0xf] }
 0x797   : > { %v12863_v17 = vsub.f32 %v12791_v34, %v5451_v61  ;;  %6087 = vmatpush.bf16.msrb.mxu1 %v7734_v20 }
 0x799   : > { %v5483_v15 = vmul.f32 %v12863_v17, %v12863_v17  ;;  %v5381_v12 = vpop.f32.mrf.mxu2 }
 0x79a   : > { %v5382_v14 = vadd.f32 %v12768_v38, %v5381_v12  ;;  %v7933_v12 = vld [vmem:[%s12911_s9 + $0xcc] sm:$0xf0] }
 0x79b   : > { %5502 = vadd.xlane.f32.xlu0 %v5483_v15  ;;  %5434 = vadd.xlane.f32.xlu2 %v12865_v35  ;;  %v7709_v15 = vld [vmem:[%s12911_s9 + $0xc0] sm:$0xf] }
 0x79c   : > { %v5425_v36 = vpop.xlane.xlu2 %5424  ;;  %v12875_v0 = vadd.f32 %v9012_v32, %v5382_v14  ;;  %v7710_v14 = vor.u32 %v7933_v12, %v7709_v15  ;;  %v7717_v32 = vld [vmem:[%s12911_s9 + $0xc8] sm:$0xf]  ;;  %v7682_v15 = vor.u32 %v7923_v63, %v7679_v27  ;;  %v7687_v12 = vld [vmem:[%s12911_s9 + $0x98] sm:$0xf0] }
 0x79d   : > { %v5452_v30 = vmul.f32 %v5425_v36, %v14542_v7  ;;  %v7931_v36 = vld [vmem:[%s12911_s9 + $0xc4] sm:$0xf] }
 0x79e   : > { %14546 = vst [vmem:[#allocation45_spill] sm:$0xff] %v12875_v0  ;;  %5990 = vmatpush.bf16.msra.mxu3 %v7710_v14 }
 0x79f   : > { %v12873_v18 = vsub.f32 %v12803_v51, %v5452_v30  ;;  %v7711_v30 = vld [vmem:[%s12911_s9 + $0xd0] sm:$0xf0] }
 0x7a1   : > { %v5484_v43 = vmul.f32 %v12873_v18, %v12873_v18  ;;  %v5383_v19 = vpop.f32.mrf.mxu2 }
 0x7a2   : > { %v5384_v56 = vadd.f32 %v12768_v38, %v5383_v19  ;;  %v7934_v19 = vld [vmem:[%s12911_s9 + $0xd4] sm:$0xf0] }
 0x7a3   : > { %5504 = vadd.xlane.f32.xlu0 %v5484_v43  ;;  %5436 = vadd.xlane.f32.xlu2 %v12875_v0  ;;  %v7714_v43 = vor.u32 %v7931_v36, %v7711_v30  ;;  %v7686_v36 = vor.u32 %v7926_v42, %v7685_v5  ;;  %v7690_v30 = vor.u32 %v7924_v22, %v7687_v12  ;;  %v7655_v5 = vld [vmem:[%s12911_s9 + $0x58] sm:$0xf0] }
 0x7a4   : > { %v5427_v54 = vpop.xlane.xlu0 %5426  ;;  %v12885_v23 = vadd.f32 %v9013_v2, %v5384_v56  ;;  %v7932_v56 = vld [vmem:[%s12911_s9 + $0xcc] sm:$0xf] }
 0x7a5   : > { %v5453_v60 = vmul.f32 %v5427_v54, %v14542_v7  ;;  %v7719_v54 = vld [vmem:[%s12911_s9 + $0xd8] sm:$0xf0]  ;;  %6039 = vmatpush.bf16.msrb.mxu0 %v7714_v43  ;;  %v7663_v43 = vld [vmem:[%s12911_s9 + $0x70] sm:$0xf0] }
 0x7a6   : > { %14547 = vst [vmem:[#allocation19_spill] sm:$0xff] %v12885_v23  ;;  %v7722_v2 = vor.u32 %v7932_v56, %v7719_v54  ;;  %v7922_v54 = vld [vmem:[%s12911_s9 + $0x74] sm:$0xf0] }
 0x7a7   : > { %v12883_v39 = vsub.f32 %v12807_v52, %v5453_v60  ;;  %v7718_v60 = vor.u32 %v7934_v19, %v7717_v32  ;;  %v7919_v32 = vld [vmem:[%s12911_s9 + $0x64] sm:$0xf]  ;;  %v7669_v19 = vld [vmem:[%s12911_s9 + $0x68] sm:$0xf] }
 0x7a8   : > { %6137 = vmatpush.bf16.msrb.mxu2 %v7722_v2  ;;  %v7671_v2 = vld [vmem:[%s12911_s9 + $0x78] sm:$0xf0] }
 0x7a9   : > { %v5485_v13 = vmul.f32 %v12883_v39, %v12883_v39  ;;  %v5386_v16 = vpop.f32.mrf.mxu2  ;;  %6088 = vmatpush.bf16.msrb.mxu1 %v7718_v60  ;;  %v7920_v60 = vld [vmem:[%s12911_s9 + $0x6c] sm:$0xf] }
 0x7aa   : > { %v5387_v48 = vadd.f32 %v12768_v38, %v5386_v16  ;;  %v7929_v16 = vld [vmem:[%s12911_s9 + $0xac] sm:$0xf0] }
 0x7ab   : > { %5506 = vadd.xlane.f32.xlu1 %v5485_v13  ;;  %5438 = vadd.xlane.f32.xlu0 %v12885_v23  ;;  %v7693_v13 = vld [vmem:[%s12911_s9 + $0xa0] sm:$0xf] }
 0x7ac   : > { %v12891_v21 = vadd.f32 %v9014_v57, %v5387_v48  ;;  %v7927_v48 = vld [vmem:[%s12911_s9 + $0xa4] sm:$0xf]  ;;  %v7694_v57 = vor.u32 %v7929_v16, %v7693_v13  ;;  %v7666_v16 = vor.u32 %v7919_v32, %v7663_v43 }
 0x7ae   : > { %14548 = vst [vmem:[#allocation50_spill] sm:$0xff] %v12891_v21  ;;  %5991 = vmatpush.bf16.msra.mxu3 %v7694_v57  ;;  %v7921_v57 = vld [vmem:[%s12911_s9 + $0x6c] sm:$0xf0] }
 0x7b1   : > { %v5388_v11 = vpop.f32.mrf.mxu2 }
 0x7b2   : > { %v5389_v40 = vadd.f32 %v12768_v38, %v5388_v11  ;;  %v7930_v11 = vld [vmem:[%s12911_s9 + $0xb4] sm:$0xf0]  ;;  %5992 = vmatpush.bf16.msra.mxu3 %v7678_v31  ;;  %v7916_v31 = vld [vmem:[%s12911_s9 + $0x4c] sm:$0xf] }
 0x7b3   : > { %5440 = vadd.xlane.f32.xlu0 %v12891_v21 }
 0x7b4   : > { %v12901_v9 = vadd.f32 %v9015_v50, %v5389_v40 }
 0x7b6   : > { %14549 = vst [vmem:[#allocation47_spill] sm:$0xff] %v12901_v9 }
 0x7b9   : > { %v5391_v41 = vpop.f32.mrf.mxu2 }
 0x7ba   : > { %v5392_v37 = vadd.f32 %v12768_v38, %v5391_v41 }
 0x7bc   : > { %v12905_v59 = vadd.f32 %v9016_v6, %v5392_v37  ;;  %v7928_v37 = vld [vmem:[%s12911_s9 + $0xac] sm:$0xf]  ;;  %v7703_v6 = vld [vmem:[%s12911_s9 + $0xb8] sm:$0xf0] }
 0x7bd   : > { %v5429_v24 = vpop.xlane.xlu0 %5428  ;;  %v7706_v45 = vor.u32 %v7928_v37, %v7703_v6  ;;  %v7917_v37 = vld [vmem:[%s12911_s9 + $0x4c] sm:$0xf0]  ;;  %v7915_v6 = vld [vmem:[%s12911_s9 + $0x44] sm:$0xf] }
 0x7be   : > { %v5454_v28 = vmul.f32 %v5429_v24, %v14542_v7  ;;  %14550 = vst [vmem:[#allocation31_spill] sm:$0xff] %v12905_v59  ;;  %v7695_v24 = vld [vmem:[%s12911_s9 + $0xb0] sm:$0xf0] }
 0x7bf   : > { %v7698_v50 = vor.u32 %v7927_v48, %v7695_v24  ;;  %6138 = vmatpush.bf16.msrb.mxu2 %v7706_v45  ;;  %v7661_v48 = vld [vmem:[%s12911_s9 + $0x60] sm:$0xf]  ;;  %v7653_v45 = vld [vmem:[%s12911_s9 + $0x48] sm:$0xf] }
 0x7c0   : > { %v12896_v1 = vsub.f32 %v12819_v8, %v5454_v28  ;;  %v7701_v28 = vld [vmem:[%s12911_s9 + $0xa8] sm:$0xf]  ;;  %v7645_v24 = vld [vmem:[%s12911_s9 + $0x40] sm:$0xf] }
 0x7c1   : > { %v7702_v41 = vor.u32 %v7930_v11, %v7701_v28  ;;  %6040 = vmatpush.bf16.msrb.mxu0 %v7698_v50  ;;  %v7674_v50 = vor.u32 %v7920_v60, %v7671_v2  ;;  %v7646_v27 = vor.u32 %v7917_v37, %v7645_v24  ;;  %v7637_v2 = vld [vmem:[%s12911_s9 + $0x28] sm:$0xf] }
 0x7c2   : > { %v5486_v33 = vmul.f32 %v12896_v1, %v12896_v1 }
 0x7c3   : > { %6089 = vmatpush.bf16.msrb.mxu1 %v7702_v41  ;;  %6139 = vmatpush.bf16.msrb.mxu2 %v7690_v30  ;;  %v7662_v41 = vor.u32 %v7921_v57, %v7661_v48  ;;  %v7913_v30 = vld [vmem:[%s12911_s9 + $0x2c] sm:$0xf0]  ;;  %v5393_v48 = vpop.f32.mrf.mxu2 }
 0x7c4   : > { %5508 = vadd.xlane.f32.xlu1 %v5486_v33 }
 0x7c5   : > { %6041 = vmatpush.bf16.msrb.mxu0 %v7682_v15  ;;  %5993 = vmatpush.bf16.msra.mxu3 %v7662_v41 }
 0x7c7   : > { %6090 = vmatpush.bf16.msrb.mxu1 %v7686_v36  ;;  %v7629_v36 = vld [vmem:[%s12911_s9 + $0x20] sm:$0xf]  ;;  %6140 = vmatpush.bf16.msrb.mxu2 %v7674_v50 }
 0x7c8   : > { %v7630_v24 = vor.u32 %v7913_v30, %v7629_v36  ;;  %v7623_v36 = vld [vmem:[%s12911_s9 + $0x18] sm:$0xf0] }
 0x7c9   : > { %6042 = vmatpush.bf16.msrb.mxu0 %v7666_v16  ;;  %v7912_v16 = vld [vmem:[%s12911_s9 + $0x2c] sm:$0xf]  ;;  %5994 = vmatpush.bf16.msra.mxu3 %v7646_v27 }
 0x7cc   : > { %5442 = vadd.xlane.f32.xlu1 %v12901_v9 }
 0x7cd   : > { %5995 = vmatpush.bf16.msra.mxu3 %v7630_v24  ;;  %v13052_v24 = vld [vmem:[%s12832_s14] ss:$0 sm:$0xff] }
 0x7d4   : > { %5444 = vadd.xlane.f32.xlu1 %v12905_v59 }
 0x7f5   : > { %v5497_v29 = vpop.xlane.xlu1 %5496 }
 0x7f6   : > { %v5528_v61 = vmul.f32 %v5497_v29, %v14542_v7 }
 0x7f8   : > { %v12922_v58 = vadd.f32 1e-05, %v5528_v61 }
 0x7fa   : > { %8842 = vrsqrt.f32 %v12922_v58  ;;  %vm5566_vm2 = vweird.f32 %v12922_v58 }
 0x7fd   : > { %v5431_v33 = vpop.xlane.xlu1 %5430  ;;  %v5499_v40 = vpop.xlane.xlu2 %5498 }
 0x7fe   : > { %v5455_v55 = vmul.f32 %v5431_v33, %v14542_v7  ;;  %v5529_v53 = vmul.f32 %v5499_v40, %v14542_v7  ;;  %v7670_v40 = vor.u32 %v7922_v54, %v7669_v19  ;;  %v7658_v19 = vor.u32 %v7916_v31, %v7655_v5  ;;  %v7631_v54 = vld [vmem:[%s12911_s9 + $0x30] sm:$0xf0]  ;;  %v7621_v31 = vld [vmem:[%s12911_s9 + $0x8] sm:$0xf] }
 0x800   : > { %v12950_v20 = vpop.eup %8842  ;;  %v12953_v29 = vsub.f32 %v12845_v46, %v5455_v55  ;;  %v12955_v61 = vadd.f32 1e-05, %v5529_v53  ;;  %v7647_v53 = vld [vmem:[%s12911_s9 + $0x50] sm:$0xf0]  ;;  %6091 = vmatpush.bf16.msrb.mxu1 %v7670_v40  ;;  %v7613_v40 = vld [vmem:[%s12911_s9] sm:$0xf]  ;;  %6141 = vmatpush.bf16.msrb.mxu2 %v7658_v19 }
 0x801   : > { %v5561_v14 = vmul.f32 %v12950_v20, %v12922_v58  ;;  %v7650_v12 = vor.u32 %v7915_v6, %v7647_v53  ;;  %vm5567_vm1 = vweird.f32 %v12950_v20  ;;  %v7909_v58 = vld [vmem:[%s12911_s9 + $0xc] sm:$0xf0]  ;;  %v7907_v53 = vld [vmem:[%s12911_s9 + $0x4] sm:$0xf] }
 0x802   : > { %8844 = vrsqrt.f32 %v12955_v61  ;;  %v5487_v56 = vmul.f32 %v12953_v29, %v12953_v29  ;;  %vm13008_vm3 = vmor %vm5566_vm2, %vm5567_vm1  ;;  %vm5576_vm12 = vweird.f32 %v12955_v61 }
 0x803   : > { %v5562_v13 = vmul.f32 %v12950_v20, %v5561_v14  ;;  %v7654_v14 = vor.u32 %v7918_v3, %v7653_v45  ;;  %6043 = vmatpush.bf16.msrb.mxu0 %v7650_v12  ;;  %v7615_v45 = vld [vmem:[%s12911_s9 + $0x10] sm:$0xf0]  ;;  %v5394_v3 = vadd.f32 %v12768_v38, %v5393_v48  ;;  %v7614_v12 = vor.u32 %v7909_v58, %v7613_v40 }
 0x804   : > { %5510 = vadd.xlane.f32.xlu2 %v5487_v56  ;;  %v7911_v56 = vld [vmem:[%s12911_s9 + $0x24] sm:$0xf] }
 0x805   : > { %v5563_v28 = vmul.f32 0.5, %v5562_v13  ;;  %v5433_v11 = vpop.xlane.xlu1 %5432  ;;  %v7914_v13 = vld [vmem:[%s12911_s9 + $0x34] sm:$0xf0]  ;;  %6092 = vmatpush.bf16.msrb.mxu1 %v7654_v14  ;;  %v7908_v14 = vld [vmem:[%s12911_s9 + $0xc] sm:$0xf]  ;;  %5996 = vmatpush.bf16.msra.mxu3 %v7614_v12 }
 0x806   : > { %v5501_v33 = vpop.xlane.xlu2 %5500  ;;  %v5456_v25 = vmul.f32 %v5433_v11, %v14542_v7  ;;  %v7626_v48 = vor.u32 %v7908_v14, %v7623_v36 }
 0x807   : > { %v5530_v55 = vmul.f32 %v5501_v33, %v14542_v7  ;;  %v5564_v63 = vsub.f32 1.5, %v5563_v28  ;;  %v7639_v28 = vld [vmem:[%s12911_s9 + $0x38] sm:$0xf0]  ;;  %v7634_v33 = vor.u32 %v7911_v56, %v7631_v54  ;;  %v7618_v56 = vor.u32 %v7907_v53, %v7615_v45 }
 0x808   : > { %v12982_v42 = vpop.eup %8844  ;;  %v12985_v22 = vsub.f32 %v12855_v10, %v5456_v25  ;;  %v7638_v25 = vor.u32 %v7914_v13, %v7637_v2  ;;  %v9017_v13 = vld [vmem:[#allocation10 + $0x78] sm:$0xff] }
 0x809   : > { %v12987_v15 = vadd.f32 1e-05, %v5530_v55  ;;  %v5565_v32 = vmul.f32 %v12950_v20, %v5564_v63  ;;  %v5571_v43 = vmul.f32 %v12982_v42, %v12955_v61  ;;  %v7642_v55 = vor.u32 %v7912_v16, %v7639_v28  ;;  %6044 = vmatpush.bf16.msrb.mxu0 %v7634_v33 }
 0x80a   : > { %v5488_v60 = vmul.f32 %v12985_v22, %v12985_v22  ;;  %vm5577_vm5 = vweird.f32 %v12982_v42  ;;  %6093 = vmatpush.bf16.msrb.mxu1 %v7638_v25 }
 0x80b   : > { %8846 = vrsqrt.f32 %v12987_v15  ;;  %v5572_v57 = vmul.f32 %v12982_v42, %v5571_v43  ;;  %v5569_v50 = vsel %vm13008_vm3, %v12950_v20, %v5565_v32  ;;  %v7910_v20 = vld [vmem:[%s12911_s9 + $0x14] sm:$0xf0]  ;;  %v13030_v32 = vld [vmem:[%s12826_s24] ss:$0 sm:$0xff]  ;;  %6142 = vmatpush.bf16.msrb.mxu2 %v7642_v55  ;;  %vm5578_vm6 = vmor %vm5576_vm12, %vm5577_vm5  ;;  %vm5586_vm13 = vweird.f32 %v12987_v15  ;;  %s9226_s9 = smov 8  }
 0x80c   : > { %5512 = vadd.xlane.f32.xlu2 %v5488_v60  ;;  %v5720_v43 = vmul.f32 %v5569_v50, %v12836_v49  ;;  %v7622_v2 = vor.u32 %v7910_v20, %v7621_v31  ;;  %v13042_v49 = vadd.f32 %v9017_v13, %v5394_v3 }
 0x80d   : > { %v5573_v41 = vmul.f32 0.5, %v5572_v57  ;;  %6045 = vmatpush.bf16.msrb.mxu0 %v7618_v56 }
 0x80e   : > { %v5503_v37 = vpop.xlane.xlu0 %5502  ;;  %v5435_v6 = vpop.xlane.xlu2 %5434  ;;  %14553 = vst [vmem:[#allocation23_spill] sm:$0xff] %v13042_v49  ;;  %v5739_v28 = vmul.f32 %v13030_v32, %v5720_v43  ;;  %6094 = vmatpush.bf16.msrb.mxu1 %v7622_v2 }
 0x80f   : > { %v5531_v63 = vmul.f32 %v5503_v37, %v14542_v7  ;;  %v5457_v27 = vmul.f32 %v5435_v6, %v14542_v7  ;;  %v5574_v5 = vsub.f32 1.5, %v5573_v41  ;;  %6143 = vmatpush.bf16.msrb.mxu2 %v7626_v48 }
 0x810   : > { %v5758_v25 = vadd.f32 %v13052_v24, %v5739_v28 }
 0x811   : > { %v13027_v30 = vpop.eup %8846  ;;  %v13033_v38 = vadd.f32 1e-05, %v5531_v63  ;;  %v13036_v19 = vsub.f32 %v12865_v35, %v5457_v27  ;;  %v5575_v54 = vmul.f32 %v12982_v42, %v5574_v5 }
 0x812   : > { %v5581_v60 = vmul.f32 %v13027_v30, %v12987_v15  ;;  %vm5587_vm9 = vweird.f32 %v13027_v30 }
 0x813   : > { %8848 = vrsqrt.f32 %v13033_v38  ;;  %v5489_v16 = vmul.f32 %v13036_v19, %v13036_v19  ;;  %v5579_v61 = vsel %vm5578_vm6, %v12982_v42, %v5575_v54  ;;  %vm5588_vm15 = vmor %vm5586_vm13, %vm5587_vm9  ;;  %vm5596_vm0 = vweird.f32 %v13033_v38 }
 0x814   : > { %v5582_v57 = vmul.f32 %v13027_v30, %v5581_v60  ;;  %v5721_v11 = vmul.f32 %v5579_v61, %v12843_v47  ;;  %5446 = vadd.xlane.f32.xlu2 %v13042_v49 }
 0x815   : > { %5514 = vadd.xlane.f32.xlu0 %v5489_v16 }
 0x816   : > { %v5583_v33 = vmul.f32 0.5, %v5582_v57  ;;  %v5505_v40 = vpop.xlane.xlu0 %5504  ;;  %v5437_v58 = vpop.xlane.xlu2 %5436  ;;  %v5740_v50 = vmul.f32 %v13030_v32, %v5721_v11 }
 0x817   : > { %v5532_v42 = vmul.f32 %v5505_v40, %v14542_v7  ;;  %v5458_v41 = vmul.f32 %v5437_v58, %v14542_v7 }
 0x818   : > { %v5584_v37 = vsub.f32 1.5, %v5583_v33  ;;  %v5759_v47 = vadd.f32 %v13052_v24, %v5740_v50 }
 0x819   : > { %v8849_v6 = vpop.eup %8848  ;;  %v5548_v55 = vadd.f32 1e-05, %v5532_v42  ;;  %v13063_v53 = vsub.f32 %v12875_v0, %v5458_v41 }
 0x81a   : > { %v5585_v45 = vmul.f32 %v13027_v30, %v5584_v37  ;;  %v5591_v3 = vmul.f32 %v8849_v6, %v13033_v38  ;;  %v5774_v63 = vpack.c.bf16 %v5759_v47, %v5758_v25  ;;  %vm5597_vm14 = vweird.f32 %v8849_v6 }
 0x81b   : > { %8850 = vrsqrt.f32 %v5548_v55  ;;  %v5490_v27 = vmul.f32 %v13063_v53, %v13063_v53  ;;  %vm5598_vm4 = vmor %vm5596_vm0, %vm5597_vm14  ;;  %vm5606_vm8 = vweird.f32 %v5548_v55 }
 0x81c   : > { %v5592_v31 = vmul.f32 %v8849_v6, %v5591_v3  ;;  %5997 = vmatmul.bf16.vlgmr.msra.gmra.mxu3 %v5774_v63  ;;  %6046 = vmatmul.bf16.vlgmr.msrb.gmra.mxu0 %v5774_v63  ;;  %v5589_v20 = vsel %vm5588_vm15, %v13027_v30, %v5585_v45 }
 0x81d   : > { %6095 = vmatmul.bf16.vlgmr.msrb.gmra.mxu1 %v5774_v63  ;;  %6144 = vmatmul.bf16.vlgmr.msrb.gmra.mxu2 %v5774_v63  ;;  %v5722_v15 = vmul.f32 %v5589_v20, %v12853_v4 }
 0x81e   : > { %v5593_v5 = vmul.f32 0.5, %v5592_v31  ;;  %v5507_v12 = vpop.xlane.xlu1 %5506  ;;  %v5439_v14 = vpop.xlane.xlu0 %5438  ;;  %5516 = vadd.xlane.f32.xlu0 %v5490_v27 }
 0x81f   : > { %v5533_v36 = vmul.f32 %v5507_v12, %v14542_v7  ;;  %v5459_v43 = vmul.f32 %v5439_v14, %v14542_v7  ;;  %v5741_v28 = vmul.f32 %v13030_v32, %v5722_v15 }
 0x820   : > { %v5594_v56 = vsub.f32 1.5, %v5593_v5 }
 0x821   : > { %v8851_v54 = vpop.eup %8850  ;;  %v5549_v60 = vadd.f32 1e-05, %v5533_v36  ;;  %v13076_v2 = vsub.f32 %v12885_v23, %v5459_v43  ;;  %v5760_v50 = vadd.f32 %v13052_v24, %v5741_v28 }
 0x822   : > { %v5595_v30 = vmul.f32 %v8849_v6, %v5594_v56  ;;  %v5601_v13 = vmul.f32 %v8851_v54, %v5548_v55  ;;  %vm5607_vm7 = vweird.f32 %v8851_v54 }
 0x823   : > { %8852 = vrsqrt.f32 %v5549_v60  ;;  %v5491_v16 = vmul.f32 %v13076_v2, %v13076_v2  ;;  %vm5608_vm11 = vmor %vm5606_vm8, %vm5607_vm7  ;;  %vm5616_vm1 = vweird.f32 %v5549_v60 }
 0x824   : > { %v5599_v48 = vsel %vm5598_vm4, %v8849_v6, %v5595_v30  ;;  %v5602_v61 = vmul.f32 %v8851_v54, %v5601_v13 }
 0x825   : > { %v5723_v57 = vmul.f32 %v5599_v48, %v12863_v17  ;;  %5518 = vadd.xlane.f32.xlu1 %v5491_v16 }
 0x826   : > { %v5603_v4 = vmul.f32 0.5, %v5602_v61  ;;  %v5441_v11 = vpop.xlane.xlu0 %5440 }
 0x827   : > { %v5742_v33 = vmul.f32 %v13030_v32, %v5723_v57  ;;  %v5460_v40 = vmul.f32 %v5441_v11, %v14542_v7 }
 0x828   : > { %v5604_v38 = vsub.f32 1.5, %v5603_v4 }
 0x829   : > { %v8853_v58 = vpop.eup %8852  ;;  %v5761_v42 = vadd.f32 %v13052_v24, %v5742_v33  ;;  %v13088_v41 = vsub.f32 %v12891_v21, %v5460_v40 }
 0x82a   : > { %v5605_v37 = vmul.f32 %v8851_v54, %v5604_v38  ;;  %v5611_v17 = vmul.f32 %v8853_v58, %v5549_v60  ;;  %vm5617_vm10 = vweird.f32 %v8853_v58 }
 0x82b   : > { %v5775_v6 = vpack.c.bf16 %v5761_v42, %v5760_v50  ;;  %v5492_v25 = vmul.f32 %v13088_v41, %v13088_v41  ;;  %vm5618_vm2 = vmor %vm5616_vm1, %vm5617_vm10 }
 0x82c   : > { %v5612_v47 = vmul.f32 %v8853_v58, %v5611_v17  ;;  %v5609_v45 = vsel %vm5608_vm11, %v8851_v54, %v5605_v37 }
 0x82d   : > { %6002 = vmatmul.bf16.gmra.mxu3 %v5775_v6  ;;  %6051 = vmatmul.bf16.gmra.mxu0 %v5775_v6  ;;  %v5724_v27 = vmul.f32 %v5609_v45, %v12873_v18 }
 0x82e   : > { %v5613_v3 = vmul.f32 0.5, %v5612_v47  ;;  %6100 = vmatmul.bf16.gmra.mxu1 %v5775_v6  ;;  %6149 = vmatmul.bf16.gmra.mxu2 %v5775_v6 }
 0x82f   : > { %5520 = vadd.xlane.f32.xlu2 %v5492_v25  ;;  %v5743_v55 = vmul.f32 %v13030_v32, %v5724_v27 }
 0x830   : > { %v5614_v63 = vsub.f32 1.5, %v5613_v3 }
 0x831   : > { %v5762_v14 = vadd.f32 %v13052_v24, %v5743_v55 }
 0x832   : > { %v5615_v31 = vmul.f32 %v8853_v58, %v5614_v63 }
 0x834   : > { %v5619_v20 = vsel %vm5618_vm2, %v8853_v58, %v5615_v31 }
 0x835   : > { %v5725_v5 = vmul.f32 %v5619_v20, %v12883_v39 }
 0x837   : > { %v5744_v12 = vmul.f32 %v13030_v32, %v5725_v5  ;;  %v5509_v56 = vpop.xlane.xlu1 %5508 }
 0x838   : > { %v5534_v48 = vmul.f32 %v5509_v56, %v14542_v7 }
 0x839   : > { %v5763_v36 = vadd.f32 %v13052_v24, %v5744_v12 }
 0x83a   : > { %v5550_v61 = vadd.f32 1e-05, %v5534_v48 }
 0x83b   : > { %v5776_v43 = vpack.c.bf16 %v5763_v36, %v5762_v14 }
 0x83c   : > { %8854 = vrsqrt.f32 %v5550_v61  ;;  %vm5626_vm5 = vweird.f32 %v5550_v61 }
 0x83d   : > { %6007 = vmatmul.bf16.gmra.mxu3 %v5776_v43  ;;  %6056 = vmatmul.bf16.gmra.mxu0 %v5776_v43 }
 0x83e   : > { %6105 = vmatmul.bf16.gmra.mxu1 %v5776_v43  ;;  %6154 = vmatmul.bf16.gmra.mxu2 %v5776_v43 }
 0x83f   : > { %v5443_v18 = vpop.xlane.xlu1 %5442 }
 0x840   : > { %v5461_v54 = vmul.f32 %v5443_v18, %v14542_v7 }
 0x842   : > { %v13100_v15 = vsub.f32 %v12901_v9, %v5461_v54  ;;  %v8855_v57 = vpop.eup %8854 }
 0x843   : > { %v5621_v28 = vmul.f32 %v8855_v57, %v5550_v61  ;;  %vm5627_vm3 = vweird.f32 %v8855_v57 }
 0x844   : > { %v5493_v39 = vmul.f32 %v13100_v15, %v13100_v15  ;;  %vm5628_vm12 = vmor %vm5626_vm5, %vm5627_vm3 }
 0x845   : > { %v5622_v4 = vmul.f32 %v8855_v57, %v5621_v28 }
 0x846   : > { %5522 = vadd.xlane.f32.xlu0 %v5493_v39 }
 0x847   : > { %v5445_v60 = vpop.xlane.xlu1 %5444  ;;  %v5623_v38 = vmul.f32 0.5, %v5622_v4 }
 0x848   : > { %v5462_v30 = vmul.f32 %v5445_v60, %v14542_v7 }
 0x849   : > { %v5624_v58 = vsub.f32 1.5, %v5623_v38 }
 0x84a   : > { %v13106_v13 = vsub.f32 %v12905_v59, %v5462_v30 }
 0x84b   : > { %v5625_v6 = vmul.f32 %v8855_v57, %v5624_v58 }
 0x84c   : > { %v5494_v16 = vmul.f32 %v13106_v13, %v13106_v13 }
 0x84d   : > { %v5629_v45 = vsel %vm5628_vm12, %v8855_v57, %v5625_v6 }
 0x84e   : > { %5524 = vadd.xlane.f32.xlu1 %v5494_v16  ;;  %v5726_v12 = vmul.f32 %v5629_v45, %v12896_v1 }
 0x850   : > { %v5745_v60 = vmul.f32 %v13030_v32, %v5726_v12 }
 0x852   : > { %v5764_v61 = vadd.f32 %v13052_v24, %v5745_v60 }
 0x877   : > { %v5511_v11 = vpop.xlane.xlu2 %5510 }
 0x878   : > { %v5535_v33 = vmul.f32 %v5511_v11, %v14542_v7 }
 0x87a   : > { %v5551_v40 = vadd.f32 1e-05, %v5535_v33 }
 0x87c   : > { %8856 = vrsqrt.f32 %v5551_v40  ;;  %vm5636_vm9 = vweird.f32 %v5551_v40 }
 0x87f   : > { %v5513_v50 = vpop.xlane.xlu2 %5512 }
 0x880   : > { %v5536_v42 = vmul.f32 %v5513_v50, %v14542_v7 }
 0x882   : > { %v8857_v37 = vpop.eup %8856  ;;  %v5552_v17 = vadd.f32 1e-05, %v5536_v42 }
 0x883   : > { %v5631_v25 = vmul.f32 %v8857_v37, %v5551_v40  ;;  %vm5637_vm6 = vweird.f32 %v8857_v37 }
 0x884   : > { %8858 = vrsqrt.f32 %v5552_v17  ;;  %vm5638_vm13 = vmor %vm5636_vm9, %vm5637_vm6  ;;  %vm5646_vm0 = vweird.f32 %v5552_v17 }
 0x885   : > { %v5632_v47 = vmul.f32 %v8857_v37, %v5631_v25 }
 0x887   : > { %v5633_v3 = vmul.f32 0.5, %v5632_v47  ;;  %v5447_v27 = vpop.xlane.xlu2 %5446 }
 0x888   : > { %v5515_v63 = vpop.xlane.xlu0 %5514  ;;  %v5463_v20 = vmul.f32 %v5447_v27, %v14542_v7 }
 0x889   : > { %v5537_v31 = vmul.f32 %v5515_v63, %v14542_v7  ;;  %v5634_v5 = vsub.f32 1.5, %v5633_v3 }
 0x88a   : > { %v8859_v55 = vpop.eup %8858  ;;  %v13117_v36 = vsub.f32 %v13042_v49, %v5463_v20 }
 0x88b   : > { %v5553_v14 = vadd.f32 1e-05, %v5537_v31  ;;  %v5635_v43 = vmul.f32 %v8857_v37, %v5634_v5  ;;  %v5641_v56 = vmul.f32 %v8859_v55, %v5552_v17  ;;  %vm5647_vm15 = vweird.f32 %v8859_v55 }
 0x88c   : > { %v5495_v18 = vmul.f32 %v13117_v36, %v13117_v36  ;;  %vm5648_vm4 = vmor %vm5646_vm0, %vm5647_vm15 }
 0x88d   : > { %8860 = vrsqrt.f32 %v5553_v14  ;;  %v5639_v54 = vsel %vm5638_vm13, %v8857_v37, %v5635_v43  ;;  %v5642_v30 = vmul.f32 %v8859_v55, %v5641_v56  ;;  %vm5656_vm7 = vweird.f32 %v5553_v14 }
 0x88e   : > { %v5727_v39 = vmul.f32 %v5639_v54, %v12953_v29  ;;  %5526 = vadd.xlane.f32.xlu2 %v5495_v18 }
 0x88f   : > { %v5643_v4 = vmul.f32 0.5, %v5642_v30 }
 0x890   : > { %v5746_v1 = vmul.f32 %v13030_v32, %v5727_v39 }
 0x891   : > { %v5517_v16 = vpop.xlane.xlu0 %5516  ;;  %v5644_v29 = vsub.f32 1.5, %v5643_v4 }
 0x892   : > { %v5765_v57 = vadd.f32 %v13052_v24, %v5746_v1  ;;  %v5538_v28 = vmul.f32 %v5517_v16, %v14542_v7 }
 0x893   : > { %v8861_v48 = vpop.eup %8860  ;;  %v5645_v25 = vmul.f32 %v8859_v55, %v5644_v29 }
 0x894   : > { %v5651_v11 = vmul.f32 %v8861_v48, %v5553_v14  ;;  %v5777_v33 = vpack.c.bf16 %v5765_v57, %v5764_v61  ;;  %v5554_v40 = vadd.f32 1e-05, %v5538_v28  ;;  %vm5657_vm14 = vweird.f32 %v8861_v48 }
 0x895   : > { %vm5658_vm8 = vmor %vm5656_vm7, %vm5657_vm14  ;;  %v5649_v63 = vsel %vm5648_vm4, %v8859_v55, %v5645_v25 }
 0x896   : > { %v5652_v38 = vmul.f32 %v8861_v48, %v5651_v11  ;;  %6012 = vmatmul.bf16.gmra.mxu3 %v5777_v33  ;;  %6061 = vmatmul.bf16.gmra.mxu0 %v5777_v33  ;;  %8862 = vrsqrt.f32 %v5554_v40  ;;  %v5728_v5 = vmul.f32 %v5649_v63, %v12985_v22  ;;  %vm5666_vm1 = vweird.f32 %v5554_v40 }
 0x897   : > { %6110 = vmatmul.bf16.gmra.mxu1 %v5777_v33  ;;  %6159 = vmatmul.bf16.gmra.mxu2 %v5777_v33 }
 0x898   : > { %v5653_v58 = vmul.f32 0.5, %v5652_v38  ;;  %v5519_v50 = vpop.xlane.xlu1 %5518  ;;  %v5747_v54 = vmul.f32 %v13030_v32, %v5728_v5 }
 0x899   : > { %v5539_v42 = vmul.f32 %v5519_v50, %v14542_v7 }
 0x89a   : > { %v5654_v37 = vsub.f32 1.5, %v5653_v58  ;;  %v5766_v30 = vadd.f32 %v13052_v24, %v5747_v54 }
 0x89b   : > { %v5555_v6 = vadd.f32 1e-05, %v5539_v42 }
 0x89c   : > { %v5655_v47 = vmul.f32 %v8861_v48, %v5654_v37  ;;  %v8863_v45 = vpop.eup %8862 }
 0x89d   : > { %8864 = vrsqrt.f32 %v5555_v6  ;;  %v5661_v3 = vmul.f32 %v8863_v45, %v5554_v40  ;;  %vm5667_vm11 = vweird.f32 %v8863_v45  ;;  %vm5676_vm3 = vweird.f32 %v5555_v6 }
 0x89e   : > { %v5659_v27 = vsel %vm5658_vm8, %v8861_v48, %v5655_v47  ;;  %vm5668_vm2 = vmor %vm5666_vm1, %vm5667_vm11 }
 0x89f   : > { %v5662_v31 = vmul.f32 %v8863_v45, %v5661_v3  ;;  %v5729_v12 = vmul.f32 %v5659_v27, %v13036_v19 }
 0x8a1   : > { %v5663_v56 = vmul.f32 0.5, %v5662_v31  ;;  %v5748_v17 = vmul.f32 %v13030_v32, %v5729_v12 }
 0x8a2   : > { %v5521_v16 = vpop.xlane.xlu2 %5520 }
 0x8a3   : > { %v8865_v20 = vpop.eup %8864  ;;  %v5664_v60 = vsub.f32 1.5, %v5663_v56  ;;  %v5767_v55 = vadd.f32 %v13052_v24, %v5748_v17  ;;  %v5540_v19 = vmul.f32 %v5521_v16, %v14542_v7  ;;  %v6047_v17 = vpop.f32.mrf.mxu0  ;;  %v5819_v16 = vld [vmem:[%s5818_s15] sm:$0xf] }
 0x8a4   : > { %v5671_v43 = vmul.f32 %v8865_v20, %v5555_v6  ;;  %vm5677_vm10 = vweird.f32 %v8865_v20 }
 0x8a5   : > { %v5778_v1 = vpack.c.bf16 %v5767_v55, %v5766_v30  ;;  %v5665_v22 = vmul.f32 %v8863_v45, %v5664_v60  ;;  %vm5678_vm5 = vmor %vm5676_vm3, %vm5677_vm10  ;;  %v5556_v28 = vadd.f32 1e-05, %v5540_v19  ;;  %v6096_v60 = vpop.f32.mrf.mxu1  ;;  %v6145_v30 = vpop.f32.mrf.mxu2  ;;  %v13156_v19 = vperm.slane %v5819_v16, 0 }
 0x8a6   : > { %v5672_v18 = vmul.f32 %v8865_v20, %v5671_v43 }
 0x8a7   : > { %6017 = vmatmul.bf16.gmra.mxu3 %v5778_v1  ;;  %6066 = vmatmul.bf16.gmra.mxu0 %v5778_v1  ;;  %v5669_v61 = vsel %vm5668_vm2, %v8863_v45, %v5665_v22  ;;  %8866 = vrsqrt.f32 %v5556_v28  ;;  %vm5686_vm6 = vweird.f32 %v5556_v28  ;;  %v13154_v22 = vperm.slane %v5819_v16, 2 }
 0x8a8   : > { %v5673_v39 = vmul.f32 0.5, %v5672_v18  ;;  %6115 = vmatmul.bf16.gmra.mxu1 %v5778_v1  ;;  %6164 = vmatmul.bf16.gmra.mxu2 %v5778_v1  ;;  %v5730_v4 = vmul.f32 %v5669_v61, %v13063_v53 }
 0x8aa   : > { %v5674_v14 = vsub.f32 1.5, %v5673_v39  ;;  %v5749_v33 = vmul.f32 %v13030_v32, %v5730_v4 }
 0x8ac   : > { %v5675_v48 = vmul.f32 %v8865_v20, %v5674_v14  ;;  %v5768_v58 = vadd.f32 %v13052_v24, %v5749_v33  ;;  %v5998_v14 = vpop.f32.mrf.mxu3 }
 0x8ad   : > { %v8867_v38 = vpop.eup %8866  ;;  %v6098_v61 = vpop.f32.mrf.mxu1 }
 0x8ae   : > { %v5679_v57 = vsel %vm5678_vm5, %v8865_v20, %v5675_v48  ;;  %v5681_v29 = vmul.f32 %v8867_v38, %v5556_v28  ;;  %vm5687_vm12 = vweird.f32 %v8867_v38  ;;  %v6049_v48 = vpop.f32.mrf.mxu0  ;;  %v13158_v28 = vperm.slane %v5819_v16, 3  ;;  %v6147_v4 = vpop.f32.mrf.mxu2 }
 0x8af   : > { %v5731_v11 = vmul.f32 %v5679_v57, %v13076_v2  ;;  %vm5688_vm9 = vmor %vm5686_vm6, %vm5687_vm12 }
 0x8b0   : > { %v5682_v42 = vmul.f32 %v8867_v38, %v5681_v29  ;;  %v13170_v29 = vadd.f32 %v6145_v30, %v13158_v28 }
 0x8b1   : > { %v5750_v40 = vmul.f32 %v13030_v32, %v5731_v11 }
 0x8b2   : > { %v5683_v2 = vmul.f32 0.5, %v5682_v42 }
 0x8b3   : > { %v5769_v50 = vadd.f32 %v13052_v24, %v5750_v40  ;;  %v13164_v40 = vadd.f32 %v6096_v60, %v13154_v22 }
 0x8b4   : > { %v5684_v47 = vsub.f32 1.5, %v5683_v2  ;;  %v6000_v57 = vpop.f32.mrf.mxu3 }
 0x8b5   : > { %v5779_v37 = vpack.c.bf16 %v5769_v50, %v5768_v58  ;;  %v6251_v42 = vmul.f32 0.044715, %v13164_v40 }
 0x8b6   : > { %v5685_v3 = vmul.f32 %v8867_v38, %v5684_v47  ;;  %v13182_v47 = vpop.f32.mrf.mxu1 }
 0x8b7   : > { %6022 = vmatmul.bf16.gmra.mxu3 %v5779_v37  ;;  %6071 = vmatmul.bf16.gmra.mxu0 %v5779_v37 }
 0x8b8   : > { %6120 = vmatmul.bf16.gmra.mxu1 %v5779_v37  ;;  %6169 = vmatmul.bf16.gmra.mxu2 %v5779_v37  ;;  %v5689_v31 = vsel %vm5688_vm9, %v8867_v38, %v5685_v3  ;;  %v13167_v38 = vadd.f32 %v5998_v14, %v13156_v19  ;;  %v6315_v3 = vmul.f32 %v6251_v42, %v13164_v40 }
 0x8b9   : > { %v5523_v6 = vpop.xlane.xlu0 %5522  ;;  %v5732_v12 = vmul.f32 %v5689_v31, %v13088_v41 }
 0x8ba   : > { %v5541_v25 = vmul.f32 %v5523_v6, %v14542_v7  ;;  %v6249_v37 = vmul.f32 0.044715, %v13167_v38  ;;  %v6252_v6 = vmul.f32 0.044715, %v13170_v29 }
 0x8bb   : > { %v5751_v54 = vmul.f32 %v13030_v32, %v5732_v12 }
 0x8bc   : > { %v5557_v53 = vadd.f32 1e-05, %v5541_v25  ;;  %v13177_v25 = vpop.f32.mrf.mxu0  ;;  %v6313_v31 = vmul.f32 %v6249_v37, %v13167_v38  ;;  %v7955_v37 = vld [vmem:[%s13230_s16 + $0x78] sm:$0xff] }
 0x8bd   : > { %v5770_v55 = vadd.f32 %v13052_v24, %v5751_v54  ;;  %7105 = vmatpush.bf16.msra.mxu0 %v7955_v37 }
 0x8be   : > { %8868 = vrsqrt.f32 %v5557_v53  ;;  %vm5696_vm15 = vweird.f32 %v5557_v53 }
 0x8c1   : > { %v5525_v33 = vpop.xlane.xlu1 %5524 }
 0x8c2   : > { %v5542_v58 = vmul.f32 %v5525_v33, %v14542_v7 }
 0x8c4   : > { %v8869_v45 = vpop.eup %8868 }
 0x8c5   : > { %v5691_v63 = vmul.f32 %v8869_v45, %v5557_v53  ;;  %vm5697_vm13 = vweird.f32 %v8869_v45  ;;  %v13179_v53 = vadd.f32 1e-05, %v5542_v58 }
 0x8c6   : > { %vm5698_vm14 = vmor %vm5696_vm15, %vm5697_vm13 }
 0x8c7   : > { %v5692_v27 = vmul.f32 %v8869_v45, %v5691_v63  ;;  %8870 = vrsqrt.f32 %v13179_v53  ;;  %vm5706_vm4 = vweird.f32 %v13179_v53 }
 0x8c9   : > { %v5693_v20 = vmul.f32 0.5, %v5692_v27  ;;  %v13190_v27 = vpop.f32.mrf.mxu2 }
 0x8cb   : > { %v5694_v5 = vsub.f32 1.5, %v5693_v20  ;;  %v6316_v20 = vmul.f32 %v6252_v6, %v13170_v29  ;;  %v7963_v6 = vld [vmem:[%s13230_s16 + $0xb8] sm:$0xff] }
 0x8cc   : > { %7154 = vmatpush.bf16.msra.mxu1 %v7963_v6  ;;  %v7961_v6 = vld [vmem:[%s13230_s16 + $0xa8] sm:$0xff] }
 0x8cd   : > { %v5695_v43 = vmul.f32 %v8869_v45, %v5694_v5  ;;  %v13195_v5 = vadd.f32 %v6098_v61, %v13154_v22  ;;  %v6380_v54 = vmul.f32 %v6316_v20, %v13170_v29  ;;  %v13205_v60 = vpop.eup %8870  ;;  %v7971_v20 = vld [vmem:[%s13230_s16 + $0xf8] sm:$0xff] }
 0x8ce   : > { %7203 = vmatpush.bf16.msra.mxu2 %v7971_v20  ;;  %vm5707_vm0 = vweird.f32 %v13205_v60 }
 0x8cf   : > { %v5699_v56 = vsel %vm5698_vm14, %v8869_v45, %v5695_v43  ;;  %v13184_v45 = vpop.f32.mrf.mxu3  ;;  %v6379_v43 = vmul.f32 %v6315_v3, %v13164_v40  ;;  %v6444_v33 = vadd.f32 %v6380_v54, %v13170_v29  ;;  %v13290_v9 = vmul.f32 0.5, %v13195_v5  ;;  %vm13369_vm7 = vmor %vm5706_vm4, %vm5707_vm0 }
 0x8d0   : > { %v5733_v18 = vmul.f32 %v5699_v56, %v13100_v15  ;;  %v13152_v15 = vperm.slane %v5819_v16, 1  ;;  %v13216_v16 = vadd.f32 %v6147_v4, %v13158_v28  ;;  %v7947_v4 = vld [vmem:[%s13230_s16 + $0x38] sm:$0xff] }
 0x8d1   : > { %v6443_v14 = vadd.f32 %v6379_v43, %v13164_v40  ;;  %7056 = vmatpush.bf16.msrb.mxu3 %v7947_v4  ;;  %v6508_v54 = vmul.f32 0.7978846, %v6444_v33 }
 0x8d2   : > { %v5752_v39 = vmul.f32 %v13030_v32, %v5733_v18  ;;  %v13161_v11 = vadd.f32 %v6047_v17, %v13152_v15  ;;  %v13188_v63 = vadd.f32 %v6049_v48, %v13152_v15  ;;  %v6377_v18 = vmul.f32 %v6313_v31, %v13167_v38  ;;  %v13218_v48 = vpop.f32.mrf.mxu1 }
 0x8d3   : > { %v6255_v17 = vmul.f32 0.044715, %v13195_v5  ;;  %v6256_v43 = vmul.f32 0.044715, %v13216_v16 }
 0x8d4   : > { %v5771_v1 = vadd.f32 %v13052_v24, %v5752_v39  ;;  %v6250_v50 = vmul.f32 0.044715, %v13161_v11  ;;  %v6254_v56 = vmul.f32 0.044715, %v13188_v63  ;;  %v13287_v59 = vmul.f32 0.5, %v13188_v63 }
 0x8d5   : > { %v6319_v58 = vmul.f32 %v6255_v17, %v13195_v5  ;;  %v6320_v33 = vmul.f32 %v6256_v43, %v13216_v16  ;;  %v7969_v43 = vld [vmem:[%s13230_s16 + $0xe8] sm:$0xff] }
 0x8d6   : > { %v5780_v41 = vpack.c.bf16 %v5771_v1, %v5770_v55  ;;  %v6314_v2 = vmul.f32 %v6250_v50, %v13161_v11  ;;  %v6318_v30 = vmul.f32 %v6254_v56, %v13188_v63  ;;  %v13210_v55 = vadd.f32 %v6000_v57, %v13156_v19  ;;  %v13212_v1 = vpop.f32.mrf.mxu0  ;;  %v13224_v50 = vpop.f32.mrf.mxu2  ;;  %v7946_v56 = vld [vmem:[%s13230_s16 + $0x30] sm:$0xff] }
 0x8d7   : > { %v13220_v61 = vpop.f32.mrf.mxu3  ;;  %v5701_v57 = vmul.f32 %v13205_v60, %v13179_v53  ;;  %v6383_v17 = vmul.f32 %v6319_v58, %v13195_v5  ;;  %7057 = vmatpush.bf16.msrb.mxu3 %v7946_v56  ;;  %v13267_v56 = vmul.f32 0.5, %v13164_v40  ;;  %v6384_v40 = vmul.f32 %v6320_v33, %v13216_v16  ;;  %v7960_v33 = vld [vmem:[%s13230_s16 + $0xa0] sm:$0xff] }
 0x8d8   : > { %6027 = vmatmul.bf16.gmra.mxu3 %v5780_v41  ;;  %6076 = vmatmul.bf16.gmra.mxu0 %v5780_v41  ;;  %v6378_v12 = vmul.f32 %v6314_v2, %v13161_v11  ;;  %v6507_v2 = vmul.f32 0.7978846, %v6443_v14  ;;  %v6382_v3 = vmul.f32 %v6318_v30, %v13188_v63  ;;  %v6253_v31 = vmul.f32 0.044715, %v13210_v55  ;;  %v7970_v14 = vld [vmem:[%s13230_s16 + $0xf0] sm:$0xff] }
 0x8d9   : > { %6125 = vmatmul.bf16.gmra.mxu1 %v5780_v41  ;;  %6174 = vmatmul.bf16.gmra.mxu2 %v5780_v41  ;;  %v6441_v41 = vadd.f32 %v6377_v18, %v13167_v38  ;;  %v7954_v18 = vld [vmem:[%s13230_s16 + $0x70] sm:$0xff]  ;;  %v5702_v30 = vmul.f32 %v13205_v60, %v5701_v57  ;;  %v6447_v58 = vadd.f32 %v6383_v17, %v13195_v5  ;;  %v7953_v57 = vld [vmem:[%s13230_s16 + $0x68] sm:$0xff] }
 0x8da   : > { %v6442_v39 = vadd.f32 %v6378_v12, %v13161_v11  ;;  %v6317_v4 = vmul.f32 %v6253_v31, %v13210_v55  ;;  %7106 = vmatpush.bf16.msra.mxu0 %v7954_v18  ;;  %7204 = vmatpush.bf16.msra.mxu2 %v7970_v14  ;;  %v13261_v31 = vpop.f32.mrf.mxu1  ;;  %v13277_v14 = vmul.f32 0.5, %v13167_v38 }
 0x8db   : > { %v6505_v12 = vmul.f32 0.7978846, %v6441_v41  ;;  %v6446_v41 = vadd.f32 %v6382_v3, %v13188_v63  ;;  %v13259_v3 = vadd.f32 %v13177_v25, %v13152_v15  ;;  %v6511_v38 = vmul.f32 0.7978846, %v6447_v58 }
 0x8dc   : > { %v6506_v42 = vmul.f32 0.7978846, %v6442_v39  ;;  %v7962_v39 = vld [vmem:[%s13230_s16 + $0xb0] sm:$0xff] }
 0x8dd   : > { %7155 = vmatpush.bf16.msra.mxu1 %v7962_v39  ;;  %v6510_v18 = vmul.f32 0.7978846, %v6446_v41 }
 0x8de   : > { %8872 = vtanh.f32 %v6506_v42  ;;  %v13249_v37 = vpop.f32.mrf.mxu0  ;;  %v7945_v42 = vld [vmem:[%s13230_s16 + $0x28] sm:$0xff]  ;;  %v13274_v25 = vpop.f32.mrf.mxu2  ;;  %7107 = vmatpush.bf16.msra.mxu0 %v7953_v57  ;;  %7205 = vmatpush.bf16.msra.mxu2 %v7969_v43  ;;  %v13299_v57 = vmul.f32 0.5, %v13210_v55  ;;  %v13311_v43 = vmul.f32 0.5, %v13216_v16 }
 0x8df   : > { %8874 = vtanh.f32 %v6507_v2  ;;  %v13255_v2 = vmul.f32 0.5, %v13161_v11  ;;  %v13263_v20 = vpop.f32.mrf.mxu3  ;;  %v13272_v11 = vadd.f32 %v13182_v47, %v13154_v22  ;;  %7058 = vmatpush.bf16.msrb.mxu3 %v7945_v42  ;;  %v7944_v47 = vld [vmem:[%s13230_s16 + $0x20] sm:$0xff] }
 0x8e0   : > { %8876 = vtanh.f32 %v6505_v12  ;;  %v5703_v12 = vmul.f32 0.5, %v5702_v30  ;;  %v13280_v30 = vmul.f32 0.5, %v13170_v29  ;;  %v13294_v29 = vadd.f32 %v13184_v45, %v13156_v19  ;;  %14554 = vst [vmem:[#allocation26_spill] sm:$0xff] %v13311_v43 }
 0x8e1   : > { %8878 = vtanh.f32 %v6508_v54  ;;  %v6381_v54 = vmul.f32 %v6317_v4, %v13210_v55  ;;  %v7952_v4 = vld [vmem:[%s13230_s16 + $0x60] sm:$0xff]  ;;  %7156 = vmatpush.bf16.msra.mxu1 %v7961_v6  ;;  %v6259_v58 = vmul.f32 0.044715, %v13272_v11 }
 0x8e2   : > { %v5704_v63 = vsub.f32 1.5, %v5703_v12  ;;  %8880 = vtanh.f32 %v6510_v18  ;;  %v6448_v12 = vadd.f32 %v6384_v40, %v13216_v16  ;;  %7108 = vmatpush.bf16.msra.mxu0 %v7952_v4  ;;  %v13320_v18 = vadd.f32 %v13190_v27, %v13158_v28  ;;  %v7967_v4 = vld [vmem:[%s13230_s16 + $0xd8] sm:$0xff] }
 0x8e3   : > { %v6445_v45 = vadd.f32 %v6381_v54, %v13210_v55  ;;  %7059 = vmatpush.bf16.msrb.mxu3 %v7944_v47  ;;  %v6257_v55 = vmul.f32 0.044715, %v13294_v29  ;;  %v7951_v54 = vld [vmem:[%s13230_s16 + $0x58] sm:$0xff]  ;;  %v13338_v27 = vadd.f32 %v13212_v1, %v13152_v15 }
 0x8e4   : > { %v8873_v39 = vpop.eup %8872  ;;  %v5705_v47 = vmul.f32 %v13205_v60, %v5704_v63  ;;  %v13346_v63 = vadd.f32 %v13220_v61, %v13156_v19  ;;  %v13361_v61 = vadd.f32 %v13249_v37, %v13152_v15  ;;  %v13377_v37 = vadd.f32 %v13263_v20, %v13156_v19 }
 0x8e5   : > { %v8875_v49 = vpop.eup %8874  ;;  %v13304_v23 = vadd.f32 1.0, %v8873_v39  ;;  %7157 = vmatpush.bf16.msra.mxu1 %v7960_v33  ;;  %14555 = vst [vmem:[#allocation20_spill] sm:$0xff] %v13338_v27  ;;  %v13342_v33 = vadd.f32 %v13218_v48, %v13154_v22  ;;  %v13356_v48 = vmul.f32 %v6257_v55, %v13294_v29 }
 0x8e6   : > { %v8877_v42 = vpop.eup %8876  ;;  %v13308_v6 = vadd.f32 1.0, %v8875_v49  ;;  %v7943_v49 = vld [vmem:[%s13230_s16 + $0x18] sm:$0xff]  ;;  %7109 = vmatpush.bf16.msra.mxu0 %v7951_v54  ;;  %v6157_v0 = vpop.f32.mrf.mxu2  ;;  %v5709_v54 = vsel %vm13369_vm7, %v13205_v60, %v5705_v47  ;;  %v6261_v10 = vmul.f32 0.044715, %v13346_v63  ;;  %v6266_v53 = vmul.f32 0.044715, %v13361_v61 }
 0x8e7   : > { %v8879_v5 = vpop.eup %8878  ;;  %v13315_v39 = vadd.f32 1.0, %v8877_v42  ;;  %v13334_v42 = vmul.f32 %v6259_v58, %v13272_v11  ;;  %7060 = vmatpush.bf16.msrb.mxu3 %v7943_v49  ;;  %v6260_v58 = vmul.f32 0.044715, %v13320_v18  ;;  %v13404_v47 = vadd.f32 %v6157_v0, %v13158_v28 }
 0x8e8   : > { %v13325_v16 = vadd.f32 1.0, %v8879_v5  ;;  %v13350_v5 = vadd.f32 %v13224_v50, %v13158_v28  ;;  %v13353_v1 = vpop.eup %8880  ;;  %v13365_v50 = vadd.f32 %v13261_v31, %v13154_v22  ;;  %v13381_v31 = vadd.f32 %v13274_v25, %v13158_v28 }
 0x8e9   : > { %14559 = vst [vmem:[#allocation24_spill] sm:$0xff] %v13404_v47  ;;  %v5734_v46 = vmul.f32 %v5709_v54, %v13106_v13  ;;  %v6265_v52 = vmul.f32 0.044715, %v13377_v37  ;;  %v13414_v34 = vmul.f32 %v6260_v58, %v13320_v18  ;;  %v7942_v13 = vld [vmem:[%s13230_s16 + $0x10] sm:$0xff]  ;;  %v13427_v44 = vmul.f32 %v6261_v10, %v13346_v63 }
 0x8ea   : > { %14558 = vst [vmem:[#allocation25_spill] sm:$0xff] %v13381_v31  ;;  %v6268_v51 = vmul.f32 0.044715, %v13381_v31  ;;  %v7950_v54 = vld [vmem:[%s13230_s16 + $0x50] sm:$0xff]  ;;  %v6272_v58 = vmul.f32 0.044715, %v13404_v47  ;;  %v13438_v10 = vmul.f32 %v6266_v53, %v13361_v61 }
 0x8eb   : > { %14560 = vst [vmem:[#allocation28_spill] sm:$0xff] %v13414_v34  ;;  %v7966_v34 = vld [vmem:[%s13230_s16 + $0xd0] sm:$0xff]  ;;  %7061 = vmatpush.bf16.msrb.mxu3 %v7942_v13  ;;  %7110 = vmatpush.bf16.msra.mxu0 %v7950_v54  ;;  %v7957_v13 = vld [vmem:[%s13230_s16 + $0x88] sm:$0xff] }
 0x8ec   : > { %14562 = vst [vmem:[#allocation36_spill] sm:$0xff] %v13427_v44 }
 0x901   : > { %v5527_v17 = vpop.xlane.xlu2 %5526 }
 0x902   : > { %v5543_v41 = vmul.f32 %v5527_v17, %v14542_v7  ;;  %v7968_v7 = vld [vmem:[%s13230_s16 + $0xe0] sm:$0xff]  ;;  %v6258_v17 = vmul.f32 0.044715, %v13259_v3 }
 0x903   : > { %7206 = vmatpush.bf16.msra.mxu2 %v7968_v7  ;;  %v6059_v7 = vpop.f32.mrf.mxu0 }
 0x904   : > { %v13302_v21 = vadd.f32 1e-05, %v5543_v41  ;;  %v7959_v41 = vld [vmem:[%s13230_s16 + $0x98] sm:$0xff]  ;;  %v13328_v40 = vmul.f32 %v6258_v17, %v13259_v3  ;;  %v6512_v17 = vmul.f32 0.7978846, %v6448_v12  ;;  %v6010_v12 = vpop.f32.mrf.mxu3  ;;  %v13384_v49 = vadd.f32 %v6059_v7, %v13152_v15 }
 0x905   : > { %7158 = vmatpush.bf16.msra.mxu1 %v7959_v41  ;;  %v6262_v41 = vmul.f32 0.044715, %v13338_v27  ;;  %v6264_v7 = vmul.f32 0.044715, %v13350_v5  ;;  %v13401_v60 = vadd.f32 %v6010_v12, %v13156_v19 }
 0x906   : > { %8882 = vrsqrt.f32 %v13302_v21  ;;  %v6270_v12 = vmul.f32 0.044715, %v13384_v49  ;;  %vm5716_vm11 = vweird.f32 %v13302_v21 }
 0x907   : > { %8884 = vtanh.f32 %v6511_v38  ;;  %v6509_v38 = vmul.f32 0.7978846, %v6445_v45  ;;  %v6108_v45 = vpop.f32.mrf.mxu1  ;;  %7207 = vmatpush.bf16.msra.mxu2 %v7967_v4  ;;  %v6263_v4 = vmul.f32 0.044715, %v13342_v33  ;;  %v13417_v0 = vmul.f32 %v6262_v41, %v13338_v27 }
 0x908   : > { %v13394_v20 = vadd.f32 %v6108_v45, %v13154_v22  ;;  %v6267_v45 = vmul.f32 0.044715, %v13365_v50  ;;  %v6269_v43 = vmul.f32 0.044715, %v13401_v60  ;;  %v13433_v41 = vmul.f32 %v6264_v7, %v13350_v5 }
 0x909   : > { %8886 = vtanh.f32 %v6509_v38  ;;  %14561 = vst [vmem:[#allocation49_spill] sm:$0xff] %v13417_v0  ;;  %v13424_v38 = vmul.f32 %v6263_v4, %v13342_v33  ;;  %v5753_v27 = vmul.f32 %v13030_v32, %v5734_v46  ;;  %v13450_v46 = vmul.f32 %v6268_v51, %v13381_v31 }
 0x90a   : > { %v6271_v62 = vmul.f32 0.044715, %v13394_v20  ;;  %8888 = vtanh.f32 %v6512_v17  ;;  %v13441_v4 = vmul.f32 %v6267_v45, %v13365_v50  ;;  %v13455_v53 = vmul.f32 %v6270_v12, %v13384_v49 }
 0x90b   : > { %7208 = vmatpush.bf16.msra.mxu2 %v7966_v34  ;;  %14563 = vst [vmem:[#allocation29_spill] sm:$0xff] %v13450_v46  ;;  %v13461_v34 = vmul.f32 %v6269_v43, %v13401_v60  ;;  %v5772_v12 = vadd.f32 %v13052_v24, %v5753_v27  ;;  %v13477_v43 = vmul.f32 0.5, %v13259_v3  ;;  %v7940_v24 = vld [vmem:[%s13230_s16] sm:$0xff] }
 0x90c   : > { %v13373_v55 = vpop.eup %8882  ;;  %14564 = vst [vmem:[#allocation27_spill] sm:$0xff] %v13455_v53  ;;  %v13458_v45 = vmul.f32 %v6271_v62, %v13394_v20  ;;  %v7941_v62 = vld [vmem:[%s13230_s16 + $0x8] sm:$0xff]  ;;  %v7948_v27 = vld [vmem:[%s13230_s16 + $0x40] sm:$0xff] }
 0x90d   : > { %v13389_v35 = vpop.eup %8884  ;;  %v5711_v25 = vmul.f32 %v13373_v55, %v13302_v21  ;;  %vm5717_vm8 = vweird.f32 %v13373_v55  ;;  %7062 = vmatpush.bf16.msrb.mxu3 %v7941_v62 }
 0x90e   : > { %14565 = vst [vmem:[#allocation35_spill] sm:$0xff] %v13458_v45  ;;  %vm5718_vm10 = vmor %vm5716_vm11, %vm5717_vm8  ;;  %v6639_v31 = vadd.f32 1.0, %v13389_v35  ;;  %v9019_v35 = vld [vmem:[%s12832_s14] ss:$0 sm:$0xff]  ;;  %s14604_s14 = sadd.s32 4294967295, %s14601_s27  }
 0x90f   : > { %v5712_v8 = vmul.f32 %v13373_v55, %v5711_v25  ;;  %v7958_v25 = vld [vmem:[%s13230_s16 + $0x90] sm:$0xff]  ;;  %v8887_v17 = vpop.eup %8886  ;;  %p8021_p10 = scmp.eq.s32.totalorder %s14604_s14, 3 }
 0x910   : > { %7159 = vmatpush.bf16.msra.mxu1 %v7958_v25 }
 0x911   : > { %v5713_v26 = vmul.f32 0.5, %v5712_v8  ;;  %7063 = vmatpush.bf16.msrb.mxu3 %v7940_v24 }
 0x913   : > { %v5714_v0 = vsub.f32 1.5, %v5713_v26  ;;  %v6062_v8 = vpop.f32.mrf.mxu0  ;;  %v13447_v26 = vmul.f32 %v6265_v52, %v13377_v37  ;;  %v13464_v52 = vmul.f32 %v6272_v58, %v13404_v47  ;;  %v7965_v58 = vld [vmem:[%s13230_s16 + $0xc8] sm:$0xff] }
 0x914   : > { %v13444_v44 = vadd.f32 %v6062_v8, %v13152_v15  ;;  %v6111_v7 = vpop.f32.mrf.mxu1  ;;  %v13485_v8 = vmul.f32 0.5, %v13272_v11  ;;  %7160 = vmatpush.bf16.msra.mxu1 %v7957_v13  ;;  %7209 = vmatpush.bf16.msra.mxu2 %v7965_v58 }
 0x915   : > { %v5715_v32 = vmul.f32 %v13373_v55, %v5714_v0  ;;  %14566 = vst [vmem:[#allocation32_spill] sm:$0xff] %v13464_v52  ;;  %v13470_v21 = vadd.f32 %v6111_v7, %v13154_v22  ;;  %v7949_v0 = vld [vmem:[%s13230_s16 + $0x48] sm:$0xff]  ;;  %v8889_v52 = vpop.eup %8888 }
 0x916   : > { %v6274_v25 = vmul.f32 0.044715, %v13444_v44  ;;  %7111 = vmatpush.bf16.msra.mxu0 %v7949_v0  ;;  %v9018_v0 = vld [vmem:[%s12826_s24] ss:$0 sm:$0xff] }
 0x917   : > { %v5719_v51 = vsel %vm5718_vm10, %v13373_v55, %v5715_v32  ;;  %v6386_v55 = vmul.f32 %v13328_v40, %v13259_v3  ;;  %v6637_v32 = vadd.f32 1.0, %v8887_v17  ;;  %v13496_v40 = vmul.f32 %v13308_v6, %v13267_v56  ;;  %v7956_v17 = vld [vmem:[%s13230_s16 + $0x80] sm:$0xff] }
 0x918   : > { %v5735_v54 = vmul.f32 %v5719_v51, %v13117_v36  ;;  %v6638_v36 = vadd.f32 1.0, %v13353_v1  ;;  %v13492_v51 = vmul.f32 %v13304_v23, %v13255_v2  ;;  %v7964_v1 = vld [vmem:[%s13230_s16 + $0xc0] sm:$0xff]  ;;  %v6387_v23 = vmul.f32 %v13334_v42, %v13272_v11  ;;  %7161 = vmatpush.bf16.msra.mxu1 %v7956_v17 }
 0x919   : > { %v6013_v7 = vpop.f32.mrf.mxu3  ;;  %v6275_v2 = vmul.f32 0.044715, %v13470_v21  ;;  %v13518_v13 = vmul.f32 %v6274_v25, %v13444_v44  ;;  %v6450_v45 = vadd.f32 %v6386_v55, %v13259_v3  ;;  %v13534_v25 = vmul.f32 %v6639_v31, %v13290_v9  ;;  %7210 = vmatpush.bf16.msra.mxu2 %v7964_v1 }
 0x91a   : > { %v13499_v47 = vadd.f32 %v6013_v7, %v13156_v19  ;;  %v6160_v62 = vpop.f32.mrf.mxu2  ;;  %v5754_v46 = vmul.f32 %v9018_v0, %v5735_v54  ;;  %v13512_v7 = vmul.f32 %v6637_v32, %v13299_v57  ;;  %v13515_v54 = vmul.f32 0.5, %v13294_v29  ;;  %7112 = vmatpush.bf16.msra.mxu0 %v7948_v27  ;;  %v14568_v32 = vld [vmem:[#allocation49_spill] sm:$0xff] }
 0x91b   : > { %v13509_v56 = vadd.f32 %v6160_v62, %v13158_v28  ;;  %v6064_v6 = vpop.f32.mrf.mxu0  ;;  %v13522_v42 = vmul.f32 %v6638_v36, %v13287_v59  ;;  %v13531_v57 = vmul.f32 %v13315_v39, %v13277_v14  ;;  %v6451_v3 = vadd.f32 %v6387_v23, %v13272_v11 }
 0x91c   : > { %v6113_v58 = vpop.f32.mrf.mxu1  ;;  %v5773_v0 = vadd.f32 %v9019_v35, %v5754_v46  ;;  %v6273_v62 = vmul.f32 0.044715, %v13499_v47  ;;  %v13527_v53 = vadd.f32 %v6064_v6, %v13152_v15  ;;  %v13539_v55 = vmul.f32 0.5, %v13320_v18 }
 0x91d   : > { %v6276_v46 = vmul.f32 0.044715, %v13509_v56  ;;  %v13542_v24 = vmul.f32 %v6275_v2, %v13470_v21  ;;  %v13545_v27 = vadd.f32 %v6113_v58, %v13154_v22  ;;  %v6761_v9 = vpack.c.bf16 %v13512_v7, %v13531_v57 }
 0x91e   : > { %v5781_v59 = vpack.c.bf16 %v5773_v0, %v5772_v12  ;;  %v13551_v14 = vmul.f32 %v13325_v16, %v13280_v30  ;;  %v6762_v11 = vpack.c.bf16 %v13522_v42, %v13492_v51  ;;  %v6640_v39 = vadd.f32 1.0, %v8889_v52  ;;  %v14567_v12 = vld [vmem:[#allocation20_spill] sm:$0xff] }
 0x91f   : > { %v6385_v31 = vmul.f32 %v13356_v48, %v13294_v29  ;;  %v6390_v36 = vmul.f32 %v14568_v32, %v14567_v12  ;;  %v13560_v17 = vmul.f32 %v6273_v62, %v13499_v47  ;;  %v6278_v1 = vmul.f32 0.044715, %v13527_v53  ;;  %v14569_v0 = vld [vmem:[#allocation36_spill] sm:$0xff] }
 0x920   : > { %6032 = vmatmul.bf16.gmra.mxu3 %v5781_v59  ;;  %6081 = vmatmul.bf16.gmra.mxu0 %v5781_v59  ;;  %v6514_v23 = vmul.f32 0.7978846, %v6450_v45  ;;  %v13566_v52 = vmul.f32 %v6276_v46, %v13509_v56  ;;  %v6391_v58 = vmul.f32 %v13424_v38, %v13342_v33  ;;  %v6389_v62 = vmul.f32 %v14569_v0, %v13346_v63 }
 0x921   : > { %6130 = vmatmul.bf16.gmra.mxu1 %v5781_v59  ;;  %6179 = vmatmul.bf16.gmra.mxu2 %v5781_v59  ;;  %v6015_v30 = vpop.f32.mrf.mxu3  ;;  %v6449_v48 = vadd.f32 %v6385_v31, %v13294_v29  ;;  %v6454_v6 = vadd.f32 %v6390_v36, %v14567_v12  ;;  %v6515_v59 = vmul.f32 0.7978846, %v6451_v3  ;;  %v6279_v31 = vmul.f32 0.044715, %v13545_v27  ;;  %v14570_v36 = vld [vmem:[#allocation26_spill] sm:$0xff]  ;;  %v14571_v3 = vld [vmem:[#allocation28_spill] sm:$0xff] }
 0x922   : > { %v6162_v2 = vpop.f32.mrf.mxu2  ;;  %v13573_v35 = vadd.f32 %v6015_v30, %v13156_v19  ;;  %8890 = vtanh.f32 %v6514_v23  ;;  %v6455_v29 = vadd.f32 %v6391_v58, %v13342_v33  ;;  %v6704_v16 = vmul.f32 %v6640_v39, %v14570_v36 }
 0x923   : > { %v13578_v45 = vadd.f32 %v6162_v2, %v13158_v28  ;;  %v6513_v46 = vmul.f32 0.7978846, %v6449_v48  ;;  %v6518_v32 = vmul.f32 0.7978846, %v6454_v6  ;;  %v6453_v38 = vadd.f32 %v6389_v62, %v13346_v63 }
 0x924   : > { %8892 = vtanh.f32 %v6515_v59  ;;  %v13585_v30 = vmul.f32 0.5, %v13346_v63  ;;  %v6519_v23 = vmul.f32 0.7978846, %v6455_v29  ;;  %v6388_v2 = vmul.f32 %v14571_v3, %v13320_v18 }
 0x925   : > { %8894 = vtanh.f32 %v6513_v46  ;;  %v6277_v48 = vmul.f32 0.044715, %v13573_v35  ;;  %v6517_v6 = vmul.f32 0.7978846, %v6453_v38  ;;  %v6392_v58 = vmul.f32 %v13433_v41, %v13350_v5 }
 0x926   : > { %8896 = vtanh.f32 %v6518_v32  ;;  %v13593_v39 = vmul.f32 %v6278_v1, %v13527_v53  ;;  %v6280_v0 = vmul.f32 0.044715, %v13578_v45  ;;  %v6452_v63 = vadd.f32 %v6388_v2, %v13320_v18 }
 0x927   : > { %8898 = vtanh.f32 %v6519_v23  ;;  %v13598_v59 = vmul.f32 %v6279_v31, %v13545_v27  ;;  %v6198_v46 = vmul.f32 0.5, %v14567_v12  ;;  %v6456_v32 = vadd.f32 %v6392_v58, %v13350_v5  ;;  %v6067_v31 = vpop.f32.mrf.mxu0 }
 0x928   : > { %v8891_v62 = vpop.eup %8890  ;;  %8900 = vtanh.f32 %v6517_v6  ;;  %v6764_v29 = vpack.c.bf16 %v6704_v16, %v13551_v14  ;;  %v13604_v41 = vmul.f32 0.5, %v13342_v33  ;;  %v13607_v1 = vmul.f32 0.5, %v13350_v5  ;;  %v6116_v16 = vpop.f32.mrf.mxu1 }
 0x929   : > { %v6516_v36 = vmul.f32 0.7978846, %v6452_v63  ;;  %v13610_v18 = vmul.f32 %v6277_v48, %v13573_v35  ;;  %v6520_v23 = vmul.f32 0.7978846, %v6456_v32  ;;  %v6393_v12 = vmul.f32 %v13447_v26, %v13377_v37 }
 0x92a   : > { %v8893_v38 = vpop.eup %8892  ;;  %v6394_v3 = vmul.f32 %v13438_v10, %v13361_v61  ;;  %v13617_v33 = vmul.f32 %v6280_v0, %v13578_v45  ;;  %v13620_v5 = vadd.f32 %v6067_v31, %v13152_v15  ;;  %v6642_v2 = vadd.f32 1.0, %v8891_v62 }
 0x92b   : > { %v8895_v14 = vpop.eup %8894  ;;  %8902 = vtanh.f32 %v6516_v36  ;;  %v13623_v6 = vadd.f32 %v6116_v16, %v13154_v22  ;;  %v6643_v58 = vadd.f32 1.0, %v8893_v38  ;;  %v6457_v26 = vadd.f32 %v6393_v12, %v13377_v37  ;;  %v6165_v57 = vpop.f32.mrf.mxu2 }
 0x92c   : > { %14572 = vst [vmem:[#allocation33_spill] sm:$0xff] %v13617_v33  ;;  %v8897_v48 = vpop.eup %8896  ;;  %8904 = vtanh.f32 %v6520_v23  ;;  %v6641_v10 = vadd.f32 1.0, %v8895_v14  ;;  %v13627_v32 = vmul.f32 0.5, %v13377_v37  ;;  %v13630_v0 = vmul.f32 0.5, %v13361_v61 }
 0x92d   : > { %v8899_v63 = vpop.eup %8898  ;;  %v13633_v31 = vmul.f32 0.5, %v13384_v49  ;;  %v6646_v36 = vadd.f32 1.0, %v8897_v48  ;;  %v6458_v16 = vadd.f32 %v6394_v3, %v13361_v61  ;;  %v13637_v38 = vmul.f32 0.5, %v13365_v50  ;;  %v6018_v48 = vpop.f32.mrf.mxu3 }
 0x92e   : > { %v8901_v62 = vpop.eup %8900  ;;  %v13640_v23 = vmul.f32 0.5, %v13394_v20  ;;  %v6282_v37 = vmul.f32 0.044715, %v13620_v5  ;;  %v13650_v12 = vmul.f32 %v6642_v2, %v13477_v43  ;;  %v6521_v61 = vmul.f32 0.7978846, %v6457_v26  ;;  %v14574_v43 = vld [vmem:[#allocation27_spill] sm:$0xff] }
 0x92f   : > { %v6395_v3 = vmul.f32 %v13441_v4, %v13365_v50  ;;  %v6283_v14 = vmul.f32 0.044715, %v13623_v6  ;;  %v14573_v33 = vpack.c.bf16 %v13534_v25, %v13496_v40  ;;  %v13659_v7 = vmul.f32 %v6643_v58, %v13485_v8 }
 0x930   : > { %7064 = vmatmul.bf16.vlgmr.msrb.gmra.mxu3 %v6761_v9  ;;  %7113 = vmatmul.bf16.vlgmr.msra.gmra.mxu0 %v6762_v11  ;;  %v6397_v51 = vmul.f32 %v13461_v34, %v13401_v60  ;;  %v6398_v42 = vmul.f32 %v14574_v43, %v13384_v49  ;;  %v6645_v9 = vadd.f32 1.0, %v8901_v62  ;;  %v13670_v40 = vmul.f32 %v6641_v10, %v13515_v54  ;;  %v6069_v34 = vpop.f32.mrf.mxu0 }
 0x931   : > { %7162 = vmatmul.bf16.vlgmr.msra.gmra.mxu1 %v14573_v33  ;;  %7211 = vmatmul.bf16.vlgmr.msra.gmra.mxu2 %v6764_v29  ;;  %v8903_v4 = vpop.eup %8902  ;;  %v6647_v25 = vadd.f32 1.0, %v8899_v63  ;;  %8906 = vtanh.f32 %v6521_v61  ;;  %v13673_v11 = vadd.f32 %v6018_v48, %v13156_v19  ;;  %v6710_v29 = vmul.f32 %v6646_v36, %v6198_v46  ;;  %v6118_v63 = vpop.f32.mrf.mxu1 }
 0x932   : > { %v8905_v8 = vpop.eup %8904  ;;  %v13676_v33 = vmul.f32 0.5, %v13401_v60  ;;  %v6461_v2 = vadd.f32 %v6397_v51, %v13401_v60  ;;  %v13680_v58 = vmul.f32 %v6282_v37, %v13620_v5  ;;  %v13683_v26 = vadd.f32 %v6165_v57, %v13158_v28 }
 0x933   : > { %v13686_v54 = vadd.f32 %v6069_v34, %v13152_v15  ;;  %v6648_v10 = vadd.f32 1.0, %v8905_v8  ;;  %v13689_v62 = vmul.f32 %v6283_v14, %v13623_v6  ;;  %v13692_v46 = vadd.f32 %v6118_v63, %v13154_v22  ;;  %v14575_v14 = vld [vmem:[#allocation35_spill] sm:$0xff] }
 0x934   : > { %v6525_v36 = vmul.f32 0.7978846, %v6461_v2  ;;  %v6522_v61 = vmul.f32 0.7978846, %v6458_v16  ;;  %v6709_v60 = vmul.f32 %v6645_v9, %v13585_v30  ;;  %v6711_v37 = vmul.f32 %v6647_v25, %v13604_v41 }
 0x935   : > { %v6644_v48 = vadd.f32 1.0, %v8903_v4  ;;  %v6462_v51 = vadd.f32 %v6398_v42, %v13384_v49  ;;  %v6281_v43 = vmul.f32 0.044715, %v13673_v11  ;;  %v6766_v57 = vpack.c.bf16 %v6710_v29, %v13650_v12  ;;  %v6020_v12 = vpop.f32.mrf.mxu3 }
 0x936   : > { %8908 = vtanh.f32 %v6525_v36  ;;  %v6399_v8 = vmul.f32 %v14575_v14, %v13394_v20  ;;  %v6284_v63 = vmul.f32 0.044715, %v13683_v26  ;;  %v6286_v16 = vmul.f32 0.044715, %v13686_v54 }
 0x937   : > { %v8907_v34 = vpop.eup %8906  ;;  %v6712_v30 = vmul.f32 %v6648_v10, %v13607_v1  ;;  %v6526_v9 = vmul.f32 0.7978846, %v6462_v51  ;;  %v6287_v41 = vmul.f32 0.044715, %v13692_v46  ;;  %8910 = vtanh.f32 %v6522_v61  ;;  %v6167_v1 = vpop.f32.mrf.mxu2 }
 0x938   : > { %v6459_v49 = vadd.f32 %v6395_v3, %v13365_v50  ;;  %v6463_v42 = vadd.f32 %v6399_v8, %v13394_v20  ;;  %v6765_v4 = vpack.c.bf16 %v6709_v60, %v13670_v40  ;;  %v6767_v25 = vpack.c.bf16 %v6711_v37, %v13659_v7  ;;  %v14576_v20 = vld [vmem:[#allocation25_spill] sm:$0xff]  ;;  %v14578_v7 = vld [vmem:[#allocation24_spill] sm:$0xff]  ;;  %v6072_v14 = vpop.f32.mrf.mxu0 }
 0x939   : > { %v6708_v29 = vmul.f32 %v6644_v48, %v13539_v55  ;;  %8912 = vtanh.f32 %v6526_v9  ;;  %v13711_v2 = vmul.f32 %v6281_v43, %v13673_v11  ;;  %v6649_v10 = vadd.f32 1.0, %v8907_v34  ;;  %v14577_v3 = vld [vmem:[#allocation29_spill] sm:$0xff]  ;;  %v14579_v60 = vld [vmem:[#allocation32_spill] sm:$0xff] }
 0x93a   : > { %v6523_v36 = vmul.f32 0.7978846, %v6459_v49  ;;  %v6527_v51 = vmul.f32 0.7978846, %v6463_v42  ;;  %v13714_v61 = vmul.f32 %v6284_v63, %v13683_v26  ;;  %v13717_v50 = vmul.f32 %v6286_v16, %v13686_v54  ;;  %v6121_v63 = vpop.f32.mrf.mxu1 }
 0x93b   : > { %v6396_v40 = vmul.f32 %v14577_v3, %v14576_v20  ;;  %v6400_v55 = vmul.f32 %v14579_v60, %v14578_v7  ;;  %v13724_v48 = vmul.f32 %v6287_v41, %v13692_v46  ;;  %v13727_v43 = vadd.f32 %v6020_v12, %v13156_v19 }
 0x93c   : > { %v8909_v37 = vpop.eup %8908  ;;  %v6768_v8 = vpack.c.bf16 %v6712_v30, %v6708_v29  ;;  %8914 = vtanh.f32 %v6523_v36  ;;  %v13730_v34 = vadd.f32 %v6167_v1, %v13158_v28  ;;  %v13733_v16 = vmul.f32 0.5, %v14576_v20 }
 0x93d   : > { %8916 = vtanh.f32 %v6527_v51  ;;  %v6401_v9 = vmul.f32 %v13560_v17, %v13499_v47  ;;  %v8911_v49 = vpop.eup %8910  ;;  %v13738_v41 = vadd.f32 %v6072_v14, %v13152_v15  ;;  %v6653_v42 = vadd.f32 1.0, %v8909_v37 }
 0x93e   : > { %v13741_v12 = vmul.f32 %v6649_v10, %v13627_v32  ;;  %v6460_v30 = vadd.f32 %v6396_v40, %v14576_v20  ;;  %v13745_v1 = vadd.f32 %v6121_v63, %v13154_v22  ;;  %v13748_v36 = vmul.f32 0.5, %v14578_v7 }
 0x93f   : > { %v8913_v29 = vpop.eup %8912  ;;  %v6464_v17 = vadd.f32 %v6400_v55, %v14578_v7  ;;  %v6405_v51 = vmul.f32 %v13610_v18, %v13573_v35  ;;  %v6285_v3 = vmul.f32 0.044715, %v13727_v43  ;;  %v13755_v20 = vmul.f32 0.5, %v13499_v47  ;;  %v6023_v55 = vpop.f32.mrf.mxu3 }
 0x940   : > { %14580 = vst [vmem:[#allocation39_spill] sm:$0xff] %v13745_v1  ;;  %7069 = vmatmul.bf16.gmra.mxu3 %v6765_v4  ;;  %7118 = vmatmul.bf16.gmra.mxu0 %v6766_v57  ;;  %v6654_v32 = vadd.f32 1.0, %v8913_v29  ;;  %v6524_v10 = vmul.f32 0.7978846, %v6460_v30  ;;  %v6288_v4 = vmul.f32 0.044715, %v13730_v34  ;;  %v6465_v60 = vadd.f32 %v6401_v9, %v13499_v47  ;;  %v6170_v30 = vpop.f32.mrf.mxu2  ;;  %v6074_v29 = vpop.f32.mrf.mxu0 }
 0x941   : > { %7167 = vmatmul.bf16.gmra.mxu1 %v6767_v25  ;;  %7216 = vmatmul.bf16.gmra.mxu2 %v6768_v8  ;;  %v6650_v57 = vadd.f32 1.0, %v8911_v49  ;;  %v6528_v40 = vmul.f32 0.7978846, %v6464_v17  ;;  %v6290_v7 = vmul.f32 0.044715, %v13738_v41  ;;  %v6717_v18 = vmul.f32 %v6653_v42, %v13676_v33 }
 0x942   : > { %v8915_v37 = vpop.eup %8914  ;;  %8918 = vtanh.f32 %v6524_v10  ;;  %v6469_v25 = vadd.f32 %v6405_v51, %v13573_v35  ;;  %v6291_v8 = vmul.f32 0.044715, %v13745_v1  ;;  %v13764_v63 = vadd.f32 %v6023_v55, %v13156_v19  ;;  %v6123_v55 = vpop.f32.mrf.mxu1 }
 0x943   : > { %v8917_v14 = vpop.eup %8916  ;;  %8920 = vtanh.f32 %v6528_v40  ;;  %v6529_v49 = vmul.f32 0.7978846, %v6465_v60  ;;  %v6718_v47 = vmul.f32 %v6654_v32, %v13633_v31  ;;  %v6651_v9 = vadd.f32 1.0, %v8915_v37 }
 0x944   : > { %v13768_v17 = vmul.f32 0.5, %v13573_v35  ;;  %v6533_v33 = vmul.f32 0.7978846, %v6469_v25  ;;  %v13771_v42 = vmul.f32 %v6285_v3, %v13727_v43  ;;  %v13774_v51 = vmul.f32 %v6288_v4, %v13730_v34 }
 0x945   : > { %v13777_v10 = vadd.f32 %v6170_v30, %v13158_v28  ;;  %v6655_v40 = vadd.f32 1.0, %v8917_v14  ;;  %v13780_v60 = vmul.f32 %v6290_v7, %v13738_v41  ;;  %v6289_v31 = vmul.f32 0.044715, %v13764_v63 }
 0x946   : > { %v13784_v35 = vadd.f32 %v6074_v29, %v13152_v15  ;;  %v6714_v32 = vmul.f32 %v6650_v57, %v13630_v0  ;;  %v13788_v3 = vmul.f32 %v6291_v8, %v13745_v1  ;;  %v13791_v4 = vadd.f32 %v6123_v55, %v13154_v22 }
 0x947   : > { %14581 = vst [vmem:[#allocation41_spill] sm:$0xff] %v13780_v60  ;;  %v6769_v37 = vpack.c.bf16 %v6717_v18, %v13741_v12  ;;  %8922 = vtanh.f32 %v6529_v49  ;;  %v6715_v7 = vmul.f32 %v6651_v9, %v13637_v38  ;;  %v6402_v30 = vmul.f32 %v13518_v13, %v13444_v44  ;;  %v6025_v49 = vpop.f32.mrf.mxu3 }
 0x948   : > { %14582 = vst [vmem:[#allocation37_spill] sm:$0xff] %v13788_v3  ;;  %v8919_v25 = vpop.eup %8918  ;;  %v6770_v14 = vpack.c.bf16 %v6718_v47, %v6714_v32  ;;  %8924 = vtanh.f32 %v6533_v33  ;;  %v6292_v0 = vmul.f32 0.044715, %v13777_v10  ;;  %v6719_v57 = vmul.f32 %v6655_v40, %v13640_v23  ;;  %v6172_v9 = vpop.f32.mrf.mxu2 }
 0x949   : > { %v8921_v29 = vpop.eup %8920  ;;  %v6652_v8 = vadd.f32 1.0, %v8919_v25  ;;  %v6406_v55 = vmul.f32 %v13593_v39, %v13527_v53  ;;  %v13802_v12 = vmul.f32 %v6289_v31, %v13764_v63  ;;  %v6294_v18 = vmul.f32 0.044715, %v13784_v35 }
 0x94a   : > { %v6656_v38 = vadd.f32 1.0, %v8921_v29  ;;  %v6466_v47 = vadd.f32 %v6402_v30, %v13444_v44  ;;  %v6295_v13 = vmul.f32 0.044715, %v13791_v4  ;;  %v13808_v33 = vmul.f32 0.5, %v13444_v44 }
 0x94b   : > { %v6470_v23 = vadd.f32 %v6406_v55, %v13527_v53  ;;  %v6403_v39 = vmul.f32 %v13542_v24, %v13470_v21  ;;  %v13814_v40 = vadd.f32 %v6025_v49, %v13156_v19  ;;  %v6716_v31 = vmul.f32 %v6652_v8, %v13733_v16 }
 0x94c   : > { %v6720_v32 = vmul.f32 %v6656_v38, %v13748_v36  ;;  %v6530_v25 = vmul.f32 0.7978846, %v6466_v47  ;;  %v13819_v29 = vmul.f32 %v6292_v0, %v13777_v10  ;;  %v6214_v44 = vmul.f32 0.5, %v13527_v53 }
 0x94d   : > { %v8923_v30 = vpop.eup %8922  ;;  %v6534_v3 = vmul.f32 0.7978846, %v6470_v23  ;;  %v6407_v55 = vmul.f32 %v13598_v59, %v13545_v27  ;;  %v13825_v24 = vadd.f32 %v6172_v9, %v13158_v28  ;;  %v6771_v49 = vpack.c.bf16 %v6719_v57, %v6715_v7 }
 0x94e   : > { %v8925_v1 = vpop.eup %8924  ;;  %v6772_v60 = vpack.c.bf16 %v6720_v32, %v6716_v31  ;;  %8926 = vtanh.f32 %v6530_v25  ;;  %v13828_v16 = vmul.f32 %v6294_v18, %v13784_v35  ;;  %v13831_v36 = vmul.f32 0.5, %v13470_v21 }
 0x94f   : > { %8928 = vtanh.f32 %v6534_v3  ;;  %v6467_v53 = vadd.f32 %v6403_v39, %v13470_v21  ;;  %v13835_v59 = vmul.f32 %v6295_v13, %v13791_v4  ;;  %v6293_v0 = vmul.f32 0.044715, %v13814_v40 }
 0x950   : > { %7074 = vmatmul.bf16.gmra.mxu3 %v6769_v37  ;;  %7123 = vmatmul.bf16.gmra.mxu0 %v6770_v14  ;;  %v6657_v7 = vadd.f32 1.0, %v8923_v30  ;;  %v6471_v57 = vadd.f32 %v6407_v55, %v13545_v27  ;;  %v6661_v8 = vadd.f32 1.0, %v8925_v1  ;;  %v6404_v3 = vmul.f32 %v13566_v52, %v13509_v56  ;;  %v14583_v37 = vld [vmem:[#allocation33_spill] sm:$0xff] }
 0x951   : > { %7172 = vmatmul.bf16.gmra.mxu1 %v6771_v49  ;;  %7221 = vmatmul.bf16.gmra.mxu2 %v6772_v60  ;;  %v6531_v18 = vmul.f32 0.7978846, %v6467_v53  ;;  %v6408_v14 = vmul.f32 %v14583_v37, %v13578_v45  ;;  %v6296_v21 = vmul.f32 0.044715, %v13825_v24  ;;  %v6215_v38 = vmul.f32 0.5, %v13545_v27 }
 0x952   : > { %v6535_v47 = vmul.f32 0.7978846, %v6471_v57  ;;  %v6409_v13 = vmul.f32 %v13711_v2, %v13673_v11  ;;  %v6468_v60 = vadd.f32 %v6404_v3, %v13509_v56  ;;  %v6413_v9 = vmul.f32 %v13771_v42, %v13727_v43 }
 0x953   : > { %8930 = vtanh.f32 %v6531_v18  ;;  %v6472_v1 = vadd.f32 %v6408_v14, %v13578_v45  ;;  %v13852_v23 = vmul.f32 %v6293_v0, %v13814_v40  ;;  %v6721_v39 = vmul.f32 %v6657_v7, %v13755_v20 }
 0x954   : > { %v8927_v52 = vpop.eup %8926  ;;  %8932 = vtanh.f32 %v6535_v47  ;;  %v6473_v27 = vadd.f32 %v6409_v13, %v13673_v11  ;;  %v6725_v2 = vmul.f32 %v6661_v8, %v13768_v17  ;;  %v6532_v32 = vmul.f32 0.7978846, %v6468_v60 }
 0x955   : > { %v8929_v31 = vpop.eup %8928  ;;  %v6536_v25 = vmul.f32 0.7978846, %v6472_v1  ;;  %v6477_v30 = vadd.f32 %v6413_v9, %v13727_v43  ;;  %v6410_v42 = vmul.f32 %v13680_v58, %v13620_v5  ;;  %v6414_v53 = vmul.f32 %v13717_v50, %v13686_v54  ;;  %v6077_v37 = vpop.f32.mrf.mxu0 }
 0x956   : > { %v6662_v55 = vadd.f32 1.0, %v8929_v31  ;;  %v6537_v49 = vmul.f32 0.7978846, %v6473_v27  ;;  %v13863_v20 = vmul.f32 %v6296_v21, %v13825_v24  ;;  %v6658_v0 = vadd.f32 1.0, %v8927_v52 }
 0x957   : > { %8934 = vtanh.f32 %v6532_v32  ;;  %v6541_v7 = vmul.f32 0.7978846, %v6477_v30  ;;  %v6212_v17 = vmul.f32 0.5, %v13509_v56  ;;  %v6474_v57 = vadd.f32 %v6410_v42, %v13620_v5 }
 0x958   : > { %8936 = vtanh.f32 %v6536_v25  ;;  %v6478_v8 = vadd.f32 %v6414_v53, %v13686_v54  ;;  %v6726_v3 = vmul.f32 %v6662_v55, %v6214_v44  ;;  %v6411_v58 = vmul.f32 %v13689_v62, %v13623_v6  ;;  %v6126_v44 = vpop.f32.mrf.mxu1 }
 0x959   : > { %v8931_v18 = vpop.eup %8930  ;;  %8938 = vtanh.f32 %v6537_v49  ;;  %v6415_v50 = vmul.f32 %v13724_v48, %v13692_v46  ;;  %v6773_v21 = vpack.c.bf16 %v6725_v2, %v6721_v39  ;;  %v6216_v56 = vmul.f32 0.5, %v13578_v45 }
 0x95a   : > { %v8933_v14 = vpop.eup %8932  ;;  %v6659_v47 = vadd.f32 1.0, %v8931_v18  ;;  %8940 = vtanh.f32 %v6541_v7  ;;  %v6722_v13 = vmul.f32 %v6658_v0, %v13808_v33  ;;  %v6538_v1 = vmul.f32 0.7978846, %v6474_v57 }
 0x95b   : > { %v6663_v60 = vadd.f32 1.0, %v8933_v14  ;;  %v6542_v9 = vmul.f32 0.7978846, %v6478_v8  ;;  %v6217_v52 = vmul.f32 0.5, %v13673_v11  ;;  %v6221_v27 = vmul.f32 0.5, %v13727_v43  ;;  %v6028_v53 = vpop.f32.mrf.mxu3 }
 0x95c   : > { %v6475_v62 = vadd.f32 %v6411_v58, %v13623_v6  ;;  %v6479_v48 = vadd.f32 %v6415_v50, %v13692_v46  ;;  %v6774_v39 = vpack.c.bf16 %v6726_v3, %v6722_v13  ;;  %v6723_v2 = vmul.f32 %v6659_v47, %v13831_v36  ;;  %v6175_v57 = vpop.f32.mrf.mxu2 }
 0x95d   : > { %v8935_v31 = vpop.eup %8934  ;;  %v6727_v45 = vmul.f32 %v6663_v60, %v6215_v38  ;;  %8942 = vtanh.f32 %v6538_v1  ;;  %v13880_v25 = vadd.f32 %v6077_v37, %v13152_v15  ;;  %v6218_v49 = vmul.f32 0.5, %v13620_v5  ;;  %v6079_v37 = vpop.f32.mrf.mxu0 }
 0x95e   : > { %v8937_v32 = vpop.eup %8936  ;;  %v6660_v33 = vadd.f32 1.0, %v8935_v31  ;;  %8944 = vtanh.f32 %v6542_v9  ;;  %v6539_v30 = vmul.f32 0.7978846, %v6475_v62  ;;  %v6543_v42 = vmul.f32 0.7978846, %v6479_v48 }
 0x95f   : > { %v8939_v11 = vpop.eup %8938  ;;  %v6775_v43 = vpack.c.bf16 %v6727_v45, %v6723_v2  ;;  %v6664_v55 = vadd.f32 1.0, %v8937_v32  ;;  %v13884_v38 = vadd.f32 %v6126_v44, %v13154_v22  ;;  %v6222_v7 = vmul.f32 0.5, %v13686_v54 }
 0x960   : > { %7079 = vmatmul.bf16.gmra.mxu3 %v6773_v21  ;;  %7128 = vmatmul.bf16.gmra.mxu0 %v6774_v39  ;;  %v8941_v0 = vpop.eup %8940  ;;  %v6724_v36 = vmul.f32 %v6660_v33, %v6212_v17  ;;  %8946 = vtanh.f32 %v6539_v30  ;;  %v6412_v3 = vmul.f32 %v13714_v61, %v13683_v26  ;;  %v6298_v5 = vmul.f32 0.044715, %v13880_v25  ;;  %v6128_v33 = vpop.f32.mrf.mxu1 }
 0x961   : > { %7177 = vmatmul.bf16.gmra.mxu1 %v6775_v43  ;;  %v6728_v8 = vmul.f32 %v6664_v55, %v6216_v56  ;;  %v6669_v18 = vadd.f32 1.0, %v8941_v0  ;;  %8948 = vtanh.f32 %v6543_v42  ;;  %v6665_v58 = vadd.f32 1.0, %v8939_v11 }
 0x962   : > { %v6416_v17 = vmul.f32 %v13774_v51, %v13730_v34  ;;  %v13893_v50 = vadd.f32 %v6028_v53, %v13156_v19  ;;  %v6476_v21 = vadd.f32 %v6412_v3, %v13683_v26  ;;  %v13897_v47 = vadd.f32 %v6175_v57, %v13158_v28 }
 0x963   : > { %v8943_v54 = vpop.eup %8942  ;;  %v6776_v14 = vpack.c.bf16 %v6728_v8, %v6724_v36  ;;  %v13900_v56 = vadd.f32 %v6079_v37, %v13152_v15  ;;  %v6299_v13 = vmul.f32 0.044715, %v13884_v38  ;;  %v6219_v60 = vmul.f32 0.5, %v13623_v6  ;;  %v6030_v11 = vpop.f32.mrf.mxu3 }
 0x964   : > { %v8945_v61 = vpop.eup %8944  ;;  %v6223_v51 = vmul.f32 0.5, %v13692_v46  ;;  %v6480_v1 = vadd.f32 %v6416_v17, %v13730_v34  ;;  %v6733_v9 = vmul.f32 %v6669_v18, %v6221_v27  ;;  %v6220_v62 = vmul.f32 0.5, %v13683_v26 }
 0x965   : > { %7226 = vmatmul.bf16.gmra.mxu2 %v6776_v14  ;;  %v6670_v44 = vadd.f32 1.0, %v8945_v61  ;;  %v6540_v48 = vmul.f32 0.7978846, %v6476_v21  ;;  %v13908_v39 = vmul.f32 %v6298_v5, %v13880_v25  ;;  %v6666_v2 = vadd.f32 1.0, %v8943_v54 }
 0x966   : > { %v8947_v31 = vpop.eup %8946  ;;  %v6544_v45 = vmul.f32 0.7978846, %v6480_v1  ;;  %v6297_v32 = vmul.f32 0.044715, %v13893_v50  ;;  %v6729_v30 = vmul.f32 %v6665_v58, %v6217_v52  ;;  %v6300_v46 = vmul.f32 0.044715, %v13897_v47  ;;  %v6177_v52 = vpop.f32.mrf.mxu2 }
 0x967   : > { %v8949_v6 = vpop.eup %8948  ;;  %8950 = vtanh.f32 %v6540_v48  ;;  %v6302_v27 = vmul.f32 0.044715, %v13900_v56  ;;  %v6734_v43 = vmul.f32 %v6670_v44, %v6222_v7  ;;  %v6667_v26 = vadd.f32 1.0, %v8947_v31 }
 0x968   : > { %v6671_v55 = vadd.f32 1.0, %v8949_v6  ;;  %8952 = vtanh.f32 %v6544_v45  ;;  %v13914_v42 = vmul.f32 %v6299_v13, %v13884_v38  ;;  %v6777_v53 = vpack.c.bf16 %v6733_v9, %v6729_v30  ;;  %v14586_v6 = vld [vmem:[#allocation37_spill] sm:$0xff] }
 0x969   : > { %v6224_v0 = vmul.f32 0.5, %v13730_v34  ;;  %v13918_v36 = vadd.f32 %v6128_v33, %v13154_v22  ;;  %v6730_v57 = vmul.f32 %v6666_v2, %v6218_v49  ;;  %v13921_v18 = vmul.f32 %v6297_v32, %v13893_v50  ;;  %v14585_v33 = vld [vmem:[#allocation39_spill] sm:$0xff] }
 0x96a   : > { %v6735_v8 = vmul.f32 %v6671_v55, %v6223_v51  ;;  %v13924_v7 = vadd.f32 %v6030_v11, %v13156_v19  ;;  %v13927_v3 = vmul.f32 %v6300_v46, %v13897_v47  ;;  %v6366_v37 = vmul.f32 %v6302_v27, %v13900_v56 }
 0x96b   : > { %v6417_v34 = vmul.f32 %v13802_v12, %v13764_v63  ;;  %v6421_v5 = vmul.f32 %v13852_v23, %v13814_v40  ;;  %v6778_v58 = vpack.c.bf16 %v6734_v43, %v6730_v57  ;;  %v6731_v49 = vmul.f32 %v6667_v26, %v6219_v60  ;;  %v14584_v12 = vld [vmem:[#allocation41_spill] sm:$0xff] }
 0x96c   : > { %v13935_v17 = vadd.f32 %v6177_v52, %v13158_v28  ;;  %v13938_v54 = vmul.f32 0.5, %v13764_v63  ;;  %v6303_v21 = vmul.f32 0.044715, %v13918_v36  ;;  %v6418_v51 = vmul.f32 %v14584_v12, %v13738_v41 }
 0x96d   : > { %v8951_v14 = vpop.eup %8950  ;;  %v6481_v61 = vadd.f32 %v6417_v34, %v13764_v63  ;;  %v6485_v13 = vadd.f32 %v6421_v5, %v13814_v40  ;;  %v6779_v23 = vpack.c.bf16 %v6735_v8, %v6731_v49  ;;  %v6301_v60 = vmul.f32 0.044715, %v13924_v7 }
 0x96e   : > { %v8953_v1 = vpop.eup %8952  ;;  %v6668_v9 = vadd.f32 1.0, %v8951_v14  ;;  %v6422_v44 = vmul.f32 %v13828_v16, %v13784_v35  ;;  %v6482_v63 = vadd.f32 %v6418_v51, %v13738_v41  ;;  %v6229_v45 = vmul.f32 0.5, %v13814_v40 }
 0x96f   : > { %v6672_v48 = vadd.f32 1.0, %v8953_v1  ;;  %v6545_v31 = vmul.f32 0.7978846, %v6481_v61  ;;  %v6549_v2 = vmul.f32 0.7978846, %v6485_v13  ;;  %v6419_v30 = vmul.f32 %v14586_v6, %v14585_v33 }
 0x970   : > { %7084 = vmatmul.bf16.gmra.mxu3 %v6777_v53  ;;  %7133 = vmatmul.bf16.gmra.mxu0 %v6778_v58  ;;  %v6486_v32 = vadd.f32 %v6422_v44, %v13784_v35  ;;  %v6423_v46 = vmul.f32 %v13835_v59, %v13791_v4  ;;  %v6732_v27 = vmul.f32 %v6668_v9, %v6220_v62  ;;  %v6546_v11 = vmul.f32 0.7978846, %v6482_v63 }
 0x971   : > { %7182 = vmatmul.bf16.gmra.mxu1 %v6779_v23  ;;  %v6736_v16 = vmul.f32 %v6672_v48, %v6224_v0  ;;  %8954 = vtanh.f32 %v6545_v31  ;;  %v6483_v26 = vadd.f32 %v6419_v30, %v14585_v33  ;;  %v6304_v53 = vmul.f32 0.044715, %v13935_v17 }
 0x972   : > { %8956 = vtanh.f32 %v6549_v2  ;;  %v6550_v43 = vmul.f32 0.7978846, %v6486_v32  ;;  %v6487_v55 = vadd.f32 %v6423_v46, %v13791_v4  ;;  %v6420_v52 = vmul.f32 %v13819_v29, %v13777_v10 }
 0x973   : > { %v6780_v40 = vpack.c.bf16 %v6736_v16, %v6732_v27  ;;  %8958 = vtanh.f32 %v6546_v11  ;;  %v6547_v59 = vmul.f32 0.7978846, %v6483_v26  ;;  %v6424_v62 = vmul.f32 %v13863_v20, %v13825_v24 }
 0x974   : > { %8960 = vtanh.f32 %v6550_v43  ;;  %v6551_v57 = vmul.f32 0.7978846, %v6487_v55  ;;  %v6367_v0 = vmul.f32 %v6303_v21, %v13918_v36  ;;  %v6226_v8 = vmul.f32 0.5, %v13738_v41 }
 0x975   : > { %7231 = vmatmul.bf16.gmra.mxu2 %v6780_v40  ;;  %v6484_v34 = vadd.f32 %v6420_v52, %v13777_v10  ;;  %v6426_v5 = vmul.f32 %v13908_v39, %v13880_v25  ;;  %v6365_v58 = vmul.f32 %v6301_v60, %v13924_v7  ;;  %8962 = vtanh.f32 %v6547_v59 }
 0x976   : > { %v6488_v29 = vadd.f32 %v6424_v62, %v13825_v24  ;;  %v6430_v49 = vmul.f32 %v6366_v37, %v13900_v56  ;;  %v6230_v20 = vmul.f32 0.5, %v13784_v35  ;;  %8964 = vtanh.f32 %v6551_v57 }
 0x977   : > { %v8955_v14 = vpop.eup %8954  ;;  %v6548_v61 = vmul.f32 0.7978846, %v6484_v34  ;;  %v6490_v21 = vadd.f32 %v6426_v5, %v13880_v25  ;;  %v6427_v39 = vmul.f32 %v13914_v42, %v13884_v38  ;;  %v6368_v23 = vmul.f32 %v6304_v53, %v13935_v17 }
 0x978   : > { %v8957_v41 = vpop.eup %8956  ;;  %v6673_v13 = vadd.f32 1.0, %v8955_v14  ;;  %v6552_v12 = vmul.f32 0.7978846, %v6488_v29  ;;  %v6494_v51 = vadd.f32 %v6430_v49, %v13900_v56  ;;  %v6431_v37 = vmul.f32 %v6367_v0, %v13918_v36 }
 0x979   : > { %v8959_v1 = vpop.eup %8958  ;;  %v6677_v9 = vadd.f32 1.0, %v8957_v41  ;;  %8966 = vtanh.f32 %v6548_v61  ;;  %v6554_v44 = vmul.f32 0.7978846, %v6490_v21  ;;  %v6491_v32 = vadd.f32 %v6427_v39, %v13884_v38 }
 0x97a   : > { %v8961_v35 = vpop.eup %8960  ;;  %v6674_v60 = vadd.f32 1.0, %v8959_v1  ;;  %8968 = vtanh.f32 %v6552_v12  ;;  %v6558_v48 = vmul.f32 0.7978846, %v6494_v51  ;;  %v6737_v31 = vmul.f32 %v6673_v13, %v13938_v54 }
 0x97b   : > { %v6741_v2 = vmul.f32 %v6677_v9, %v6229_v45  ;;  %v6678_v63 = vadd.f32 1.0, %v8961_v35  ;;  %v8963_v6 = vpop.eup %8962  ;;  %v6227_v30 = vmul.f32 0.5, %v14585_v33  ;;  %v6231_v46 = vmul.f32 0.5, %v13791_v4 }
 0x97c   : > { %v6738_v42 = vmul.f32 %v6674_v60, %v6226_v8  ;;  %v6495_v27 = vadd.f32 %v6431_v37, %v13918_v36  ;;  %v8965_v16 = vpop.eup %8964  ;;  %v6675_v26 = vadd.f32 1.0, %v8963_v6  ;;  %8970 = vtanh.f32 %v6558_v48 }
 0x97d   : > { %v6781_v11 = vpack.c.bf16 %v6741_v2, %v6737_v31  ;;  %v6742_v43 = vmul.f32 %v6678_v63, %v6230_v20  ;;  %v6679_v55 = vadd.f32 1.0, %v8965_v16  ;;  %v6555_v40 = vmul.f32 0.7978846, %v6491_v32 }
 0x97e   : > { %v6559_v54 = vmul.f32 0.7978846, %v6495_v27  ;;  %v6425_v45 = vmul.f32 %v13921_v18, %v13893_v50  ;;  %v6228_v33 = vmul.f32 0.5, %v13777_v10  ;;  %8972 = vtanh.f32 %v6554_v44 }
 0x97f   : > { %v8967_v53 = vpop.eup %8966  ;;  %v6782_v52 = vpack.c.bf16 %v6742_v43, %v6738_v42  ;;  %v6429_v4 = vmul.f32 %v6365_v58, %v13924_v7  ;;  %v6739_v57 = vmul.f32 %v6675_v26, %v6227_v30  ;;  %v6743_v62 = vmul.f32 %v6679_v55, %v6231_v46 }
 0x980   : > { %7089 = vmatmul.bf16.gmra.mxu3 %v6781_v11  ;;  %v8969_v59 = vpop.eup %8968  ;;  %v6676_v0 = vadd.f32 1.0, %v8967_v53  ;;  %v6489_v8 = vadd.f32 %v6425_v45, %v13893_v50  ;;  %v6232_v34 = vmul.f32 0.5, %v13825_v24  ;;  %8974 = vtanh.f32 %v6559_v54 }
 0x981   : > { %7138 = vmatmul.bf16.gmra.mxu0 %v6782_v52  ;;  %v6680_v5 = vadd.f32 1.0, %v8969_v59  ;;  %v6493_v18 = vadd.f32 %v6429_v4, %v13924_v7  ;;  %v6783_v29 = vpack.c.bf16 %v6743_v62, %v6739_v57  ;;  %8976 = vtanh.f32 %v6555_v40 }
 0x982   : > { %v6553_v49 = vmul.f32 0.7978846, %v6489_v8  ;;  %v8971_v10 = vpop.eup %8970  ;;  %v6740_v14 = vmul.f32 %v6676_v0, %v6228_v33  ;;  %v6428_v61 = vmul.f32 %v13927_v3, %v13897_v47  ;;  %v6432_v21 = vmul.f32 %v6368_v23, %v13935_v17 }
 0x983   : > { %v6744_v20 = vmul.f32 %v6680_v5, %v6232_v34  ;;  %v6557_v58 = vmul.f32 0.7978846, %v6493_v18  ;;  %7187 = vmatmul.bf16.gmra.mxu1 %v6783_v29  ;;  %v6686_v39 = vadd.f32 1.0, %v8971_v10  ;;  %v6238_v35 = vmul.f32 0.5, %v13900_v56 }
 0x984   : > { %8978 = vtanh.f32 %v6553_v49  ;;  %v8973_v41 = vpop.eup %8972  ;;  %v6492_v13 = vadd.f32 %v6428_v61, %v13897_v47  ;;  %v6496_v12 = vadd.f32 %v6432_v21, %v13935_v17  ;;  %v6234_v48 = vmul.f32 0.5, %v13880_v25 }
 0x985   : > { %v6784_v24 = vpack.c.bf16 %v6744_v20, %v6740_v14  ;;  %8980 = vtanh.f32 %v6557_v58  ;;  %v6682_v3 = vadd.f32 1.0, %v8973_v41  ;;  %v6750_v31 = vmul.f32 %v6686_v39, %v6238_v35 }
 0x986   : > { %v8975_v51 = vpop.eup %8974  ;;  %v6556_v1 = vmul.f32 0.7978846, %v6492_v13  ;;  %v6560_v37 = vmul.f32 0.7978846, %v6496_v12  ;;  %v6239_v2 = vmul.f32 0.5, %v13918_v36  ;;  %v6233_v6 = vmul.f32 0.5, %v13893_v50 }
 0x987   : > { %7236 = vmatmul.bf16.gmra.mxu2 %v6784_v24  ;;  %v8977_v9 = vpop.eup %8976  ;;  %v6687_v44 = vadd.f32 1.0, %v8975_v51  ;;  %v6237_v42 = vmul.f32 0.5, %v13924_v7  ;;  %v6746_v46 = vmul.f32 %v6682_v3, %v6234_v48  ;;  %v6235_v56 = vmul.f32 0.5, %v13884_v38 }
 0x988   : > { %8982 = vtanh.f32 %v6556_v1  ;;  %v6683_v32 = vadd.f32 1.0, %v8977_v9  ;;  %v6236_v36 = vmul.f32 0.5, %v13897_v47  ;;  %v6240_v50 = vmul.f32 0.5, %v13935_v17 }
 0x989   : > { %8984 = vtanh.f32 %v6560_v37  ;;  %v6751_v27 = vmul.f32 %v6687_v44, %v6239_v2  ;;  %v6786_v26 = vpack.c.bf16 %v6750_v31, %v6746_v46 }
 0x98a   : > { %v8979_v60 = vpop.eup %8978  ;;  %v6747_v25 = vmul.f32 %v6683_v32, %v6235_v56 }
 0x98b   : > { %v8981_v23 = vpop.eup %8980  ;;  %v6681_v63 = vadd.f32 1.0, %v8979_v60 }
 0x98c   : > { %v6685_v30 = vadd.f32 1.0, %v8981_v23  ;;  %v6787_v7 = vpack.c.bf16 %v6751_v27, %v6747_v25 }
 0x98d   : > { %v6745_v16 = vmul.f32 %v6681_v63, %v6233_v6 }
 0x98e   : > { %v6749_v11 = vmul.f32 %v6685_v30, %v6237_v42  ;;  %v8983_v43 = vpop.eup %8982 }
 0x98f   : > { %v8985_v55 = vpop.eup %8984  ;;  %v6684_v54 = vadd.f32 1.0, %v8983_v43 }
 0x990   : > { %v6785_v40 = vpack.c.bf16 %v6749_v11, %v6745_v16  ;;  %v6688_v45 = vadd.f32 1.0, %v8985_v55 }
 0x991   : > { %7143 = vmatmul.bf16.gmra.mxu0 %v6786_v26  ;;  %v6748_v53 = vmul.f32 %v6684_v54, %v6236_v36 }
 0x992   : > { %7094 = vmatmul.bf16.gmra.mxu3 %v6785_v40  ;;  %v6752_v52 = vmul.f32 %v6688_v45, %v6240_v50 }
 0x993   : > { %7192 = vmatmul.bf16.gmra.mxu1 %v6787_v7 }
 0x994   : > { %v6788_v38 = vpack.c.bf16 %v6752_v52, %v6748_v53 }
 0x997   : > { %7241 = vmatmul.bf16.gmra.mxu2 %v6788_v38 }
 0x99d   : > { %v6082_v33 = vpop.f32.mrf.mxu0 }
 0x99e   : > { %v14003_v4 = vadd.f32 %v6082_v33, %v13152_v15  ;;  %v6131_v59 = vpop.f32.mrf.mxu1 }
 0x99f   : > { %v14006_v57 = vadd.f32 %v6131_v59, %v13154_v22 }
 0x9a0   : > { %v6306_v47 = vmul.f32 0.044715, %v14003_v4 }
 0x9a1   : > { %v6307_v17 = vmul.f32 0.044715, %v14006_v57 }
 0x9a2   : > { %v6370_v62 = vmul.f32 %v6306_v47, %v14003_v4 }
 0x9a3   : > { %v6371_v0 = vmul.f32 %v6307_v17, %v14006_v57  ;;  %v6033_v8 = vpop.f32.mrf.mxu3 }
 0x9a4   : > { %v14013_v34 = vadd.f32 %v6033_v8, %v13156_v19  ;;  %v6180_v5 = vpop.f32.mrf.mxu2  ;;  %v6434_v14 = vmul.f32 %v6370_v62, %v14003_v4 }
 0x9a5   : > { %v14016_v18 = vadd.f32 %v6180_v5, %v13158_v28  ;;  %v6084_v29 = vpop.f32.mrf.mxu0  ;;  %v6435_v61 = vmul.f32 %v6371_v0, %v14006_v57 }
 0x9a6   : > { %v14019_v49 = vadd.f32 %v6084_v29, %v13152_v15  ;;  %v6133_v10 = vpop.f32.mrf.mxu1  ;;  %v6305_v20 = vmul.f32 0.044715, %v14013_v34  ;;  %v6498_v24 = vadd.f32 %v6434_v14, %v14003_v4  ;;  %v6242_v29 = vmul.f32 0.5, %v14003_v4 }
 0x9a7   : > { %v14024_v58 = vadd.f32 %v6133_v10, %v13154_v22  ;;  %v6308_v21 = vmul.f32 0.044715, %v14016_v18  ;;  %v6499_v15 = vadd.f32 %v6435_v61, %v14006_v57  ;;  %v6243_v61 = vmul.f32 0.5, %v14006_v57 }
 0x9a8   : > { %v6310_v41 = vmul.f32 0.044715, %v14019_v49  ;;  %v6562_v51 = vmul.f32 0.7978846, %v6498_v24  ;;  %v6369_v39 = vmul.f32 %v6305_v20, %v14013_v34  ;;  %v6246_v10 = vmul.f32 0.5, %v14019_v49 }
 0x9a9   : > { %v6311_v13 = vmul.f32 0.044715, %v14024_v58  ;;  %v6563_v9 = vmul.f32 0.7978846, %v6499_v15  ;;  %v6372_v37 = vmul.f32 %v6308_v21, %v14016_v18  ;;  %v6247_v21 = vmul.f32 0.5, %v14024_v58 }
 0x9aa   : > { %v6374_v12 = vmul.f32 %v6310_v41, %v14019_v49  ;;  %8986 = vtanh.f32 %v6562_v51  ;;  %v6433_v6 = vmul.f32 %v6369_v39, %v14013_v34  ;;  %v14587_v39 = vld [vmem:[#allocation38_spill] sm:$0xff] }
 0x9ab   : > { %v6375_v22 = vmul.f32 %v6311_v13, %v14024_v58  ;;  %v6035_v1 = vpop.f32.mrf.mxu3  ;;  %8988 = vtanh.f32 %v6563_v9  ;;  %v6436_v46 = vmul.f32 %v6372_v37, %v14016_v18 }
 0x9ac   : > { %v14037_v35 = vadd.f32 %v6035_v1, %v13156_v19  ;;  %v6182_v3 = vpop.f32.mrf.mxu2  ;;  %v6438_v60 = vmul.f32 %v6374_v12, %v14019_v49  ;;  %v6497_v16 = vadd.f32 %v6433_v6, %v14013_v34 }
 0x9ad   : > { %v14041_v44 = vadd.f32 %v6182_v3, %v13158_v28  ;;  %v7114_v23 = vpop.f32.mrf.mxu0  ;;  %v6439_v48 = vmul.f32 %v6375_v22, %v14024_v58  ;;  %v14055_v28 = vld [vmem:[%s6859_s17] ss:$0 sm:$0xff]  ;;  %v6500_v43 = vadd.f32 %v6436_v46, %v14016_v18 }
 0x9ae   : > { %v6309_v31 = vmul.f32 0.044715, %v14037_v35  ;;  %v7163_v2 = vpop.f32.mrf.mxu1  ;;  %v6502_v63 = vadd.f32 %v6438_v60, %v14019_v49  ;;  %v6561_v55 = vmul.f32 0.7978846, %v6497_v16 }
 0x9af   : > { %v6312_v32 = vmul.f32 0.044715, %v14041_v44  ;;  %v6503_v19 = vadd.f32 %v6439_v48, %v14024_v58  ;;  %v6564_v45 = vmul.f32 0.7978846, %v6500_v43 }
 0x9b0   : > { %v6373_v42 = vmul.f32 %v6309_v31, %v14037_v35  ;;  %v6566_v30 = vmul.f32 0.7978846, %v6502_v63  ;;  %v8987_v40 = vpop.eup %8986  ;;  %v6241_v63 = vmul.f32 0.5, %v14013_v34 }
 0x9b1   : > { %v6376_v56 = vmul.f32 %v6312_v32, %v14041_v44  ;;  %v6567_v27 = vmul.f32 0.7978846, %v6503_v19  ;;  %v8989_v7 = vpop.eup %8988  ;;  %v6690_v47 = vadd.f32 1.0, %v8987_v40  ;;  %v6245_v32 = vmul.f32 0.5, %v14037_v35 }
 0x9b2   : > { %8990 = vtanh.f32 %v6566_v30  ;;  %v6437_v11 = vmul.f32 %v6373_v42, %v14037_v35  ;;  %v6691_v8 = vadd.f32 1.0, %v8989_v7  ;;  %v6244_v42 = vmul.f32 0.5, %v14016_v18 }
 0x9b3   : > { %v7065_v26 = vpop.f32.mrf.mxu3  ;;  %8992 = vtanh.f32 %v6567_v27  ;;  %v6440_v25 = vmul.f32 %v6376_v56, %v14041_v44  ;;  %v6754_v15 = vmul.f32 %v6690_v47, %v6242_v29  ;;  %v6248_v30 = vmul.f32 0.5, %v14041_v44 }
 0x9b4   : > { %v7066_v54 = vadd.f32 %v14055_v28, %v7065_v26  ;;  %v7212_v36 = vpop.f32.mrf.mxu2  ;;  %v6501_v50 = vadd.f32 %v6437_v11, %v14037_v35  ;;  %8994 = vtanh.f32 %v6561_v55  ;;  %v6755_v9 = vmul.f32 %v6691_v8, %v6243_v61 }
 0x9b5   : > { %v7116_v53 = vpop.f32.mrf.mxu0  ;;  %v6504_v52 = vadd.f32 %v6440_v25, %v14041_v44  ;;  %8996 = vtanh.f32 %v6564_v45  ;;  %v14588_v25 = vld [vmem:[#allocation18_spill] sm:$0xff] }
 0x9b6   : > { %v7115_v38 = vadd.f32 %v7114_v23, %v7066_v54  ;;  %v7165_v33 = vpop.f32.mrf.mxu1  ;;  %v6565_v59 = vmul.f32 0.7978846, %v6501_v50 }
 0x9b7   : > { %v6568_v17 = vmul.f32 0.7978846, %v6504_v52 }
 0x9b8   : > { %v8991_v62 = vpop.eup %8990  ;;  %v7164_v0 = vadd.f32 %v7163_v2, %v7115_v38  ;;  %8998 = vtanh.f32 %v6565_v59 }
 0x9b9   : > { %v8993_v5 = vpop.eup %8992  ;;  %v6694_v14 = vadd.f32 1.0, %v8991_v62  ;;  %9000 = vtanh.f32 %v6568_v17 }
 0x9ba   : > { %v7213_v20 = vadd.f32 %v7212_v36, %v7164_v0  ;;  %v6695_v41 = vadd.f32 1.0, %v8993_v5  ;;  %v8995_v24 = vpop.eup %8994  ;;  %v14590_v5 = vld [vmem:[#allocation46_spill] sm:$0xff] }
 0x9bb   : > { %v7067_v13 = vpop.f32.mrf.mxu3  ;;  %v6758_v12 = vmul.f32 %v6694_v14, %v6246_v10  ;;  %v8997_v51 = vpop.eup %8996  ;;  %v6689_v60 = vadd.f32 1.0, %v8995_v24 }
 0x9bc   : > { %v7252_v22 = vadd.f32 %v7213_v20, %v14587_v39  ;;  %v7068_v1 = vadd.f32 %v14055_v28, %v7067_v13  ;;  %v7214_v4 = vpop.f32.mrf.mxu2  ;;  %v6759_v49 = vmul.f32 %v6695_v41, %v6247_v21  ;;  %v6692_v31 = vadd.f32 1.0, %v8997_v51 }
 0x9bd   : > { %v7119_v37 = vpop.f32.mrf.mxu0  ;;  %v6790_v3 = vpack.c.bf16 %v6758_v12, %v6754_v15  ;;  %v6753_v56 = vmul.f32 %v6689_v60, %v6241_v63  ;;  %v14591_v15 = vld [vmem:[#allocation44_spill] sm:$0xff] }
 0x9be   : > { %v8999_v23 = vpop.eup %8998  ;;  %7268 = vst [vmem:[#allocation10] sm:$0xff] %v7252_v22  ;;  %v7117_v57 = vadd.f32 %v7116_v53, %v7068_v1  ;;  %v7168_v58 = vpop.f32.mrf.mxu1  ;;  %v6791_v48 = vpack.c.bf16 %v6759_v49, %v6755_v9  ;;  %v6756_v11 = vmul.f32 %v6692_v31, %v6244_v42  ;;  %v14589_v53 = vld [vmem:[#allocation22_spill] sm:$0xff] }
 0x9bf   : > { %v9001_v2 = vpop.eup %9000  ;;  %7148 = vmatmul.bf16.gmra.mxu0 %v6790_v3  ;;  %v6693_v19 = vadd.f32 1.0, %v8999_v23  ;;  %v14592_v3 = vld [vmem:[#allocation40_spill] sm:$0xff] }
 0x9c0   : > { %v7166_v6 = vadd.f32 %v7165_v33, %v7117_v57  ;;  %7197 = vmatmul.bf16.gmra.mxu1 %v6791_v48  ;;  %v6696_v46 = vadd.f32 1.0, %v9001_v2 }
 0x9c1   : > { %v6757_v27 = vmul.f32 %v6693_v19, %v6245_v32  ;;  %v14593_v19 = vld [vmem:[#allocation43_spill] sm:$0xff] }
 0x9c2   : > { %v7215_v16 = vadd.f32 %v7214_v4, %v7166_v6  ;;  %v6760_v43 = vmul.f32 %v6696_v46, %v6248_v30 }
 0x9c3   : > { %v7070_v26 = vpop.f32.mrf.mxu3  ;;  %v6789_v55 = vpack.c.bf16 %v6757_v27, %v6753_v56 }
 0x9c4   : > { %v7253_v40 = vadd.f32 %v7215_v16, %v14588_v25  ;;  %v7071_v34 = vadd.f32 %v14055_v28, %v7070_v26  ;;  %v7217_v35 = vpop.f32.mrf.mxu2  ;;  %v6792_v54 = vpack.c.bf16 %v6760_v43, %v6756_v11  ;;  %v14594_v26 = vld [vmem:[#allocation21_spill] sm:$0xff] }
 0x9c5   : > { %7099 = vmatmul.bf16.gmra.mxu3 %v6789_v55  ;;  %v7121_v36 = vpop.f32.mrf.mxu0 }
 0x9c6   : > { %7269 = vst [vmem:[#allocation10 + $0x8] sm:$0xff] %v7253_v40  ;;  %v7120_v18 = vadd.f32 %v7119_v37, %v7071_v34  ;;  %v7170_v50 = vpop.f32.mrf.mxu1  ;;  %7246 = vmatmul.bf16.gmra.mxu2 %v6792_v54 }
 0x9c8   : > { %v7169_v44 = vadd.f32 %v7168_v58, %v7120_v18 }
 0x9ca   : > { %v7218_v45 = vadd.f32 %v7217_v35, %v7169_v44  ;;  %v14595_v44 = vld [vmem:[#allocation51_spill] sm:$0xff] }
 0x9cb   : > { %v7072_v7 = vpop.f32.mrf.mxu3 }
 0x9cc   : > { %v7254_v52 = vadd.f32 %v7218_v45, %v14589_v53  ;;  %v7073_v38 = vadd.f32 %v14055_v28, %v7072_v7  ;;  %v7219_v33 = vpop.f32.mrf.mxu2 }
 0x9cd   : > { %v7124_v59 = vpop.f32.mrf.mxu0 }
 0x9ce   : > { %7270 = vst [vmem:[#allocation10 + $0x10] sm:$0xff] %v7254_v52  ;;  %v7122_v47 = vadd.f32 %v7121_v36, %v7073_v38  ;;  %v7173_v17 = vpop.f32.mrf.mxu1 }
 0x9d0   : > { %v7171_v62 = vadd.f32 %v7170_v50, %v7122_v47 }
 0x9d2   : > { %v7220_v0 = vadd.f32 %v7219_v33, %v7171_v62 }
 0x9d3   : > { %v7075_v8 = vpop.f32.mrf.mxu3 }
 0x9d4   : > { %v7255_v29 = vadd.f32 %v7220_v0, %v14590_v5  ;;  %v7076_v10 = vadd.f32 %v14055_v28, %v7075_v8  ;;  %v7222_v14 = vpop.f32.mrf.mxu2 }
 0x9d5   : > { %v7126_v20 = vpop.f32.mrf.mxu0 }
 0x9d6   : > { %7271 = vst [vmem:[#allocation10 + $0x18] sm:$0xff] %v7255_v29  ;;  %v7125_v61 = vadd.f32 %v7124_v59, %v7076_v10  ;;  %v7175_v21 = vpop.f32.mrf.mxu1 }
 0x9d8   : > { %v7174_v41 = vadd.f32 %v7173_v17, %v7125_v61  ;;  %v14596_v17 = vld [vmem:[#allocation48_spill] sm:$0xff] }
 0x9da   : > { %v7223_v24 = vadd.f32 %v7222_v14, %v7174_v41  ;;  %v14597_v41 = vld [vmem:[#allocation45_spill] sm:$0xff] }
 0x9db   : > { %v7077_v13 = vpop.f32.mrf.mxu3 }
 0x9dc   : > { %v7256_v12 = vadd.f32 %v7223_v24, %v14591_v15  ;;  %v7078_v51 = vadd.f32 %v14055_v28, %v7077_v13  ;;  %v7224_v1 = vpop.f32.mrf.mxu2 }
 0x9dd   : > { %v7129_v39 = vpop.f32.mrf.mxu0 }
 0x9de   : > { %7272 = vst [vmem:[#allocation10 + $0x20] sm:$0xff] %v7256_v12  ;;  %v7127_v22 = vadd.f32 %v7126_v20, %v7078_v51  ;;  %v7178_v4 = vpop.f32.mrf.mxu1 }
 0x9e0   : > { %v7176_v9 = vadd.f32 %v7175_v21, %v7127_v22  ;;  %v14598_v22 = vld [vmem:[#allocation19_spill] sm:$0xff] }
 0x9e2   : > { %v7225_v49 = vadd.f32 %v7224_v1, %v7176_v9 }
 0x9e3   : > { %v7080_v37 = vpop.f32.mrf.mxu3 }
 0x9e4   : > { %v7257_v60 = vadd.f32 %v7225_v49, %v14592_v3  ;;  %v7081_v23 = vadd.f32 %v14055_v28, %v7080_v37 }
 0x9e5   : > { %v7131_v57 = vpop.f32.mrf.mxu0 }
 0x9e6   : > { %7273 = vst [vmem:[#allocation10 + $0x28] sm:$0xff] %v7257_v60  ;;  %v7130_v58 = vadd.f32 %v7129_v39, %v7081_v23  ;;  %v7180_v48 = vpop.f32.mrf.mxu1 }
 0x9e8   : > { %v7179_v31 = vadd.f32 %v7178_v4, %v7130_v58  ;;  %v7227_v2 = vpop.f32.mrf.mxu2 }
 0x9ea   : > { %v7228_v63 = vadd.f32 %v7227_v2, %v7179_v31 }
 0x9eb   : > { %v7082_v32 = vpop.f32.mrf.mxu3 }
 0x9ec   : > { %v7258_v6 = vadd.f32 %v7228_v63, %v14593_v19  ;;  %v7083_v42 = vadd.f32 %v14055_v28, %v7082_v32 }
 0x9ed   : > { %v7134_v46 = vpop.f32.mrf.mxu0 }
 0x9ee   : > { %7274 = vst [vmem:[#allocation10 + $0x30] sm:$0xff] %v7258_v6  ;;  %v7132_v30 = vadd.f32 %v7131_v57, %v7083_v42  ;;  %v7183_v27 = vpop.f32.mrf.mxu1 }
 0x9f0   : > { %v7181_v56 = vadd.f32 %v7180_v48, %v7132_v30  ;;  %v7229_v16 = vpop.f32.mrf.mxu2  ;;  %v14599_v48 = vld [vmem:[#allocation50_spill] sm:$0xff] }
 0x9f2   : > { %v7230_v11 = vadd.f32 %v7229_v16, %v7181_v56 }
 0x9f3   : > { %v7085_v43 = vpop.f32.mrf.mxu3 }
 0x9f4   : > { %v7259_v55 = vadd.f32 %v7230_v11, %v14594_v26  ;;  %v7086_v25 = vadd.f32 %v14055_v28, %v7085_v43 }
 0x9f5   : > { %v7136_v35 = vpop.f32.mrf.mxu0 }
 0x9f6   : > { %7275 = vst [vmem:[#allocation10 + $0x38] sm:$0xff] %v7259_v55  ;;  %v7135_v40 = vadd.f32 %v7134_v46, %v7086_v25  ;;  %v7185_v18 = vpop.f32.mrf.mxu1  ;;  %v14600_v46 = vld [vmem:[#allocation47_spill] sm:$0xff] }
 0x9f8   : > { %v7184_v34 = vadd.f32 %v7183_v27, %v7135_v40  ;;  %v7232_v54 = vpop.f32.mrf.mxu2 }
 0x9fa   : > { %v7233_v36 = vadd.f32 %v7232_v54, %v7184_v34 }
 0x9fb   : > { %v7087_v50 = vpop.f32.mrf.mxu3 }
 0x9fc   : > { %v7260_v45 = vadd.f32 %v7233_v36, %v14595_v44  ;;  %v7088_v7 = vadd.f32 %v14055_v28, %v7087_v50 }
 0x9fe   : > { %7276 = vst [vmem:[#allocation10 + $0x40] sm:$0xff] %v7260_v45  ;;  %v7137_v53 = vadd.f32 %v7136_v35, %v7088_v7  ;;  %v7139_v59 = vpop.f32.mrf.mxu0  ;;  %v14602_v35 = vld [vmem:[#allocation31_spill] sm:$0xff] }
 0xa00   : > { %v7186_v52 = vadd.f32 %v7185_v18, %v7137_v53  ;;  %v7234_v38 = vpop.f32.mrf.mxu2  ;;  %v7188_v0 = vpop.f32.mrf.mxu1 }
 0xa02   : > { %v7235_v33 = vadd.f32 %v7234_v38, %v7186_v52  ;;  %v14605_v52 = vld [vmem:[#allocation23_spill] sm:$0xff] }
 0xa03   : > { %v7090_v47 = vpop.f32.mrf.mxu3 }
 0xa04   : > { %v7261_v62 = vadd.f32 %v7235_v33, %v14596_v17  ;;  %v7091_v8 = vadd.f32 %v14055_v28, %v7090_v47 }
 0xa06   : > { %7277 = vst [vmem:[#allocation10 + $0x48] sm:$0xff] %v7261_v62  ;;  %v7140_v5 = vadd.f32 %v7139_v59, %v7091_v8  ;;  %v7141_v61 = vpop.f32.mrf.mxu0 }
 0xa08   : > { %v7189_v29 = vadd.f32 %v7188_v0, %v7140_v5  ;;  %v7190_v13 = vpop.f32.mrf.mxu1 }
 0xa0a   : > { %v7237_v10 = vpop.f32.mrf.mxu2 }
 0xa0b   : > { %v7092_v14 = vpop.f32.mrf.mxu3  ;;  %v7238_v20 = vadd.f32 %v7237_v10, %v7189_v29 }
 0xa0c   : > { %v7093_v21 = vadd.f32 %v14055_v28, %v7092_v14 }
 0xa0d   : > { %v7262_v24 = vadd.f32 %v7238_v20, %v14597_v41 }
 0xa0e   : > { %v7142_v15 = vadd.f32 %v7141_v61, %v7093_v21  ;;  %v7144_v4 = vpop.f32.mrf.mxu0 }
 0xa0f   : > { %7278 = vst [vmem:[#allocation10 + $0x50] sm:$0xff] %v7262_v24 }
 0xa10   : > { %v7191_v12 = vadd.f32 %v7190_v13, %v7142_v15  ;;  %v7193_v37 = vpop.f32.mrf.mxu1 }
 0xa12   : > { %v7239_v51 = vpop.f32.mrf.mxu2 }
 0xa13   : > { %v7240_v39 = vadd.f32 %v7239_v51, %v7191_v12 }
 0xa15   : > { %v7263_v1 = vadd.f32 %v7240_v39, %v14598_v22  ;;  %v7095_v9 = vpop.f32.mrf.mxu3 }
 0xa16   : > { %v7096_v49 = vadd.f32 %v14055_v28, %v7095_v9  ;;  %v7146_v63 = vpop.f32.mrf.mxu0 }
 0xa17   : > { %7279 = vst [vmem:[#allocation10 + $0x58] sm:$0xff] %v7263_v1 }
 0xa18   : > { %v7145_v3 = vadd.f32 %v7144_v4, %v7096_v49  ;;  %v7195_v19 = vpop.f32.mrf.mxu1 }
 0xa1a   : > { %v7194_v60 = vadd.f32 %v7193_v37, %v7145_v3  ;;  %v7242_v23 = vpop.f32.mrf.mxu2 }
 0xa1c   : > { %v7243_v57 = vadd.f32 %v7242_v23, %v7194_v60 }
 0xa1d   : > { %v7097_v58 = vpop.f32.mrf.mxu3 }
 0xa1e   : > { %v7264_v31 = vadd.f32 %v7243_v57, %v14599_v48  ;;  %v7098_v2 = vadd.f32 %v14055_v28, %v7097_v58 }
 0xa20   : > { %7280 = vst [vmem:[#allocation10 + $0x60] sm:$0xff] %v7264_v31  ;;  %v7147_v32 = vadd.f32 %v7146_v63, %v7098_v2 }
 0xa22   : > { %v7196_v6 = vadd.f32 %v7195_v19, %v7147_v32  ;;  %v7244_v42 = vpop.f32.mrf.mxu2 }
 0xa24   : > { %v7245_v30 = vadd.f32 %v7244_v42, %v7196_v6 }
 0xa26   : > { %v7265_v56 = vadd.f32 %v7245_v30, %v14600_v46 }
 0xa28   : > { %7281 = vst [vmem:[#allocation10 + $0x68] sm:$0xff] %v7265_v56 }
 0xa3c   : > { %v7149_v27 = vpop.f32.mrf.mxu0 }
 0xa3d   : > { %v7198_v43 = vpop.f32.mrf.mxu1 }
 0xa44   : > { %v7151_v18 = vpop.f32.mrf.mxu0 }
 0xa45   : > { %v7200_v44 = vpop.f32.mrf.mxu1 }
 0xa48   : > { %v7100_v16 = vpop.f32.mrf.mxu3 }
 0xa49   : > { %v7101_v11 = vadd.f32 %v14055_v28, %v7100_v16  ;;  %v7247_v55 = vpop.f32.mrf.mxu2 }
 0xa4b   : > { %v7150_v26 = vadd.f32 %v7149_v27, %v7101_v11 }
 0xa4d   : > { %v7199_v25 = vadd.f32 %v7198_v43, %v7150_v26 }
 0xa4f   : > { %v7248_v40 = vadd.f32 %v7247_v55, %v7199_v25 }
 0xa50   : > { %v7102_v34 = vpop.f32.mrf.mxu3 }
 0xa51   : > { %v7266_v54 = vadd.f32 %v7248_v40, %v14602_v35  ;;  %v7103_v36 = vadd.f32 %v14055_v28, %v7102_v34  ;;  %v7249_v7 = vpop.f32.mrf.mxu2 }
 0xa53   : > { %7282 = vst [vmem:[#allocation10 + $0x70] sm:$0xff] %v7266_v54  ;;  %v7152_v50 = vadd.f32 %v7151_v18, %v7103_v36 }
 0xa55   : > { %v7201_v45 = vadd.f32 %v7200_v44, %v7152_v50 }
 0xa57   : > { %v7250_v53 = vadd.f32 %v7249_v7, %v7201_v45 }
 0xa59   : > { %v7267_v38 = vadd.f32 %v7250_v53, %v14605_v52 }
 0xa5b   : > { %7283 = vst [vmem:[#allocation10 + $0x78] sm:$0xff] %v7267_v38 }
 0xa5c   : > { %7997 = dma.vmem_to_hbm [thread:$0]  (%p8021_p10), %s7294_s22, 2048, %s7296_s3, [#allocation4], %s9225_s0, %s9225_s0, %s9226_s9  }
 0xa5d   : > { %9193 = dma.done.wait (%p8021_p10), [#allocation4], 2048  }
 0xa5e   : > { %9195 = vsyncadd (%p8021_p10), [#allocation4], 4294965248 }
 0xa5f PF: > { %s14606_s13 = sld [smem:[#allocation16_spill]]  ;;  %s14608_s26 = smov %s14610_s20 }
 0xa60   : > { %s14607_s25 = sld [smem:[#allocation15_spill]] }
 0xa65   : > { %s27_s27 = sadd.s32 1, %s14606_s13  }
 0xa66   : > { %p24_p11 = scmp.ge.s32.totalorder %s27_s27, 6  }
 0xa68   :  { %26 = sbr.rel (!%p24_p11) target bundleno = 10 (0xa), region = 131 }
 0xa6d   :  { %7312 = vsyncpa [#allocation3], 1 }
 0xa6e   :  { %7314 = vsyncpa [#allocation3 + $0x1], 1 }
 0xa6f   :  { %7315 = vsyncpa [#allocation6], 1 }
 0xa70   :  { %7316 = vsyncpa [#allocation9], 1 }
 0xa71   :  { %7317 = vsyncpa [#allocation4], 1 }
 0xa72   :  { %7319 = vsyncpa [#allocation4 + $0x1], 1 }

</bundles_post_ra>
